<compile_context>
chip_gen: v6e
topology: v6e:2x2x1
jax: 0.10.0
libtpu: 0.0.40
codegen_flags: <defaults>
</compile_context>

<pallas_src>
import jax
import jax.numpy as jnp
from jax.experimental import pallas as pl
from jax.experimental.pallas import tpu as pltpu


# ----------------------------------------------------------------------------
# Static geometry
# ----------------------------------------------------------------------------
_W0 = 16                 # row stride of the 16x16 input / front-half buffers
_L1 = 13 * _W0 + 14      # 222: conv1 output slab length (14x14 valid @ stride 16)
_L2 = 11 * _W0 + 12      # 188: conv2 output slab length (12x12 valid @ stride 16)
_WP = 5                  # row stride of the 5x5 zero-padded back-half images
_LP = 2 * _WP + 3        # 13:  slab length of the 3x3 "same" convs (3x3 valid)


# ----------------------------------------------------------------------------
# Fused forward kernel (one grid step == one batch element)
# ----------------------------------------------------------------------------
def _fused_forward_kernel(
    x_ref,                       # (1, 256, 1)   input image, row-major pixels
    w1_ref, a1_ref,              # conv1 (9,1,8),  affine (3,8)  = [bias, scale, shift]
    w2_ref, a2_ref,              # conv2 (9,8,12), affine (3,12)
    w3_ref, b3_ref,              # conv3 (12,6),   bias (1,6)
    w4_ref, a4_ref,              # conv4 (9,6,12)
    w5_ref, a5_ref,              # conv5 (9,12,16)
    w6_ref, a6_ref,              # conv6 (9,16,14)
    w7_ref, a7_ref,              # conv7 (9,14,12)
    w8_ref, b8_ref,              # conv8 (12,10),  bias (1,10)
    o_ref,                       # (1, 1, 10)    log-probs
    buf1, buf2, buf3, p4, p5, p6, p7,   # VMEM scratch
):
    f32 = jnp.float32

    def relu_bn(z, aff_ref):
        # z = conv accumulation (no bias yet).  PyTorch order: bn(relu(conv + b)).
        bias = aff_ref[0:1, :]
        scale = aff_ref[1:2, :]
        shift = aff_ref[2:3, :]
        return jnp.maximum(z + bias, 0.0) * scale + shift

    # ---- conv1: 16x16x1 -> 14x14x8 (valid), stored at row stride 16 ----------
    acc = jnp.zeros((_L1, 8), f32)
    for kh in range(3):
        for kw in range(3):
            col = x_ref[0, pl.ds(kh * _W0 + kw, _L1), :]          # (222, 1)
            acc = acc + col * w1_ref[3 * kh + kw]                  # bcast (1, 8)
    buf1[0:_L1, :] = relu_bn(acc, a1_ref)

    # ---- conv2: 14x14x8 -> 12x12x12 (valid), row stride 16 -------------------
    acc = jnp.zeros((_L2, 12), f32)
    for kh in range(3):
        for kw in range(3):
            s = kh * _W0 + kw
            acc = acc + jnp.dot(buf1[s:s + _L2, :], w2_ref[3 * kh + kw],
                                preferred_element_type=f32)
    buf2[0:_L2, :] = relu_bn(acc, a2_ref)

    # ---- pool1 (2x2) + conv3 (1x1): 12x12x12 -> 6x6x6, row stride 6 ----------
    w3v = w3_ref[...]
    b3v = b3_ref[...]
    for oh in range(6):
        top = 2 * oh * _W0
        bot = top + _W0
        t00 = buf2[pl.ds(top, 6, 2), :]
        t01 = buf2[pl.ds(top + 1, 6, 2), :]
        t10 = buf2[pl.ds(bot, 6, 2), :]
        t11 = buf2[pl.ds(bot + 1, 6, 2), :]
        m = jnp.maximum(jnp.maximum(t00, t01), jnp.maximum(t10, t11))   # (6, 12)
        buf3[oh * 6:(oh + 1) * 6, :] = (
            jnp.dot(m, w3v, preferred_element_type=f32) + b3v)

    # ---- zero the 5x5 padded images of the back half -------------------------
    p4[...] = jnp.zeros_like(p4)
    p5[...] = jnp.zeros_like(p5)
    p6[...] = jnp.zeros_like(p6)
    p7[...] = jnp.zeros_like(p7)

    # ---- pool2 (2x2): 6x6x6 -> 3x3x6, written into the interior of p4 --------
    for oh in range(3):
        top = 2 * oh * 6
        bot = top + 6
        t00 = buf3[pl.ds(top, 3, 2), :]
        t01 = buf3[pl.ds(top + 1, 3, 2), :]
        t10 = buf3[pl.ds(bot, 3, 2), :]
        t11 = buf3[pl.ds(bot + 1, 3, 2), :]
        m = jnp.maximum(jnp.maximum(t00, t01), jnp.maximum(t10, t11))   # (3, 6)
        r = (oh + 1) * _WP + 1
        p4[r:r + 3, :] = m

    # ---- conv4..conv7: 3x3 "same" conv on the 5x5 zero-padded image ----------
    def conv_same(src_ref, w_ref, aff_ref, cout, dst_ref):
        acc = jnp.zeros((_LP, cout), f32)
        for kh in range(3):
            for kw in range(3):
                s = kh * _WP + kw
                acc = acc + jnp.dot(src_ref[s:s + _LP, :], w_ref[3 * kh + kw],
                                    preferred_element_type=f32)
        z = relu_bn(acc, aff_ref)
        if dst_ref is None:
            return z
        for oh in range(3):                    # write only the interior rows so
            r = (oh + 1) * _WP + 1             # the zero border stays intact
            dst_ref[r:r + 3, :] = z[oh * _WP:oh * _WP + 3, :]
        return None

    conv_same(p4, w4_ref, a4_ref, 12, p5)
    conv_same(p5, w5_ref, a5_ref, 16, p6)
    conv_same(p6, w6_ref, a6_ref, 14, p7)
    z7 = conv_same(p7, w7_ref, a7_ref, 12, None)          # (13, 12) slab

    # ---- conv8 (1x1) + global avg pool + log_softmax -------------------------
    z8 = jnp.dot(z7, w8_ref[...], preferred_element_type=f32) + b8_ref[...]  # (13, 10)
    s9 = z8[0:3, :] + z8[_WP:_WP + 3, :] + z8[2 * _WP:2 * _WP + 3, :]        # (3, 10)
    mean = jnp.sum(s9, axis=0, keepdims=True) * (1.0 / 9.0)                  # (1, 10)
    mx = jnp.max(mean, axis=-1, keepdims=True)
    lse = jnp.log(jnp.sum(jnp.exp(mean - mx), axis=-1, keepdims=True)) + mx
    o_ref[...] = (mean - lse).reshape(1, 1, 10)


# ----------------------------------------------------------------------------
# Parameter preparation (one-time, outside the jitted forward)
# ----------------------------------------------------------------------------
def _prep_conv3x3(w):
    # PyTorch (Cout, Cin, 3, 3) -> (9, Cin, Cout), tap index t = 3*kh + kw
    cout, cin = w.shape[0], w.shape[1]
    return jnp.transpose(w, (2, 3, 1, 0)).reshape(9, cin, cout)


def _prep_conv1x1(w):
    # (Cout, Cin, 1, 1) -> (Cin, Cout)
    return jnp.transpose(w[:, :, 0, 0], (1, 0))


def _prep_aff(bias, scale, shift):
    return jnp.stack([bias, scale, shift], axis=0)        # (3, C)


def prepare_params(params):
    w1, b1 = params["conv1"]; s1, t1 = params["bn1"]
    w2, b2 = params["conv2"]; s2, t2 = params["bn2"]
    w3, b3 = params["conv3"]
    w4, b4 = params["conv4"]; s4, t4 = params["bn4"]
    w5, b5 = params["conv5"]; s5, t5 = params["bn5"]
    w6, b6 = params["conv6"]; s6, t6 = params["bn6"]
    w7, b7 = params["conv7"]; s7, t7 = params["bn7"]
    w8, b8 = params["conv8"]
    return (
        _prep_conv3x3(w1), _prep_aff(b1, s1, t1),
        _prep_conv3x3(w2), _prep_aff(b2, s2, t2),
        _prep_conv1x1(w3), b3.reshape(1, -1),
        _prep_conv3x3(w4), _prep_aff(b4, s4, t4),
        _prep_conv3x3(w5), _prep_aff(b5, s5, t5),
        _prep_conv3x3(w6), _prep_aff(b6, s6, t6),
        _prep_conv3x3(w7), _prep_aff(b7, s7, t7),
        _prep_conv1x1(w8), b8.reshape(1, -1),
    )


# ----------------------------------------------------------------------------
# Forward: ONE pallas_call for the whole network
# ----------------------------------------------------------------------------
def forward(prepped, x_nchw):
    # TODO(synk): Dropout2d is identity (eval mode); train-mode stochastic channel
    # dropout and batch-statistic BatchNorm are not reproduced.
    n = x_nchw.shape[0]
    x_rows = x_nchw.astype(jnp.float32).reshape(n, 256, 1)   # row-major pixels

    in_specs = [pl.BlockSpec((1, 256, 1), lambda i: (i, 0, 0))]
    for wop in prepped:
        nd = wop.ndim
        in_specs.append(pl.BlockSpec(wop.shape, lambda i, _z=(0,) * nd: _z))

    out = pl.pallas_call(
        _fused_forward_kernel,
        out_shape=jax.ShapeDtypeStruct((n, 1, 10), jnp.float32),
        grid=(n,),
        in_specs=in_specs,
        out_specs=pl.BlockSpec((1, 1, 10), lambda i: (i, 0, 0)),
        scratch_shapes=[
            pltpu.VMEM((224, 8), jnp.float32),    # buf1: conv1 out (14x14x8 @ stride 16)
            pltpu.VMEM((192, 12), jnp.float32),   # buf2: conv2 out (12x12x12 @ stride 16)
            pltpu.VMEM((36, 6), jnp.float32),     # buf3: pool1+conv3 out (6x6x6 @ stride 6)
            pltpu.VMEM((25, 6), jnp.float32),     # p4: padded 5x5x6
            pltpu.VMEM((25, 12), jnp.float32),    # p5: padded 5x5x12
            pltpu.VMEM((25, 16), jnp.float32),    # p6: padded 5x5x16
            pltpu.VMEM((25, 14), jnp.float32),    # p7: padded 5x5x14
        ],
        compiler_params=pltpu.CompilerParams(
            dimension_semantics=("parallel",)),   # batch split across TCs on v7x
    )(x_rows, *prepped)
    return out.reshape(n, 10)


# ----------------------------------------------------------------------------
# Deterministic parameter init (shapes from Model_1.__init__)
# ----------------------------------------------------------------------------
def init_params(key):
    def conv(k, cout, cin, ks):
        kw, kb = jax.random.split(k)
        w = jax.random.normal(kw, (cout, cin, ks, ks), jnp.float32) * 0.1
        b = jax.random.normal(kb, (cout,), jnp.float32) * 0.05
        return w, b

    def bn(k, c, eps=1e-5):
        k1, k2, k3, k4 = jax.random.split(k, 4)
        gamma = 1.0 + 0.1 * jax.random.normal(k1, (c,), jnp.float32)
        beta = 0.1 * jax.random.normal(k2, (c,), jnp.float32)
        mean = 0.05 * jax.random.normal(k3, (c,), jnp.float32)
        var = 1.0 + 0.1 * jnp.abs(jax.random.normal(k4, (c,), jnp.float32))
        scale = gamma / jnp.sqrt(var + eps)
        shift = beta - mean * scale
        return scale, shift

    ks = jax.random.split(key, 14)
    p = {}
    p["conv1"] = conv(ks[0], 8, 1, 3);    p["bn1"] = bn(ks[1], 8)
    p["conv2"] = conv(ks[2], 12, 8, 3);   p["bn2"] = bn(ks[3], 12)
    p["conv3"] = conv(ks[4], 6, 12, 1)
    p["conv4"] = conv(ks[5], 12, 6, 3);   p["bn4"] = bn(ks[6], 12)
    p["conv5"] = conv(ks[7], 16, 12, 3);  p["bn5"] = bn(ks[8], 16)
    p["conv6"] = conv(ks[9], 14, 16, 3);  p["bn6"] = bn(ks[10], 14)
    p["conv7"] = conv(ks[11], 12, 14, 3); p["bn7"] = bn(ks[12], 12)
    p["conv8"] = conv(ks[13], 10, 12, 1)
    return p


# ----------------------------------------------------------------------------
# Pure-JAX reference (eval-mode Model_1) for a correctness check
# ----------------------------------------------------------------------------
def _ref_forward(params, x):
    def conv(x, w, b, pad):
        y = jax.lax.conv_general_dilated(
            x, w, window_strides=(1, 1), padding=[(pad, pad), (pad, pad)],
            dimension_numbers=("NCHW", "OIHW", "NCHW"))
        return y + b.reshape(1, -1, 1, 1)

    def bn(x, sc, sh):
        return x * sc.reshape(1, -1, 1, 1) + sh.reshape(1, -1, 1, 1)

    def pool(x):
        return jax.lax.reduce_window(x, -jnp.inf, jax.lax.max,
                                     (1, 1, 2, 2), (1, 1, 2, 2), "VALID")

    w, b = params["conv1"]; s, t = params["bn1"]; x = bn(jax.nn.relu(conv(x, w, b, 0)), s, t)
    w, b = params["conv2"]; s, t = params["bn2"]; x = bn(jax.nn.relu(conv(x, w, b, 0)), s, t)
    x = pool(x)
    w, b = params["conv3"]; x = conv(x, w, b, 0)
    x = pool(x)
    w, b = params["conv4"]; s, t = params["bn4"]; x = bn(jax.nn.relu(conv(x, w, b, 1)), s, t)
    w, b = params["conv5"]; s, t = params["bn5"]; x = bn(jax.nn.relu(conv(x, w, b, 1)), s, t)
    w, b = params["conv6"]; s, t = params["bn6"]; x = bn(jax.nn.relu(conv(x, w, b, 1)), s, t)
    w, b = params["conv7"]; s, t = params["bn7"]; x = bn(jax.nn.relu(conv(x, w, b, 1)), s, t)
    w, b = params["conv8"]; x = conv(x, w, b, 0)
    x = jnp.mean(x, axis=(2, 3))
    return jax.nn.log_softmax(x, axis=-1)


if __name__ == "__main__":
    key = jax.random.PRNGKey(0)
    kx, kp = jax.random.split(key)
    params = init_params(kp)
    prepped = prepare_params(params)
    x = jax.random.normal(kx, (2, 1, 16, 16), jnp.float32)   # NCHW like PyTorch

    fwd = jax.jit(forward)
    out = jax.block_until_ready(fwd(prepped, x))

    assert out.shape == (2, 10), out.shape
    assert bool(jnp.all(jnp.isfinite(out)))
    # log_softmax rows must sum (in prob space) to ~1
    assert bool(jnp.allclose(jnp.sum(jnp.exp(out), axis=-1), 1.0, atol=1e-4))
    # parity with a plain-JAX eval-mode reference of Model_1
    ref = _ref_forward(params, x)
    assert bool(jnp.allclose(out, ref, atol=1e-3, rtol=1e-3)), (
        float(jnp.max(jnp.abs(out - ref))))
    print("KERNEL_OK")
</pallas_src>

<mosaic_0001>
module attributes {stable_mosaic.version = 11 : i64} {
  func.func @_fused_forward_kernel(%arg0: i32, %arg1: memref<1x256x1xf32, #tpu.memory_space<vmem>>, %arg2: memref<9x1x8xf32, #tpu.memory_space<vmem>>, %arg3: memref<3x8xf32, #tpu.memory_space<vmem>>, %arg4: memref<9x8x12xf32, #tpu.memory_space<vmem>>, %arg5: memref<3x12xf32, #tpu.memory_space<vmem>>, %arg6: memref<12x6xf32, #tpu.memory_space<vmem>>, %arg7: memref<1x6xf32, #tpu.memory_space<vmem>>, %arg8: memref<9x6x12xf32, #tpu.memory_space<vmem>>, %arg9: memref<3x12xf32, #tpu.memory_space<vmem>>, %arg10: memref<9x12x16xf32, #tpu.memory_space<vmem>>, %arg11: memref<3x16xf32, #tpu.memory_space<vmem>>, %arg12: memref<9x16x14xf32, #tpu.memory_space<vmem>>, %arg13: memref<3x14xf32, #tpu.memory_space<vmem>>, %arg14: memref<9x14x12xf32, #tpu.memory_space<vmem>>, %arg15: memref<3x12xf32, #tpu.memory_space<vmem>>, %arg16: memref<12x10xf32, #tpu.memory_space<vmem>>, %arg17: memref<1x10xf32, #tpu.memory_space<vmem>>, %arg18: memref<1x1x10xf32, #tpu.memory_space<vmem>>, %arg19: memref<224x8xf32, #tpu.memory_space<vmem>>, %arg20: memref<192x12xf32, #tpu.memory_space<vmem>>, %arg21: memref<36x6xf32, #tpu.memory_space<vmem>>, %arg22: memref<25x6xf32, #tpu.memory_space<vmem>>, %arg23: memref<25x12xf32, #tpu.memory_space<vmem>>, %arg24: memref<25x16xf32, #tpu.memory_space<vmem>>, %arg25: memref<25x14xf32, #tpu.memory_space<vmem>>) attributes {dimension_semantics = [#tpu.dimension_semantics<parallel>], iteration_bounds = array<i64: 2>, scalar_prefetch = 0 : i64, scratch_operands = 7 : i64, tpu.core_type = #tpu.core_type<tc>, window_params = [{transform_indices = @transform_0, window_bounds = array<i64: 1, 256, 1>}, {pipeline_mode = #tpu.pipeline_mode<synchronous>, transform_indices = @transform_1, window_bounds = array<i64: 9, 1, 8>}, {pipeline_mode = #tpu.pipeline_mode<synchronous>, transform_indices = @transform_2, window_bounds = array<i64: 3, 8>}, {pipeline_mode = #tpu.pipeline_mode<synchronous>, transform_indices = @transform_3, window_bounds = array<i64: 9, 8, 12>}, {pipeline_mode = #tpu.pipeline_mode<synchronous>, transform_indices = @transform_4, window_bounds = array<i64: 3, 12>}, {pipeline_mode = #tpu.pipeline_mode<synchronous>, transform_indices = @transform_5, window_bounds = array<i64: 12, 6>}, {pipeline_mode = #tpu.pipeline_mode<synchronous>, transform_indices = @transform_6, window_bounds = array<i64: 1, 6>}, {pipeline_mode = #tpu.pipeline_mode<synchronous>, transform_indices = @transform_7, window_bounds = array<i64: 9, 6, 12>}, {pipeline_mode = #tpu.pipeline_mode<synchronous>, transform_indices = @transform_8, window_bounds = array<i64: 3, 12>}, {pipeline_mode = #tpu.pipeline_mode<synchronous>, transform_indices = @transform_9, window_bounds = array<i64: 9, 12, 16>}, {pipeline_mode = #tpu.pipeline_mode<synchronous>, transform_indices = @transform_10, window_bounds = array<i64: 3, 16>}, {pipeline_mode = #tpu.pipeline_mode<synchronous>, transform_indices = @transform_11, window_bounds = array<i64: 9, 16, 14>}, {pipeline_mode = #tpu.pipeline_mode<synchronous>, transform_indices = @transform_12, window_bounds = array<i64: 3, 14>}, {pipeline_mode = #tpu.pipeline_mode<synchronous>, transform_indices = @transform_13, window_bounds = array<i64: 9, 14, 12>}, {pipeline_mode = #tpu.pipeline_mode<synchronous>, transform_indices = @transform_14, window_bounds = array<i64: 3, 12>}, {pipeline_mode = #tpu.pipeline_mode<synchronous>, transform_indices = @transform_15, window_bounds = array<i64: 12, 10>}, {pipeline_mode = #tpu.pipeline_mode<synchronous>, transform_indices = @transform_16, window_bounds = array<i64: 1, 10>}, {transform_indices = @transform_17, window_bounds = array<i64: 1, 1, 10>}]} {
    %cst = arith.constant 0.000000e+00 : f32
    %0 = vector.broadcast %cst : f32 to vector<222x8xf32>
    %c0 = arith.constant 0 : index
    %c0_0 = arith.constant 0 : index
    %c0_1 = arith.constant 0 : index
    %1 = vector.load %arg1[%c0, %c0_0, %c0_1] : memref<1x256x1xf32, #tpu.memory_space<vmem>>, vector<1x222x1xf32>
    %2 = vector.shape_cast %1 : vector<1x222x1xf32> to vector<222x1xf32>
    %c0_2 = arith.constant 0 : index
    %c0_3 = arith.constant 0 : index
    %c0_4 = arith.constant 0 : index
    %3 = vector.load %arg2[%c0_2, %c0_3, %c0_4] : memref<9x1x8xf32, #tpu.memory_space<vmem>>, vector<1x1x8xf32>
    %4 = vector.shape_cast %3 : vector<1x1x8xf32> to vector<1x8xf32>
    %5 = vector.broadcast %2 : vector<222x1xf32> to vector<222x8xf32>
    %6 = vector.broadcast %4 : vector<1x8xf32> to vector<222x8xf32>
    %7 = arith.mulf %5, %6 : vector<222x8xf32>
    %8 = arith.addf %0, %7 : vector<222x8xf32>
    %c0_5 = arith.constant 0 : index
    %c1 = arith.constant 1 : index
    %c0_6 = arith.constant 0 : index
    %9 = vector.load %arg1[%c0_5, %c1, %c0_6] : memref<1x256x1xf32, #tpu.memory_space<vmem>>, vector<1x222x1xf32>
    %10 = vector.shape_cast %9 : vector<1x222x1xf32> to vector<222x1xf32>
    %c1_7 = arith.constant 1 : index
    %c0_8 = arith.constant 0 : index
    %c0_9 = arith.constant 0 : index
    %11 = vector.load %arg2[%c1_7, %c0_8, %c0_9] : memref<9x1x8xf32, #tpu.memory_space<vmem>>, vector<1x1x8xf32>
    %12 = vector.shape_cast %11 : vector<1x1x8xf32> to vector<1x8xf32>
    %13 = vector.broadcast %10 : vector<222x1xf32> to vector<222x8xf32>
    %14 = vector.broadcast %12 : vector<1x8xf32> to vector<222x8xf32>
    %15 = arith.mulf %13, %14 : vector<222x8xf32>
    %16 = arith.addf %8, %15 : vector<222x8xf32>
    %c0_10 = arith.constant 0 : index
    %c2 = arith.constant 2 : index
    %c0_11 = arith.constant 0 : index
    %17 = vector.load %arg1[%c0_10, %c2, %c0_11] : memref<1x256x1xf32, #tpu.memory_space<vmem>>, vector<1x222x1xf32>
    %18 = vector.shape_cast %17 : vector<1x222x1xf32> to vector<222x1xf32>
    %c2_12 = arith.constant 2 : index
    %c0_13 = arith.constant 0 : index
    %c0_14 = arith.constant 0 : index
    %19 = vector.load %arg2[%c2_12, %c0_13, %c0_14] : memref<9x1x8xf32, #tpu.memory_space<vmem>>, vector<1x1x8xf32>
    %20 = vector.shape_cast %19 : vector<1x1x8xf32> to vector<1x8xf32>
    %21 = vector.broadcast %18 : vector<222x1xf32> to vector<222x8xf32>
    %22 = vector.broadcast %20 : vector<1x8xf32> to vector<222x8xf32>
    %23 = arith.mulf %21, %22 : vector<222x8xf32>
    %24 = arith.addf %16, %23 : vector<222x8xf32>
    %c0_15 = arith.constant 0 : index
    %c16 = arith.constant 16 : index
    %c0_16 = arith.constant 0 : index
    %25 = vector.load %arg1[%c0_15, %c16, %c0_16] : memref<1x256x1xf32, #tpu.memory_space<vmem>>, vector<1x222x1xf32>
    %26 = vector.shape_cast %25 : vector<1x222x1xf32> to vector<222x1xf32>
    %c3 = arith.constant 3 : index
    %c0_17 = arith.constant 0 : index
    %c0_18 = arith.constant 0 : index
    %27 = vector.load %arg2[%c3, %c0_17, %c0_18] : memref<9x1x8xf32, #tpu.memory_space<vmem>>, vector<1x1x8xf32>
    %28 = vector.shape_cast %27 : vector<1x1x8xf32> to vector<1x8xf32>
    %29 = vector.broadcast %26 : vector<222x1xf32> to vector<222x8xf32>
    %30 = vector.broadcast %28 : vector<1x8xf32> to vector<222x8xf32>
    %31 = arith.mulf %29, %30 : vector<222x8xf32>
    %32 = arith.addf %24, %31 : vector<222x8xf32>
    %c0_19 = arith.constant 0 : index
    %c17 = arith.constant 17 : index
    %c0_20 = arith.constant 0 : index
    %33 = vector.load %arg1[%c0_19, %c17, %c0_20] : memref<1x256x1xf32, #tpu.memory_space<vmem>>, vector<1x222x1xf32>
    %34 = vector.shape_cast %33 : vector<1x222x1xf32> to vector<222x1xf32>
    %c4 = arith.constant 4 : index
    %c0_21 = arith.constant 0 : index
    %c0_22 = arith.constant 0 : index
    %35 = vector.load %arg2[%c4, %c0_21, %c0_22] : memref<9x1x8xf32, #tpu.memory_space<vmem>>, vector<1x1x8xf32>
    %36 = vector.shape_cast %35 : vector<1x1x8xf32> to vector<1x8xf32>
    %37 = vector.broadcast %34 : vector<222x1xf32> to vector<222x8xf32>
    %38 = vector.broadcast %36 : vector<1x8xf32> to vector<222x8xf32>
    %39 = arith.mulf %37, %38 : vector<222x8xf32>
    %40 = arith.addf %32, %39 : vector<222x8xf32>
    %c0_23 = arith.constant 0 : index
    %c18 = arith.constant 18 : index
    %c0_24 = arith.constant 0 : index
    %41 = vector.load %arg1[%c0_23, %c18, %c0_24] : memref<1x256x1xf32, #tpu.memory_space<vmem>>, vector<1x222x1xf32>
    %42 = vector.shape_cast %41 : vector<1x222x1xf32> to vector<222x1xf32>
    %c5 = arith.constant 5 : index
    %c0_25 = arith.constant 0 : index
    %c0_26 = arith.constant 0 : index
    %43 = vector.load %arg2[%c5, %c0_25, %c0_26] : memref<9x1x8xf32, #tpu.memory_space<vmem>>, vector<1x1x8xf32>
    %44 = vector.shape_cast %43 : vector<1x1x8xf32> to vector<1x8xf32>
    %45 = vector.broadcast %42 : vector<222x1xf32> to vector<222x8xf32>
    %46 = vector.broadcast %44 : vector<1x8xf32> to vector<222x8xf32>
    %47 = arith.mulf %45, %46 : vector<222x8xf32>
    %48 = arith.addf %40, %47 : vector<222x8xf32>
    %c0_27 = arith.constant 0 : index
    %c32 = arith.constant 32 : index
    %c0_28 = arith.constant 0 : index
    %49 = vector.load %arg1[%c0_27, %c32, %c0_28] : memref<1x256x1xf32, #tpu.memory_space<vmem>>, vector<1x222x1xf32>
    %50 = vector.shape_cast %49 : vector<1x222x1xf32> to vector<222x1xf32>
    %c6 = arith.constant 6 : index
    %c0_29 = arith.constant 0 : index
    %c0_30 = arith.constant 0 : index
    %51 = vector.load %arg2[%c6, %c0_29, %c0_30] : memref<9x1x8xf32, #tpu.memory_space<vmem>>, vector<1x1x8xf32>
    %52 = vector.shape_cast %51 : vector<1x1x8xf32> to vector<1x8xf32>
    %53 = vector.broadcast %50 : vector<222x1xf32> to vector<222x8xf32>
    %54 = vector.broadcast %52 : vector<1x8xf32> to vector<222x8xf32>
    %55 = arith.mulf %53, %54 : vector<222x8xf32>
    %56 = arith.addf %48, %55 : vector<222x8xf32>
    %c0_31 = arith.constant 0 : index
    %c33 = arith.constant 33 : index
    %c0_32 = arith.constant 0 : index
    %57 = vector.load %arg1[%c0_31, %c33, %c0_32] : memref<1x256x1xf32, #tpu.memory_space<vmem>>, vector<1x222x1xf32>
    %58 = vector.shape_cast %57 : vector<1x222x1xf32> to vector<222x1xf32>
    %c7 = arith.constant 7 : index
    %c0_33 = arith.constant 0 : index
    %c0_34 = arith.constant 0 : index
    %59 = vector.load %arg2[%c7, %c0_33, %c0_34] : memref<9x1x8xf32, #tpu.memory_space<vmem>>, vector<1x1x8xf32>
    %60 = vector.shape_cast %59 : vector<1x1x8xf32> to vector<1x8xf32>
    %61 = vector.broadcast %58 : vector<222x1xf32> to vector<222x8xf32>
    %62 = vector.broadcast %60 : vector<1x8xf32> to vector<222x8xf32>
    %63 = arith.mulf %61, %62 : vector<222x8xf32>
    %64 = arith.addf %56, %63 : vector<222x8xf32>
    %c0_35 = arith.constant 0 : index
    %c34 = arith.constant 34 : index
    %c0_36 = arith.constant 0 : index
    %65 = vector.load %arg1[%c0_35, %c34, %c0_36] : memref<1x256x1xf32, #tpu.memory_space<vmem>>, vector<1x222x1xf32>
    %66 = vector.shape_cast %65 : vector<1x222x1xf32> to vector<222x1xf32>
    %c8 = arith.constant 8 : index
    %c0_37 = arith.constant 0 : index
    %c0_38 = arith.constant 0 : index
    %67 = vector.load %arg2[%c8, %c0_37, %c0_38] : memref<9x1x8xf32, #tpu.memory_space<vmem>>, vector<1x1x8xf32>
    %68 = vector.shape_cast %67 : vector<1x1x8xf32> to vector<1x8xf32>
    %69 = vector.broadcast %66 : vector<222x1xf32> to vector<222x8xf32>
    %70 = vector.broadcast %68 : vector<1x8xf32> to vector<222x8xf32>
    %71 = arith.mulf %69, %70 : vector<222x8xf32>
    %72 = arith.addf %64, %71 : vector<222x8xf32>
    %c0_39 = arith.constant 0 : index
    %c0_40 = arith.constant 0 : index
    %73 = vector.load %arg3[%c0_39, %c0_40] : memref<3x8xf32, #tpu.memory_space<vmem>>, vector<1x8xf32>
    %c1_41 = arith.constant 1 : index
    %c0_42 = arith.constant 0 : index
    %74 = vector.load %arg3[%c1_41, %c0_42] : memref<3x8xf32, #tpu.memory_space<vmem>>, vector<1x8xf32>
    %c2_43 = arith.constant 2 : index
    %c0_44 = arith.constant 0 : index
    %75 = vector.load %arg3[%c2_43, %c0_44] : memref<3x8xf32, #tpu.memory_space<vmem>>, vector<1x8xf32>
    %76 = vector.broadcast %73 : vector<1x8xf32> to vector<222x8xf32>
    %77 = arith.addf %72, %76 : vector<222x8xf32>
    %cst_45 = arith.constant 0.000000e+00 : f32
    %78 = vector.broadcast %cst_45 : f32 to vector<222x8xf32>
    %79 = arith.maximumf %77, %78 : vector<222x8xf32>
    %80 = vector.broadcast %74 : vector<1x8xf32> to vector<222x8xf32>
    %81 = arith.mulf %79, %80 : vector<222x8xf32>
    %82 = vector.broadcast %75 : vector<1x8xf32> to vector<222x8xf32>
    %83 = arith.addf %81, %82 : vector<222x8xf32>
    %c0_46 = arith.constant 0 : index
    %c0_47 = arith.constant 0 : index
    %84 = vector.load %arg19[%c0_46, %c0_47] : memref<224x8xf32, #tpu.memory_space<vmem>>, vector<222x8xf32>
    tpu.vector_store %arg19[%c0_46, %c0_47], %83 {strides = array<i32>} : memref<224x8xf32, #tpu.memory_space<vmem>>, vector<222x8xf32>,
    %cst_48 = arith.constant 0.000000e+00 : f32
    %85 = vector.broadcast %cst_48 : f32 to vector<188x12xf32>
    %c0_49 = arith.constant 0 : index
    %c0_50 = arith.constant 0 : index
    %86 = vector.load %arg19[%c0_49, %c0_50] : memref<224x8xf32, #tpu.memory_space<vmem>>, vector<188x8xf32>
    %c0_51 = arith.constant 0 : index
    %c0_52 = arith.constant 0 : index
    %c0_53 = arith.constant 0 : index
    %87 = vector.load %arg4[%c0_51, %c0_52, %c0_53] : memref<9x8x12xf32, #tpu.memory_space<vmem>>, vector<1x8x12xf32>
    %88 = vector.shape_cast %87 : vector<1x8x12xf32> to vector<8x12xf32>
    %cst_54 = arith.constant dense<0.000000e+00> : vector<188x12xf32>
    %89 = tpu.matmul %86, %88, %cst_54 {dimension_numbers = #tpu.dot_dimension_numbers<[1], [0], [0], [1], [0, 0, 1, 1], [], []>} : vector<188x8xf32>, vector<8x12xf32>, vector<188x12xf32> -> vector<188x12xf32>
    %90 = arith.addf %85, %89 : vector<188x12xf32>
    %c1_55 = arith.constant 1 : index
    %c0_56 = arith.constant 0 : index
    %91 = vector.load %arg19[%c1_55, %c0_56] : memref<224x8xf32, #tpu.memory_space<vmem>>, vector<188x8xf32>
    %c1_57 = arith.constant 1 : index
    %c0_58 = arith.constant 0 : index
    %c0_59 = arith.constant 0 : index
    %92 = vector.load %arg4[%c1_57, %c0_58, %c0_59] : memref<9x8x12xf32, #tpu.memory_space<vmem>>, vector<1x8x12xf32>
    %93 = vector.shape_cast %92 : vector<1x8x12xf32> to vector<8x12xf32>
    %cst_60 = arith.constant dense<0.000000e+00> : vector<188x12xf32>
    %94 = tpu.matmul %91, %93, %cst_60 {dimension_numbers = #tpu.dot_dimension_numbers<[1], [0], [0], [1], [0, 0, 1, 1], [], []>} : vector<188x8xf32>, vector<8x12xf32>, vector<188x12xf32> -> vector<188x12xf32>
    %95 = arith.addf %90, %94 : vector<188x12xf32>
    %c2_61 = arith.constant 2 : index
    %c0_62 = arith.constant 0 : index
    %96 = vector.load %arg19[%c2_61, %c0_62] : memref<224x8xf32, #tpu.memory_space<vmem>>, vector<188x8xf32>
    %c2_63 = arith.constant 2 : index
    %c0_64 = arith.constant 0 : index
    %c0_65 = arith.constant 0 : index
    %97 = vector.load %arg4[%c2_63, %c0_64, %c0_65] : memref<9x8x12xf32, #tpu.memory_space<vmem>>, vector<1x8x12xf32>
    %98 = vector.shape_cast %97 : vector<1x8x12xf32> to vector<8x12xf32>
    %cst_66 = arith.constant dense<0.000000e+00> : vector<188x12xf32>
    %99 = tpu.matmul %96, %98, %cst_66 {dimension_numbers = #tpu.dot_dimension_numbers<[1], [0], [0], [1], [0, 0, 1, 1], [], []>} : vector<188x8xf32>, vector<8x12xf32>, vector<188x12xf32> -> vector<188x12xf32>
    %100 = arith.addf %95, %99 : vector<188x12xf32>
    %c16_67 = arith.constant 16 : index
    %c0_68 = arith.constant 0 : index
    %101 = vector.load %arg19[%c16_67, %c0_68] : memref<224x8xf32, #tpu.memory_space<vmem>>, vector<188x8xf32>
    %c3_69 = arith.constant 3 : index
    %c0_70 = arith.constant 0 : index
    %c0_71 = arith.constant 0 : index
    %102 = vector.load %arg4[%c3_69, %c0_70, %c0_71] : memref<9x8x12xf32, #tpu.memory_space<vmem>>, vector<1x8x12xf32>
    %103 = vector.shape_cast %102 : vector<1x8x12xf32> to vector<8x12xf32>
    %cst_72 = arith.constant dense<0.000000e+00> : vector<188x12xf32>
    %104 = tpu.matmul %101, %103, %cst_72 {dimension_numbers = #tpu.dot_dimension_numbers<[1], [0], [0], [1], [0, 0, 1, 1], [], []>} : vector<188x8xf32>, vector<8x12xf32>, vector<188x12xf32> -> vector<188x12xf32>
    %105 = arith.addf %100, %104 : vector<188x12xf32>
    %c17_73 = arith.constant 17 : index
    %c0_74 = arith.constant 0 : index
    %106 = vector.load %arg19[%c17_73, %c0_74] : memref<224x8xf32, #tpu.memory_space<vmem>>, vector<188x8xf32>
    %c4_75 = arith.constant 4 : index
    %c0_76 = arith.constant 0 : index
    %c0_77 = arith.constant 0 : index
    %107 = vector.load %arg4[%c4_75, %c0_76, %c0_77] : memref<9x8x12xf32, #tpu.memory_space<vmem>>, vector<1x8x12xf32>
    %108 = vector.shape_cast %107 : vector<1x8x12xf32> to vector<8x12xf32>
    %cst_78 = arith.constant dense<0.000000e+00> : vector<188x12xf32>
    %109 = tpu.matmul %106, %108, %cst_78 {dimension_numbers = #tpu.dot_dimension_numbers<[1], [0], [0], [1], [0, 0, 1, 1], [], []>} : vector<188x8xf32>, vector<8x12xf32>, vector<188x12xf32> -> vector<188x12xf32>
    %110 = arith.addf %105, %109 : vector<188x12xf32>
    %c18_79 = arith.constant 18 : index
    %c0_80 = arith.constant 0 : index
    %111 = vector.load %arg19[%c18_79, %c0_80] : memref<224x8xf32, #tpu.memory_space<vmem>>, vector<188x8xf32>
    %c5_81 = arith.constant 5 : index
    %c0_82 = arith.constant 0 : index
    %c0_83 = arith.constant 0 : index
    %112 = vector.load %arg4[%c5_81, %c0_82, %c0_83] : memref<9x8x12xf32, #tpu.memory_space<vmem>>, vector<1x8x12xf32>
    %113 = vector.shape_cast %112 : vector<1x8x12xf32> to vector<8x12xf32>
    %cst_84 = arith.constant dense<0.000000e+00> : vector<188x12xf32>
    %114 = tpu.matmul %111, %113, %cst_84 {dimension_numbers = #tpu.dot_dimension_numbers<[1], [0], [0], [1], [0, 0, 1, 1], [], []>} : vector<188x8xf32>, vector<8x12xf32>, vector<188x12xf32> -> vector<188x12xf32>
    %115 = arith.addf %110, %114 : vector<188x12xf32>
    %c32_85 = arith.constant 32 : index
    %c0_86 = arith.constant 0 : index
    %116 = vector.load %arg19[%c32_85, %c0_86] : memref<224x8xf32, #tpu.memory_space<vmem>>, vector<188x8xf32>
    %c6_87 = arith.constant 6 : index
    %c0_88 = arith.constant 0 : index
    %c0_89 = arith.constant 0 : index
    %117 = vector.load %arg4[%c6_87, %c0_88, %c0_89] : memref<9x8x12xf32, #tpu.memory_space<vmem>>, vector<1x8x12xf32>
    %118 = vector.shape_cast %117 : vector<1x8x12xf32> to vector<8x12xf32>
    %cst_90 = arith.constant dense<0.000000e+00> : vector<188x12xf32>
    %119 = tpu.matmul %116, %118, %cst_90 {dimension_numbers = #tpu.dot_dimension_numbers<[1], [0], [0], [1], [0, 0, 1, 1], [], []>} : vector<188x8xf32>, vector<8x12xf32>, vector<188x12xf32> -> vector<188x12xf32>
    %120 = arith.addf %115, %119 : vector<188x12xf32>
    %c33_91 = arith.constant 33 : index
    %c0_92 = arith.constant 0 : index
    %121 = vector.load %arg19[%c33_91, %c0_92] : memref<224x8xf32, #tpu.memory_space<vmem>>, vector<188x8xf32>
    %c7_93 = arith.constant 7 : index
    %c0_94 = arith.constant 0 : index
    %c0_95 = arith.constant 0 : index
    %122 = vector.load %arg4[%c7_93, %c0_94, %c0_95] : memref<9x8x12xf32, #tpu.memory_space<vmem>>, vector<1x8x12xf32>
    %123 = vector.shape_cast %122 : vector<1x8x12xf32> to vector<8x12xf32>
    %cst_96 = arith.constant dense<0.000000e+00> : vector<188x12xf32>
    %124 = tpu.matmul %121, %123, %cst_96 {dimension_numbers = #tpu.dot_dimension_numbers<[1], [0], [0], [1], [0, 0, 1, 1], [], []>} : vector<188x8xf32>, vector<8x12xf32>, vector<188x12xf32> -> vector<188x12xf32>
    %125 = arith.addf %120, %124 : vector<188x12xf32>
    %c34_97 = arith.constant 34 : index
    %c0_98 = arith.constant 0 : index
    %126 = vector.load %arg19[%c34_97, %c0_98] : memref<224x8xf32, #tpu.memory_space<vmem>>, vector<188x8xf32>
    %c8_99 = arith.constant 8 : index
    %c0_100 = arith.constant 0 : index
    %c0_101 = arith.constant 0 : index
    %127 = vector.load %arg4[%c8_99, %c0_100, %c0_101] : memref<9x8x12xf32, #tpu.memory_space<vmem>>, vector<1x8x12xf32>
    %128 = vector.shape_cast %127 : vector<1x8x12xf32> to vector<8x12xf32>
    %cst_102 = arith.constant dense<0.000000e+00> : vector<188x12xf32>
    %129 = tpu.matmul %126, %128, %cst_102 {dimension_numbers = #tpu.dot_dimension_numbers<[1], [0], [0], [1], [0, 0, 1, 1], [], []>} : vector<188x8xf32>, vector<8x12xf32>, vector<188x12xf32> -> vector<188x12xf32>
    %130 = arith.addf %125, %129 : vector<188x12xf32>
    %c0_103 = arith.constant 0 : index
    %c0_104 = arith.constant 0 : index
    %131 = vector.load %arg5[%c0_103, %c0_104] : memref<3x12xf32, #tpu.memory_space<vmem>>, vector<1x12xf32>
    %c1_105 = arith.constant 1 : index
    %c0_106 = arith.constant 0 : index
    %132 = vector.load %arg5[%c1_105, %c0_106] : memref<3x12xf32, #tpu.memory_space<vmem>>, vector<1x12xf32>
    %c2_107 = arith.constant 2 : index
    %c0_108 = arith.constant 0 : index
    %133 = vector.load %arg5[%c2_107, %c0_108] : memref<3x12xf32, #tpu.memory_space<vmem>>, vector<1x12xf32>
    %134 = vector.broadcast %131 : vector<1x12xf32> to vector<188x12xf32>
    %135 = arith.addf %130, %134 : vector<188x12xf32>
    %cst_109 = arith.constant 0.000000e+00 : f32
    %136 = vector.broadcast %cst_109 : f32 to vector<188x12xf32>
    %137 = arith.maximumf %135, %136 : vector<188x12xf32>
    %138 = vector.broadcast %132 : vector<1x12xf32> to vector<188x12xf32>
    %139 = arith.mulf %137, %138 : vector<188x12xf32>
    %140 = vector.broadcast %133 : vector<1x12xf32> to vector<188x12xf32>
    %141 = arith.addf %139, %140 : vector<188x12xf32>
    %c0_110 = arith.constant 0 : index
    %c0_111 = arith.constant 0 : index
    %142 = vector.load %arg20[%c0_110, %c0_111] : memref<192x12xf32, #tpu.memory_space<vmem>>, vector<188x12xf32>
    tpu.vector_store %arg20[%c0_110, %c0_111], %141 {strides = array<i32>} : memref<192x12xf32, #tpu.memory_space<vmem>>, vector<188x12xf32>,
    %c0_112 = arith.constant 0 : index
    %c0_113 = arith.constant 0 : index
    %143 = vector.load %arg6[%c0_112, %c0_113] : memref<12x6xf32, #tpu.memory_space<vmem>>, vector<12x6xf32>
    %c0_114 = arith.constant 0 : index
    %c0_115 = arith.constant 0 : index
    %144 = vector.load %arg7[%c0_114, %c0_115] : memref<1x6xf32, #tpu.memory_space<vmem>>, vector<1x6xf32>
    %c0_116 = arith.constant 0 : index
    %c0_117 = arith.constant 0 : index
    %145 = tpu.strided_load %arg20[%c0_116, %c0_117] {strides = array<i32: 2, 1>} : memref<192x12xf32, #tpu.memory_space<vmem>>, vector<6x12xf32>
    %c1_118 = arith.constant 1 : index
    %c0_119 = arith.constant 0 : index
    %146 = tpu.strided_load %arg20[%c1_118, %c0_119] {strides = array<i32: 2, 1>} : memref<192x12xf32, #tpu.memory_space<vmem>>, vector<6x12xf32>
    %c16_120 = arith.constant 16 : index
    %c0_121 = arith.constant 0 : index
    %147 = tpu.strided_load %arg20[%c16_120, %c0_121] {strides = array<i32: 2, 1>} : memref<192x12xf32, #tpu.memory_space<vmem>>, vector<6x12xf32>
    %c17_122 = arith.constant 17 : index
    %c0_123 = arith.constant 0 : index
    %148 = tpu.strided_load %arg20[%c17_122, %c0_123] {strides = array<i32: 2, 1>} : memref<192x12xf32, #tpu.memory_space<vmem>>, vector<6x12xf32>
    %149 = arith.maximumf %145, %146 : vector<6x12xf32>
    %150 = arith.maximumf %147, %148 : vector<6x12xf32>
    %151 = arith.maximumf %149, %150 : vector<6x12xf32>
    %cst_124 = arith.constant dense<0.000000e+00> : vector<6x6xf32>
    %152 = tpu.matmul %151, %143, %cst_124 {dimension_numbers = #tpu.dot_dimension_numbers<[1], [0], [0], [1], [0, 0, 1, 1], [], []>} : vector<6x12xf32>, vector<12x6xf32>, vector<6x6xf32> -> vector<6x6xf32>
    %153 = vector.broadcast %144 : vector<1x6xf32> to vector<6x6xf32>
    %154 = arith.addf %152, %153 : vector<6x6xf32>
    %c0_125 = arith.constant 0 : index
    %c0_126 = arith.constant 0 : index
    %155 = vector.load %arg21[%c0_125, %c0_126] : memref<36x6xf32, #tpu.memory_space<vmem>>, vector<6x6xf32>
    tpu.vector_store %arg21[%c0_125, %c0_126], %154 {strides = array<i32>} : memref<36x6xf32, #tpu.memory_space<vmem>>, vector<6x6xf32>,
    %c32_127 = arith.constant 32 : index
    %c0_128 = arith.constant 0 : index
    %156 = tpu.strided_load %arg20[%c32_127, %c0_128] {strides = array<i32: 2, 1>} : memref<192x12xf32, #tpu.memory_space<vmem>>, vector<6x12xf32>
    %c33_129 = arith.constant 33 : index
    %c0_130 = arith.constant 0 : index
    %157 = tpu.strided_load %arg20[%c33_129, %c0_130] {strides = array<i32: 2, 1>} : memref<192x12xf32, #tpu.memory_space<vmem>>, vector<6x12xf32>
    %c48 = arith.constant 48 : index
    %c0_131 = arith.constant 0 : index
    %158 = tpu.strided_load %arg20[%c48, %c0_131] {strides = array<i32: 2, 1>} : memref<192x12xf32, #tpu.memory_space<vmem>>, vector<6x12xf32>
    %c49 = arith.constant 49 : index
    %c0_132 = arith.constant 0 : index
    %159 = tpu.strided_load %arg20[%c49, %c0_132] {strides = array<i32: 2, 1>} : memref<192x12xf32, #tpu.memory_space<vmem>>, vector<6x12xf32>
    %160 = arith.maximumf %156, %157 : vector<6x12xf32>
    %161 = arith.maximumf %158, %159 : vector<6x12xf32>
    %162 = arith.maximumf %160, %161 : vector<6x12xf32>
    %cst_133 = arith.constant dense<0.000000e+00> : vector<6x6xf32>
    %163 = tpu.matmul %162, %143, %cst_133 {dimension_numbers = #tpu.dot_dimension_numbers<[1], [0], [0], [1], [0, 0, 1, 1], [], []>} : vector<6x12xf32>, vector<12x6xf32>, vector<6x6xf32> -> vector<6x6xf32>
    %164 = vector.broadcast %144 : vector<1x6xf32> to vector<6x6xf32>
    %165 = arith.addf %163, %164 : vector<6x6xf32>
    %c6_134 = arith.constant 6 : index
    %c0_135 = arith.constant 0 : index
    %166 = vector.load %arg21[%c6_134, %c0_135] : memref<36x6xf32, #tpu.memory_space<vmem>>, vector<6x6xf32>
    tpu.vector_store %arg21[%c6_134, %c0_135], %165 {strides = array<i32>} : memref<36x6xf32, #tpu.memory_space<vmem>>, vector<6x6xf32>,
    %c64 = arith.constant 64 : index
    %c0_136 = arith.constant 0 : index
    %167 = tpu.strided_load %arg20[%c64, %c0_136] {strides = array<i32: 2, 1>} : memref<192x12xf32, #tpu.memory_space<vmem>>, vector<6x12xf32>
    %c65 = arith.constant 65 : index
    %c0_137 = arith.constant 0 : index
    %168 = tpu.strided_load %arg20[%c65, %c0_137] {strides = array<i32: 2, 1>} : memref<192x12xf32, #tpu.memory_space<vmem>>, vector<6x12xf32>
    %c80 = arith.constant 80 : index
    %c0_138 = arith.constant 0 : index
    %169 = tpu.strided_load %arg20[%c80, %c0_138] {strides = array<i32: 2, 1>} : memref<192x12xf32, #tpu.memory_space<vmem>>, vector<6x12xf32>
    %c81 = arith.constant 81 : index
    %c0_139 = arith.constant 0 : index
    %170 = tpu.strided_load %arg20[%c81, %c0_139] {strides = array<i32: 2, 1>} : memref<192x12xf32, #tpu.memory_space<vmem>>, vector<6x12xf32>
    %171 = arith.maximumf %167, %168 : vector<6x12xf32>
    %172 = arith.maximumf %169, %170 : vector<6x12xf32>
    %173 = arith.maximumf %171, %172 : vector<6x12xf32>
    %cst_140 = arith.constant dense<0.000000e+00> : vector<6x6xf32>
    %174 = tpu.matmul %173, %143, %cst_140 {dimension_numbers = #tpu.dot_dimension_numbers<[1], [0], [0], [1], [0, 0, 1, 1], [], []>} : vector<6x12xf32>, vector<12x6xf32>, vector<6x6xf32> -> vector<6x6xf32>
    %175 = vector.broadcast %144 : vector<1x6xf32> to vector<6x6xf32>
    %176 = arith.addf %174, %175 : vector<6x6xf32>
    %c12 = arith.constant 12 : index
    %c0_141 = arith.constant 0 : index
    %177 = vector.load %arg21[%c12, %c0_141] : memref<36x6xf32, #tpu.memory_space<vmem>>, vector<6x6xf32>
    tpu.vector_store %arg21[%c12, %c0_141], %176 {strides = array<i32>} : memref<36x6xf32, #tpu.memory_space<vmem>>, vector<6x6xf32>,
    %c96 = arith.constant 96 : index
    %c0_142 = arith.constant 0 : index
    %178 = tpu.strided_load %arg20[%c96, %c0_142] {strides = array<i32: 2, 1>} : memref<192x12xf32, #tpu.memory_space<vmem>>, vector<6x12xf32>
    %c97 = arith.constant 97 : index
    %c0_143 = arith.constant 0 : index
    %179 = tpu.strided_load %arg20[%c97, %c0_143] {strides = array<i32: 2, 1>} : memref<192x12xf32, #tpu.memory_space<vmem>>, vector<6x12xf32>
    %c112 = arith.constant 112 : index
    %c0_144 = arith.constant 0 : index
    %180 = tpu.strided_load %arg20[%c112, %c0_144] {strides = array<i32: 2, 1>} : memref<192x12xf32, #tpu.memory_space<vmem>>, vector<6x12xf32>
    %c113 = arith.constant 113 : index
    %c0_145 = arith.constant 0 : index
    %181 = tpu.strided_load %arg20[%c113, %c0_145] {strides = array<i32: 2, 1>} : memref<192x12xf32, #tpu.memory_space<vmem>>, vector<6x12xf32>
    %182 = arith.maximumf %178, %179 : vector<6x12xf32>
    %183 = arith.maximumf %180, %181 : vector<6x12xf32>
    %184 = arith.maximumf %182, %183 : vector<6x12xf32>
    %cst_146 = arith.constant dense<0.000000e+00> : vector<6x6xf32>
    %185 = tpu.matmul %184, %143, %cst_146 {dimension_numbers = #tpu.dot_dimension_numbers<[1], [0], [0], [1], [0, 0, 1, 1], [], []>} : vector<6x12xf32>, vector<12x6xf32>, vector<6x6xf32> -> vector<6x6xf32>
    %186 = vector.broadcast %144 : vector<1x6xf32> to vector<6x6xf32>
    %187 = arith.addf %185, %186 : vector<6x6xf32>
    %c18_147 = arith.constant 18 : index
    %c0_148 = arith.constant 0 : index
    %188 = vector.load %arg21[%c18_147, %c0_148] : memref<36x6xf32, #tpu.memory_space<vmem>>, vector<6x6xf32>
    tpu.vector_store %arg21[%c18_147, %c0_148], %187 {strides = array<i32>} : memref<36x6xf32, #tpu.memory_space<vmem>>, vector<6x6xf32>,
    %c128 = arith.constant 128 : index
    %c0_149 = arith.constant 0 : index
    %189 = tpu.strided_load %arg20[%c128, %c0_149] {strides = array<i32: 2, 1>} : memref<192x12xf32, #tpu.memory_space<vmem>>, vector<6x12xf32>
    %c129 = arith.constant 129 : index
    %c0_150 = arith.constant 0 : index
    %190 = tpu.strided_load %arg20[%c129, %c0_150] {strides = array<i32: 2, 1>} : memref<192x12xf32, #tpu.memory_space<vmem>>, vector<6x12xf32>
    %c144 = arith.constant 144 : index
    %c0_151 = arith.constant 0 : index
    %191 = tpu.strided_load %arg20[%c144, %c0_151] {strides = array<i32: 2, 1>} : memref<192x12xf32, #tpu.memory_space<vmem>>, vector<6x12xf32>
    %c145 = arith.constant 145 : index
    %c0_152 = arith.constant 0 : index
    %192 = tpu.strided_load %arg20[%c145, %c0_152] {strides = array<i32: 2, 1>} : memref<192x12xf32, #tpu.memory_space<vmem>>, vector<6x12xf32>
    %193 = arith.maximumf %189, %190 : vector<6x12xf32>
    %194 = arith.maximumf %191, %192 : vector<6x12xf32>
    %195 = arith.maximumf %193, %194 : vector<6x12xf32>
    %cst_153 = arith.constant dense<0.000000e+00> : vector<6x6xf32>
    %196 = tpu.matmul %195, %143, %cst_153 {dimension_numbers = #tpu.dot_dimension_numbers<[1], [0], [0], [1], [0, 0, 1, 1], [], []>} : vector<6x12xf32>, vector<12x6xf32>, vector<6x6xf32> -> vector<6x6xf32>
    %197 = vector.broadcast %144 : vector<1x6xf32> to vector<6x6xf32>
    %198 = arith.addf %196, %197 : vector<6x6xf32>
    %c24 = arith.constant 24 : index
    %c0_154 = arith.constant 0 : index
    %199 = vector.load %arg21[%c24, %c0_154] : memref<36x6xf32, #tpu.memory_space<vmem>>, vector<6x6xf32>
    tpu.vector_store %arg21[%c24, %c0_154], %198 {strides = array<i32>} : memref<36x6xf32, #tpu.memory_space<vmem>>, vector<6x6xf32>,
    %c160 = arith.constant 160 : index
    %c0_155 = arith.constant 0 : index
    %200 = tpu.strided_load %arg20[%c160, %c0_155] {strides = array<i32: 2, 1>} : memref<192x12xf32, #tpu.memory_space<vmem>>, vector<6x12xf32>
    %c161 = arith.constant 161 : index
    %c0_156 = arith.constant 0 : index
    %201 = tpu.strided_load %arg20[%c161, %c0_156] {strides = array<i32: 2, 1>} : memref<192x12xf32, #tpu.memory_space<vmem>>, vector<6x12xf32>
    %c176 = arith.constant 176 : index
    %c0_157 = arith.constant 0 : index
    %202 = tpu.strided_load %arg20[%c176, %c0_157] {strides = array<i32: 2, 1>} : memref<192x12xf32, #tpu.memory_space<vmem>>, vector<6x12xf32>
    %c177 = arith.constant 177 : index
    %c0_158 = arith.constant 0 : index
    %203 = tpu.strided_load %arg20[%c177, %c0_158] {strides = array<i32: 2, 1>} : memref<192x12xf32, #tpu.memory_space<vmem>>, vector<6x12xf32>
    %204 = arith.maximumf %200, %201 : vector<6x12xf32>
    %205 = arith.maximumf %202, %203 : vector<6x12xf32>
    %206 = arith.maximumf %204, %205 : vector<6x12xf32>
    %cst_159 = arith.constant dense<0.000000e+00> : vector<6x6xf32>
    %207 = tpu.matmul %206, %143, %cst_159 {dimension_numbers = #tpu.dot_dimension_numbers<[1], [0], [0], [1], [0, 0, 1, 1], [], []>} : vector<6x12xf32>, vector<12x6xf32>, vector<6x6xf32> -> vector<6x6xf32>
    %208 = vector.broadcast %144 : vector<1x6xf32> to vector<6x6xf32>
    %209 = arith.addf %207, %208 : vector<6x6xf32>
    %c30 = arith.constant 30 : index
    %c0_160 = arith.constant 0 : index
    %210 = vector.load %arg21[%c30, %c0_160] : memref<36x6xf32, #tpu.memory_space<vmem>>, vector<6x6xf32>
    tpu.vector_store %arg21[%c30, %c0_160], %209 {strides = array<i32>} : memref<36x6xf32, #tpu.memory_space<vmem>>, vector<6x6xf32>,
    %cst_161 = arith.constant 0.000000e+00 : f32
    %211 = vector.broadcast %cst_161 : f32 to vector<25x6xf32>
    %c0_162 = arith.constant 0 : index
    %c0_163 = arith.constant 0 : index
    %212 = vector.load %arg22[%c0_162, %c0_163] : memref<25x6xf32, #tpu.memory_space<vmem>>, vector<25x6xf32>
    tpu.vector_store %arg22[%c0_162, %c0_163], %211 {strides = array<i32>} : memref<25x6xf32, #tpu.memory_space<vmem>>, vector<25x6xf32>,
    %cst_164 = arith.constant 0.000000e+00 : f32
    %213 = vector.broadcast %cst_164 : f32 to vector<25x12xf32>
    %c0_165 = arith.constant 0 : index
    %c0_166 = arith.constant 0 : index
    %214 = vector.load %arg23[%c0_165, %c0_166] : memref<25x12xf32, #tpu.memory_space<vmem>>, vector<25x12xf32>
    tpu.vector_store %arg23[%c0_165, %c0_166], %213 {strides = array<i32>} : memref<25x12xf32, #tpu.memory_space<vmem>>, vector<25x12xf32>,
    %cst_167 = arith.constant 0.000000e+00 : f32
    %215 = vector.broadcast %cst_167 : f32 to vector<25x16xf32>
    %c0_168 = arith.constant 0 : index
    %c0_169 = arith.constant 0 : index
    %216 = vector.load %arg24[%c0_168, %c0_169] : memref<25x16xf32, #tpu.memory_space<vmem>>, vector<25x16xf32>
    tpu.vector_store %arg24[%c0_168, %c0_169], %215 {strides = array<i32>} : memref<25x16xf32, #tpu.memory_space<vmem>>, vector<25x16xf32>,
    %cst_170 = arith.constant 0.000000e+00 : f32
    %217 = vector.broadcast %cst_170 : f32 to vector<25x14xf32>
    %c0_171 = arith.constant 0 : index
    %c0_172 = arith.constant 0 : index
    %218 = vector.load %arg25[%c0_171, %c0_172] : memref<25x14xf32, #tpu.memory_space<vmem>>, vector<25x14xf32>
    tpu.vector_store %arg25[%c0_171, %c0_172], %217 {strides = array<i32>} : memref<25x14xf32, #tpu.memory_space<vmem>>, vector<25x14xf32>,
    %c0_173 = arith.constant 0 : index
    %c0_174 = arith.constant 0 : index
    %219 = tpu.strided_load %arg21[%c0_173, %c0_174] {strides = array<i32: 2, 1>} : memref<36x6xf32, #tpu.memory_space<vmem>>, vector<3x6xf32>
    %c1_175 = arith.constant 1 : index
    %c0_176 = arith.constant 0 : index
    %220 = tpu.strided_load %arg21[%c1_175, %c0_176] {strides = array<i32: 2, 1>} : memref<36x6xf32, #tpu.memory_space<vmem>>, vector<3x6xf32>
    %c6_177 = arith.constant 6 : index
    %c0_178 = arith.constant 0 : index
    %221 = tpu.strided_load %arg21[%c6_177, %c0_178] {strides = array<i32: 2, 1>} : memref<36x6xf32, #tpu.memory_space<vmem>>, vector<3x6xf32>
    %c7_179 = arith.constant 7 : index
    %c0_180 = arith.constant 0 : index
    %222 = tpu.strided_load %arg21[%c7_179, %c0_180] {strides = array<i32: 2, 1>} : memref<36x6xf32, #tpu.memory_space<vmem>>, vector<3x6xf32>
    %223 = arith.maximumf %219, %220 : vector<3x6xf32>
    %224 = arith.maximumf %221, %222 : vector<3x6xf32>
    %225 = arith.maximumf %223, %224 : vector<3x6xf32>
    %c6_181 = arith.constant 6 : index
    %c0_182 = arith.constant 0 : index
    %226 = vector.load %arg22[%c6_181, %c0_182] : memref<25x6xf32, #tpu.memory_space<vmem>>, vector<3x6xf32>
    tpu.vector_store %arg22[%c6_181, %c0_182], %225 {strides = array<i32>} : memref<25x6xf32, #tpu.memory_space<vmem>>, vector<3x6xf32>,
    %c12_183 = arith.constant 12 : index
    %c0_184 = arith.constant 0 : index
    %227 = tpu.strided_load %arg21[%c12_183, %c0_184] {strides = array<i32: 2, 1>} : memref<36x6xf32, #tpu.memory_space<vmem>>, vector<3x6xf32>
    %c13 = arith.constant 13 : index
    %c0_185 = arith.constant 0 : index
    %228 = tpu.strided_load %arg21[%c13, %c0_185] {strides = array<i32: 2, 1>} : memref<36x6xf32, #tpu.memory_space<vmem>>, vector<3x6xf32>
    %c18_186 = arith.constant 18 : index
    %c0_187 = arith.constant 0 : index
    %229 = tpu.strided_load %arg21[%c18_186, %c0_187] {strides = array<i32: 2, 1>} : memref<36x6xf32, #tpu.memory_space<vmem>>, vector<3x6xf32>
    %c19 = arith.constant 19 : index
    %c0_188 = arith.constant 0 : index
    %230 = tpu.strided_load %arg21[%c19, %c0_188] {strides = array<i32: 2, 1>} : memref<36x6xf32, #tpu.memory_space<vmem>>, vector<3x6xf32>
    %231 = arith.maximumf %227, %228 : vector<3x6xf32>
    %232 = arith.maximumf %229, %230 : vector<3x6xf32>
    %233 = arith.maximumf %231, %232 : vector<3x6xf32>
    %c11 = arith.constant 11 : index
    %c0_189 = arith.constant 0 : index
    %234 = vector.load %arg22[%c11, %c0_189] : memref<25x6xf32, #tpu.memory_space<vmem>>, vector<3x6xf32>
    tpu.vector_store %arg22[%c11, %c0_189], %233 {strides = array<i32>} : memref<25x6xf32, #tpu.memory_space<vmem>>, vector<3x6xf32>,
    %c24_190 = arith.constant 24 : index
    %c0_191 = arith.constant 0 : index
    %235 = tpu.strided_load %arg21[%c24_190, %c0_191] {strides = array<i32: 2, 1>} : memref<36x6xf32, #tpu.memory_space<vmem>>, vector<3x6xf32>
    %c25 = arith.constant 25 : index
    %c0_192 = arith.constant 0 : index
    %236 = tpu.strided_load %arg21[%c25, %c0_192] {strides = array<i32: 2, 1>} : memref<36x6xf32, #tpu.memory_space<vmem>>, vector<3x6xf32>
    %c30_193 = arith.constant 30 : index
    %c0_194 = arith.constant 0 : index
    %237 = tpu.strided_load %arg21[%c30_193, %c0_194] {strides = array<i32: 2, 1>} : memref<36x6xf32, #tpu.memory_space<vmem>>, vector<3x6xf32>
    %c31 = arith.constant 31 : index
    %c0_195 = arith.constant 0 : index
    %238 = tpu.strided_load %arg21[%c31, %c0_195] {strides = array<i32: 2, 1>} : memref<36x6xf32, #tpu.memory_space<vmem>>, vector<3x6xf32>
    %239 = arith.maximumf %235, %236 : vector<3x6xf32>
    %240 = arith.maximumf %237, %238 : vector<3x6xf32>
    %241 = arith.maximumf %239, %240 : vector<3x6xf32>
    %c16_196 = arith.constant 16 : index
    %c0_197 = arith.constant 0 : index
    %242 = vector.load %arg22[%c16_196, %c0_197] : memref<25x6xf32, #tpu.memory_space<vmem>>, vector<3x6xf32>
    tpu.vector_store %arg22[%c16_196, %c0_197], %241 {strides = array<i32>} : memref<25x6xf32, #tpu.memory_space<vmem>>, vector<3x6xf32>,
    %cst_198 = arith.constant 0.000000e+00 : f32
    %243 = vector.broadcast %cst_198 : f32 to vector<13x12xf32>
    %c0_199 = arith.constant 0 : index
    %c0_200 = arith.constant 0 : index
    %244 = vector.load %arg22[%c0_199, %c0_200] : memref<25x6xf32, #tpu.memory_space<vmem>>, vector<13x6xf32>
    %c0_201 = arith.constant 0 : index
    %c0_202 = arith.constant 0 : index
    %c0_203 = arith.constant 0 : index
    %245 = vector.load %arg8[%c0_201, %c0_202, %c0_203] : memref<9x6x12xf32, #tpu.memory_space<vmem>>, vector<1x6x12xf32>
    %246 = vector.shape_cast %245 : vector<1x6x12xf32> to vector<6x12xf32>
    %cst_204 = arith.constant dense<0.000000e+00> : vector<13x12xf32>
    %247 = tpu.matmul %244, %246, %cst_204 {dimension_numbers = #tpu.dot_dimension_numbers<[1], [0], [0], [1], [0, 0, 1, 1], [], []>} : vector<13x6xf32>, vector<6x12xf32>, vector<13x12xf32> -> vector<13x12xf32>
    %248 = arith.addf %243, %247 : vector<13x12xf32>
    %c1_205 = arith.constant 1 : index
    %c0_206 = arith.constant 0 : index
    %249 = vector.load %arg22[%c1_205, %c0_206] : memref<25x6xf32, #tpu.memory_space<vmem>>, vector<13x6xf32>
    %c1_207 = arith.constant 1 : index
    %c0_208 = arith.constant 0 : index
    %c0_209 = arith.constant 0 : index
    %250 = vector.load %arg8[%c1_207, %c0_208, %c0_209] : memref<9x6x12xf32, #tpu.memory_space<vmem>>, vector<1x6x12xf32>
    %251 = vector.shape_cast %250 : vector<1x6x12xf32> to vector<6x12xf32>
    %cst_210 = arith.constant dense<0.000000e+00> : vector<13x12xf32>
    %252 = tpu.matmul %249, %251, %cst_210 {dimension_numbers = #tpu.dot_dimension_numbers<[1], [0], [0], [1], [0, 0, 1, 1], [], []>} : vector<13x6xf32>, vector<6x12xf32>, vector<13x12xf32> -> vector<13x12xf32>
    %253 = arith.addf %248, %252 : vector<13x12xf32>
    %c2_211 = arith.constant 2 : index
    %c0_212 = arith.constant 0 : index
    %254 = vector.load %arg22[%c2_211, %c0_212] : memref<25x6xf32, #tpu.memory_space<vmem>>, vector<13x6xf32>
    %c2_213 = arith.constant 2 : index
    %c0_214 = arith.constant 0 : index
    %c0_215 = arith.constant 0 : index
    %255 = vector.load %arg8[%c2_213, %c0_214, %c0_215] : memref<9x6x12xf32, #tpu.memory_space<vmem>>, vector<1x6x12xf32>
    %256 = vector.shape_cast %255 : vector<1x6x12xf32> to vector<6x12xf32>
    %cst_216 = arith.constant dense<0.000000e+00> : vector<13x12xf32>
    %257 = tpu.matmul %254, %256, %cst_216 {dimension_numbers = #tpu.dot_dimension_numbers<[1], [0], [0], [1], [0, 0, 1, 1], [], []>} : vector<13x6xf32>, vector<6x12xf32>, vector<13x12xf32> -> vector<13x12xf32>
    %258 = arith.addf %253, %257 : vector<13x12xf32>
    %c5_217 = arith.constant 5 : index
    %c0_218 = arith.constant 0 : index
    %259 = vector.load %arg22[%c5_217, %c0_218] : memref<25x6xf32, #tpu.memory_space<vmem>>, vector<13x6xf32>
    %c3_219 = arith.constant 3 : index
    %c0_220 = arith.constant 0 : index
    %c0_221 = arith.constant 0 : index
    %260 = vector.load %arg8[%c3_219, %c0_220, %c0_221] : memref<9x6x12xf32, #tpu.memory_space<vmem>>, vector<1x6x12xf32>
    %261 = vector.shape_cast %260 : vector<1x6x12xf32> to vector<6x12xf32>
    %cst_222 = arith.constant dense<0.000000e+00> : vector<13x12xf32>
    %262 = tpu.matmul %259, %261, %cst_222 {dimension_numbers = #tpu.dot_dimension_numbers<[1], [0], [0], [1], [0, 0, 1, 1], [], []>} : vector<13x6xf32>, vector<6x12xf32>, vector<13x12xf32> -> vector<13x12xf32>
    %263 = arith.addf %258, %262 : vector<13x12xf32>
    %c6_223 = arith.constant 6 : index
    %c0_224 = arith.constant 0 : index
    %264 = vector.load %arg22[%c6_223, %c0_224] : memref<25x6xf32, #tpu.memory_space<vmem>>, vector<13x6xf32>
    %c4_225 = arith.constant 4 : index
    %c0_226 = arith.constant 0 : index
    %c0_227 = arith.constant 0 : index
    %265 = vector.load %arg8[%c4_225, %c0_226, %c0_227] : memref<9x6x12xf32, #tpu.memory_space<vmem>>, vector<1x6x12xf32>
    %266 = vector.shape_cast %265 : vector<1x6x12xf32> to vector<6x12xf32>
    %cst_228 = arith.constant dense<0.000000e+00> : vector<13x12xf32>
    %267 = tpu.matmul %264, %266, %cst_228 {dimension_numbers = #tpu.dot_dimension_numbers<[1], [0], [0], [1], [0, 0, 1, 1], [], []>} : vector<13x6xf32>, vector<6x12xf32>, vector<13x12xf32> -> vector<13x12xf32>
    %268 = arith.addf %263, %267 : vector<13x12xf32>
    %c7_229 = arith.constant 7 : index
    %c0_230 = arith.constant 0 : index
    %269 = vector.load %arg22[%c7_229, %c0_230] : memref<25x6xf32, #tpu.memory_space<vmem>>, vector<13x6xf32>
    %c5_231 = arith.constant 5 : index
    %c0_232 = arith.constant 0 : index
    %c0_233 = arith.constant 0 : index
    %270 = vector.load %arg8[%c5_231, %c0_232, %c0_233] : memref<9x6x12xf32, #tpu.memory_space<vmem>>, vector<1x6x12xf32>
    %271 = vector.shape_cast %270 : vector<1x6x12xf32> to vector<6x12xf32>
    %cst_234 = arith.constant dense<0.000000e+00> : vector<13x12xf32>
    %272 = tpu.matmul %269, %271, %cst_234 {dimension_numbers = #tpu.dot_dimension_numbers<[1], [0], [0], [1], [0, 0, 1, 1], [], []>} : vector<13x6xf32>, vector<6x12xf32>, vector<13x12xf32> -> vector<13x12xf32>
    %273 = arith.addf %268, %272 : vector<13x12xf32>
    %c10 = arith.constant 10 : index
    %c0_235 = arith.constant 0 : index
    %274 = vector.load %arg22[%c10, %c0_235] : memref<25x6xf32, #tpu.memory_space<vmem>>, vector<13x6xf32>
    %c6_236 = arith.constant 6 : index
    %c0_237 = arith.constant 0 : index
    %c0_238 = arith.constant 0 : index
    %275 = vector.load %arg8[%c6_236, %c0_237, %c0_238] : memref<9x6x12xf32, #tpu.memory_space<vmem>>, vector<1x6x12xf32>
    %276 = vector.shape_cast %275 : vector<1x6x12xf32> to vector<6x12xf32>
    %cst_239 = arith.constant dense<0.000000e+00> : vector<13x12xf32>
    %277 = tpu.matmul %274, %276, %cst_239 {dimension_numbers = #tpu.dot_dimension_numbers<[1], [0], [0], [1], [0, 0, 1, 1], [], []>} : vector<13x6xf32>, vector<6x12xf32>, vector<13x12xf32> -> vector<13x12xf32>
    %278 = arith.addf %273, %277 : vector<13x12xf32>
    %c11_240 = arith.constant 11 : index
    %c0_241 = arith.constant 0 : index
    %279 = vector.load %arg22[%c11_240, %c0_241] : memref<25x6xf32, #tpu.memory_space<vmem>>, vector<13x6xf32>
    %c7_242 = arith.constant 7 : index
    %c0_243 = arith.constant 0 : index
    %c0_244 = arith.constant 0 : index
    %280 = vector.load %arg8[%c7_242, %c0_243, %c0_244] : memref<9x6x12xf32, #tpu.memory_space<vmem>>, vector<1x6x12xf32>
    %281 = vector.shape_cast %280 : vector<1x6x12xf32> to vector<6x12xf32>
    %cst_245 = arith.constant dense<0.000000e+00> : vector<13x12xf32>
    %282 = tpu.matmul %279, %281, %cst_245 {dimension_numbers = #tpu.dot_dimension_numbers<[1], [0], [0], [1], [0, 0, 1, 1], [], []>} : vector<13x6xf32>, vector<6x12xf32>, vector<13x12xf32> -> vector<13x12xf32>
    %283 = arith.addf %278, %282 : vector<13x12xf32>
    %c12_246 = arith.constant 12 : index
    %c0_247 = arith.constant 0 : index
    %284 = vector.load %arg22[%c12_246, %c0_247] : memref<25x6xf32, #tpu.memory_space<vmem>>, vector<13x6xf32>
    %c8_248 = arith.constant 8 : index
    %c0_249 = arith.constant 0 : index
    %c0_250 = arith.constant 0 : index
    %285 = vector.load %arg8[%c8_248, %c0_249, %c0_250] : memref<9x6x12xf32, #tpu.memory_space<vmem>>, vector<1x6x12xf32>
    %286 = vector.shape_cast %285 : vector<1x6x12xf32> to vector<6x12xf32>
    %cst_251 = arith.constant dense<0.000000e+00> : vector<13x12xf32>
    %287 = tpu.matmul %284, %286, %cst_251 {dimension_numbers = #tpu.dot_dimension_numbers<[1], [0], [0], [1], [0, 0, 1, 1], [], []>} : vector<13x6xf32>, vector<6x12xf32>, vector<13x12xf32> -> vector<13x12xf32>
    %288 = arith.addf %283, %287 : vector<13x12xf32>
    %c0_252 = arith.constant 0 : index
    %c0_253 = arith.constant 0 : index
    %289 = vector.load %arg9[%c0_252, %c0_253] : memref<3x12xf32, #tpu.memory_space<vmem>>, vector<1x12xf32>
    %c1_254 = arith.constant 1 : index
    %c0_255 = arith.constant 0 : index
    %290 = vector.load %arg9[%c1_254, %c0_255] : memref<3x12xf32, #tpu.memory_space<vmem>>, vector<1x12xf32>
    %c2_256 = arith.constant 2 : index
    %c0_257 = arith.constant 0 : index
    %291 = vector.load %arg9[%c2_256, %c0_257] : memref<3x12xf32, #tpu.memory_space<vmem>>, vector<1x12xf32>
    %292 = vector.broadcast %289 : vector<1x12xf32> to vector<13x12xf32>
    %293 = arith.addf %288, %292 : vector<13x12xf32>
    %cst_258 = arith.constant 0.000000e+00 : f32
    %294 = vector.broadcast %cst_258 : f32 to vector<13x12xf32>
    %295 = arith.maximumf %293, %294 : vector<13x12xf32>
    %296 = vector.broadcast %290 : vector<1x12xf32> to vector<13x12xf32>
    %297 = arith.mulf %295, %296 : vector<13x12xf32>
    %298 = vector.broadcast %291 : vector<1x12xf32> to vector<13x12xf32>
    %299 = arith.addf %297, %298 : vector<13x12xf32>
    %300 = vector.extract_strided_slice %299 {offsets = [0, 0], sizes = [3, 12], strides = [1, 1]} : vector<13x12xf32> to vector<3x12xf32>
    %c6_259 = arith.constant 6 : index
    %c0_260 = arith.constant 0 : index
    %301 = vector.load %arg23[%c6_259, %c0_260] : memref<25x12xf32, #tpu.memory_space<vmem>>, vector<3x12xf32>
    tpu.vector_store %arg23[%c6_259, %c0_260], %300 {strides = array<i32>} : memref<25x12xf32, #tpu.memory_space<vmem>>, vector<3x12xf32>,
    %302 = vector.extract_strided_slice %299 {offsets = [5, 0], sizes = [3, 12], strides = [1, 1]} : vector<13x12xf32> to vector<3x12xf32>
    %c11_261 = arith.constant 11 : index
    %c0_262 = arith.constant 0 : index
    %303 = vector.load %arg23[%c11_261, %c0_262] : memref<25x12xf32, #tpu.memory_space<vmem>>, vector<3x12xf32>
    tpu.vector_store %arg23[%c11_261, %c0_262], %302 {strides = array<i32>} : memref<25x12xf32, #tpu.memory_space<vmem>>, vector<3x12xf32>,
    %304 = vector.extract_strided_slice %299 {offsets = [10, 0], sizes = [3, 12], strides = [1, 1]} : vector<13x12xf32> to vector<3x12xf32>
    %c16_263 = arith.constant 16 : index
    %c0_264 = arith.constant 0 : index
    %305 = vector.load %arg23[%c16_263, %c0_264] : memref<25x12xf32, #tpu.memory_space<vmem>>, vector<3x12xf32>
    tpu.vector_store %arg23[%c16_263, %c0_264], %304 {strides = array<i32>} : memref<25x12xf32, #tpu.memory_space<vmem>>, vector<3x12xf32>,
    %cst_265 = arith.constant 0.000000e+00 : f32
    %306 = vector.broadcast %cst_265 : f32 to vector<13x16xf32>
    %c0_266 = arith.constant 0 : index
    %c0_267 = arith.constant 0 : index
    %307 = vector.load %arg23[%c0_266, %c0_267] : memref<25x12xf32, #tpu.memory_space<vmem>>, vector<13x12xf32>
    %c0_268 = arith.constant 0 : index
    %c0_269 = arith.constant 0 : index
    %c0_270 = arith.constant 0 : index
    %308 = vector.load %arg10[%c0_268, %c0_269, %c0_270] : memref<9x12x16xf32, #tpu.memory_space<vmem>>, vector<1x12x16xf32>
    %309 = vector.shape_cast %308 : vector<1x12x16xf32> to vector<12x16xf32>
    %cst_271 = arith.constant dense<0.000000e+00> : vector<13x16xf32>
    %310 = tpu.matmul %307, %309, %cst_271 {dimension_numbers = #tpu.dot_dimension_numbers<[1], [0], [0], [1], [0, 0, 1, 1], [], []>} : vector<13x12xf32>, vector<12x16xf32>, vector<13x16xf32> -> vector<13x16xf32>
    %311 = arith.addf %306, %310 : vector<13x16xf32>
    %c1_272 = arith.constant 1 : index
    %c0_273 = arith.constant 0 : index
    %312 = vector.load %arg23[%c1_272, %c0_273] : memref<25x12xf32, #tpu.memory_space<vmem>>, vector<13x12xf32>
    %c1_274 = arith.constant 1 : index
    %c0_275 = arith.constant 0 : index
    %c0_276 = arith.constant 0 : index
    %313 = vector.load %arg10[%c1_274, %c0_275, %c0_276] : memref<9x12x16xf32, #tpu.memory_space<vmem>>, vector<1x12x16xf32>
    %314 = vector.shape_cast %313 : vector<1x12x16xf32> to vector<12x16xf32>
    %cst_277 = arith.constant dense<0.000000e+00> : vector<13x16xf32>
    %315 = tpu.matmul %312, %314, %cst_277 {dimension_numbers = #tpu.dot_dimension_numbers<[1], [0], [0], [1], [0, 0, 1, 1], [], []>} : vector<13x12xf32>, vector<12x16xf32>, vector<13x16xf32> -> vector<13x16xf32>
    %316 = arith.addf %311, %315 : vector<13x16xf32>
    %c2_278 = arith.constant 2 : index
    %c0_279 = arith.constant 0 : index
    %317 = vector.load %arg23[%c2_278, %c0_279] : memref<25x12xf32, #tpu.memory_space<vmem>>, vector<13x12xf32>
    %c2_280 = arith.constant 2 : index
    %c0_281 = arith.constant 0 : index
    %c0_282 = arith.constant 0 : index
    %318 = vector.load %arg10[%c2_280, %c0_281, %c0_282] : memref<9x12x16xf32, #tpu.memory_space<vmem>>, vector<1x12x16xf32>
    %319 = vector.shape_cast %318 : vector<1x12x16xf32> to vector<12x16xf32>
    %cst_283 = arith.constant dense<0.000000e+00> : vector<13x16xf32>
    %320 = tpu.matmul %317, %319, %cst_283 {dimension_numbers = #tpu.dot_dimension_numbers<[1], [0], [0], [1], [0, 0, 1, 1], [], []>} : vector<13x12xf32>, vector<12x16xf32>, vector<13x16xf32> -> vector<13x16xf32>
    %321 = arith.addf %316, %320 : vector<13x16xf32>
    %c5_284 = arith.constant 5 : index
    %c0_285 = arith.constant 0 : index
    %322 = vector.load %arg23[%c5_284, %c0_285] : memref<25x12xf32, #tpu.memory_space<vmem>>, vector<13x12xf32>
    %c3_286 = arith.constant 3 : index
    %c0_287 = arith.constant 0 : index
    %c0_288 = arith.constant 0 : index
    %323 = vector.load %arg10[%c3_286, %c0_287, %c0_288] : memref<9x12x16xf32, #tpu.memory_space<vmem>>, vector<1x12x16xf32>
    %324 = vector.shape_cast %323 : vector<1x12x16xf32> to vector<12x16xf32>
    %cst_289 = arith.constant dense<0.000000e+00> : vector<13x16xf32>
    %325 = tpu.matmul %322, %324, %cst_289 {dimension_numbers = #tpu.dot_dimension_numbers<[1], [0], [0], [1], [0, 0, 1, 1], [], []>} : vector<13x12xf32>, vector<12x16xf32>, vector<13x16xf32> -> vector<13x16xf32>
    %326 = arith.addf %321, %325 : vector<13x16xf32>
    %c6_290 = arith.constant 6 : index
    %c0_291 = arith.constant 0 : index
    %327 = vector.load %arg23[%c6_290, %c0_291] : memref<25x12xf32, #tpu.memory_space<vmem>>, vector<13x12xf32>
    %c4_292 = arith.constant 4 : index
    %c0_293 = arith.constant 0 : index
    %c0_294 = arith.constant 0 : index
    %328 = vector.load %arg10[%c4_292, %c0_293, %c0_294] : memref<9x12x16xf32, #tpu.memory_space<vmem>>, vector<1x12x16xf32>
    %329 = vector.shape_cast %328 : vector<1x12x16xf32> to vector<12x16xf32>
    %cst_295 = arith.constant dense<0.000000e+00> : vector<13x16xf32>
    %330 = tpu.matmul %327, %329, %cst_295 {dimension_numbers = #tpu.dot_dimension_numbers<[1], [0], [0], [1], [0, 0, 1, 1], [], []>} : vector<13x12xf32>, vector<12x16xf32>, vector<13x16xf32> -> vector<13x16xf32>
    %331 = arith.addf %326, %330 : vector<13x16xf32>
    %c7_296 = arith.constant 7 : index
    %c0_297 = arith.constant 0 : index
    %332 = vector.load %arg23[%c7_296, %c0_297] : memref<25x12xf32, #tpu.memory_space<vmem>>, vector<13x12xf32>
    %c5_298 = arith.constant 5 : index
    %c0_299 = arith.constant 0 : index
    %c0_300 = arith.constant 0 : index
    %333 = vector.load %arg10[%c5_298, %c0_299, %c0_300] : memref<9x12x16xf32, #tpu.memory_space<vmem>>, vector<1x12x16xf32>
    %334 = vector.shape_cast %333 : vector<1x12x16xf32> to vector<12x16xf32>
    %cst_301 = arith.constant dense<0.000000e+00> : vector<13x16xf32>
    %335 = tpu.matmul %332, %334, %cst_301 {dimension_numbers = #tpu.dot_dimension_numbers<[1], [0], [0], [1], [0, 0, 1, 1], [], []>} : vector<13x12xf32>, vector<12x16xf32>, vector<13x16xf32> -> vector<13x16xf32>
    %336 = arith.addf %331, %335 : vector<13x16xf32>
    %c10_302 = arith.constant 10 : index
    %c0_303 = arith.constant 0 : index
    %337 = vector.load %arg23[%c10_302, %c0_303] : memref<25x12xf32, #tpu.memory_space<vmem>>, vector<13x12xf32>
    %c6_304 = arith.constant 6 : index
    %c0_305 = arith.constant 0 : index
    %c0_306 = arith.constant 0 : index
    %338 = vector.load %arg10[%c6_304, %c0_305, %c0_306] : memref<9x12x16xf32, #tpu.memory_space<vmem>>, vector<1x12x16xf32>
    %339 = vector.shape_cast %338 : vector<1x12x16xf32> to vector<12x16xf32>
    %cst_307 = arith.constant dense<0.000000e+00> : vector<13x16xf32>
    %340 = tpu.matmul %337, %339, %cst_307 {dimension_numbers = #tpu.dot_dimension_numbers<[1], [0], [0], [1], [0, 0, 1, 1], [], []>} : vector<13x12xf32>, vector<12x16xf32>, vector<13x16xf32> -> vector<13x16xf32>
    %341 = arith.addf %336, %340 : vector<13x16xf32>
    %c11_308 = arith.constant 11 : index
    %c0_309 = arith.constant 0 : index
    %342 = vector.load %arg23[%c11_308, %c0_309] : memref<25x12xf32, #tpu.memory_space<vmem>>, vector<13x12xf32>
    %c7_310 = arith.constant 7 : index
    %c0_311 = arith.constant 0 : index
    %c0_312 = arith.constant 0 : index
    %343 = vector.load %arg10[%c7_310, %c0_311, %c0_312] : memref<9x12x16xf32, #tpu.memory_space<vmem>>, vector<1x12x16xf32>
    %344 = vector.shape_cast %343 : vector<1x12x16xf32> to vector<12x16xf32>
    %cst_313 = arith.constant dense<0.000000e+00> : vector<13x16xf32>
    %345 = tpu.matmul %342, %344, %cst_313 {dimension_numbers = #tpu.dot_dimension_numbers<[1], [0], [0], [1], [0, 0, 1, 1], [], []>} : vector<13x12xf32>, vector<12x16xf32>, vector<13x16xf32> -> vector<13x16xf32>
    %346 = arith.addf %341, %345 : vector<13x16xf32>
    %c12_314 = arith.constant 12 : index
    %c0_315 = arith.constant 0 : index
    %347 = vector.load %arg23[%c12_314, %c0_315] : memref<25x12xf32, #tpu.memory_space<vmem>>, vector<13x12xf32>
    %c8_316 = arith.constant 8 : index
    %c0_317 = arith.constant 0 : index
    %c0_318 = arith.constant 0 : index
    %348 = vector.load %arg10[%c8_316, %c0_317, %c0_318] : memref<9x12x16xf32, #tpu.memory_space<vmem>>, vector<1x12x16xf32>
    %349 = vector.shape_cast %348 : vector<1x12x16xf32> to vector<12x16xf32>
    %cst_319 = arith.constant dense<0.000000e+00> : vector<13x16xf32>
    %350 = tpu.matmul %347, %349, %cst_319 {dimension_numbers = #tpu.dot_dimension_numbers<[1], [0], [0], [1], [0, 0, 1, 1], [], []>} : vector<13x12xf32>, vector<12x16xf32>, vector<13x16xf32> -> vector<13x16xf32>
    %351 = arith.addf %346, %350 : vector<13x16xf32>
    %c0_320 = arith.constant 0 : index
    %c0_321 = arith.constant 0 : index
    %352 = vector.load %arg11[%c0_320, %c0_321] : memref<3x16xf32, #tpu.memory_space<vmem>>, vector<1x16xf32>
    %c1_322 = arith.constant 1 : index
    %c0_323 = arith.constant 0 : index
    %353 = vector.load %arg11[%c1_322, %c0_323] : memref<3x16xf32, #tpu.memory_space<vmem>>, vector<1x16xf32>
    %c2_324 = arith.constant 2 : index
    %c0_325 = arith.constant 0 : index
    %354 = vector.load %arg11[%c2_324, %c0_325] : memref<3x16xf32, #tpu.memory_space<vmem>>, vector<1x16xf32>
    %355 = vector.broadcast %352 : vector<1x16xf32> to vector<13x16xf32>
    %356 = arith.addf %351, %355 : vector<13x16xf32>
    %cst_326 = arith.constant 0.000000e+00 : f32
    %357 = vector.broadcast %cst_326 : f32 to vector<13x16xf32>
    %358 = arith.maximumf %356, %357 : vector<13x16xf32>
    %359 = vector.broadcast %353 : vector<1x16xf32> to vector<13x16xf32>
    %360 = arith.mulf %358, %359 : vector<13x16xf32>
    %361 = vector.broadcast %354 : vector<1x16xf32> to vector<13x16xf32>
    %362 = arith.addf %360, %361 : vector<13x16xf32>
    %363 = vector.extract_strided_slice %362 {offsets = [0, 0], sizes = [3, 16], strides = [1, 1]} : vector<13x16xf32> to vector<3x16xf32>
    %c6_327 = arith.constant 6 : index
    %c0_328 = arith.constant 0 : index
    %364 = vector.load %arg24[%c6_327, %c0_328] : memref<25x16xf32, #tpu.memory_space<vmem>>, vector<3x16xf32>
    tpu.vector_store %arg24[%c6_327, %c0_328], %363 {strides = array<i32>} : memref<25x16xf32, #tpu.memory_space<vmem>>, vector<3x16xf32>,
    %365 = vector.extract_strided_slice %362 {offsets = [5, 0], sizes = [3, 16], strides = [1, 1]} : vector<13x16xf32> to vector<3x16xf32>
    %c11_329 = arith.constant 11 : index
    %c0_330 = arith.constant 0 : index
    %366 = vector.load %arg24[%c11_329, %c0_330] : memref<25x16xf32, #tpu.memory_space<vmem>>, vector<3x16xf32>
    tpu.vector_store %arg24[%c11_329, %c0_330], %365 {strides = array<i32>} : memref<25x16xf32, #tpu.memory_space<vmem>>, vector<3x16xf32>,
    %367 = vector.extract_strided_slice %362 {offsets = [10, 0], sizes = [3, 16], strides = [1, 1]} : vector<13x16xf32> to vector<3x16xf32>
    %c16_331 = arith.constant 16 : index
    %c0_332 = arith.constant 0 : index
    %368 = vector.load %arg24[%c16_331, %c0_332] : memref<25x16xf32, #tpu.memory_space<vmem>>, vector<3x16xf32>
    tpu.vector_store %arg24[%c16_331, %c0_332], %367 {strides = array<i32>} : memref<25x16xf32, #tpu.memory_space<vmem>>, vector<3x16xf32>,
    %cst_333 = arith.constant 0.000000e+00 : f32
    %369 = vector.broadcast %cst_333 : f32 to vector<13x14xf32>
    %c0_334 = arith.constant 0 : index
    %c0_335 = arith.constant 0 : index
    %370 = vector.load %arg24[%c0_334, %c0_335] : memref<25x16xf32, #tpu.memory_space<vmem>>, vector<13x16xf32>
    %c0_336 = arith.constant 0 : index
    %c0_337 = arith.constant 0 : index
    %c0_338 = arith.constant 0 : index
    %371 = vector.load %arg12[%c0_336, %c0_337, %c0_338] : memref<9x16x14xf32, #tpu.memory_space<vmem>>, vector<1x16x14xf32>
    %372 = vector.shape_cast %371 : vector<1x16x14xf32> to vector<16x14xf32>
    %cst_339 = arith.constant dense<0.000000e+00> : vector<13x14xf32>
    %373 = tpu.matmul %370, %372, %cst_339 {dimension_numbers = #tpu.dot_dimension_numbers<[1], [0], [0], [1], [0, 0, 1, 1], [], []>} : vector<13x16xf32>, vector<16x14xf32>, vector<13x14xf32> -> vector<13x14xf32>
    %374 = arith.addf %369, %373 : vector<13x14xf32>
    %c1_340 = arith.constant 1 : index
    %c0_341 = arith.constant 0 : index
    %375 = vector.load %arg24[%c1_340, %c0_341] : memref<25x16xf32, #tpu.memory_space<vmem>>, vector<13x16xf32>
    %c1_342 = arith.constant 1 : index
    %c0_343 = arith.constant 0 : index
    %c0_344 = arith.constant 0 : index
    %376 = vector.load %arg12[%c1_342, %c0_343, %c0_344] : memref<9x16x14xf32, #tpu.memory_space<vmem>>, vector<1x16x14xf32>
    %377 = vector.shape_cast %376 : vector<1x16x14xf32> to vector<16x14xf32>
    %cst_345 = arith.constant dense<0.000000e+00> : vector<13x14xf32>
    %378 = tpu.matmul %375, %377, %cst_345 {dimension_numbers = #tpu.dot_dimension_numbers<[1], [0], [0], [1], [0, 0, 1, 1], [], []>} : vector<13x16xf32>, vector<16x14xf32>, vector<13x14xf32> -> vector<13x14xf32>
    %379 = arith.addf %374, %378 : vector<13x14xf32>
    %c2_346 = arith.constant 2 : index
    %c0_347 = arith.constant 0 : index
    %380 = vector.load %arg24[%c2_346, %c0_347] : memref<25x16xf32, #tpu.memory_space<vmem>>, vector<13x16xf32>
    %c2_348 = arith.constant 2 : index
    %c0_349 = arith.constant 0 : index
    %c0_350 = arith.constant 0 : index
    %381 = vector.load %arg12[%c2_348, %c0_349, %c0_350] : memref<9x16x14xf32, #tpu.memory_space<vmem>>, vector<1x16x14xf32>
    %382 = vector.shape_cast %381 : vector<1x16x14xf32> to vector<16x14xf32>
    %cst_351 = arith.constant dense<0.000000e+00> : vector<13x14xf32>
    %383 = tpu.matmul %380, %382, %cst_351 {dimension_numbers = #tpu.dot_dimension_numbers<[1], [0], [0], [1], [0, 0, 1, 1], [], []>} : vector<13x16xf32>, vector<16x14xf32>, vector<13x14xf32> -> vector<13x14xf32>
    %384 = arith.addf %379, %383 : vector<13x14xf32>
    %c5_352 = arith.constant 5 : index
    %c0_353 = arith.constant 0 : index
    %385 = vector.load %arg24[%c5_352, %c0_353] : memref<25x16xf32, #tpu.memory_space<vmem>>, vector<13x16xf32>
    %c3_354 = arith.constant 3 : index
    %c0_355 = arith.constant 0 : index
    %c0_356 = arith.constant 0 : index
    %386 = vector.load %arg12[%c3_354, %c0_355, %c0_356] : memref<9x16x14xf32, #tpu.memory_space<vmem>>, vector<1x16x14xf32>
    %387 = vector.shape_cast %386 : vector<1x16x14xf32> to vector<16x14xf32>
    %cst_357 = arith.constant dense<0.000000e+00> : vector<13x14xf32>
    %388 = tpu.matmul %385, %387, %cst_357 {dimension_numbers = #tpu.dot_dimension_numbers<[1], [0], [0], [1], [0, 0, 1, 1], [], []>} : vector<13x16xf32>, vector<16x14xf32>, vector<13x14xf32> -> vector<13x14xf32>
    %389 = arith.addf %384, %388 : vector<13x14xf32>
    %c6_358 = arith.constant 6 : index
    %c0_359 = arith.constant 0 : index
    %390 = vector.load %arg24[%c6_358, %c0_359] : memref<25x16xf32, #tpu.memory_space<vmem>>, vector<13x16xf32>
    %c4_360 = arith.constant 4 : index
    %c0_361 = arith.constant 0 : index
    %c0_362 = arith.constant 0 : index
    %391 = vector.load %arg12[%c4_360, %c0_361, %c0_362] : memref<9x16x14xf32, #tpu.memory_space<vmem>>, vector<1x16x14xf32>
    %392 = vector.shape_cast %391 : vector<1x16x14xf32> to vector<16x14xf32>
    %cst_363 = arith.constant dense<0.000000e+00> : vector<13x14xf32>
    %393 = tpu.matmul %390, %392, %cst_363 {dimension_numbers = #tpu.dot_dimension_numbers<[1], [0], [0], [1], [0, 0, 1, 1], [], []>} : vector<13x16xf32>, vector<16x14xf32>, vector<13x14xf32> -> vector<13x14xf32>
    %394 = arith.addf %389, %393 : vector<13x14xf32>
    %c7_364 = arith.constant 7 : index
    %c0_365 = arith.constant 0 : index
    %395 = vector.load %arg24[%c7_364, %c0_365] : memref<25x16xf32, #tpu.memory_space<vmem>>, vector<13x16xf32>
    %c5_366 = arith.constant 5 : index
    %c0_367 = arith.constant 0 : index
    %c0_368 = arith.constant 0 : index
    %396 = vector.load %arg12[%c5_366, %c0_367, %c0_368] : memref<9x16x14xf32, #tpu.memory_space<vmem>>, vector<1x16x14xf32>
    %397 = vector.shape_cast %396 : vector<1x16x14xf32> to vector<16x14xf32>
    %cst_369 = arith.constant dense<0.000000e+00> : vector<13x14xf32>
    %398 = tpu.matmul %395, %397, %cst_369 {dimension_numbers = #tpu.dot_dimension_numbers<[1], [0], [0], [1], [0, 0, 1, 1], [], []>} : vector<13x16xf32>, vector<16x14xf32>, vector<13x14xf32> -> vector<13x14xf32>
    %399 = arith.addf %394, %398 : vector<13x14xf32>
    %c10_370 = arith.constant 10 : index
    %c0_371 = arith.constant 0 : index
    %400 = vector.load %arg24[%c10_370, %c0_371] : memref<25x16xf32, #tpu.memory_space<vmem>>, vector<13x16xf32>
    %c6_372 = arith.constant 6 : index
    %c0_373 = arith.constant 0 : index
    %c0_374 = arith.constant 0 : index
    %401 = vector.load %arg12[%c6_372, %c0_373, %c0_374] : memref<9x16x14xf32, #tpu.memory_space<vmem>>, vector<1x16x14xf32>
    %402 = vector.shape_cast %401 : vector<1x16x14xf32> to vector<16x14xf32>
    %cst_375 = arith.constant dense<0.000000e+00> : vector<13x14xf32>
    %403 = tpu.matmul %400, %402, %cst_375 {dimension_numbers = #tpu.dot_dimension_numbers<[1], [0], [0], [1], [0, 0, 1, 1], [], []>} : vector<13x16xf32>, vector<16x14xf32>, vector<13x14xf32> -> vector<13x14xf32>
    %404 = arith.addf %399, %403 : vector<13x14xf32>
    %c11_376 = arith.constant 11 : index
    %c0_377 = arith.constant 0 : index
    %405 = vector.load %arg24[%c11_376, %c0_377] : memref<25x16xf32, #tpu.memory_space<vmem>>, vector<13x16xf32>
    %c7_378 = arith.constant 7 : index
    %c0_379 = arith.constant 0 : index
    %c0_380 = arith.constant 0 : index
    %406 = vector.load %arg12[%c7_378, %c0_379, %c0_380] : memref<9x16x14xf32, #tpu.memory_space<vmem>>, vector<1x16x14xf32>
    %407 = vector.shape_cast %406 : vector<1x16x14xf32> to vector<16x14xf32>
    %cst_381 = arith.constant dense<0.000000e+00> : vector<13x14xf32>
    %408 = tpu.matmul %405, %407, %cst_381 {dimension_numbers = #tpu.dot_dimension_numbers<[1], [0], [0], [1], [0, 0, 1, 1], [], []>} : vector<13x16xf32>, vector<16x14xf32>, vector<13x14xf32> -> vector<13x14xf32>
    %409 = arith.addf %404, %408 : vector<13x14xf32>
    %c12_382 = arith.constant 12 : index
    %c0_383 = arith.constant 0 : index
    %410 = vector.load %arg24[%c12_382, %c0_383] : memref<25x16xf32, #tpu.memory_space<vmem>>, vector<13x16xf32>
    %c8_384 = arith.constant 8 : index
    %c0_385 = arith.constant 0 : index
    %c0_386 = arith.constant 0 : index
    %411 = vector.load %arg12[%c8_384, %c0_385, %c0_386] : memref<9x16x14xf32, #tpu.memory_space<vmem>>, vector<1x16x14xf32>
    %412 = vector.shape_cast %411 : vector<1x16x14xf32> to vector<16x14xf32>
    %cst_387 = arith.constant dense<0.000000e+00> : vector<13x14xf32>
    %413 = tpu.matmul %410, %412, %cst_387 {dimension_numbers = #tpu.dot_dimension_numbers<[1], [0], [0], [1], [0, 0, 1, 1], [], []>} : vector<13x16xf32>, vector<16x14xf32>, vector<13x14xf32> -> vector<13x14xf32>
    %414 = arith.addf %409, %413 : vector<13x14xf32>
    %c0_388 = arith.constant 0 : index
    %c0_389 = arith.constant 0 : index
    %415 = vector.load %arg13[%c0_388, %c0_389] : memref<3x14xf32, #tpu.memory_space<vmem>>, vector<1x14xf32>
    %c1_390 = arith.constant 1 : index
    %c0_391 = arith.constant 0 : index
    %416 = vector.load %arg13[%c1_390, %c0_391] : memref<3x14xf32, #tpu.memory_space<vmem>>, vector<1x14xf32>
    %c2_392 = arith.constant 2 : index
    %c0_393 = arith.constant 0 : index
    %417 = vector.load %arg13[%c2_392, %c0_393] : memref<3x14xf32, #tpu.memory_space<vmem>>, vector<1x14xf32>
    %418 = vector.broadcast %415 : vector<1x14xf32> to vector<13x14xf32>
    %419 = arith.addf %414, %418 : vector<13x14xf32>
    %cst_394 = arith.constant 0.000000e+00 : f32
    %420 = vector.broadcast %cst_394 : f32 to vector<13x14xf32>
    %421 = arith.maximumf %419, %420 : vector<13x14xf32>
    %422 = vector.broadcast %416 : vector<1x14xf32> to vector<13x14xf32>
    %423 = arith.mulf %421, %422 : vector<13x14xf32>
    %424 = vector.broadcast %417 : vector<1x14xf32> to vector<13x14xf32>
    %425 = arith.addf %423, %424 : vector<13x14xf32>
    %426 = vector.extract_strided_slice %425 {offsets = [0, 0], sizes = [3, 14], strides = [1, 1]} : vector<13x14xf32> to vector<3x14xf32>
    %c6_395 = arith.constant 6 : index
    %c0_396 = arith.constant 0 : index
    %427 = vector.load %arg25[%c6_395, %c0_396] : memref<25x14xf32, #tpu.memory_space<vmem>>, vector<3x14xf32>
    tpu.vector_store %arg25[%c6_395, %c0_396], %426 {strides = array<i32>} : memref<25x14xf32, #tpu.memory_space<vmem>>, vector<3x14xf32>,
    %428 = vector.extract_strided_slice %425 {offsets = [5, 0], sizes = [3, 14], strides = [1, 1]} : vector<13x14xf32> to vector<3x14xf32>
    %c11_397 = arith.constant 11 : index
    %c0_398 = arith.constant 0 : index
    %429 = vector.load %arg25[%c11_397, %c0_398] : memref<25x14xf32, #tpu.memory_space<vmem>>, vector<3x14xf32>
    tpu.vector_store %arg25[%c11_397, %c0_398], %428 {strides = array<i32>} : memref<25x14xf32, #tpu.memory_space<vmem>>, vector<3x14xf32>,
    %430 = vector.extract_strided_slice %425 {offsets = [10, 0], sizes = [3, 14], strides = [1, 1]} : vector<13x14xf32> to vector<3x14xf32>
    %c16_399 = arith.constant 16 : index
    %c0_400 = arith.constant 0 : index
    %431 = vector.load %arg25[%c16_399, %c0_400] : memref<25x14xf32, #tpu.memory_space<vmem>>, vector<3x14xf32>
    tpu.vector_store %arg25[%c16_399, %c0_400], %430 {strides = array<i32>} : memref<25x14xf32, #tpu.memory_space<vmem>>, vector<3x14xf32>,
    %cst_401 = arith.constant 0.000000e+00 : f32
    %432 = vector.broadcast %cst_401 : f32 to vector<13x12xf32>
    %c0_402 = arith.constant 0 : index
    %c0_403 = arith.constant 0 : index
    %433 = vector.load %arg25[%c0_402, %c0_403] : memref<25x14xf32, #tpu.memory_space<vmem>>, vector<13x14xf32>
    %c0_404 = arith.constant 0 : index
    %c0_405 = arith.constant 0 : index
    %c0_406 = arith.constant 0 : index
    %434 = vector.load %arg14[%c0_404, %c0_405, %c0_406] : memref<9x14x12xf32, #tpu.memory_space<vmem>>, vector<1x14x12xf32>
    %435 = vector.shape_cast %434 : vector<1x14x12xf32> to vector<14x12xf32>
    %cst_407 = arith.constant dense<0.000000e+00> : vector<13x12xf32>
    %436 = tpu.matmul %433, %435, %cst_407 {dimension_numbers = #tpu.dot_dimension_numbers<[1], [0], [0], [1], [0, 0, 1, 1], [], []>} : vector<13x14xf32>, vector<14x12xf32>, vector<13x12xf32> -> vector<13x12xf32>
    %437 = arith.addf %432, %436 : vector<13x12xf32>
    %c1_408 = arith.constant 1 : index
    %c0_409 = arith.constant 0 : index
    %438 = vector.load %arg25[%c1_408, %c0_409] : memref<25x14xf32, #tpu.memory_space<vmem>>, vector<13x14xf32>
    %c1_410 = arith.constant 1 : index
    %c0_411 = arith.constant 0 : index
    %c0_412 = arith.constant 0 : index
    %439 = vector.load %arg14[%c1_410, %c0_411, %c0_412] : memref<9x14x12xf32, #tpu.memory_space<vmem>>, vector<1x14x12xf32>
    %440 = vector.shape_cast %439 : vector<1x14x12xf32> to vector<14x12xf32>
    %cst_413 = arith.constant dense<0.000000e+00> : vector<13x12xf32>
    %441 = tpu.matmul %438, %440, %cst_413 {dimension_numbers = #tpu.dot_dimension_numbers<[1], [0], [0], [1], [0, 0, 1, 1], [], []>} : vector<13x14xf32>, vector<14x12xf32>, vector<13x12xf32> -> vector<13x12xf32>
    %442 = arith.addf %437, %441 : vector<13x12xf32>
    %c2_414 = arith.constant 2 : index
    %c0_415 = arith.constant 0 : index
    %443 = vector.load %arg25[%c2_414, %c0_415] : memref<25x14xf32, #tpu.memory_space<vmem>>, vector<13x14xf32>
    %c2_416 = arith.constant 2 : index
    %c0_417 = arith.constant 0 : index
    %c0_418 = arith.constant 0 : index
    %444 = vector.load %arg14[%c2_416, %c0_417, %c0_418] : memref<9x14x12xf32, #tpu.memory_space<vmem>>, vector<1x14x12xf32>
    %445 = vector.shape_cast %444 : vector<1x14x12xf32> to vector<14x12xf32>
    %cst_419 = arith.constant dense<0.000000e+00> : vector<13x12xf32>
    %446 = tpu.matmul %443, %445, %cst_419 {dimension_numbers = #tpu.dot_dimension_numbers<[1], [0], [0], [1], [0, 0, 1, 1], [], []>} : vector<13x14xf32>, vector<14x12xf32>, vector<13x12xf32> -> vector<13x12xf32>
    %447 = arith.addf %442, %446 : vector<13x12xf32>
    %c5_420 = arith.constant 5 : index
    %c0_421 = arith.constant 0 : index
    %448 = vector.load %arg25[%c5_420, %c0_421] : memref<25x14xf32, #tpu.memory_space<vmem>>, vector<13x14xf32>
    %c3_422 = arith.constant 3 : index
    %c0_423 = arith.constant 0 : index
    %c0_424 = arith.constant 0 : index
    %449 = vector.load %arg14[%c3_422, %c0_423, %c0_424] : memref<9x14x12xf32, #tpu.memory_space<vmem>>, vector<1x14x12xf32>
    %450 = vector.shape_cast %449 : vector<1x14x12xf32> to vector<14x12xf32>
    %cst_425 = arith.constant dense<0.000000e+00> : vector<13x12xf32>
    %451 = tpu.matmul %448, %450, %cst_425 {dimension_numbers = #tpu.dot_dimension_numbers<[1], [0], [0], [1], [0, 0, 1, 1], [], []>} : vector<13x14xf32>, vector<14x12xf32>, vector<13x12xf32> -> vector<13x12xf32>
    %452 = arith.addf %447, %451 : vector<13x12xf32>
    %c6_426 = arith.constant 6 : index
    %c0_427 = arith.constant 0 : index
    %453 = vector.load %arg25[%c6_426, %c0_427] : memref<25x14xf32, #tpu.memory_space<vmem>>, vector<13x14xf32>
    %c4_428 = arith.constant 4 : index
    %c0_429 = arith.constant 0 : index
    %c0_430 = arith.constant 0 : index
    %454 = vector.load %arg14[%c4_428, %c0_429, %c0_430] : memref<9x14x12xf32, #tpu.memory_space<vmem>>, vector<1x14x12xf32>
    %455 = vector.shape_cast %454 : vector<1x14x12xf32> to vector<14x12xf32>
    %cst_431 = arith.constant dense<0.000000e+00> : vector<13x12xf32>
    %456 = tpu.matmul %453, %455, %cst_431 {dimension_numbers = #tpu.dot_dimension_numbers<[1], [0], [0], [1], [0, 0, 1, 1], [], []>} : vector<13x14xf32>, vector<14x12xf32>, vector<13x12xf32> -> vector<13x12xf32>
    %457 = arith.addf %452, %456 : vector<13x12xf32>
    %c7_432 = arith.constant 7 : index
    %c0_433 = arith.constant 0 : index
    %458 = vector.load %arg25[%c7_432, %c0_433] : memref<25x14xf32, #tpu.memory_space<vmem>>, vector<13x14xf32>
    %c5_434 = arith.constant 5 : index
    %c0_435 = arith.constant 0 : index
    %c0_436 = arith.constant 0 : index
    %459 = vector.load %arg14[%c5_434, %c0_435, %c0_436] : memref<9x14x12xf32, #tpu.memory_space<vmem>>, vector<1x14x12xf32>
    %460 = vector.shape_cast %459 : vector<1x14x12xf32> to vector<14x12xf32>
    %cst_437 = arith.constant dense<0.000000e+00> : vector<13x12xf32>
    %461 = tpu.matmul %458, %460, %cst_437 {dimension_numbers = #tpu.dot_dimension_numbers<[1], [0], [0], [1], [0, 0, 1, 1], [], []>} : vector<13x14xf32>, vector<14x12xf32>, vector<13x12xf32> -> vector<13x12xf32>
    %462 = arith.addf %457, %461 : vector<13x12xf32>
    %c10_438 = arith.constant 10 : index
    %c0_439 = arith.constant 0 : index
    %463 = vector.load %arg25[%c10_438, %c0_439] : memref<25x14xf32, #tpu.memory_space<vmem>>, vector<13x14xf32>
    %c6_440 = arith.constant 6 : index
    %c0_441 = arith.constant 0 : index
    %c0_442 = arith.constant 0 : index
    %464 = vector.load %arg14[%c6_440, %c0_441, %c0_442] : memref<9x14x12xf32, #tpu.memory_space<vmem>>, vector<1x14x12xf32>
    %465 = vector.shape_cast %464 : vector<1x14x12xf32> to vector<14x12xf32>
    %cst_443 = arith.constant dense<0.000000e+00> : vector<13x12xf32>
    %466 = tpu.matmul %463, %465, %cst_443 {dimension_numbers = #tpu.dot_dimension_numbers<[1], [0], [0], [1], [0, 0, 1, 1], [], []>} : vector<13x14xf32>, vector<14x12xf32>, vector<13x12xf32> -> vector<13x12xf32>
    %467 = arith.addf %462, %466 : vector<13x12xf32>
    %c11_444 = arith.constant 11 : index
    %c0_445 = arith.constant 0 : index
    %468 = vector.load %arg25[%c11_444, %c0_445] : memref<25x14xf32, #tpu.memory_space<vmem>>, vector<13x14xf32>
    %c7_446 = arith.constant 7 : index
    %c0_447 = arith.constant 0 : index
    %c0_448 = arith.constant 0 : index
    %469 = vector.load %arg14[%c7_446, %c0_447, %c0_448] : memref<9x14x12xf32, #tpu.memory_space<vmem>>, vector<1x14x12xf32>
    %470 = vector.shape_cast %469 : vector<1x14x12xf32> to vector<14x12xf32>
    %cst_449 = arith.constant dense<0.000000e+00> : vector<13x12xf32>
    %471 = tpu.matmul %468, %470, %cst_449 {dimension_numbers = #tpu.dot_dimension_numbers<[1], [0], [0], [1], [0, 0, 1, 1], [], []>} : vector<13x14xf32>, vector<14x12xf32>, vector<13x12xf32> -> vector<13x12xf32>
    %472 = arith.addf %467, %471 : vector<13x12xf32>
    %c12_450 = arith.constant 12 : index
    %c0_451 = arith.constant 0 : index
    %473 = vector.load %arg25[%c12_450, %c0_451] : memref<25x14xf32, #tpu.memory_space<vmem>>, vector<13x14xf32>
    %c8_452 = arith.constant 8 : index
    %c0_453 = arith.constant 0 : index
    %c0_454 = arith.constant 0 : index
    %474 = vector.load %arg14[%c8_452, %c0_453, %c0_454] : memref<9x14x12xf32, #tpu.memory_space<vmem>>, vector<1x14x12xf32>
    %475 = vector.shape_cast %474 : vector<1x14x12xf32> to vector<14x12xf32>
    %cst_455 = arith.constant dense<0.000000e+00> : vector<13x12xf32>
    %476 = tpu.matmul %473, %475, %cst_455 {dimension_numbers = #tpu.dot_dimension_numbers<[1], [0], [0], [1], [0, 0, 1, 1], [], []>} : vector<13x14xf32>, vector<14x12xf32>, vector<13x12xf32> -> vector<13x12xf32>
    %477 = arith.addf %472, %476 : vector<13x12xf32>
    %c0_456 = arith.constant 0 : index
    %c0_457 = arith.constant 0 : index
    %478 = vector.load %arg15[%c0_456, %c0_457] : memref<3x12xf32, #tpu.memory_space<vmem>>, vector<1x12xf32>
    %c1_458 = arith.constant 1 : index
    %c0_459 = arith.constant 0 : index
    %479 = vector.load %arg15[%c1_458, %c0_459] : memref<3x12xf32, #tpu.memory_space<vmem>>, vector<1x12xf32>
    %c2_460 = arith.constant 2 : index
    %c0_461 = arith.constant 0 : index
    %480 = vector.load %arg15[%c2_460, %c0_461] : memref<3x12xf32, #tpu.memory_space<vmem>>, vector<1x12xf32>
    %481 = vector.broadcast %478 : vector<1x12xf32> to vector<13x12xf32>
    %482 = arith.addf %477, %481 : vector<13x12xf32>
    %cst_462 = arith.constant 0.000000e+00 : f32
    %483 = vector.broadcast %cst_462 : f32 to vector<13x12xf32>
    %484 = arith.maximumf %482, %483 : vector<13x12xf32>
    %485 = vector.broadcast %479 : vector<1x12xf32> to vector<13x12xf32>
    %486 = arith.mulf %484, %485 : vector<13x12xf32>
    %487 = vector.broadcast %480 : vector<1x12xf32> to vector<13x12xf32>
    %488 = arith.addf %486, %487 : vector<13x12xf32>
    %c0_463 = arith.constant 0 : index
    %c0_464 = arith.constant 0 : index
    %489 = vector.load %arg16[%c0_463, %c0_464] : memref<12x10xf32, #tpu.memory_space<vmem>>, vector<12x10xf32>
    %cst_465 = arith.constant dense<0.000000e+00> : vector<13x10xf32>
    %490 = tpu.matmul %488, %489, %cst_465 {dimension_numbers = #tpu.dot_dimension_numbers<[1], [0], [0], [1], [0, 0, 1, 1], [], []>} : vector<13x12xf32>, vector<12x10xf32>, vector<13x10xf32> -> vector<13x10xf32>
    %c0_466 = arith.constant 0 : index
    %c0_467 = arith.constant 0 : index
    %491 = vector.load %arg17[%c0_466, %c0_467] : memref<1x10xf32, #tpu.memory_space<vmem>>, vector<1x10xf32>
    %492 = vector.broadcast %491 : vector<1x10xf32> to vector<13x10xf32>
    %493 = arith.addf %490, %492 : vector<13x10xf32>
    %494 = vector.extract_strided_slice %493 {offsets = [0, 0], sizes = [3, 10], strides = [1, 1]} : vector<13x10xf32> to vector<3x10xf32>
    %495 = vector.extract_strided_slice %493 {offsets = [5, 0], sizes = [3, 10], strides = [1, 1]} : vector<13x10xf32> to vector<3x10xf32>
    %496 = arith.addf %494, %495 : vector<3x10xf32>
    %497 = vector.extract_strided_slice %493 {offsets = [10, 0], sizes = [3, 10], strides = [1, 1]} : vector<13x10xf32> to vector<3x10xf32>
    %498 = arith.addf %496, %497 : vector<3x10xf32>
    %cst_468 = arith.constant dense<0.000000e+00> : vector<10xf32>
    %499 = vector.multi_reduction <add>, %498, %cst_468 [0] : vector<3x10xf32> to vector<10xf32>
    %500 = vector.shape_cast %499 : vector<10xf32> to vector<1x10xf32>
    %cst_469 = arith.constant 0.111111112 : f32
    %501 = vector.broadcast %cst_469 : f32 to vector<1x10xf32>
    %502 = arith.mulf %500, %501 : vector<1x10xf32>
    %cst_470 = arith.constant dense<0xFF800000> : vector<1xf32>
    %503 = vector.multi_reduction <maximumf>, %502, %cst_470 [1] : vector<1x10xf32> to vector<1xf32>
    %504 = vector.shape_cast %503 : vector<1xf32> to vector<1x1xf32>
    %505 = vector.broadcast %504 : vector<1x1xf32> to vector<1x10xf32>
    %506 = arith.subf %502, %505 : vector<1x10xf32>
    %507 = math.exp %506 : vector<1x10xf32>
    %cst_471 = arith.constant dense<0.000000e+00> : vector<1xf32>
    %508 = vector.multi_reduction <add>, %507, %cst_471 [1] : vector<1x10xf32> to vector<1xf32>
    %509 = vector.shape_cast %508 : vector<1xf32> to vector<1x1xf32>
    %510 = math.log %509 : vector<1x1xf32>
    %511 = arith.addf %510, %504 : vector<1x1xf32>
    %512 = vector.broadcast %511 : vector<1x1xf32> to vector<1x10xf32>
    %513 = arith.subf %502, %512 : vector<1x10xf32>
    %514 = vector.shape_cast %513 : vector<1x10xf32> to vector<1x1x10xf32>
    %c0_472 = arith.constant 0 : index
    %c0_473 = arith.constant 0 : index
    %c0_474 = arith.constant 0 : index
    %515 = vector.load %arg18[%c0_472, %c0_473, %c0_474] : memref<1x1x10xf32, #tpu.memory_space<vmem>>, vector<1x1x10xf32>
    tpu.vector_store %arg18[%c0_472, %c0_473, %c0_474], %514 {strides = array<i32>} : memref<1x1x10xf32, #tpu.memory_space<vmem>>, vector<1x1x10xf32>,
    return
  }
  func.func @transform_0(%arg0: i32) -> (i32, i32, i32) {
    %c0_i32 = arith.constant 0 : i32
    %c0_i32_0 = arith.constant 0 : i32
    %c0_i32_1 = arith.constant 0 : i32
    return %arg0, %c0_i32, %c0_i32_0 : i32, i32, i32
  }
  func.func @transform_1(%arg0: i32) -> (i32, i32, i32) {
    %c0_i32 = arith.constant 0 : i32
    %c0_i32_0 = arith.constant 0 : i32
    %c0_i32_1 = arith.constant 0 : i32
    %c0_i32_2 = arith.constant 0 : i32
    return %c0_i32, %c0_i32_0, %c0_i32_1 : i32, i32, i32
  }
  func.func @transform_2(%arg0: i32) -> (i32, i32) {
    %c0_i32 = arith.constant 0 : i32
    %c0_i32_0 = arith.constant 0 : i32
    %c0_i32_1 = arith.constant 0 : i32
    return %c0_i32, %c0_i32_0 : i32, i32
  }
  func.func @transform_3(%arg0: i32) -> (i32, i32, i32) {
    %c0_i32 = arith.constant 0 : i32
    %c0_i32_0 = arith.constant 0 : i32
    %c0_i32_1 = arith.constant 0 : i32
    %c0_i32_2 = arith.constant 0 : i32
    return %c0_i32, %c0_i32_0, %c0_i32_1 : i32, i32, i32
  }
  func.func @transform_4(%arg0: i32) -> (i32, i32) {
    %c0_i32 = arith.constant 0 : i32
    %c0_i32_0 = arith.constant 0 : i32
    %c0_i32_1 = arith.constant 0 : i32
    return %c0_i32, %c0_i32_0 : i32, i32
  }
  func.func @transform_5(%arg0: i32) -> (i32, i32) {
    %c0_i32 = arith.constant 0 : i32
    %c0_i32_0 = arith.constant 0 : i32
    %c0_i32_1 = arith.constant 0 : i32
    return %c0_i32, %c0_i32_0 : i32, i32
  }
  func.func @transform_6(%arg0: i32) -> (i32, i32) {
    %c0_i32 = arith.constant 0 : i32
    %c0_i32_0 = arith.constant 0 : i32
    %c0_i32_1 = arith.constant 0 : i32
    return %c0_i32, %c0_i32_0 : i32, i32
  }
  func.func @transform_7(%arg0: i32) -> (i32, i32, i32) {
    %c0_i32 = arith.constant 0 : i32
    %c0_i32_0 = arith.constant 0 : i32
    %c0_i32_1 = arith.constant 0 : i32
    %c0_i32_2 = arith.constant 0 : i32
    return %c0_i32, %c0_i32_0, %c0_i32_1 : i32, i32, i32
  }
  func.func @transform_8(%arg0: i32) -> (i32, i32) {
    %c0_i32 = arith.constant 0 : i32
    %c0_i32_0 = arith.constant 0 : i32
    %c0_i32_1 = arith.constant 0 : i32
    return %c0_i32, %c0_i32_0 : i32, i32
  }
  func.func @transform_9(%arg0: i32) -> (i32, i32, i32) {
    %c0_i32 = arith.constant 0 : i32
    %c0_i32_0 = arith.constant 0 : i32
    %c0_i32_1 = arith.constant 0 : i32
    %c0_i32_2 = arith.constant 0 : i32
    return %c0_i32, %c0_i32_0, %c0_i32_1 : i32, i32, i32
  }
  func.func @transform_10(%arg0: i32) -> (i32, i32) {
    %c0_i32 = arith.constant 0 : i32
    %c0_i32_0 = arith.constant 0 : i32
    %c0_i32_1 = arith.constant 0 : i32
    return %c0_i32, %c0_i32_0 : i32, i32
  }
  func.func @transform_11(%arg0: i32) -> (i32, i32, i32) {
    %c0_i32 = arith.constant 0 : i32
    %c0_i32_0 = arith.constant 0 : i32
    %c0_i32_1 = arith.constant 0 : i32
    %c0_i32_2 = arith.constant 0 : i32
    return %c0_i32, %c0_i32_0, %c0_i32_1 : i32, i32, i32
  }
  func.func @transform_12(%arg0: i32) -> (i32, i32) {
    %c0_i32 = arith.constant 0 : i32
    %c0_i32_0 = arith.constant 0 : i32
    %c0_i32_1 = arith.constant 0 : i32
    return %c0_i32, %c0_i32_0 : i32, i32
  }
  func.func @transform_13(%arg0: i32) -> (i32, i32, i32) {
    %c0_i32 = arith.constant 0 : i32
    %c0_i32_0 = arith.constant 0 : i32
    %c0_i32_1 = arith.constant 0 : i32
    %c0_i32_2 = arith.constant 0 : i32
    return %c0_i32, %c0_i32_0, %c0_i32_1 : i32, i32, i32
  }
  func.func @transform_14(%arg0: i32) -> (i32, i32) {
    %c0_i32 = arith.constant 0 : i32
    %c0_i32_0 = arith.constant 0 : i32
    %c0_i32_1 = arith.constant 0 : i32
    return %c0_i32, %c0_i32_0 : i32, i32
  }
  func.func @transform_15(%arg0: i32) -> (i32, i32) {
    %c0_i32 = arith.constant 0 : i32
    %c0_i32_0 = arith.constant 0 : i32
    %c0_i32_1 = arith.constant 0 : i32
    return %c0_i32, %c0_i32_0 : i32, i32
  }
  func.func @transform_16(%arg0: i32) -> (i32, i32) {
    %c0_i32 = arith.constant 0 : i32
    %c0_i32_0 = arith.constant 0 : i32
    %c0_i32_1 = arith.constant 0 : i32
    return %c0_i32, %c0_i32_0 : i32, i32
  }
  func.func @transform_17(%arg0: i32) -> (i32, i32, i32) {
    %c0_i32 = arith.constant 0 : i32
    %c0_i32_0 = arith.constant 0 : i32
    %c0_i32_1 = arith.constant 0 : i32
    return %arg0, %c0_i32, %c0_i32_0 : i32, i32, i32
  }
}

</mosaic_0001>

<bundles_post_ra>
// kernel: forward.1
= control target key start
LH: loop header
LB: loop body
LE: loop exit
PB: predicated region body
PF: predicated region fallthrough
CT: control target
= control target key end

     0   :  { %s15046_s0 = inlined_call_operand.vmem [shape: f32[2,256,1], index: 0, kind: input, shape index: {}]   ;;  %s15047_s1 = inlined_call_operand.vmem [shape: f32[9,1,8], index: 1, kind: input, shape index: {}]   ;;  %s15048_s2 = inlined_call_operand.hbm [shape: f32[3,8], index: 2, kind: input, shape index: {}]   ;;  %s15049_s3 = inlined_call_operand.vmem [shape: f32[9,8,12], index: 3, kind: input, shape index: {}]   ;;  %s15050_s4 = inlined_call_operand.hbm [shape: f32[3,12], index: 4, kind: input, shape index: {}]   ;;  %s15051_s5 = inlined_call_operand.vmem [shape: f32[12,6], index: 5, kind: input, shape index: {}]   ;;  %s15052_s6 = inlined_call_operand.hbm [shape: f32[1,6], index: 6, kind: input, shape index: {}]   ;;  %s15053_s7 = inlined_call_operand.vmem [shape: f32[9,6,12], index: 7, kind: input, shape index: {}]   ;;  %s15054_s8 = inlined_call_operand.hbm [shape: f32[3,12], index: 8, kind: input, shape index: {}]   ;;  %s15055_s9 = inlined_call_operand.vmem [shape: f32[9,12,16], index: 9, kind: input, shape index: {}]   ;;  %s15056_s10 = inlined_call_operand.hbm [shape: f32[3,16], index: 10, kind: input, shape index: {}]   ;;  %s15057_s11 = inlined_call_operand.vmem [shape: f32[9,16,14], index: 11, kind: input, shape index: {}]   ;;  %s15058_s12 = inlined_call_operand.hbm [shape: f32[3,14], index: 12, kind: input, shape index: {}]   ;;  %s15059_s13 = inlined_call_operand.vmem [shape: f32[9,14,12], index: 13, kind: input, shape index: {}]   ;;  %s15060_s14 = inlined_call_operand.hbm [shape: f32[3,12], index: 14, kind: input, shape index: {}]   ;;  %s15061_s15 = inlined_call_operand.hbm [shape: f32[12,10], index: 15, kind: input, shape index: {}]   ;;  %s15062_s16 = inlined_call_operand.hbm [shape: f32[1,10], index: 16, kind: input, shape index: {}]   ;;  %s15063_s17 = inlined_call_operand.hbm [shape: f32[2,1,10], index: 17, kind: output, shape index: {}]  }
   0x1   :  { %15085 = sst [smem:[#allocation90_spill]] %s15046_s0 }
   0x2   :  { %15086 = sst [smem:[#allocation91_spill]] %s15047_s1 }
   0x3   :  { %15087 = sst [smem:[#allocation92_spill]] %s15050_s4 }
   0x4   :  { %15088 = sst [smem:[#allocation93_spill]] %s15054_s8 }
   0x5   :  { %15089 = sst [smem:[#allocation94_spill]] %s15058_s12 }
   0x6   :  { %22 = vsyncpa [#allocation10], 0 }
   0x7   :  { %23 = vsyncpa [#allocation13], 0 }
   0x8   :  { %24 = vsyncpa [#allocation16], 0 }
   0x9   :  { %25 = vsyncpa [#allocation19], 0 }
   0xa   :  { %26 = vsyncpa [#allocation22], 0 }
   0xb   :  { %27 = vsyncpa [#allocation11], 0 }
   0xc   :  { %29 = vsyncpa [#allocation11 + $0x1], 0  ;;  %s12006_s24 = smov 0   ;;  %s12008_s25 = smov 0  }
   0xd   :  { %s12010_s26 = smov 0   ;;  %s12012_s27 = smov 0  }
   0xe LB: > { %15090 = sst [smem:[#allocation31_spill]] %s11887_s24  ;;  %s12027_s28 = sadd.s32 4294967295, %s11899_s27   ;;  %s11899_s27 = sphi %s12012_s27, %s15279_s27   ;;  %s11895_s26 = sphi %s12010_s26, %s15281_s26   ;;  %s11891_s25 = sphi %s12008_s25, %s15283_s25   ;;  %s11887_s24 = sphi %s12006_s24, %s15282_s24  }
   0xf   : > { %15091 = sst [smem:[#allocation32_spill]] %s11895_s26  ;;  %s9951_s29 = sadd.s32 4294967294, %s11899_s27  }
  0x10   : > { %s12031_s0 = sadd.s32 1, %s11899_s27   ;;  %s404_s30 = sadd.s32 1, %s11895_s26 }
  0x11   : > { %15092 = sst [smem:[#allocation33_spill]] %s12031_s0  ;;  %s401_s18 = ssub.s32 %s11899_s27, %s12031_s0 }
  0x12   : > { %p414_p0 = scmp.ne.s32.totalorder %s11895_s26, %s11891_s25  ;;  %p402_p1 = scmp.eq.s32.totalorder %s401_s18, 0 }
  0x13   : > { %p415_p2 = scmp.eq.s32.totalorder %s12027_s28, 1  ;;  %p420_p3 = scmp.ne.s32.totalorder %s11891_s25, %s11887_s24 }
  0x14   : > { %p421_p4 = scmp.eq.s32.totalorder %s9951_s29, 1  ;;  %p9952_p7 = scmp.ge.s32.totalorder %s11899_s27, 1 }
  0x15   : > { %s12042_s19 = scalar_select %p402_p1, %s11895_s26, %s404_s30  }
  0x16   : > { %p12044_p5 = por %p415_p2, %p414_p0  ;;  %p12048_p6 = por %p421_p4, %p420_p3 }
  0x17   : > { %15093 = sst [smem:[#allocation34_spill]] %s12042_s19  ;;  %p428_p8 = scmp.lt.s32.totalorder %s11899_s27, 3 }
  0x18   : > { %s15094_s1 = scalar_select %p12044_p5, 1, 0 }
  0x19   : > { %s15095_s20 = scalar_select %p12048_p6, 1, 0 }
  0x1a   : > { %p15069_p9 = scmp.eq.s32.totalorder %s12027_s28, 0  ;;  %p12055_p10 = pnand %p9952_p7, %p428_p8 }
  0x1b   : > { %15096 = sst [smem:[#allocation35_spill]] %s15095_s20  ;;  %s11901_s22 = smov [#allocation12]  }
  0x1c   : > { %s15097_s21 = scalar_select %p12055_p10, 1, 0 }
  0x1d   : > { %s458_s23 = sshll.u32 %s11901_s22, 4  ;;  %p11455_p11 = pneg %p12055_p10  ;;  %s459_s23 = int_to_ptr.vmem [resolvable:$true] %s458_s23 }
  0x1e   : > { %s11902_s29 = smov [#allocation15]   ;;  %s11903_s19 = smov [#allocation18]  }
  0x1f   : > { %s486_s30 = sshll.u32 %s11902_s29, 4  ;;  %p12063_p12 = pnand %p15069_p9, %p11455_p11  ;;  %s487_s30 = int_to_ptr.vmem [resolvable:$true] %s486_s30 }
  0x20   : > { %s514_s26 = sshll.u32 %s11903_s19, 4  ;;  %s11596_s22 = scalar_lea.vmem %s459_s23, 64  ;;  %s12067_s26 = int_to_ptr.vmem [resolvable:$true] %s514_s26 }
  0x21   : > { %p12071_p13 = pneg %p12063_p12  ;;  %p11597_p0 = scmp.ne.s32.totalorder %s459_s23, %s11596_s22 }
  0x22   : > { %p11604_p3 = scmp.lt.s32.totalorder %s459_s23, %s459_s23  ;;  %p11605_p4 = scmp.lt.s32.totalorder %s11596_s22, %s11596_s22 }
  0x23   : > { %p11599_p1 = pnand %p11597_p0, %p12071_p13 }
  0x24   : > { %p11606_p7 = por %p11605_p4, %p11604_p3 }
  0x25   : > { %p11600_p2 = pneg %p11599_p1 }
  0x27   : > { %p11607_p8 = pnand %p11606_p7, %p11600_p2 }
  0x29   : > { %11610 = shalt.err (!%p11607_p8)
}
  0x2a   : > { %s15100_s4 = sld [smem:[#allocation92_spill]]  ;;  %s11622_s20 = scalar_lea.vmem %s487_s30, 64 }
  0x2b   : > { %p11623_p11 = scmp.ne.s32.totalorder %s487_s30, %s11622_s20  ;;  %p11630_p5 = scmp.lt.s32.totalorder %s487_s30, %s487_s30 }
  0x2c   : > { %p11631_p0 = scmp.lt.s32.totalorder %s11622_s20, %s11622_s20 }
  0x2d   : > { %p11625_p9 = pnand %p11623_p11, %p12071_p13 }
  0x2e   : > { %p11632_p1 = por %p11631_p0, %p11630_p5 }
  0x2f   : > { %p11626_p6 = pneg %p11625_p9 }
  0x30   : > { %11461 = dma.hbm_to_vmem [thread:$0]  (!%p12063_p12), %s15100_s4, 64, %s459_s23, [#allocation13]  }
  0x31   : > { %p11633_p10 = pnand %p11632_p1, %p11626_p6 }
  0x33   : > { %11636 = shalt.err (!%p11633_p10)
}
  0x34   : > { %s15101_s8 = sld [smem:[#allocation93_spill]]  ;;  %s11648_s23 = scalar_lea.vmem %s12067_s26, 64 }
  0x35   : > { %p11649_p2 = scmp.ne.s32.totalorder %s12067_s26, %s11648_s23  ;;  %p11656_p4 = scmp.lt.s32.totalorder %s12067_s26, %s12067_s26 }
  0x36   : > { %p11657_p5 = scmp.lt.s32.totalorder %s11648_s23, %s11648_s23 }
  0x37   : > { %p11651_p3 = pnand %p11649_p2, %p12071_p13 }
  0x38   : > { %p11658_p6 = por %p11657_p5, %p11656_p4 }
  0x39   : > { %p11652_p9 = pneg %p11651_p3 }
  0x3a   : > { %11467 = dma.hbm_to_vmem [thread:$0]  (!%p12063_p12), %s15101_s8, 64, %s487_s30, [#allocation16]  }
  0x3b   : > { %p11659_p10 = pnand %p11658_p6, %p11652_p9 }
  0x3d   : > { %11662 = shalt.err (!%p11659_p10)
}
  0x3e   : > { %s15102_s12 = sld [smem:[#allocation94_spill]]  ;;  %s11904_s30 = smov [#allocation21]  }
  0x3f   : > { %s538_s19 = sshll.u32 %s11904_s30, 4  ;;  %s539_s19 = int_to_ptr.vmem [resolvable:$true] %s538_s19 }
  0x40   : > { %s11674_s29 = scalar_lea.vmem %s539_s19, 256  ;;  %p11682_p0 = scmp.lt.s32.totalorder %s539_s19, %s539_s19 }
  0x41   : > { %p11675_p7 = scmp.ne.s32.totalorder %s539_s19, %s11674_s29  ;;  %p11683_p1 = scmp.lt.s32.totalorder %s11674_s29, %s11674_s29 }
  0x43   : > { %p11677_p8 = pnand %p11675_p7, %p12071_p13  ;;  %p11684_p2 = por %p11683_p1, %p11682_p0 }
  0x44   : > { %11473 = dma.hbm_to_vmem [thread:$0]  (!%p12063_p12), %s15102_s12, 64, %s12067_s26, [#allocation19]  }
  0x45   : > { %p11678_p11 = pneg %p11677_p8 }
  0x47   : > { %p11685_p3 = pnand %p11684_p2, %p11678_p11 }
  0x49   : > { %11688 = shalt.err (!%p11685_p3)
}
  0x4a   : > { %s11905_s22 = smov 128   ;;  %s11906_s23 = smov 8  }
  0x4b   : > { %11479 = dma.hbm_to_vmem [thread:$0]  (!%p12063_p12), %s15061_s15, 256, %s539_s19, [#allocation22], %s11905_s22, %s11905_s22, %s11906_s23  }
  0x4c   : > { %s11907_s20 = smov [#allocation9]   ;;  %s11908_s4 = smov [#allocation14]  }
  0x4d   : > { %s444_s30 = sshll.u32 %s11907_s20, 4  ;;  %s472_s8 = sshll.u32 %s11908_s4, 4  ;;  %s445_s30 = int_to_ptr.vmem [resolvable:$true] %s444_s30  ;;  %s473_s8 = int_to_ptr.vmem [resolvable:$true] %s472_s8 }
  0x4e   : > { %s11700_s12 = scalar_lea.vmem %s445_s30, 64  ;;  %p11708_p6 = scmp.lt.s32.totalorder %s445_s30, %s445_s30 }
  0x4f   : > { %p11701_p9 = scmp.ne.s32.totalorder %s445_s30, %s11700_s12  ;;  %p11709_p10 = scmp.lt.s32.totalorder %s11700_s12, %s11700_s12 }
  0x51   : > { %p11703_p4 = pnand %p11701_p9, %p12071_p13  ;;  %p11710_p7 = por %p11709_p10, %p11708_p6 }
  0x53   : > { %p11704_p5 = pneg %p11703_p4 }
  0x55   : > { %p11711_p8 = pnand %p11710_p7, %p11704_p5 }
  0x57   : > { %11714 = shalt.err (!%p11711_p8)
}
  0x58   : > { %11458 = dma.hbm_to_vmem [thread:$0]  (!%p12063_p12), %s15048_s2, 64, %s445_s30, [#allocation10]  }
  0x59   : > { %s11726_s4 = scalar_lea.vmem %s473_s8, 16  ;;  %s11733_s22 = scalar_lea.vmem %s473_s8, 32 }
  0x5a   : > { %p11727_p11 = scmp.ne.s32.totalorder %s473_s8, %s11726_s4  ;;  %p11734_p2 = scmp.lt.s32.totalorder %s473_s8, %s473_s8 }
  0x5b   : > { %p11735_p3 = scmp.lt.s32.totalorder %s11733_s22, %s11726_s4 }
  0x5c   : > { %p11729_p0 = pnand %p11727_p11, %p12071_p13 }
  0x5d   : > { %p11736_p9 = por %p11735_p3, %p11734_p2 }
  0x5e   : > { %p11730_p1 = pneg %p11729_p0 }
  0x60   : > { %p11737_p4 = pnand %p11736_p9, %p11730_p1 }
  0x62   : > { %11740 = shalt.err (!%p11737_p4)
}
  0x63   : > { %11464 = dma.hbm_to_vmem [thread:$0]  (!%p12063_p12), %s15052_s6, 16, %s473_s8, [#allocation13]  }
  0x64   : > { %s11909_s24 = smov [#allocation17]   ;;  %s11910_s20 = smov [#allocation20]  }
  0x65   : > { %s500_s26 = sshll.u32 %s11909_s24, 4  ;;  %s528_s30 = sshll.u32 %s11910_s20, 4  ;;  %s501_s26 = int_to_ptr.vmem [resolvable:$true] %s500_s26  ;;  %s529_s30 = int_to_ptr.vmem [resolvable:$true] %s528_s30 }
  0x66   : > { %s11752_s29 = scalar_lea.vmem %s501_s26, 64  ;;  %p11760_p7 = scmp.lt.s32.totalorder %s501_s26, %s501_s26 }
  0x67   : > { %p11753_p5 = scmp.ne.s32.totalorder %s501_s26, %s11752_s29  ;;  %p11761_p8 = scmp.lt.s32.totalorder %s11752_s29, %s11752_s29 }
  0x69   : > { %p11755_p6 = pnand %p11753_p5, %p12071_p13  ;;  %p11762_p11 = por %p11761_p8, %p11760_p7 }
  0x6b   : > { %p11756_p10 = pneg %p11755_p6 }
  0x6d   : > { %p11763_p0 = pnand %p11762_p11, %p11756_p10 }
  0x6f   : > { %11766 = shalt.err (!%p11763_p0)
}
  0x70   : > { %11470 = dma.hbm_to_vmem [thread:$0]  (!%p12063_p12), %s15056_s10, 64, %s501_s26, [#allocation16]  }
  0x71   : > { %s11778_s4 = scalar_lea.vmem %s529_s30, 64  ;;  %p11786_p9 = scmp.lt.s32.totalorder %s529_s30, %s529_s30 }
  0x72   : > { %p11779_p1 = scmp.ne.s32.totalorder %s529_s30, %s11778_s4  ;;  %p11787_p4 = scmp.lt.s32.totalorder %s11778_s4, %s11778_s4 }
  0x74   : > { %p11781_p2 = pnand %p11779_p1, %p12071_p13  ;;  %p11788_p5 = por %p11787_p4, %p11786_p9 }
  0x76   : > { %p11782_p3 = pneg %p11781_p2 }
  0x78   : > { %p11789_p6 = pnand %p11788_p5, %p11782_p3 }
  0x7a   : > { %11792 = shalt.err (!%p11789_p6)
}
  0x7b   : > { %11476 = dma.hbm_to_vmem [thread:$0]  (!%p12063_p12), %s15060_s14, 64, %s529_s30, [#allocation19]  }
  0x7c   : > { %s11911_s23 = smov [#allocation23]  }
  0x7d   : > { %s552_s24 = sshll.u32 %s11911_s23, 4  ;;  %s553_s24 = int_to_ptr.vmem [resolvable:$true] %s552_s24 }
  0x7e   : > { %s11804_s26 = scalar_lea.vmem %s553_s24, 16  ;;  %s11811_s20 = scalar_lea.vmem %s553_s24, 32 }
  0x7f   : > { %p11805_p10 = scmp.ne.s32.totalorder %s553_s24, %s11804_s26  ;;  %p11812_p11 = scmp.lt.s32.totalorder %s553_s24, %s553_s24 }
  0x80   : > { %p11813_p0 = scmp.lt.s32.totalorder %s11811_s20, %s11804_s26 }
  0x81   : > { %p11807_p7 = pnand %p11805_p10, %p12071_p13 }
  0x82   : > { %p11814_p1 = por %p11813_p0, %p11812_p11 }
  0x83   : > { %p11808_p8 = pneg %p11807_p7 }
  0x85   : > { %p11815_p2 = pnand %p11814_p1, %p11808_p8 }
  0x87   : > { %11818 = shalt.err (!%p11815_p2)
}
  0x88   : > { %11482 = dma.hbm_to_vmem [thread:$0]  (!%p12063_p12), %s15062_s16, 16, %s553_s24, [#allocation22]  }
  0x89   : > { %p15103_p3 = scmp.ne.s32.totalorder %s15097_s21, 0 }
  0x8b   : > { %573 = sbr.rel (%p15103_p3) target bundleno = 2842 (0xb1a), region = 88 }
  0x90   : > { %p15104_p9 = scmp.eq.s32.totalorder %s12027_s28, 0 }
  0x92   : > { %11862 = dma.done.wait (%p15104_p9), [#allocation10], 64   ;;  %p15105_p13 = pmov %p15104_p9 }
  0x93   : > { %p15106_p4 = pmov %p15104_p9 }
  0x94   : > { %11864 = vsyncadd (%p15105_p13), [#allocation10], 4294967232 }
  0x95   : > { %11866 = dma.done.wait (%p15106_p4), [#allocation13], 80   ;;  %p15107_p5 = pmov %p15106_p4 }
  0x96   : > { %p15108_p6 = pmov %p15106_p4 }
  0x97   : > { %11868 = vsyncadd (%p15107_p5), [#allocation13], 4294967216 }
  0x98   : > { %11870 = dma.done.wait (%p15108_p6), [#allocation16], 128   ;;  %p15109_p12 = pmov %p15106_p4 }
  0x99   : > { %p15110_p10 = pmov %p15106_p4 }
  0x9a   : > { %11872 = vsyncadd (%p15109_p12), [#allocation16], 4294967168 }
  0x9b   : > { %11874 = dma.done.wait (%p15110_p10), [#allocation19], 128   ;;  %p15111_p7 = pmov %p15106_p4 }
  0x9c   : > { %p15112_p8 = pmov %p15106_p4 }
  0x9d   : > { %11876 = vsyncadd (%p15111_p7), [#allocation19], 4294967168 }
  0x9e   : > { %11878 = dma.done.wait (%p15112_p8), [#allocation22], 272   ;;  %p15113_p11 = pmov %p15106_p4 }
  0x9f   : > { %p656_p0 = scmp.lt.s32.totalorder %s12027_s28, 1  ;;  %v11912_v0 = vmov 0   ;;  %s15114_s8 = sld [smem:[#allocation90_spill]]  ;;  %v2929_v30 = vld [vmem:[%s15049_s3] sm:$0xff]  ;;  %v9995_v35 = vld [vmem:[%s15049_s3 + $0x8] sm:$0xff]  ;;  %vm2875_vm0 = vcmask 64512  }
  0xa0   : > { %11880 = vsyncadd (%p15113_p11), [#allocation22], 4294967024  ;;  %11553 = vset.pattern.permute.xlu1 %v11912_v0  ;;  %11552 = vset.pattern.permute.xlu0 %v11912_v0  ;;  %s15116_s29 = sld [smem:[#allocation91_spill]]  ;;  %vm2903_vm1 = vcmask 62464   ;;  %vm5778_vm2 = vcmask 1043456   ;;  %vm5730_vm3 = vcmask 97280  }
  0xa1   : > { %s657_s0 = scalar_select %p656_p0, %s12027_s28, 1  ;;  %10830 = vmatprep.subr.mxu1 %v2929_v30  ;;  %10792 = vmatprep.subr.mxu0 %v9995_v35  ;;  %vm11914_vm4 = vmmov 0   ;;  %vm5754_vm5 = vcmask 93184   ;;  %vm6279_vm6 = vcmask 48128   ;;  %vm6351_vm7 = vcmask 1045504  }
  0xa2   : > { %10831 = vmatpush3.msra.mxu1 %v2929_v30  ;;  %10793 = vmatpush3.msra.mxu0 %v9995_v35  ;;  %vm6283_vm8 = vcmask 40960   ;;  %vm5852_vm9 = vcmask 46080   ;;  %vm6312_vm10 = vcmask 43008   ;;  %vm6288_vm11 = vcmask 90112   ;;  %s10406_s22 = sshll.u32 %s12027_s28, 4  ;;  %p15275_p2 = scmp.ne.s32.totalorder %s15094_s1, 0 }
  0xa3   : > { %s10409_s21 = sshll.u32 %s657_s0, 8  ;;  %vm7171_vm12 = vcmask 94210   ;;  %vm7167_vm13 = vcmask 92160   ;;  %vm7169_vm14 = vcmask 97285   ;;  %vm6290_vm15 = vcmask 130048   ;;  %s9806_s20 = scalar_lea.hbm %s15063_s17, %s10406_s22 }
  0xa5   : > { %s12170_s4 = scalar_lea.vmem %s15114_s8, %s10409_s21  ;;  %s11915_s21 = smov [#allocation24]  }
  0xa6   : > { %v892_v1 = vld [vmem:[%s12170_s4 + $0x1] sm:$0xff]  ;;  %v893_v3 = vld [vmem:[%s12170_s4 + $0x9] sm:$0xff]  ;;  %v894_v5 = vld [vmem:[%s12170_s4 + $0x11] sm:$0xff]  ;;  %s11823_s18 = sshll.u32 %s11915_s21, 4  ;;  %s11824_s18 = int_to_ptr.vmem [resolvable:$false] %s11823_s18 }
  0xa7   : > { %v661_v2 = vld [vmem:[%s12170_s4] sm:$0xff]  ;;  %924 = vperm.xlu1 %11553, %v892_v1   ;;  %v662_v4 = vld [vmem:[%s12170_s4 + $0x8] sm:$0xff]  ;;  %v663_v6 = vld [vmem:[%s12170_s4 + $0x10] sm:$0xff]  ;;  %s11825_s28 = scalar_lea.vmem %s11824_s18, 32 }
  0xa8   : > { %692 = vperm.xlu0 %11552, %v661_v2   ;;  %v1125_v7 = vld [vmem:[%s12170_s4 + $0xa] sm:$0xff]  ;;  %v1124_v8 = vld [vmem:[%s12170_s4 + $0x2] sm:$0xff]  ;;  %v664_v9 = vld [vmem:[%s12170_s4 + $0x18] sm:$0xff] }
  0xa9   : > { %v1126_v10 = vld [vmem:[%s12170_s4 + $0x12] sm:$0xff]  ;;  %v665_v12 = vld [vmem:[%s12170_s4 + $0x20] sm:$0xff]  ;;  %v666_v16 = vld [vmem:[%s12170_s4 + $0x28] sm:$0xff] }
  0xaa   : > { %v895_v11 = vld [vmem:[%s12170_s4 + $0x19] sm:$0xff]  ;;  %v896_v13 = vld [vmem:[%s12170_s4 + $0x21] sm:$0xff]  ;;  %v897_v17 = vld [vmem:[%s12170_s4 + $0x29] sm:$0xff] }
  0xab   : > { %929 = vperm.xlu1 %11553, %v893_v3   ;;  %v1127_v14 = vld [vmem:[%s12170_s4 + $0x1a] sm:$0xff]  ;;  %v1128_v15 = vld [vmem:[%s12170_s4 + $0x22] sm:$0xff]  ;;  %v898_v18 = vld [vmem:[%s12170_s4 + $0x31] sm:$0xff] }
  0xac   : > { %697 = vperm.xlu0 %11552, %v662_v4   ;;  %v667_v19 = vld [vmem:[%s12170_s4 + $0x30] sm:$0xff]  ;;  %v668_v22 = vld [vmem:[%s12170_s4 + $0x38] sm:$0xff]  ;;  %v669_v24 = vld [vmem:[%s12170_s4 + $0x40] sm:$0xff] }
  0xad   : > { %v1129_v20 = vld [vmem:[%s12170_s4 + $0x2a] sm:$0xff]  ;;  %v1130_v21 = vld [vmem:[%s12170_s4 + $0x32] sm:$0xff]  ;;  %v900_v25 = vld [vmem:[%s12170_s4 + $0x41] sm:$0xff] }
  0xae   : > { %v899_v23 = vld [vmem:[%s12170_s4 + $0x39] sm:$0xff]  ;;  %v1132_v27 = vld [vmem:[%s12170_s4 + $0x42] sm:$0xff]  ;;  %v902_v31 = vld [vmem:[%s12170_s4 + $0x51] sm:$0xff] }
  0xaf   : > { %934 = vperm.xlu1 %11553, %v894_v5   ;;  %v1131_v26 = vld [vmem:[%s12170_s4 + $0x3a] sm:$0xff]  ;;  %v670_v28 = vld [vmem:[%s12170_s4 + $0x48] sm:$0xff]  ;;  %v671_v32 = vld [vmem:[%s12170_s4 + $0x50] sm:$0xff] }
  0xb0   : > { %702 = vperm.xlu0 %11552, %v663_v6   ;;  %v901_v29 = vld [vmem:[%s12170_s4 + $0x49] sm:$0xff]  ;;  %v1134_v43 = vld [vmem:[%s12170_s4 + $0x52] sm:$0xff]  ;;  %v904_v56 = vld [vmem:[%s12170_s4 + $0x61] sm:$0xff] }
  0xb1   : > { %v1133_v38 = vld [vmem:[%s12170_s4 + $0x4a] sm:$0xff]  ;;  %v672_v48 = vld [vmem:[%s12170_s4 + $0x58] sm:$0xff]  ;;  %v673_v57 = vld [vmem:[%s12170_s4 + $0x60] sm:$0xff] }
  0xb2   : > { %v903_v51 = vld [vmem:[%s12170_s4 + $0x59] sm:$0xff]  ;;  %v12272_v3 = vld [vmem:[%s12170_s4 + $0x62] sm:$0xff] }
  0xb3   : > { %1161 = vperm.xlu1 %11553, %v1125_v7   ;;  %v12260_v62 = vld [vmem:[%s12170_s4 + $0x5a] sm:$0xff]  ;;  %v12347_v35 = vld [vmem:[%s12170_s4 + $0x72] sm:$0xff] }
  0xb4   : > { %1156 = vperm.xlu0 %11552, %v1124_v8   ;;  %v674_v8 = vld [vmem:[%s12170_s4 + $0x68] sm:$0xff] }
  0xb7   : > { %707 = vperm.xlu1 %11553, %v664_v9  }
  0xb8   : > { %1166 = vperm.xlu0 %11552, %v1126_v10  }
  0xbb   : > { %1388 = vperm.xlu1 %11553, %v663_v6  }
  0xbc   : > { %939 = vperm.xlu0 %11552, %v895_v11  }
  0xbf   : > { %712 = vperm.xlu1 %11553, %v665_v12  }
  0xc0   : > { %1393 = vperm.xlu0 %11552, %v664_v9  }
  0xc3   : > { %1398 = vperm.xlu1 %11553, %v665_v12  }
  0xc4   : > { %944 = vperm.xlu0 %11552, %v896_v13  }
  0xc7   : > { %1620 = vperm.xlu1 %11553, %v894_v5  }
  0xc8   : > { %1171 = vperm.xlu0 %11552, %v1127_v14  }
  0xcb   : > { %1176 = vperm.xlu1 %11553, %v1128_v15  }
  0xcc   : > { %1625 = vperm.xlu0 %11552, %v895_v11   ;;  %v12289_v11 = vld [vmem:[%s12170_s4 + $0x69] sm:$0xff] }
  0xcf   : > { %717 = vperm.xlu1 %11553, %v666_v16  }
  0xd0   : > { %1630 = vperm.xlu0 %11552, %v896_v13  }
  0xd3   : > { %1403 = vperm.xlu1 %11553, %v666_v16  }
  0xd4   : > { %949 = vperm.xlu0 %11552, %v897_v17  }
  0xd7   : > { %1857 = vperm.xlu1 %11553, %v1127_v14  }
  0xd8   : > { %1852 = vperm.xlu0 %11552, %v1126_v10  }
  0xdb   : > { %954 = vperm.xlu1 %11553, %v898_v18  }
  0xdc   : > { %722 = vperm.xlu0 %11552, %v667_v19  }
  0xdf   : > { %1862 = vperm.xlu1 %11553, %v1128_v15  }
  0xe0   : > { %1408 = vperm.xlu0 %11552, %v667_v19  }
  0xe3   : > { %1635 = vperm.xlu1 %11553, %v897_v17  }
  0xe4   : > { %1181 = vperm.xlu0 %11552, %v1129_v20  }
  0xe7   : > { %2089 = vperm.xlu1 %11553, %v666_v16   ;;  %v12300_v16 = vld [vmem:[%s12170_s4 + $0x71] sm:$0xff] }
  0xe8   : > { %2084 = vperm.xlu0 %11552, %v665_v12  }
  0xeb   : > { %1640 = vperm.xlu1 %11553, %v898_v18  }
  0xec   : > { %1186 = vperm.xlu0 %11552, %v1130_v21  }
  0xef   : > { %727 = vperm.xlu1 %11553, %v668_v22  }
  0xf0   : > { %2094 = vperm.xlu0 %11552, %v667_v19  }
  0xf3   : > { %1413 = vperm.xlu1 %11553, %v668_v22  }
  0xf4   : > { %959 = vperm.xlu0 %11552, %v899_v23  }
  0xf7   : > { %2316 = vperm.xlu1 %11553, %v896_v13  }
  0xf8   : > { %1867 = vperm.xlu0 %11552, %v1129_v20  }
  0xfb   : > { %732 = vperm.xlu1 %11553, %v669_v24  }
  0xfc   : > { %2321 = vperm.xlu0 %11552, %v897_v17   ;;  %v675_v17 = vld [vmem:[%s12170_s4 + $0x70] sm:$0xff] }
  0xff   : > { %1418 = vperm.xlu1 %11553, %v669_v24  }
 0x100   : > { %964 = vperm.xlu0 %11552, %v900_v25  }
 0x103   : > { %2326 = vperm.xlu1 %11553, %v898_v18  }
 0x104   : > { %1872 = vperm.xlu0 %11552, %v1130_v21  }
 0x107   : > { %1645 = vperm.xlu1 %11553, %v899_v23  }
 0x108   : > { %1191 = vperm.xlu0 %11552, %v1131_v26  }
 0x10b   : > { %2548 = vperm.xlu1 %11553, %v1128_v15  }
 0x10c   : > { %2099 = vperm.xlu0 %11552, %v668_v22   ;;  %v12314_v22 = vld [vmem:[%s12170_s4 + $0x6a] sm:$0xff] }
 0x10f   : > { %1196 = vperm.xlu1 %11553, %v1132_v27  }
 0x110   : > { %2553 = vperm.xlu0 %11552, %v1129_v20  }
 0x113   : > { %2104 = vperm.xlu1 %11553, %v669_v24  }
 0x114   : > { %1650 = vperm.xlu0 %11552, %v900_v25  }
 0x117   : > { %737 = vperm.xlu1 %11553, %v670_v28  }
 0x118   : > { %2558 = vperm.xlu0 %11552, %v1130_v21  }
 0x11b   : > { %1423 = vperm.xlu1 %11553, %v670_v28  }
 0x11c   : > { %969 = vperm.xlu0 %11552, %v901_v29  }
 0x11f   : > { %2331 = vperm.xlu1 %11553, %v899_v23  }
 0x120   : > { %1877 = vperm.xlu0 %11552, %v1131_v26  }
 0x122   : > { %v12206_v33 = vpop.permute.xlu1 %924 }
 0x123   : > { %v12208_v34 = vpop.permute.xlu0 %692  ;;  %974 = vperm.xlu1 %11553, %v902_v31  }
 0x124   : > { %742 = vperm.xlu0 %11552, %v671_v32  }
 0x126   : > { %v12213_v36 = vpop.permute.xlu1 %929 }
 0x127   : > { %v12215_v37 = vpop.permute.xlu0 %697  ;;  %1882 = vperm.xlu1 %11553, %v1132_v27  }
 0x128   : > { %1428 = vperm.xlu0 %11552, %v671_v32  }
 0x12a   : > { %v12218_v39 = vpop.permute.xlu1 %934 }
 0x12b   : > { %v12220_v40 = vpop.permute.xlu0 %702  ;;  %1201 = vperm.xlu1 %11553, %v1133_v38  }
 0x12c   : > { %2336 = vperm.xlu0 %11552, %v900_v25   ;;  %v12322_v25 = vld [vmem:[%s15116_s29 + $0x1] ss:$0 sm:$0xff] }
 0x12d   : > { %v1068_v30 = vmul.f32 %v12322_v25, %v12206_v33 }
 0x12e   : > { %v12222_v41 = vpop.permute.xlu1 %1161 }
 0x12f   : > { %v12224_v42 = vpop.permute.xlu0 %1156  ;;  %2109 = vperm.xlu1 %11553, %v670_v28  }
 0x130   : > { %1655 = vperm.xlu0 %11552, %v901_v29  }
 0x132   : > { %v12227_v44 = vpop.permute.xlu1 %707 }
 0x133   : > { %v12229_v45 = vpop.permute.xlu0 %1166  ;;  %1206 = vperm.xlu1 %11553, %v1134_v43  }
 0x134   : > { %2563 = vperm.xlu0 %11552, %v1131_v26   ;;  %v12327_v26 = vld [vmem:[%s15116_s29] ss:$0 sm:$0xff] }
 0x135   : > { %v837_v33 = vmul.f32 %v12327_v26, %v12215_v37  ;;  %v12373_v37 = vld [vmem:[%s15116_s29 + $0x5] ss:$0 sm:$0xff] }
 0x136   : > { %v12231_v46 = vpop.permute.xlu1 %1388 }
 0x137   : > { %v12233_v47 = vpop.permute.xlu0 %939  ;;  %2114 = vperm.xlu1 %11553, %v671_v32   ;;  %v12344_v32 = vld [vmem:[%s15116_s29 + $0x3] ss:$0 sm:$0xff] }
 0x138   : > { %1660 = vperm.xlu0 %11552, %v902_v31  }
 0x13a   : > { %v12236_v49 = vpop.permute.xlu1 %712 }
 0x13b   : > { %v12238_v50 = vpop.permute.xlu0 %1393  ;;  %747 = vperm.xlu1 %11553, %v672_v48  }
 0x13c   : > { %2568 = vperm.xlu0 %11552, %v1132_v27   ;;  %v12332_v27 = vld [vmem:[%s15116_s29 + $0x2] ss:$0 sm:$0xff] }
 0x13e   : > { %v12241_v52 = vpop.permute.xlu1 %1398 }
 0x13f   : > { %v12243_v53 = vpop.permute.xlu0 %944  ;;  %1433 = vperm.xlu1 %11553, %v672_v48  }
 0x140   : > { %979 = vperm.xlu0 %11552, %v903_v51  }
 0x142   : > { %v12245_v54 = vpop.permute.xlu1 %1620 }
 0x143   : > { %v12247_v55 = vpop.permute.xlu0 %1171  ;;  %2341 = vperm.xlu1 %11553, %v901_v29  }
 0x144   : > { %1887 = vperm.xlu0 %11552, %v1133_v38  }
 0x146   : > { %v12251_v58 = vpop.permute.xlu1 %1176 }
 0x147   : > { %v12253_v59 = vpop.permute.xlu0 %1625  ;;  %984 = vperm.xlu1 %11553, %v904_v56  }
 0x148   : > { %752 = vperm.xlu0 %11552, %v673_v57  }
 0x14a   : > { %v12255_v60 = vpop.permute.xlu1 %717 }
 0x14b   : > { %v12257_v61 = vpop.permute.xlu0 %1630  ;;  %1892 = vperm.xlu1 %11553, %v1134_v43  }
 0x14c   : > { %1438 = vperm.xlu0 %11552, %v673_v57  }
 0x14e   : > { %v12262_v63 = vpop.permute.xlu1 %1403 }
 0x14f   : > { %v12264_v0 = vpop.permute.xlu0 %949  ;;  %1211 = vperm.xlu1 %11553, %v12260_v62  }
 0x150   : > { %2346 = vperm.xlu0 %11552, %v902_v31   ;;  %v836_v31 = vmul.f32 %v12327_v26, %v12208_v34  ;;  %v12358_v34 = vld [vmem:[%s15116_s29 + $0x4] ss:$0 sm:$0xff] }
 0x152   : > { %v12267_v1 = vpop.permute.xlu1 %1857 }
 0x153   : > { %v12269_v2 = vpop.permute.xlu0 %1852  ;;  %2119 = vperm.xlu1 %11553, %v672_v48  }
 0x154   : > { %1665 = vperm.xlu0 %11552, %v903_v51  }
 0x156   : > { %v12274_v4 = vpop.permute.xlu1 %954 }
 0x157   : > { %v12276_v5 = vpop.permute.xlu0 %722  ;;  %1216 = vperm.xlu1 %11553, %v12272_v3  }
 0x158   : > { %2573 = vperm.xlu0 %11552, %v1133_v38   ;;  %v1300_v38 = vmul.f32 %v12332_v27, %v12224_v42 }
 0x15a   : > { %v12279_v6 = vpop.permute.xlu1 %1862 }
 0x15b   : > { %v12281_v7 = vpop.permute.xlu0 %1408  ;;  %2124 = vperm.xlu1 %11553, %v673_v57   ;;  %v1532_v57 = vmul.f32 %v12344_v32, %v12231_v46  ;;  %v1533_v46 = vmul.f32 %v12344_v32, %v12238_v50  ;;  %v1765_v50 = vmul.f32 %v12358_v34, %v12253_v59  ;;  %v1997_v59 = vmul.f32 %v12373_v37, %v12267_v1  ;;  %v12423_v1 = vld [vmem:[%s12170_s4 + $0x79] sm:$0xff] }
 0x15c   : > { %1670 = vperm.xlu0 %11552, %v904_v56  }
 0x15e   : > { %v12284_v9 = vpop.permute.xlu1 %1635 }
 0x15f   : > { %v12286_v10 = vpop.permute.xlu0 %1181  ;;  %757 = vperm.xlu1 %11553, %v674_v8  }
 0x160   : > { %2578 = vperm.xlu0 %11552, %v1134_v43   ;;  %v1069_v43 = vmul.f32 %v12322_v25, %v12213_v36  ;;  %v1301_v36 = vmul.f32 %v12332_v27, %v12222_v41 }
 0x162   : > { %v12291_v12 = vpop.permute.xlu1 %2089 }
 0x163   : > { %v2085_v13 = vpop.permute.xlu0 %2084  ;;  %1443 = vperm.xlu1 %11553, %v674_v8  }
 0x164   : > { %989 = vperm.xlu0 %11552, %v12289_v11  }
 0x166   : > { %v12294_v14 = vpop.permute.xlu1 %1640 }
 0x167   : > { %v12296_v15 = vpop.permute.xlu0 %1186  ;;  %2351 = vperm.xlu1 %11553, %v903_v51  }
 0x168   : > { %1897 = vperm.xlu0 %11552, %v12260_v62  }
 0x16a   : > { %v12303_v18 = vpop.permute.xlu1 %727 }
 0x16b   : > { %15115 = vst [vmem:[#allocation36_spill] sm:$0xff] %v12303_v18  ;;  %v12305_v19 = vpop.permute.xlu0 %2094  ;;  %994 = vperm.xlu1 %11553, %v12300_v16  }
 0x16c   : > { %762 = vperm.xlu0 %11552, %v675_v17  }
 0x16e   : > { %v12308_v20 = vpop.permute.xlu1 %1413 }
 0x16f   : > { %v12310_v21 = vpop.permute.xlu0 %959  ;;  %1902 = vperm.xlu1 %11553, %v12272_v3  }
 0x170   : > { %1448 = vperm.xlu0 %11552, %v675_v17  }
 0x172   : > { %v2317_v23 = vpop.permute.xlu1 %2316 }
 0x173   : > { %v12316_v24 = vpop.permute.xlu0 %1867  ;;  %1221 = vperm.xlu1 %11553, %v12314_v22  }
 0x174   : > { %2356 = vperm.xlu0 %11552, %v904_v56   ;;  %v1096_v56 = vadd.f32 %v1068_v30, %v836_v31  ;;  %v1097_v30 = vadd.f32 %v1069_v43, %v837_v33  ;;  %v12396_v43 = vld [vmem:[%s15116_s29 + $0x7] ss:$0 sm:$0xff]  ;;  %v12399_v33 = vld [vmem:[%s12170_s4 + $0x78] sm:$0xff] }
 0x175   : > { %v2460_v18 = vmul.f32 %v12396_v43, %v2317_v23 }
 0x176   : > { %v12334_v28 = vpop.permute.xlu1 %732  ;;  %v1328_v42 = vadd.f32 %v1300_v38, %v1096_v56  ;;  %v1996_v38 = vmul.f32 %v12373_v37, %v12269_v2  ;;  %v1070_v2 = vmul.f32 %v12322_v25, %v12218_v39  ;;  %v1302_v39 = vmul.f32 %v12332_v27, %v12229_v45 }
 0x177   : > { %15117 = vst [vmem:[#allocation37_spill] sm:$0xff] %v12334_v28  ;;  %v2322_v29 = vpop.permute.xlu0 %2321  ;;  %2129 = vperm.xlu1 %11553, %v674_v8   ;;  %v1764_v8 = vmul.f32 %v12358_v34, %v12245_v54  ;;  %v1329_v54 = vadd.f32 %v1301_v36, %v1097_v30 }
 0x178   : > { %1675 = vperm.xlu0 %11552, %v12289_v11   ;;  %v1560_v28 = vadd.f32 %v1532_v57, %v1328_v42 }
 0x179   : > { %v1561_v36 = vadd.f32 %v1533_v46, %v1329_v54  ;;  %v1534_v46 = vmul.f32 %v12344_v32, %v12241_v52  ;;  %v1766_v52 = vmul.f32 %v12358_v34, %v12257_v61  ;;  %v12447_v61 = vld [vmem:[#allocation9 + $0x1] ss:$0 sm:$0xff] }
 0x17a   : > { %v12360_v48 = vpop.permute.xlu1 %1418  ;;  %v1792_v56 = vadd.f32 %v1764_v8, %v1560_v28 }
 0x17b   : > { %v12362_v51 = vpop.permute.xlu0 %964  ;;  %1226 = vperm.xlu1 %11553, %v12347_v35  }
 0x17c   : > { %15118 = vst [vmem:[#allocation38_spill] sm:$0xff] %v12362_v51  ;;  %2583 = vperm.xlu0 %11552, %v12260_v62   ;;  %v12382_v62 = vld [vmem:[%s15116_s29 + $0x6] ss:$0 sm:$0xff]  ;;  %v2024_v51 = vadd.f32 %v1996_v38, %v1792_v56 }
 0x17d   : > { %v2228_v57 = vmul.f32 %v12382_v62, %v2085_v13  ;;  %v1793_v13 = vadd.f32 %v1765_v50, %v1561_v36  ;;  %v2229_v28 = vmul.f32 %v12382_v62, %v12291_v12  ;;  %v2461_v50 = vmul.f32 %v12396_v43, %v2322_v29 }
 0x17e   : > { %v12384_v41 = vpop.permute.xlu1 %2326 }
 0x17f   : > { %v12386_v31 = vpop.permute.xlu0 %1872  ;;  %2134 = vperm.xlu1 %11553, %v675_v17   ;;  %v838_v17 = vmul.f32 %v12327_v26, %v12220_v40  ;;  %v12420_v40 = vld [vmem:[%s15116_s29 + $0x8] ss:$0 sm:$0xff]  ;;  %v2256_v8 = vadd.f32 %v2228_v57, %v2024_v51 }
 0x180   : > { %1680 = vperm.xlu0 %11552, %v12300_v16   ;;  %v12435_v51 = vld [vmem:[#allocation9] ss:$0 sm:$0xff] }
 0x181   : > { %v1098_v23 = vadd.f32 %v1070_v2, %v838_v17  ;;  %v2488_v45 = vadd.f32 %v2460_v18, %v2256_v8  ;;  %v1998_v18 = vmul.f32 %v12373_v37, %v12279_v6  ;;  %v2230_v6 = vmul.f32 %v12382_v62, %v12305_v19 }
 0x182   : > { %v12408_v42 = vpop.permute.xlu1 %1645 }
 0x183   : > { %v12410_v30 = vpop.permute.xlu0 %1191  ;;  %767 = vperm.xlu1 %11553, %v12399_v33   ;;  %v1330_v12 = vadd.f32 %v1302_v39, %v1098_v23 }
 0x184   : > { %2588 = vperm.xlu0 %11552, %v12272_v3   ;;  %v2025_v3 = vadd.f32 %v1997_v59, %v1793_v13 }
 0x185   : > { %v1562_v17 = vadd.f32 %v1534_v46, %v1330_v12 }
 0x186   : > { %v2549_v38 = vpop.permute.xlu1 %2548  ;;  %v2257_v57 = vadd.f32 %v2229_v28, %v2025_v3  ;;  %v12450_v28 = vld [vmem:[%s12170_s4 + $0x81] sm:$0xff] }
 0x187   : > { %v12429_v54 = vpop.permute.xlu0 %2099  ;;  %v2692_v56 = vmul.f32 %v12420_v40, %v2549_v38  ;;  %1453 = vperm.xlu1 %11553, %v12399_v33   ;;  %v1794_v8 = vadd.f32 %v1766_v52, %v1562_v17  ;;  %v677_v3 = vld [vmem:[%s12170_s4 + $0x80] sm:$0xff]  ;;  %v12455_v38 = vld [vmem:[#allocation9 + $0x2] ss:$0 sm:$0xff] }
 0x188   : > { %999 = vperm.xlu0 %11552, %v12423_v1   ;;  %v2489_v59 = vadd.f32 %v2461_v50, %v2257_v57 }
 0x189   : > { %v2720_v2 = vadd.f32 %v2692_v56, %v2488_v45  ;;  %v2462_v56 = vmul.f32 %v12396_v43, %v12384_v41 }
 0x18a   : > { %v12441_v29 = vpop.permute.xlu1 %1196 }
 0x18b   : > { %v2554_v36 = vpop.permute.xlu0 %2553  ;;  %v2755_v13 = vadd.f32 %v12435_v51, %v2720_v2  ;;  %2361 = vperm.xlu1 %11553, %v12289_v11   ;;  %v2026_v11 = vadd.f32 %v1998_v18, %v1794_v8 }
 0x18c   : > { %v2693_v39 = vmul.f32 %v12420_v40, %v2554_v36  ;;  %1907 = vperm.xlu0 %11552, %v12314_v22  }
 0x18d   : > { %v2783_v23 = vmax.f32 %v2755_v13, 0.0  ;;  %v2258_v19 = vadd.f32 %v2230_v6, %v2026_v11  ;;  %v12474_v13 = vld [vmem:[%s12170_s4 + $0x7a] sm:$0xff] }
 0x18e   : > { %v2721_v46 = vadd.f32 %v2693_v39, %v2489_v59  ;;  %v12457_v45 = vpop.permute.xlu1 %2104 }
 0x18f   : > { %v12459_v50 = vpop.permute.xlu0 %1650  ;;  %v2815_v12 = vmul.f32 %v12447_v61, %v2783_v23  ;;  %1004 = vperm.xlu1 %11553, %v12450_v28   ;;  %v2490_v18 = vadd.f32 %v2462_v56, %v2258_v19 }
 0x190   : > { %v2756_v52 = vadd.f32 %v12435_v51, %v2721_v46  ;;  %772 = vperm.xlu0 %11552, %v677_v3  }
 0x191   : > { %v2847_v57 = vadd.f32 %v12455_v38, %v2815_v12 }
 0x192   : > { %v2784_v2 = vmax.f32 %v2756_v52, 0.0  ;;  %v12467_v17 = vpop.permute.xlu1 %737 }
 0x193   : > { %v2559_v36 = vpop.permute.xlu0 %2558  ;;  %2876 = vst.msk [vmem:[#allocation2] sm:$0xff] %vm2875_vm0, %v2847_v57  ;;  %1912 = vperm.xlu1 %11553, %v12347_v35   ;;  %v12492_v57 = vld [vmem:[%s12170_s4 + $0x82] sm:$0xff] }
 0x194   : > { %v2816_v41 = vmul.f32 %v12447_v61, %v2784_v2  ;;  %v2694_v59 = vmul.f32 %v12420_v40, %v2559_v36  ;;  %1458 = vperm.xlu0 %11552, %v677_v3  }
 0x196   : > { %v2848_v39 = vadd.f32 %v12455_v38, %v2816_v41  ;;  %v2722_v8 = vadd.f32 %v2694_v59, %v2490_v18  ;;  %v12477_v6 = vpop.permute.xlu1 %1423  ;;  %v1071_v59 = vmul.f32 %v12322_v25, %v12233_v47 }
 0x197   : > { %v12479_v23 = vpop.permute.xlu0 %969  ;;  %1231 = vperm.xlu1 %11553, %v12474_v13  }
 0x198   : > { %2877 = vst.msk [vmem:[#allocation2 + $0x8] sm:$0xff] %vm2875_vm0, %v2848_v39  ;;  %v2757_v46 = vadd.f32 %v12435_v51, %v2722_v8  ;;  %2366 = vperm.xlu0 %11552, %v12300_v16   ;;  %v1303_v39 = vmul.f32 %v12332_v27, %v12247_v55 }
 0x19a   : > { %v2785_v11 = vmax.f32 %v2757_v46, 0.0  ;;  %v2332_v56 = vpop.permute.xlu1 %2331  ;;  %v2905_v52 = vld [vmem:[#allocation2] sm:$0xff] }
 0x19b   : > { %v12485_v12 = vpop.permute.xlu0 %1877  ;;  %2139 = vperm.xlu1 %11553, %v12399_v33   ;;  %10832 = vmatprep.mubr.msk.f32.mxu1 %vm2875_vm0, %v2905_v52  ;;  %v839_v33 = vmul.f32 %v12327_v26, %v12227_v44  ;;  %v1767_v44 = vmul.f32 %v12358_v34, %v12284_v9  ;;  %v840_v9 = vmul.f32 %v12327_v26, %v12236_v49 }
 0x19c   : > { %v2817_v19 = vmul.f32 %v12447_v61, %v2785_v11  ;;  %1685 = vperm.xlu0 %11552, %v12423_v1   ;;  %v1535_v11 = vmul.f32 %v12344_v32, %v12262_v63  ;;  %v1999_v63 = vmul.f32 %v12373_v37, %v12316_v24  ;;  %v2463_v49 = vmul.f32 %v12396_v43, %v2332_v56 }
 0x19d   : > { %v1099_v47 = vadd.f32 %v1071_v59, %v839_v33 }
 0x19e   : > { %v2849_v2 = vadd.f32 %v12455_v38, %v2817_v19  ;;  %v12495_v36 = vpop.permute.xlu1 %974 }
 0x19f   : > { %v12497_v16 = vpop.permute.xlu0 %742  ;;  %v2930_v18 = vld [vmem:[#allocation2 + $0x1] sm:$0xff]  ;;  %1236 = vperm.xlu1 %11553, %v12492_v57   ;;  %v1331_v52 = vadd.f32 %v1303_v39, %v1099_v47  ;;  %v12539_v39 = vld [vmem:[%s12170_s4 + $0x89] sm:$0xff] }
 0x1a0   : > { %v2906_v41 = vld [vmem:[#allocation2 + $0x8] sm:$0xff]  ;;  %2878 = vst.msk [vmem:[#allocation2 + $0x10] sm:$0xff] %vm2875_vm0, %v2849_v2  ;;  %10794 = vmatprep.mubr.msk.f32.mxu0 %vm2875_vm0, %v2930_v18  ;;  %2593 = vperm.xlu0 %11552, %v12314_v22  }
 0x1a1   : > { %10833 = vmatmul.mubr.msk.f32.vlgmr.msra.gmra.mxu1 %vm2875_vm0, %v2906_v41  ;;  %v12518_v22 = vld [vmem:[%s12170_s4 + $0x88] sm:$0xff]  ;;  %v1072_v41 = vmul.f32 %v12322_v25, %v12243_v53  ;;  %v1563_v59 = vadd.f32 %v1535_v11, %v1331_v52  ;;  %v2231_v53 = vmul.f32 %v12382_v62, %v12429_v54  ;;  %v1768_v54 = vmul.f32 %v12358_v34, %v12294_v14 }
 0x1a2   : > { %v12510_v8 = vpop.permute.xlu1 %1882  ;;  %v2232_v14 = vmul.f32 %v12382_v62, %v12457_v45 }
 0x1a3   : > { %v12512_v46 = vpop.permute.xlu0 %1428  ;;  %2144 = vperm.xlu1 %11553, %v677_v3   ;;  %v1304_v3 = vmul.f32 %v12332_v27, %v12251_v58  ;;  %v1795_v33 = vadd.f32 %v1767_v44, %v1563_v59  ;;  %v1100_v11 = vadd.f32 %v1072_v41, %v840_v9 }
 0x1a4   : > { %1690 = vperm.xlu0 %11552, %v12450_v28  }
 0x1a5   : > { %v2027_v52 = vadd.f32 %v1999_v63, %v1795_v33  ;;  %v1332_v58 = vadd.f32 %v1304_v3, %v1100_v11  ;;  %v12560_v63 = vld [vmem:[%s12170_s4 + $0x91] sm:$0xff] }
 0x1a6   : > { %v12522_v19 = vpop.permute.xlu1 %1201  ;;  %v679_v33 = vld [vmem:[%s12170_s4 + $0x90] sm:$0xff] }
 0x1a7   : > { %v2337_v55 = vpop.permute.xlu0 %2336  ;;  %v2931_v2 = vld [vmem:[#allocation2 + $0x9] sm:$0xff]  ;;  %777 = vperm.xlu1 %11553, %v12518_v22   ;;  %v2259_v44 = vadd.f32 %v2231_v53, %v2027_v52 }
 0x1a8   : > { %v2907_v18 = vld [vmem:[#allocation2 + $0x10] sm:$0xff]  ;;  %10795 = vmatmul.mubr.msk.f32.vlgmr.msra.gmra.mxu0 %vm2875_vm0, %v2931_v2  ;;  %2598 = vperm.xlu0 %11552, %v12347_v35   ;;  %v1536_v35 = vmul.f32 %v12344_v32, %v12281_v7  ;;  %v2000_v7 = vmul.f32 %v12373_v37, %v12386_v31 }
 0x1a9   : > { %10835 = vmatprep.mubr.msk.f32.mxu1 %vm2875_vm0, %v2907_v18  ;;  %v2491_v59 = vadd.f32 %v2463_v49, %v2259_v44 }
 0x1aa   : > { %v12541_v24 = vpop.permute.xlu1 %2109  ;;  %v1564_v41 = vadd.f32 %v1536_v35, %v1332_v58  ;;  %v2464_v35 = vmul.f32 %v12396_v43, %v2337_v55  ;;  %v12578_v55 = vld [vmem:[%s12170_s4 + $0x8a] sm:$0xff] }
 0x1ab   : > { %v12543_v47 = vpop.permute.xlu0 %1655  ;;  %1463 = vperm.xlu1 %11553, %v12518_v22  }
 0x1ac   : > { %1009 = vperm.xlu0 %11552, %v12539_v39   ;;  %v1796_v9 = vadd.f32 %v1768_v54, %v1564_v41 }
 0x1ae   : > { %v12552_v2 = vpop.permute.xlu1 %1206  ;;  %v2028_v31 = vadd.f32 %v2000_v7, %v1796_v9 }
 0x1af   : > { %v2564_v18 = vpop.permute.xlu0 %2563  ;;  %2371 = vperm.xlu1 %11553, %v12423_v1  }
 0x1b0   : > { %v2695_v56 = vmul.f32 %v12420_v40, %v2564_v18  ;;  %1917 = vperm.xlu0 %11552, %v12474_v13   ;;  %v2260_v52 = vadd.f32 %v2232_v14, %v2028_v31 }
 0x1b2   : > { %v2723_v3 = vadd.f32 %v2695_v56, %v2491_v59  ;;  %v12565_v53 = vpop.permute.xlu1 %2114  ;;  %v2492_v54 = vadd.f32 %v2464_v35, %v2260_v52 }
 0x1b3   : > { %v12567_v11 = vpop.permute.xlu0 %1660  ;;  %1014 = vperm.xlu1 %11553, %v12560_v63  }
 0x1b4   : > { %v2758_v1 = vadd.f32 %v12435_v51, %v2723_v3  ;;  %782 = vperm.xlu0 %11552, %v679_v33  }
 0x1b6   : > { %v2786_v49 = vmax.f32 %v2758_v1, 0.0  ;;  %v12572_v58 = vpop.permute.xlu1 %747  ;;  %v12595_v1 = vld [vmem:[%s12170_s4 + $0x92] sm:$0xff] }
 0x1b7   : > { %v2569_v45 = vpop.permute.xlu0 %2568  ;;  %1922 = vperm.xlu1 %11553, %v12492_v57  }
 0x1b8   : > { %v2818_v44 = vmul.f32 %v12447_v61, %v2786_v49  ;;  %v2696_v18 = vmul.f32 %v12420_v40, %v2569_v45  ;;  %1468 = vperm.xlu0 %11552, %v679_v33  }
 0x1ba   : > { %v2850_v41 = vadd.f32 %v12455_v38, %v2818_v44  ;;  %v2724_v7 = vadd.f32 %v2696_v18, %v2492_v54  ;;  %v12581_v59 = vpop.permute.xlu1 %1433  ;;  %v1073_v44 = vmul.f32 %v12322_v25, %v12264_v0  ;;  %v1305_v18 = vmul.f32 %v12332_v27, %v12286_v10 }
 0x1bb   : > { %v12583_v56 = vpop.permute.xlu0 %979  ;;  %1241 = vperm.xlu1 %11553, %v12578_v55   ;;  %v1074_v10 = vmul.f32 %v12322_v25, %v12274_v4  ;;  %v1306_v4 = vmul.f32 %v12332_v27, %v12296_v15 }
 0x1bc   : > { %2879 = vst.msk [vmem:[#allocation2 + $0x18] sm:$0xff] %vm2875_vm0, %v2850_v41  ;;  %v2759_v9 = vadd.f32 %v12435_v51, %v2724_v7  ;;  %2376 = vperm.xlu0 %11552, %v12450_v28  }
 0x1be   : > { %v2787_v14 = vmax.f32 %v2759_v9, 0.0  ;;  %v2342_v3 = vpop.permute.xlu1 %2341  ;;  %v1537_v9 = vmul.f32 %v12344_v32, %v12308_v20  ;;  %v842_v20 = vmul.f32 %v12327_v26, %v12276_v5  ;;  %v12642_v5 = vld [vmem:[%s12170_s4 + $0x99] sm:$0xff] }
 0x1bf   : > { %v12589_v31 = vpop.permute.xlu0 %1887  ;;  %2149 = vperm.xlu1 %11553, %v12518_v22   ;;  %v841_v22 = vmul.f32 %v12327_v26, %v12255_v60  ;;  %v1769_v60 = vmul.f32 %v12358_v34, %v12408_v42 }
 0x1c0   : > { %v2819_v35 = vmul.f32 %v12447_v61, %v2787_v14  ;;  %1695 = vperm.xlu0 %11552, %v12539_v39  }
 0x1c1   : > { %v1101_v0 = vadd.f32 %v1073_v44, %v841_v22  ;;  %v2001_v44 = vmul.f32 %v12373_v37, %v12485_v12  ;;  %v2233_v22 = vmul.f32 %v12382_v62, %v12541_v24  ;;  %v1770_v24 = vmul.f32 %v12358_v34, %v12459_v50 }
 0x1c2   : > { %v2851_v52 = vadd.f32 %v12455_v38, %v2819_v35  ;;  %v12598_v49 = vpop.permute.xlu1 %984  ;;  %v2234_v50 = vmul.f32 %v12382_v62, %v12565_v53 }
 0x1c3   : > { %v12600_v45 = vpop.permute.xlu0 %752  ;;  %v2932_v54 = vld [vmem:[#allocation2 + $0x11] sm:$0xff]  ;;  %1246 = vperm.xlu1 %11553, %v12595_v1   ;;  %v1333_v14 = vadd.f32 %v1305_v18, %v1101_v0  ;;  %v1102_v0 = vadd.f32 %v1074_v10, %v842_v20 }
 0x1c4   : > { %v2908_v28 = vld [vmem:[#allocation2 + $0x18] sm:$0xff]  ;;  %2880 = vst.msk [vmem:[#allocation2 + $0x20] sm:$0xff] %vm2875_vm0, %v2851_v52  ;;  %10797 = vmatprep.mubr.msk.f32.mxu0 %vm2875_vm0, %v2932_v54  ;;  %2603 = vperm.xlu0 %11552, %v12474_v13  }
 0x1c5   : > { %10836 = vmatmul.mubr.msk.f32.gmra.mxu1 %vm2875_vm0, %v2908_v28  ;;  %v12621_v13 = vld [vmem:[%s12170_s4 + $0x98] sm:$0xff]  ;;  %v1334_v15 = vadd.f32 %v1306_v4, %v1102_v0 }
 0x1c6   : > { %v12613_v41 = vpop.permute.xlu1 %1892 }
 0x1c7   : > { %v12615_v7 = vpop.permute.xlu0 %1438  ;;  %2154 = vperm.xlu1 %11553, %v679_v33   ;;  %v1565_v33 = vadd.f32 %v1537_v9, %v1333_v14  ;;  %v1538_v9 = vmul.f32 %v12344_v32, %v12360_v48  ;;  %v2465_v14 = vmul.f32 %v12396_v43, %v2342_v3  ;;  %v2002_v48 = vmul.f32 %v12373_v37, %v12510_v8 }
 0x1c8   : > { %1700 = vperm.xlu0 %11552, %v12560_v63  }
 0x1c9   : > { %v1797_v42 = vadd.f32 %v1769_v60, %v1565_v33  ;;  %v12663_v33 = vld [vmem:[%s12170_s4 + $0xa1] sm:$0xff] }
 0x1ca   : > { %v12627_v35 = vpop.permute.xlu1 %1211 }
 0x1cb   : > { %v2347_v52 = vpop.permute.xlu0 %2346  ;;  %v2933_v54 = vld [vmem:[#allocation2 + $0x19] sm:$0xff]  ;;  %787 = vperm.xlu1 %11553, %v12621_v13  }
 0x1cc   : > { %v2909_v28 = vld [vmem:[#allocation2 + $0x20] sm:$0xff]  ;;  %10798 = vmatmul.mubr.msk.f32.gmra.mxu0 %vm2875_vm0, %v2933_v54  ;;  %2608 = vperm.xlu0 %11552, %v12492_v57   ;;  %v2029_v57 = vadd.f32 %v2001_v44, %v1797_v42 }
 0x1cd   : > { %10838 = vmatprep.mubr.msk.f32.mxu1 %vm2875_vm0, %v2909_v28  ;;  %v1566_v28 = vadd.f32 %v1538_v9, %v1334_v15  ;;  %v681_v42 = vld [vmem:[%s12170_s4 + $0xa0] sm:$0xff]  ;;  %v2466_v9 = vmul.f32 %v12396_v43, %v2347_v52 }
 0x1ce   : > { %v12644_v18 = vpop.permute.xlu1 %2119  ;;  %v2261_v60 = vadd.f32 %v2233_v22, %v2029_v57  ;;  %v12681_v52 = vld [vmem:[%s12170_s4 + $0x9a] sm:$0xff] }
 0x1cf   : > { %v12646_v12 = vpop.permute.xlu0 %1665  ;;  %1473 = vperm.xlu1 %11553, %v12621_v13   ;;  %v1798_v44 = vadd.f32 %v1770_v24, %v1566_v28 }
 0x1d0   : > { %1019 = vperm.xlu0 %11552, %v12642_v5   ;;  %v2493_v20 = vadd.f32 %v2465_v14, %v2261_v60 }
 0x1d1   : > { %v2030_v8 = vadd.f32 %v2002_v48, %v1798_v44 }
 0x1d2   : > { %v12655_v54 = vpop.permute.xlu1 %1216 }
 0x1d3   : > { %v2574_v10 = vpop.permute.xlu0 %2573  ;;  %2381 = vperm.xlu1 %11553, %v12539_v39   ;;  %v2262_v57 = vadd.f32 %v2234_v50, %v2030_v8 }
 0x1d4   : > { %v2697_v3 = vmul.f32 %v12420_v40, %v2574_v10  ;;  %1927 = vperm.xlu0 %11552, %v12578_v55  }
 0x1d5   : > { %v2494_v24 = vadd.f32 %v2466_v9, %v2262_v57 }
 0x1d6   : > { %v2725_v4 = vadd.f32 %v2697_v3, %v2493_v20  ;;  %v12668_v22 = vpop.permute.xlu1 %2124 }
 0x1d7   : > { %v12670_v0 = vpop.permute.xlu0 %1670  ;;  %1024 = vperm.xlu1 %11553, %v12663_v33  }
 0x1d8   : > { %v2760_v39 = vadd.f32 %v12435_v51, %v2725_v4  ;;  %792 = vperm.xlu0 %11552, %v681_v42  }
 0x1da   : > { %v2788_v14 = vmax.f32 %v2760_v39, 0.0  ;;  %v12675_v15 = vpop.permute.xlu1 %757  ;;  %v12698_v39 = vld [vmem:[%s12170_s4 + $0xa2] sm:$0xff] }
 0x1db   : > { %v2579_v53 = vpop.permute.xlu0 %2578  ;;  %1932 = vperm.xlu1 %11553, %v12595_v1  }
 0x1dc   : > { %v2820_v60 = vmul.f32 %v12447_v61, %v2788_v14  ;;  %v2698_v10 = vmul.f32 %v12420_v40, %v2579_v53  ;;  %1478 = vperm.xlu0 %11552, %v681_v42  }
 0x1de   : > { %v2852_v28 = vadd.f32 %v12455_v38, %v2820_v60  ;;  %v2726_v48 = vadd.f32 %v2698_v10, %v2494_v24  ;;  %v12684_v20 = vpop.permute.xlu1 %1443  ;;  %v1075_v60 = vmul.f32 %v12322_v25, %v12310_v21 }
 0x1df   : > { %v12686_v3 = vpop.permute.xlu0 %989  ;;  %1251 = vperm.xlu1 %11553, %v12681_v52  }
 0x1e0   : > { %2881 = vst.msk [vmem:[#allocation2 + $0x28] sm:$0xff] %vm2875_vm0, %v2852_v28  ;;  %v2761_v44 = vadd.f32 %v12435_v51, %v2726_v48  ;;  %2386 = vperm.xlu0 %11552, %v12560_v63   ;;  %v1307_v28 = vmul.f32 %v12332_v27, %v12410_v30 }
 0x1e2   : > { %v2789_v50 = vmax.f32 %v2761_v44, 0.0  ;;  %v2352_v4 = vpop.permute.xlu1 %2351 }
 0x1e3   : > { %v12692_v8 = vpop.permute.xlu0 %1897  ;;  %2159 = vperm.xlu1 %11553, %v12621_v13   ;;  %v15120_v13 = vld [vmem:[#allocation36_spill] sm:$0xff] }
 0x1e4   : > { %v2821_v9 = vmul.f32 %v12447_v61, %v2789_v50  ;;  %1705 = vperm.xlu0 %11552, %v12642_v5   ;;  %v843_v10 = vmul.f32 %v12327_v26, %v15120_v13  ;;  %v1539_v50 = vmul.f32 %v12344_v32, %v12477_v6  ;;  %v2003_v6 = vmul.f32 %v12373_v37, %v12589_v31 }
 0x1e6   : > { %v2853_v57 = vadd.f32 %v12455_v38, %v2821_v9  ;;  %v12701_v14 = vpop.permute.xlu1 %994  ;;  %v1103_v21 = vadd.f32 %v1075_v60, %v843_v10 }
 0x1e7   : > { %v12703_v53 = vpop.permute.xlu0 %762  ;;  %v2934_v24 = vld [vmem:[#allocation2 + $0x21] sm:$0xff]  ;;  %1256 = vperm.xlu1 %11553, %v12698_v39  }
 0x1e8   : > { %15119 = vst [vmem:[#allocation39_spill] sm:$0xff] %v12703_v53  ;;  %v2910_v63 = vld [vmem:[#allocation2 + $0x28] sm:$0xff]  ;;  %2882 = vst.msk [vmem:[#allocation2 + $0x30] sm:$0xff] %vm2875_vm0, %v2853_v57  ;;  %10800 = vmatprep.mubr.msk.f32.mxu0 %vm2875_vm0, %v2934_v24  ;;  %2613 = vperm.xlu0 %11552, %v12578_v55   ;;  %v1335_v9 = vadd.f32 %v1307_v28, %v1103_v21  ;;  %v1771_v57 = vmul.f32 %v12358_v34, %v12543_v47  ;;  %v15122_v47 = vld [vmem:[#allocation37_spill] sm:$0xff] }
 0x1e9   : > { %10839 = vmatmul.mubr.msk.f32.gmra.mxu1 %vm2875_vm0, %v2910_v63  ;;  %v12724_v55 = vld [vmem:[%s12170_s4 + $0xa8] sm:$0xff]  ;;  %v1308_v28 = vmul.f32 %v12332_v27, %v12441_v29 }
 0x1ea   : > { %v12716_v48 = vpop.permute.xlu1 %1902  ;;  %v15121_v53 = vld [vmem:[#allocation38_spill] sm:$0xff]  ;;  %v1567_v10 = vadd.f32 %v1539_v50, %v1335_v9 }
 0x1eb   : > { %v12718_v44 = vpop.permute.xlu0 %1448  ;;  %2164 = vperm.xlu1 %11553, %v681_v42   ;;  %v1076_v60 = vmul.f32 %v12322_v25, %v15121_v53  ;;  %v844_v42 = vmul.f32 %v12327_v26, %v15122_v47  ;;  %v2235_v53 = vmul.f32 %v12382_v62, %v12644_v18  ;;  %v12745_v50 = vld [vmem:[%s12170_s4 + $0xa9] sm:$0xff]  ;;  %v2467_v47 = vmul.f32 %v12396_v43, %v2352_v4 }
 0x1ec   : > { %1710 = vperm.xlu0 %11552, %v12663_v33   ;;  %v1799_v21 = vadd.f32 %v1771_v57, %v1567_v10  ;;  %v1772_v18 = vmul.f32 %v12358_v34, %v12567_v11  ;;  %v2236_v11 = vmul.f32 %v12382_v62, %v12668_v22 }
 0x1ee   : > { %v12728_v24 = vpop.permute.xlu1 %1221 }
 0x1ef   : > { %v2357_v30 = vpop.permute.xlu0 %2356  ;;  %v2935_v63 = vld [vmem:[#allocation2 + $0x29] sm:$0xff]  ;;  %797 = vperm.xlu1 %11553, %v12724_v55  }
 0x1f0   : > { %v2911_v13 = vld [vmem:[#allocation2 + $0x30] sm:$0xff]  ;;  %10801 = vmatmul.mubr.msk.f32.gmra.mxu0 %vm2875_vm0, %v2935_v63  ;;  %2618 = vperm.xlu0 %11552, %v12595_v1   ;;  %v1104_v63 = vadd.f32 %v1076_v60, %v844_v42  ;;  %v1540_v1 = vmul.f32 %v12344_v32, %v12512_v46  ;;  %v2004_v46 = vmul.f32 %v12373_v37, %v12613_v41 }
 0x1f1   : > { %10841 = vmatprep.mubr.msk.f32.mxu1 %vm2875_vm0, %v2911_v13  ;;  %v2031_v13 = vadd.f32 %v2003_v6, %v1799_v21  ;;  %v12766_v21 = vld [vmem:[%s12170_s4 + $0xb1] sm:$0xff] }
 0x1f2   : > { %v12747_v31 = vpop.permute.xlu1 %2129  ;;  %v1336_v29 = vadd.f32 %v1308_v28, %v1104_v63  ;;  %v683_v63 = vld [vmem:[%s12170_s4 + $0xb0] sm:$0xff] }
 0x1f3   : > { %v12749_v9 = vpop.permute.xlu0 %1675  ;;  %1483 = vperm.xlu1 %11553, %v12724_v55   ;;  %v2263_v57 = vadd.f32 %v2235_v53, %v2031_v13 }
 0x1f4   : > { %1029 = vperm.xlu0 %11552, %v12745_v50   ;;  %v1568_v42 = vadd.f32 %v1540_v1, %v1336_v29 }
 0x1f5   : > { %v2495_v6 = vadd.f32 %v2467_v47, %v2263_v57  ;;  %v2468_v47 = vmul.f32 %v12396_v43, %v2357_v30  ;;  %v12784_v30 = vld [vmem:[%s12170_s4 + $0xaa] sm:$0xff] }
 0x1f6   : > { %v12758_v10 = vpop.permute.xlu1 %1226  ;;  %v1800_v28 = vadd.f32 %v1772_v18, %v1568_v42 }
 0x1f7   : > { %v2584_v60 = vpop.permute.xlu0 %2583  ;;  %2391 = vperm.xlu1 %11553, %v12642_v5  }
 0x1f8   : > { %v2699_v4 = vmul.f32 %v12420_v40, %v2584_v60  ;;  %1937 = vperm.xlu0 %11552, %v12681_v52   ;;  %v2032_v41 = vadd.f32 %v2004_v46, %v1800_v28 }
 0x1fa   : > { %v2727_v53 = vadd.f32 %v2699_v4, %v2495_v6  ;;  %v12771_v13 = vpop.permute.xlu1 %2134  ;;  %v2264_v29 = vadd.f32 %v2236_v11, %v2032_v41 }
 0x1fb   : > { %v12773_v1 = vpop.permute.xlu0 %1680  ;;  %1034 = vperm.xlu1 %11553, %v12766_v21  }
 0x1fc   : > { %v2762_v5 = vadd.f32 %v12435_v51, %v2727_v53  ;;  %802 = vperm.xlu0 %11552, %v683_v63   ;;  %v2496_v60 = vadd.f32 %v2468_v47, %v2264_v29 }
 0x1fe   : > { %v2790_v18 = vmax.f32 %v2762_v5, 0.0  ;;  %v12778_v57 = vpop.permute.xlu1 %767 }
 0x1ff   : > { %v2589_v22 = vpop.permute.xlu0 %2588  ;;  %1942 = vperm.xlu1 %11553, %v12698_v39  }
 0x200   : > { %v2822_v42 = vmul.f32 %v12447_v61, %v2790_v18  ;;  %v2700_v6 = vmul.f32 %v12420_v40, %v2589_v22  ;;  %1488 = vperm.xlu0 %11552, %v683_v63   ;;  %v12801_v18 = vld [vmem:[%s12170_s4 + $0xb2] sm:$0xff] }
 0x202   : > { %v2854_v46 = vadd.f32 %v12455_v38, %v2822_v42  ;;  %v2728_v4 = vadd.f32 %v2700_v6, %v2496_v60  ;;  %v12787_v28 = vpop.permute.xlu1 %1453 }
 0x203   : > { %v12789_v11 = vpop.permute.xlu0 %999  ;;  %1261 = vperm.xlu1 %11553, %v12784_v30  }
 0x204   : > { %2883 = vst.msk [vmem:[#allocation2 + $0x38] sm:$0xff] %vm2875_vm0, %v2854_v46  ;;  %v2763_v53 = vadd.f32 %v12435_v51, %v2728_v4  ;;  %2396 = vperm.xlu0 %11552, %v12663_v33   ;;  %v845_v46 = vmul.f32 %v12327_v26, %v12467_v17  ;;  %v1309_v4 = vmul.f32 %v12332_v27, %v12522_v19 }
 0x205   : > { %v1773_v17 = vmul.f32 %v12358_v34, %v12646_v12  ;;  %v12841_v12 = vld [vmem:[%s12170_s4 + $0xb9] sm:$0xff] }
 0x206   : > { %v2791_v41 = vmax.f32 %v2763_v53, 0.0  ;;  %v2362_v47 = vpop.permute.xlu1 %2361 }
 0x207   : > { %v12795_v5 = vpop.permute.xlu0 %1907  ;;  %2169 = vperm.xlu1 %11553, %v12724_v55   ;;  %v1077_v55 = vmul.f32 %v12322_v25, %v12479_v23  ;;  %v684_v23 = vld [vmem:[%s12170_s4 + $0xb8] sm:$0xff] }
 0x208   : > { %v2823_v29 = vmul.f32 %v12447_v61, %v2791_v41  ;;  %1715 = vperm.xlu0 %11552, %v12745_v50  }
 0x20a   : > { %v2855_v22 = vadd.f32 %v12455_v38, %v2823_v29  ;;  %v12804_v60 = vpop.permute.xlu1 %1004  ;;  %v1105_v29 = vadd.f32 %v1077_v55, %v845_v46  ;;  %v2005_v46 = vmul.f32 %v12373_v37, %v12692_v8  ;;  %v1542_v8 = vmul.f32 %v12344_v32, %v12615_v7 }
 0x20b   : > { %v2936_v42 = vld [vmem:[#allocation2 + $0x31] sm:$0xff]  ;;  %v12807_v33 = vpop.permute.xlu0 %772  ;;  %1266 = vperm.xlu1 %11553, %v12801_v18   ;;  %v2006_v7 = vmul.f32 %v12373_v37, %v12716_v48 }
 0x20c   : > { %v2912_v6 = vld [vmem:[#allocation2 + $0x38] sm:$0xff]  ;;  %2884 = vst.msk [vmem:[#allocation2 + $0x40] sm:$0xff] %vm2875_vm0, %v2855_v22  ;;  %15123 = vst [vmem:[#allocation36_spill] sm:$0xff] %v12807_v33  ;;  %10803 = vmatprep.mubr.msk.f32.mxu0 %vm2875_vm0, %v2936_v42  ;;  %2623 = vperm.xlu0 %11552, %v12681_v52   ;;  %v1541_v22 = vmul.f32 %v12344_v32, %v12581_v59  ;;  %v1337_v52 = vadd.f32 %v1309_v4, %v1105_v29 }
 0x20d   : > { %10842 = vmatmul.mubr.msk.f32.gmra.mxu1 %vm2875_vm0, %v2912_v6  ;;  %v1078_v33 = vmul.f32 %v12322_v25, %v12495_v36  ;;  %v846_v59 = vmul.f32 %v12327_v26, %v12497_v16  ;;  %v1310_v36 = vmul.f32 %v12332_v27, %v12552_v2  ;;  %v2237_v29 = vmul.f32 %v12382_v62, %v12747_v31 }
 0x20e   : > { %v12819_v53 = vpop.permute.xlu1 %1912  ;;  %v1569_v55 = vadd.f32 %v1541_v22, %v1337_v52  ;;  %v2469_v22 = vmul.f32 %v12396_v43, %v2362_v47  ;;  %v1774_v2 = vmul.f32 %v12358_v34, %v12670_v0  ;;  %v2238_v0 = vmul.f32 %v12382_v62, %v12771_v13 }
 0x20f   : > { %v12821_v41 = vpop.permute.xlu0 %1458  ;;  %2174 = vperm.xlu1 %11553, %v683_v63   ;;  %v1106_v16 = vadd.f32 %v1078_v33, %v846_v59  ;;  %v12865_v59 = vld [vmem:[%s12170_s4 + $0xc0] sm:$0xff] }
 0x210   : > { %1720 = vperm.xlu0 %11552, %v12766_v21   ;;  %v1801_v4 = vadd.f32 %v1773_v17, %v1569_v55 }
 0x211   : > { %v1338_v27 = vadd.f32 %v1310_v36, %v1106_v16  ;;  %v12878_v16 = vld [vmem:[%s12170_s4 + $0xba] sm:$0xff] }
 0x212   : > { %v12829_v42 = vpop.permute.xlu1 %1231 }
 0x213   : > { %v2937_v19 = vld [vmem:[#allocation2 + $0x39] sm:$0xff]  ;;  %v2367_v63 = vpop.permute.xlu0 %2366  ;;  %807 = vperm.xlu1 %11553, %v684_v23   ;;  %v1570_v33 = vadd.f32 %v1542_v8, %v1338_v27 }
 0x214   : > { %v2913_v6 = vld [vmem:[#allocation2 + $0x40] sm:$0xff]  ;;  %10804 = vmatmul.mubr.msk.f32.gmra.mxu0 %vm2875_vm0, %v2937_v19  ;;  %2628 = vperm.xlu0 %11552, %v12698_v39   ;;  %v2033_v39 = vadd.f32 %v2005_v46, %v1801_v4  ;;  %v2470_v48 = vmul.f32 %v12396_v43, %v2367_v63 }
 0x215   : > { %10844 = vmatprep.mubr.msk.f32.mxu1 %vm2875_vm0, %v2913_v6  ;;  %v1802_v55 = vadd.f32 %v1774_v2, %v1570_v33 }
 0x216   : > { %v12847_v19 = vpop.permute.xlu1 %2139  ;;  %v2265_v31 = vadd.f32 %v2237_v29, %v2033_v39 }
 0x217   : > { %v12849_v26 = vpop.permute.xlu0 %1685  ;;  %1493 = vperm.xlu1 %11553, %v684_v23   ;;  %v2034_v4 = vadd.f32 %v2006_v7, %v1802_v55  ;;  %v12895_v7 = vld [vmem:[%s12170_s4 + $0xc1] sm:$0xff] }
 0x218   : > { %1039 = vperm.xlu0 %11552, %v12841_v12   ;;  %v2497_v6 = vadd.f32 %v2469_v22, %v2265_v31 }
 0x219   : > { %v2266_v8 = vadd.f32 %v2238_v0, %v2034_v4 }
 0x21a   : > { %v12857_v52 = vpop.permute.xlu1 %1236 }
 0x21b   : > { %v2594_v17 = vpop.permute.xlu0 %2593  ;;  %2401 = vperm.xlu1 %11553, %v12745_v50   ;;  %v2498_v22 = vadd.f32 %v2470_v48, %v2266_v8 }
 0x21c   : > { %v2701_v47 = vmul.f32 %v12420_v40, %v2594_v17  ;;  %1947 = vperm.xlu0 %11552, %v12784_v30  }
 0x21e   : > { %v2729_v46 = vadd.f32 %v2701_v47, %v2497_v6  ;;  %v12869_v36 = vpop.permute.xlu1 %2144 }
 0x21f   : > { %v12871_v50 = vpop.permute.xlu0 %1690  ;;  %1952 = vperm.xlu1 %11553, %v12801_v18  }
 0x220   : > { %v2764_v29 = vadd.f32 %v12435_v51, %v2729_v46  ;;  %1498 = vperm.xlu0 %11552, %v12865_v59  }
 0x222   : > { %v2792_v39 = vmax.f32 %v2764_v29, 0.0  ;;  %v12880_v62 = vpop.permute.xlu1 %777  ;;  %v1079_v29 = vmul.f32 %v12322_v25, %v12583_v56  ;;  %v12927_v25 = vld [vmem:[%s15116_s29 + $0x2] ss:$0 sm:$0xff] }
 0x223   : > { %v2599_v13 = vpop.permute.xlu0 %2598  ;;  %1271 = vperm.xlu1 %11553, %v12878_v16   ;;  %v1311_v56 = vmul.f32 %v12927_v25, %v12627_v35 }
 0x224   : > { %v2824_v27 = vmul.f32 %v12447_v61, %v2792_v39  ;;  %v2702_v2 = vmul.f32 %v12420_v40, %v2599_v13  ;;  %2406 = vperm.xlu0 %11552, %v12766_v21  }
 0x226   : > { %v2856_v43 = vadd.f32 %v12455_v38, %v2824_v27  ;;  %v2730_v63 = vadd.f32 %v2702_v2, %v2498_v22  ;;  %v12887_v31 = vpop.permute.xlu1 %1463  ;;  %v1543_v27 = vmul.f32 %v12344_v32, %v12684_v20 }
 0x227   : > { %v12889_v17 = vpop.permute.xlu0 %1009  ;;  %2179 = vperm.xlu1 %11553, %v684_v23  }
 0x228   : > { %2885 = vst.msk [vmem:[#allocation2 + $0x48] sm:$0xff] %vm2875_vm0, %v2856_v43  ;;  %v2765_v33 = vadd.f32 %v12435_v51, %v2730_v63  ;;  %1725 = vperm.xlu0 %11552, %v12841_v12   ;;  %v1775_v43 = vmul.f32 %v12358_v34, %v12749_v9  ;;  %v12949_v63 = vld [vmem:[%s15116_s29 + $0x1] ss:$0 sm:$0xff]  ;;  %v2007_v34 = vmul.f32 %v12373_v37, %v12795_v5  ;;  %v12961_v9 = vld [vmem:[%s12170_s4 + $0xc9] sm:$0xff] }
 0x22a   : > { %v2793_v6 = vmax.f32 %v2765_v33, 0.0  ;;  %v2372_v47 = vpop.permute.xlu1 %2371  ;;  %v1080_v33 = vmul.f32 %v12949_v63, %v12598_v49  ;;  %v1312_v49 = vmul.f32 %v12927_v25, %v12655_v54  ;;  %v12984_v54 = vld [vmem:[%s15116_s29 + $0x3] ss:$0 sm:$0xff] }
 0x22b   : > { %v12897_v21 = vpop.permute.xlu0 %1917  ;;  %1730 = vperm.xlu1 %11553, %v12895_v7  }
 0x22c   : > { %v2825_v55 = vmul.f32 %v12447_v61, %v2793_v6  ;;  %2633 = vperm.xlu0 %11552, %v12784_v30   ;;  %v12915_v30 = vld [vmem:[%s12170_s4 + $0xc8] sm:$0xff] }
 0x22e   : > { %v2857_v23 = vadd.f32 %v12455_v38, %v2825_v55  ;;  %v12903_v0 = vpop.permute.xlu1 %1014 }
 0x22f   : > { %v12905_v46 = vpop.permute.xlu0 %782  ;;  %2638 = vperm.xlu1 %11553, %v12801_v18   ;;  %v2938_v4 = vld [vmem:[#allocation2 + $0x41] sm:$0xff]  ;;  %v12920_v18 = vld [vmem:[%s15116_s29] ss:$0 sm:$0xff] }
 0x230   : > { %15124 = vst [vmem:[#allocation38_spill] sm:$0xff] %v12905_v46  ;;  %v2914_v48 = vld [vmem:[#allocation2 + $0x48] sm:$0xff]  ;;  %2886 = vst.msk [vmem:[#allocation2 + $0x50] sm:$0xff] %vm2875_vm0, %v2857_v23  ;;  %2184 = vperm.xlu0 %11552, %v12865_v59   ;;  %10806 = vmatprep.mubr.msk.f32.mxu0 %vm2875_vm0, %v2938_v4  ;;  %v847_v8 = vmul.f32 %v12920_v18, %v12572_v58  ;;  %v848_v32 = vmul.f32 %v12920_v18, %v12600_v45  ;;  %v12969_v4 = vld [vmem:[%s15116_s29 + $0x6] ss:$0 sm:$0xff] }
 0x231   : > { %10845 = vmatmul.mubr.msk.f32.gmra.mxu1 %vm2875_vm0, %v2914_v48  ;;  %v12940_v58 = vld [vmem:[%s12170_s4 + $0xc2] sm:$0xff]  ;;  %v2239_v37 = vmul.f32 %v12969_v4, %v12847_v19  ;;  %v1544_v19 = vmul.f32 %v12984_v54, %v12718_v44 }
 0x232   : > { %v12931_v39 = vpop.permute.xlu1 %1922  ;;  %v1107_v22 = vadd.f32 %v1079_v29, %v847_v8  ;;  %v1108_v48 = vadd.f32 %v1080_v33, %v848_v32 }
 0x233   : > { %v12933_v13 = vpop.permute.xlu0 %1468  ;;  %1957 = vperm.xlu1 %11553, %v12878_v16  }
 0x234   : > { %1503 = vperm.xlu0 %11552, %v12915_v30   ;;  %v1339_v2 = vadd.f32 %v1311_v56, %v1107_v22  ;;  %v12991_v56 = vld [vmem:[%s15116_s29 + $0x7] ss:$0 sm:$0xff] }
 0x235   : > { %v2471_v22 = vmul.f32 %v12991_v56, %v2372_v47 }
 0x236   : > { %v12944_v35 = vpop.permute.xlu1 %1241  ;;  %v1571_v23 = vadd.f32 %v1543_v27, %v1339_v2  ;;  %v1340_v27 = vadd.f32 %v1312_v49, %v1108_v48  ;;  %v12998_v2 = vld [vmem:[%s15116_s29 + $0x4] ss:$0 sm:$0xff] }
 0x237   : > { %v2377_v20 = vpop.permute.xlu0 %2376  ;;  %1962 = vperm.xlu1 %11553, %v12940_v58   ;;  %v2939_v6 = vld [vmem:[#allocation2 + $0x49] sm:$0xff]  ;;  %v1776_v44 = vmul.f32 %v12998_v2, %v12773_v1 }
 0x238   : > { %v2915_v55 = vld [vmem:[#allocation2 + $0x50] sm:$0xff]  ;;  %2411 = vperm.xlu0 %11552, %v12841_v12   ;;  %10807 = vmatmul.mubr.msk.f32.gmra.mxu0 %vm2875_vm0, %v2939_v6  ;;  %v1803_v45 = vadd.f32 %v1775_v43, %v1571_v23  ;;  %v1572_v47 = vadd.f32 %v1544_v19, %v1340_v27  ;;  %v13008_v6 = vld [vmem:[%s15116_s29 + $0x5] ss:$0 sm:$0xff] }
 0x239   : > { %10847 = vmatprep.mubr.msk.f32.mxu1 %vm2875_vm0, %v2915_v55  ;;  %v10044_v12 = vld [vmem:[%s15049_s3 + $0x10] sm:$0xff]  ;;  %v2008_v55 = vmul.f32 %v13008_v6, %v12819_v53 }
 0x23a   : > { %v12973_v5 = vpop.permute.xlu1 %2149  ;;  %10868 = vmatprep.subr.mxu0 %v10044_v12  ;;  %v2035_v8 = vadd.f32 %v2007_v34, %v1803_v45  ;;  %v13015_v1 = vld [vmem:[%s12170_s4 + $0xd0] sm:$0xff]  ;;  %v1804_v49 = vadd.f32 %v1776_v44, %v1572_v47 }
 0x23b   : > { %v12978_v29 = vpop.permute.xlu0 %1695  ;;  %1735 = vperm.xlu1 %11553, %v12961_v9   ;;  %10869 = vmatpush3.msra.mxu0 %v10044_v12  ;;  %v13028_v19 = vld [vmem:[%s12170_s4 + $0xca] sm:$0xff] }
 0x23c   : > { %2416 = vperm.xlu0 %11552, %v12895_v7   ;;  %v2267_v43 = vadd.f32 %v2239_v37, %v2035_v8  ;;  %v2036_v53 = vadd.f32 %v2008_v55, %v1804_v49  ;;  %v13045_v47 = vld [vmem:[%s12170_s4 + $0xd1] sm:$0xff]  ;;  %v13054_v49 = vld [vmem:[#allocation9] ss:$0 sm:$0xff] }
 0x23e   : > { %v13002_v33 = vpop.permute.xlu1 %1246  ;;  %v2499_v23 = vadd.f32 %v2471_v22, %v2267_v43 }
 0x23f   : > { %15125 = vst [vmem:[#allocation37_spill] sm:$0xff] %v13002_v33  ;;  %v2604_v32 = vpop.permute.xlu0 %2603  ;;  %2643 = vperm.xlu1 %11553, %v12878_v16   ;;  %v2240_v16 = vmul.f32 %v12969_v4, %v12869_v36 }
 0x240   : > { %v2703_v34 = vmul.f32 %v12420_v40, %v2604_v32  ;;  %2189 = vperm.xlu0 %11552, %v12915_v30   ;;  %v2472_v40 = vmul.f32 %v12991_v56, %v2377_v20  ;;  %v13037_v20 = vld [vmem:[%s15116_s29 + $0x8] ss:$0 sm:$0xff]  ;;  %v13042_v32 = vld [vmem:[%s12170_s4 + $0xd8] sm:$0xff] }
 0x241   : > { %v2268_v8 = vadd.f32 %v2240_v16, %v2036_v53 }
 0x242   : > { %v2731_v45 = vadd.f32 %v2703_v34, %v2499_v23  ;;  %v13019_v37 = vpop.permute.xlu1 %2154 }
 0x243   : > { %v13021_v12 = vpop.permute.xlu0 %1700  ;;  %2648 = vperm.xlu1 %11553, %v12940_v58   ;;  %v2500_v44 = vadd.f32 %v2472_v40, %v2268_v8 }
 0x244   : > { %v2766_v48 = vadd.f32 %v12435_v51, %v2731_v45  ;;  %2194 = vperm.xlu0 %11552, %v13015_v1   ;;  %v13059_v45 = vld [vmem:[%s12170_s4 + $0xd2] sm:$0xff] }
 0x246   : > { %v2794_v36 = vmax.f32 %v2766_v48, 0.0  ;;  %v13030_v22 = vpop.permute.xlu1 %787  ;;  %v13064_v48 = vld [vmem:[#allocation9 + $0x1] ss:$0 sm:$0xff] }
 0x247   : > { %v2609_v27 = vpop.permute.xlu0 %2608  ;;  %2421 = vperm.xlu1 %11553, %v12961_v9  }
 0x248   : > { %v2826_v43 = vmul.f32 %v12447_v61, %v2794_v36  ;;  %v2704_v51 = vmul.f32 %v13037_v20, %v2609_v27  ;;  %1967 = vperm.xlu0 %11552, %v13028_v19   ;;  %v13069_v36 = vld [vmem:[%s12170_s4 + $0xda] sm:$0xff] }
 0x249   : > { %v2307_v27 = vld [vmem:[%s12170_s4 + $0xd9] sm:$0xff] }
 0x24a   : > { %v2858_v55 = vadd.f32 %v12455_v38, %v2826_v43  ;;  %v2732_v23 = vadd.f32 %v2704_v51, %v2500_v44  ;;  %v13048_v34 = vpop.permute.xlu1 %1473  ;;  %v13072_v44 = vld [vmem:[#allocation9 + $0x2] ss:$0 sm:$0xff] }
 0x24b   : > { %15126 = vst [vmem:[#allocation40_spill] sm:$0xff] %v13048_v34  ;;  %v13050_v61 = vpop.permute.xlu0 %1019  ;;  %2199 = vperm.xlu1 %11553, %v13042_v32  }
 0x24c   : > { %2887 = vst.msk [vmem:[#allocation2 + $0x58] sm:$0xff] %vm2875_vm0, %v2858_v55  ;;  %v2767_v16 = vadd.f32 %v13054_v49, %v2732_v23  ;;  %2426 = vperm.xlu0 %11552, %v13045_v47  }
 0x24e   : > { %v2795_v38 = vmax.f32 %v2767_v16, 0.0  ;;  %v2382_v53 = vpop.permute.xlu1 %2381 }
 0x24f   : > { %v13061_v40 = vpop.permute.xlu0 %1927  ;;  %2658 = vperm.xlu1 %11553, %v13059_v45  }
 0x250   : > { %v2827_v8 = vmul.f32 %v13064_v48, %v2795_v38  ;;  %2653 = vperm.xlu0 %11552, %v13028_v19   ;;  %v1081_v38 = vmul.f32 %v12949_v63, %v12686_v3 }
 0x252   : > { %v2859_v43 = vadd.f32 %v13072_v44, %v2827_v8  ;;  %v13075_v51 = vpop.permute.xlu1 %1024  ;;  %v849_v8 = vmul.f32 %v12920_v18, %v12675_v15 }
 0x253   : > { %15127 = vst [vmem:[#allocation41_spill] sm:$0xff] %v13075_v51  ;;  %v13077_v55 = vpop.permute.xlu0 %792  ;;  %2663 = vperm.xlu1 %11553, %v13069_v36   ;;  %v2940_v23 = vld [vmem:[#allocation2 + $0x51] sm:$0xff] }
 0x254   : > { %15128 = vst [vmem:[#allocation42_spill] sm:$0xff] %v13077_v55  ;;  %v2916_v16 = vld [vmem:[#allocation2 + $0x58] sm:$0xff]  ;;  %2888 = vst.msk [vmem:[#allocation2 + $0x60] sm:$0xff] %vm2875_vm0, %v2859_v43  ;;  %2431 = vperm.xlu0 %11552, %v2307_v27   ;;  %10809 = vmatprep.mubr.msk.f32.mxu0 %vm2875_vm0, %v2940_v23  ;;  %v1313_v55 = vmul.f32 %v12927_v25, %v12728_v24  ;;  %v1109_v3 = vadd.f32 %v1081_v38, %v849_v8 }
 0x255   : > { %10848 = vmatmul.mubr.msk.f32.gmra.mxu1 %vm2875_vm0, %v2916_v16  ;;  %v1545_v43 = vmul.f32 %v12984_v54, %v12787_v28  ;;  %v1777_v16 = vmul.f32 %v12998_v2, %v12849_v26  ;;  %v1082_v24 = vmul.f32 %v12949_v63, %v12701_v14  ;;  %v2009_v28 = vmul.f32 %v13008_v6, %v12897_v21 }
 0x256   : > { %v13089_v51 = vpop.permute.xlu1 %1932  ;;  %v1341_v23 = vadd.f32 %v1313_v55, %v1109_v3  ;;  %v1314_v14 = vmul.f32 %v12927_v25, %v12758_v10  ;;  %v1778_v3 = vmul.f32 %v12998_v2, %v12871_v50 }
 0x257   : > { %v13091_v33 = vpop.permute.xlu0 %1478  ;;  %1044 = vperm.xlu1 %11553, %v12895_v7   ;;  %v15130_v7 = vld [vmem:[#allocation39_spill] sm:$0xff] }
 0x258   : > { %15129 = vst [vmem:[#allocation43_spill] sm:$0xff] %v13091_v33  ;;  %812 = vperm.xlu0 %11552, %v12865_v59   ;;  %v850_v38 = vmul.f32 %v12920_v18, %v15130_v7  ;;  %v1573_v8 = vadd.f32 %v1545_v43, %v1341_v23  ;;  %v2241_v59 = vmul.f32 %v12969_v4, %v12973_v5 }
 0x25a   : > { %v1252_v15 = vpop.permute.xlu1 %1251  ;;  %v1805_v26 = vadd.f32 %v1777_v16, %v1573_v8  ;;  %v1110_v21 = vadd.f32 %v1082_v24, %v850_v38  ;;  %v2010_v16 = vmul.f32 %v13008_v6, %v12931_v39 }
 0x25b   : > { %v2387_v34 = vpop.permute.xlu0 %2386  ;;  %1049 = vperm.xlu1 %11553, %v12961_v9   ;;  %v2941_v33 = vld [vmem:[#allocation2 + $0x59] sm:$0xff] }
 0x25c   : > { %v2917_v46 = vld [vmem:[#allocation2 + $0x60] sm:$0xff]  ;;  %817 = vperm.xlu0 %11552, %v12915_v30   ;;  %10810 = vmatmul.mubr.msk.f32.gmra.mxu0 %vm2875_vm0, %v2941_v33  ;;  %v1546_v30 = vmul.f32 %v12984_v54, %v12821_v41  ;;  %v2037_v33 = vadd.f32 %v2009_v28, %v1805_v26  ;;  %v1342_v10 = vadd.f32 %v1314_v14, %v1110_v21 }
 0x25d   : > { %10850 = vmatprep.mubr.msk.f32.mxu1 %vm2875_vm0, %v2917_v46  ;;  %v2473_v46 = vmul.f32 %v12991_v56, %v2382_v53  ;;  %v2242_v53 = vmul.f32 %v12969_v4, %v13019_v37  ;;  %v2474_v39 = vmul.f32 %v12991_v56, %v2387_v34  ;;  %v10069_v37 = vld [vmem:[%s15049_s3 + $0x18] sm:$0xff]  ;;  %v13150_v34 = vld [vmem:[%s15049_s3 + $0x20] sm:$0xff] }
 0x25e   : > { %v13113_v9 = vpop.permute.xlu1 %2159  ;;  %v2269_v5 = vadd.f32 %v2241_v59, %v2037_v33  ;;  %v1087_v59 = vmul.f32 %v12949_v63, %v13050_v61  ;;  %10906 = vmatprep.subr.mxu1 %v10069_v37  ;;  %v855_v33 = vmul.f32 %v12920_v18, %v13030_v22  ;;  %10944 = vmatprep.subr.mxu0 %v13150_v34 }
 0x25f   : > { %v13115_v55 = vpop.permute.xlu0 %1705  ;;  %1281 = vperm.xlu1 %11553, %v13028_v19   ;;  %v1574_v19 = vadd.f32 %v1546_v30, %v1342_v10  ;;  %10907 = vmatpush3.msra.mxu1 %v10069_v37 }
 0x260   : > { %1276 = vperm.xlu0 %11552, %v12940_v58   ;;  %v2501_v41 = vadd.f32 %v2473_v46, %v2269_v5  ;;  %v1319_v46 = vmul.f32 %v12927_v25, %v1252_v15 }
 0x261   : > { %v1806_v58 = vadd.f32 %v1778_v3, %v1574_v19  ;;  %v10834_v50 = vpop.f32.mrf.mxu1  ;;  %v1115_v19 = vadd.f32 %v1087_v59, %v855_v33  ;;  %v13183_v33 = vld [vmem:[%s12170_s4 + $0xe2] sm:$0xff] }
 0x262   : > { %v13124_v43 = vpop.permute.xlu1 %1256 }
 0x263   : > { %v2614_v23 = vpop.permute.xlu0 %2613  ;;  %1513 = vperm.xlu1 %11553, %v13042_v32   ;;  %v2038_v28 = vadd.f32 %v2010_v16, %v1806_v58  ;;  %v13162_v16 = vld [vmem:[%s12170_s4 + $0xe0] sm:$0xff] }
 0x264   : > { %v2705_v24 = vmul.f32 %v13037_v20, %v2614_v23  ;;  %1508 = vperm.xlu0 %11552, %v13015_v1   ;;  %v2077_v23 = vld [vmem:[%s12170_s4 + $0xe8] sm:$0xff] }
 0x266   : > { %v2733_v7 = vadd.f32 %v2705_v24, %v2501_v41  ;;  %v13133_v38 = vpop.permute.xlu1 %2164 }
 0x267   : > { %v13135_v8 = vpop.permute.xlu0 %1710  ;;  %1745 = vperm.xlu1 %11553, %v2307_v27   ;;  %v2270_v27 = vadd.f32 %v2242_v53, %v2038_v28 }
 0x268   : > { %v10796_v32 = vpop.f32.mrf.mxu0  ;;  %v2768_v14 = vadd.f32 %v13054_v49, %v2733_v7  ;;  %1740 = vperm.xlu0 %11552, %v13045_v47  }
 0x269   : > { %v13139_v26 = vadd.f32 %v10834_v50, %v10796_v32  ;;  %v2502_v61 = vadd.f32 %v2474_v39, %v2270_v27  ;;  %v2309_v32 = vld [vmem:[%s12170_s4 + $0xe9] sm:$0xff]  ;;  %v13175_v39 = vld [vmem:[%s12170_s4 + $0xe1] sm:$0xff] }
 0x26a   : > { %v2796_v21 = vmax.f32 %v2768_v14, 0.0  ;;  %v798_v30 = vpop.permute.xlu1 %797 }
 0x26b   : > { %15131 = vst [vmem:[#allocation39_spill] sm:$0xff] %v13139_v26  ;;  %v2619_v10 = vpop.permute.xlu0 %2618  ;;  %1977 = vperm.xlu1 %11553, %v13069_v36   ;;  %v1347_v36 = vadd.f32 %v1319_v46, %v1115_v19  ;;  %v857_v53 = vmul.f32 %v12920_v18, %v798_v30  ;;  %v2541_v30 = vld [vmem:[%s12170_s4 + $0xea] sm:$0xff]  ;;  %v1083_v19 = vmul.f32 %v12949_v63, %v12789_v11 }
 0x26c   : > { %v2828_v3 = vmul.f32 %v13064_v48, %v2796_v21  ;;  %v2706_v5 = vmul.f32 %v13037_v20, %v2619_v10  ;;  %1972 = vperm.xlu0 %11552, %v13059_v45  }
 0x26e   : > { %v2860_v22 = vadd.f32 %v13072_v44, %v2828_v3  ;;  %v2734_v15 = vadd.f32 %v2706_v5, %v2502_v61  ;;  %v1484_v41 = vpop.permute.xlu1 %1483 }
 0x26f   : > { %v1551_v24 = vmul.f32 %v12984_v54, %v1484_v41  ;;  %v1030_v58 = vpop.permute.xlu0 %1029  ;;  %2209 = vperm.xlu1 %11553, %v2077_v23   ;;  %v1315_v41 = vmul.f32 %v12927_v25, %v12829_v42  ;;  %v1779_v42 = vmul.f32 %v12998_v2, %v12978_v29  ;;  %v1151_v29 = vld [vmem:[%s12170_s4 + $0xda] sm:$0x3f] }
 0x270   : > { %2889 = vst.msk [vmem:[#allocation2 + $0x68] sm:$0xff] %vm2875_vm0, %v2860_v22  ;;  %v2769_v50 = vadd.f32 %v13054_v49, %v2734_v15  ;;  %v1089_v7 = vmul.f32 %v12949_v63, %v1030_v58  ;;  %2204 = vperm.xlu0 %11552, %v13162_v16   ;;  %v851_v15 = vmul.f32 %v12920_v18, %v12778_v57  ;;  %v688_v57 = vld [vmem:[%s12170_s4 + $0xd8] sm:$0x3f] }
 0x271   : > { %v13172_v28 = vadd.f32 %v1551_v24, %v1347_v36 }
 0x272   : > { %v2797_v14 = vmax.f32 %v2769_v50, 0.0  ;;  %v1117_v37 = vadd.f32 %v1089_v7, %v857_v53  ;;  %v2392_v59 = vpop.permute.xlu1 %2391  ;;  %v1111_v58 = vadd.f32 %v1083_v19, %v851_v15  ;;  %v1547_v53 = vmul.f32 %v12984_v54, %v12887_v31  ;;  %v919_v50 = vld [vmem:[%s12170_s4 + $0xd9] sm:$0x3f] }
 0x273   : > { %v13177_v27 = vpop.permute.xlu0 %1937  ;;  %2441 = vperm.xlu1 %11553, %v2309_v32   ;;  %v15132_v31 = vld [vmem:[#allocation36_spill] sm:$0xff]  ;;  %v2243_v19 = vmul.f32 %v12969_v4, %v13113_v9  ;;  %v1780_v9 = vmul.f32 %v12998_v2, %v13021_v12 }
 0x274   : > { %v2829_v21 = vmul.f32 %v13064_v48, %v2797_v14  ;;  %2436 = vperm.xlu0 %11552, %v13175_v39   ;;  %v1343_v7 = vadd.f32 %v1315_v41, %v1111_v58  ;;  %v1084_v14 = vmul.f32 %v12949_v63, %v12804_v60  ;;  %v2475_v58 = vmul.f32 %v12991_v56, %v2392_v59 }
 0x276   : > { %v2861_v46 = vadd.f32 %v13072_v44, %v2829_v21  ;;  %v1035_v10 = vpop.permute.xlu1 %1034 }
 0x277   : > { %v1090_v61 = vmul.f32 %v12949_v63, %v1035_v10  ;;  %v803_v3 = vpop.permute.xlu0 %802  ;;  %2673 = vperm.xlu1 %11553, %v2541_v30   ;;  %v2942_v5 = vld [vmem:[#allocation2 + $0x61] sm:$0xff]  ;;  %v1575_v10 = vadd.f32 %v1547_v53, %v1343_v7 }
 0x278   : > { %v13187_v23 = vld [vmem:[#allocation2 + $0x68] sm:$0xff]  ;;  %2890 = vst.msk [vmem:[#allocation2 + $0x70] sm:$0xff] %vm2875_vm0, %v2861_v46  ;;  %v858_v22 = vmul.f32 %v12920_v18, %v803_v3  ;;  %2668 = vperm.xlu0 %11552, %v13183_v33   ;;  %10812 = vmatprep.mubr.msk.f32.mxu0 %vm2875_vm0, %v2942_v5  ;;  %v1316_v3 = vmul.f32 %v12927_v25, %v12857_v52 }
 0x279   : > { %10851 = vmatmul.mubr.msk.f32.gmra.mxu1 %vm2875_vm0, %v13187_v23  ;;  %v1807_v5 = vadd.f32 %v1779_v42, %v1575_v10  ;;  %v1383_v52 = vld [vmem:[%s12170_s4 + $0xe8] sm:$0x3f] }
 0x27a   : > { %v13201_v36 = vadd.f32 %v1090_v61, %v858_v22  ;;  %v13203_v11 = vpop.permute.xlu1 %1942  ;;  %v2011_v61 = vmul.f32 %v13008_v6, %v13061_v40 }
 0x27b   : > { %v13205_v24 = vpop.permute.xlu0 %1488  ;;  %1054 = vperm.xlu1 %11553, %v13045_v47  }
 0x27c   : > { %822 = vperm.xlu0 %11552, %v13015_v1   ;;  %v852_v1 = vmul.f32 %v12920_v18, %v15132_v31  ;;  %v2039_v41 = vadd.f32 %v2011_v61, %v1807_v5 }
 0x27e   : > { %v1262_v32 = vpop.permute.xlu1 %1261  ;;  %v1112_v15 = vadd.f32 %v1084_v14, %v852_v1 }
 0x27f   : > { %v1321_v21 = vmul.f32 %v12927_v25, %v1262_v32  ;;  %v2397_v47 = vpop.permute.xlu0 %2396  ;;  %1059 = vperm.xlu1 %11553, %v919_v50   ;;  %v2943_v30 = vld [vmem:[#allocation2 + $0x69] sm:$0xff]  ;;  %v2271_v50 = vadd.f32 %v2243_v19, %v2039_v41  ;;  %v13249_v32 = vpop.f32.mrf.mxu1 }
 0x280   : > { %v13218_v46 = vld [vmem:[#allocation2 + $0x70] sm:$0xff]  ;;  %827 = vperm.xlu0 %11552, %v688_v57   ;;  %10813 = vmatmul.mubr.msk.f32.gmra.mxu0 %vm2875_vm0, %v2943_v30  ;;  %v1344_v53 = vadd.f32 %v1316_v3, %v1112_v15  ;;  %15133 = vst [vmem:[#allocation36_spill] sm:$0xff] %v13249_v32  ;;  %v2244_v30 = vmul.f32 %v12969_v4, %v13133_v38  ;;  %v1847_v38 = vld [vmem:[%s12170_s4 + $0xea] sm:$0x3f]  ;;  %v13663_v32 = vld [vmem:[#allocation9 + $0x1] ss:$0 sm:$0xff] }
 0x281   : > { %v13226_v60 = vadd.f32 %v1321_v21, %v1117_v37  ;;  %10853 = vmatprep.mubr.msk.f32.mxu1 %vm2875_vm0, %v13218_v46  ;;  %v1548_v37 = vmul.f32 %v12984_v54, %v12933_v13  ;;  %v2012_v13 = vmul.f32 %v13008_v6, %v13089_v51  ;;  %v2503_v14 = vadd.f32 %v2475_v58, %v2271_v50  ;;  %v13254_v21 = vpop.f32.mrf.mxu0 }
 0x282   : > { %v13234_v22 = vpop.permute.xlu1 %2169  ;;  %15134 = vst [vmem:[#allocation44_spill] sm:$0xff] %v13254_v21 }
 0x283   : > { %v13236_v40 = vpop.permute.xlu0 %1715  ;;  %1291 = vperm.xlu1 %11553, %v1151_v29   ;;  %v1576_v42 = vadd.f32 %v1548_v37, %v1344_v53  ;;  %v2079_v53 = vld [vmem:[%s12170_s4 + $0xf8] sm:$0x3f] }
 0x284   : > { %1286 = vperm.xlu0 %11552, %v13059_v45   ;;  %v1615_v45 = vld [vmem:[%s12170_s4 + $0xe9] sm:$0x3f] }
 0x285   : > { %v1808_v12 = vadd.f32 %v1780_v9, %v1576_v42  ;;  %v10837_v31 = vpop.f32.mrf.mxu1  ;;  %v2078_v9 = vld [vmem:[%s12170_s4 + $0xf0] sm:$0xff] }
 0x286   : > { %v13245_v57 = vpop.permute.xlu1 %1266 }
 0x287   : > { %v2624_v7 = vpop.permute.xlu0 %2623  ;;  %1523 = vperm.xlu1 %11553, %v1383_v52   ;;  %v2040_v29 = vadd.f32 %v2012_v13, %v1808_v12 }
 0x288   : > { %v2707_v59 = vmul.f32 %v13037_v20, %v2624_v7  ;;  %1518 = vperm.xlu0 %11552, %v13162_v16   ;;  %v2476_v16 = vmul.f32 %v12991_v56, %v2397_v47 }
 0x289   : > { %v2272_v19 = vadd.f32 %v2244_v30, %v2040_v29  ;;  %v1085_v30 = vmul.f32 %v12949_v63, %v12889_v17  ;;  %v2542_v29 = vld [vmem:[%s12170_s4 + $0xf2] sm:$0xff] }
 0x28a   : > { %v2735_v1 = vadd.f32 %v2707_v59, %v2503_v14  ;;  %v13258_v10 = vpop.permute.xlu1 %2174  ;;  %v2311_v14 = vld [vmem:[%s12170_s4 + $0xf9] sm:$0x3f]  ;;  %v2310_v59 = vld [vmem:[%s12170_s4 + $0xf1] sm:$0xff] }
 0x28b   : > { %v13260_v51 = vpop.permute.xlu0 %1720  ;;  %1755 = vperm.xlu1 %11553, %v1615_v45   ;;  %v2504_v58 = vadd.f32 %v2476_v16, %v2272_v19  ;;  %v853_v16 = vmul.f32 %v12920_v18, %v12880_v62  ;;  %v1086_v19 = vmul.f32 %v12949_v63, %v12903_v0  ;;  %v15138_v0 = vld [vmem:[#allocation37_spill] sm:$0xff] }
 0x28c   : > { %v10799_v61 = vpop.f32.mrf.mxu0  ;;  %v2770_v3 = vadd.f32 %v13054_v49, %v2735_v1  ;;  %1750 = vperm.xlu0 %11552, %v13175_v39   ;;  %v2543_v1 = vld [vmem:[%s12170_s4 + $0xfa] sm:$0x3f]  ;;  %s654_s4 = sand.u32 1, %s11891_s25  }
 0x28d   : > { %v13264_v5 = vadd.f32 %v10837_v31, %v10799_v61  ;;  %v13293_v61 = vld [vmem:[%s15049_s3 + $0x28] sm:$0xff]  ;;  %v1113_v62 = vadd.f32 %v1085_v30, %v853_v16  ;;  %v1782_v16 = vmul.f32 %v12998_v2, %v13135_v8  ;;  %s655_s12 = scalar_lea.vmem [#allocation24], %s654_s4  ;;  %s9796_s19 = scalar_lea.sflag [#allocation11], %s654_s4 }
 0x28e   : > { %v2798_v15 = vmax.f32 %v2770_v3, 0.0  ;;  %v13268_v37 = vpop.permute.xlu1 %807  ;;  %10982 = vmatprep.subr.mxu1 %v13293_v61  ;;  %v1317_v3 = vmul.f32 %v12927_v25, %v12944_v35  ;;  %s9808_s23 = sshll.u32 %s655_s12, 4  ;;  %s9809_s23 = int_to_ptr.vmem [resolvable:$true] %s9808_s23 }
 0x28f   : > { %15135 = vst [vmem:[#allocation45_spill] sm:$0xff] %v13264_v5  ;;  %v2629_v41 = vpop.permute.xlu0 %2628  ;;  %1987 = vperm.xlu1 %11553, %v1847_v38   ;;  %s11819_s0 = scalar_lea.vmem %s9809_s23, 16  ;;  %p11826_p13 = scmp.lt.s32.totalorder %s9809_s23, %s11824_s18 }
 0x290   : > { %v2830_v52 = vmul.f32 %v13064_v48, %v2798_v15  ;;  %v2708_v47 = vmul.f32 %v13037_v20, %v2629_v41  ;;  %1982 = vperm.xlu0 %11552, %v13183_v33   ;;  %v15136_v15 = vld [vmem:[#allocation38_spill] sm:$0xff]  ;;  %p11820_p1 = scmp.ne.s32.totalorder %s9809_s23, %s11819_s0  ;;  %p11827_p4 = scmp.lt.s32.totalorder %s11825_s28, %s11819_s0 }
 0x291   : > { %v854_v41 = vmul.f32 %v12920_v18, %v15136_v15 }
 0x292   : > { %v2862_v39 = vadd.f32 %v13072_v44, %v2830_v52  ;;  %v2736_v50 = vadd.f32 %v2708_v47, %v2504_v58  ;;  %v13276_v7 = vpop.permute.xlu1 %1493  ;;  %p11821_p3 = pnand %p11820_p1, %p15275_p2  ;;  %p11828_p5 = por %p11827_p4, %p11826_p13 }
 0x293   : > { %v13278_v42 = vpop.permute.xlu0 %1039  ;;  %2219 = vperm.xlu1 %11553, %v2079_v53   ;;  %v15137_v53 = vld [vmem:[#allocation40_spill] sm:$0xff] }
 0x294   : > { %2891 = vst.msk [vmem:[#allocation2 + $0x78] sm:$0xff] %vm2875_vm0, %v2862_v39  ;;  %v2771_v13 = vadd.f32 %v13054_v49, %v2736_v50  ;;  %2214 = vperm.xlu0 %11552, %v2078_v9   ;;  %v1549_v35 = vmul.f32 %v12984_v54, %v15137_v53  ;;  %v1318_v9 = vmul.f32 %v12927_v25, %v15138_v0  ;;  %p11822_p9 = pneg %p11821_p3 }
 0x295   : > { %v1345_v39 = vadd.f32 %v1317_v3, %v1113_v62  ;;  %v1781_v50 = vmul.f32 %v12998_v2, %v13115_v55  ;;  %v2245_v3 = vmul.f32 %v12969_v4, %v13234_v22  ;;  %v2246_v22 = vmul.f32 %v12969_v4, %v13258_v10 }
 0x296   : > { %v2799_v33 = vmax.f32 %v2771_v13, 0.0  ;;  %v2402_v45 = vpop.permute.xlu1 %2401  ;;  %p11829_p6 = pnand %p11828_p5, %p11822_p9 }
 0x297   : > { %v13284_v12 = vpop.permute.xlu0 %1947  ;;  %2451 = vperm.xlu1 %11553, %v2311_v14   ;;  %v1114_v14 = vadd.f32 %v1086_v19, %v854_v41  ;;  %v2014_v19 = vmul.f32 %v13008_v6, %v13203_v11 }
 0x298   : > { %v2831_v31 = vmul.f32 %v13064_v48, %v2799_v33  ;;  %2446 = vperm.xlu0 %11552, %v2310_v59   ;;  %v15139_v59 = vld [vmem:[#allocation43_spill] sm:$0xff] }
 0x299   : > { %v1550_v33 = vmul.f32 %v12984_v54, %v15139_v59 }
 0x29a   : > { %v2863_v17 = vadd.f32 %v13072_v44, %v2831_v31  ;;  %v13302_v38 = vpop.permute.xlu1 %1952  ;;  %v1577_v31 = vadd.f32 %v1549_v35, %v1345_v39  ;;  %v2477_v35 = vmul.f32 %v12991_v56, %v2402_v45 }
 0x29b   : > { %v13308_v58 = vpop.permute.xlu0 %1498  ;;  %2683 = vperm.xlu1 %11553, %v2543_v1   ;;  %v13310_v52 = vld [vmem:[#allocation2 + $0x71] sm:$0xff]  ;;  %v2013_v1 = vmul.f32 %v13008_v6, %v13177_v27 }
 0x29c   : > { %v13312_v47 = vld [vmem:[#allocation2 + $0x78] sm:$0xff]  ;;  %2892 = vst.msk [vmem:[#allocation2 + $0x80] sm:$0xff] %vm2875_vm0, %v2863_v17  ;;  %2678 = vperm.xlu0 %11552, %v2542_v29   ;;  %10815 = vmatprep.mubr.msk.f32.mxu0 %vm2875_vm0, %v13310_v52  ;;  %v1346_v29 = vadd.f32 %v1318_v9, %v1114_v14  ;;  %v1809_v17 = vadd.f32 %v1781_v50, %v1577_v31 }
 0x29d   : > { %10854 = vmatmul.mubr.msk.f32.gmra.mxu1 %vm2875_vm0, %v13312_v47 }
 0x29e   : > { %v13325_v13 = vpop.permute.xlu1 %1271  ;;  %v1578_v15 = vadd.f32 %v1550_v33, %v1346_v29  ;;  %v2041_v27 = vadd.f32 %v2013_v1, %v1809_v17  ;;  %v13355_v17 = vpop.f32.mrf.mxu1 }
 0x29f   : > { %v2407_v30 = vpop.permute.xlu0 %2406  ;;  %15140 = vst [vmem:[#allocation38_spill] sm:$0xff] %v13355_v17 }
 0x2a0   : > { %v1810_v8 = vadd.f32 %v1782_v16, %v1578_v15  ;;  %v2273_v11 = vadd.f32 %v2245_v3, %v2041_v27  ;;  %v2478_v39 = vmul.f32 %v12991_v56, %v2407_v30  ;;  %v13358_v3 = vpop.f32.mrf.mxu0  ;;  %v15143_v27 = vld [vmem:[#allocation42_spill] sm:$0xff] }
 0x2a1   : > { %15141 = vst [vmem:[#allocation40_spill] sm:$0xff] %v13358_v3  ;;  %v13661_v3 = vld [vmem:[#allocation2 + $0x4a] sm:$0xff] }
 0x2a2   : > { %v2180_v55 = vpop.permute.xlu1 %2179  ;;  %v2042_v9 = vadd.f32 %v2014_v19, %v1810_v8  ;;  %v2505_v14 = vadd.f32 %v2477_v35, %v2273_v11  ;;  %v15142_v19 = vld [vmem:[#allocation41_spill] sm:$0xff]  ;;  %v856_v35 = vmul.f32 %v12920_v18, %v15143_v27 }
 0x2a3   : > { %v13337_v41 = vpop.permute.xlu0 %1725  ;;  %v13339_v62 = vld [vmem:[#allocation2 + $0x79] sm:$0xff]  ;;  %v1088_v30 = vmul.f32 %v12949_v63, %v15142_v19  ;;  %v2015_v19 = vmul.f32 %v13008_v6, %v13284_v12  ;;  %v2016_v12 = vmul.f32 %v13008_v6, %v13302_v38 }
 0x2a4   : > { %v13341_v53 = vld [vmem:[#allocation2 + $0x80] sm:$0xff]  ;;  %10816 = vmatmul.mubr.msk.f32.gmra.mxu0 %vm2875_vm0, %v13339_v62  ;;  %v2274_v59 = vadd.f32 %v2246_v22, %v2042_v9 }
 0x2a5   : > { %10856 = vmatprep.mubr.msk.f32.mxu1 %vm2875_vm0, %v13341_v53 }
 0x2a6   : > { %v13350_v0 = vpop.permute.xlu1 %1730  ;;  %v2506_v1 = vadd.f32 %v2478_v39, %v2274_v59 }
 0x2a7   : > { %v2634_v50 = vpop.permute.xlu0 %2633 }
 0x2a8   : > { %v2709_v45 = vmul.f32 %v13037_v20, %v2634_v50 }
 0x2a9   : > { %v10840_v22 = vpop.f32.mrf.mxu1 }
 0x2aa   : > { %v2737_v33 = vadd.f32 %v2709_v45, %v2505_v14  ;;  %v2639_v31 = vpop.permute.xlu1 %2638  ;;  %v1320_v14 = vmul.f32 %v12927_v25, %v13124_v43 }
 0x2ab   : > { %v2710_v29 = vmul.f32 %v13037_v20, %v2639_v31  ;;  %v2185_v16 = vpop.permute.xlu0 %2184 }
 0x2ac   : > { %v2772_v10 = vadd.f32 %v13054_v49, %v2737_v33  ;;  %v1783_v33 = vmul.f32 %v12998_v2, %v13236_v40  ;;  %v1784_v40 = vmul.f32 %v12998_v2, %v13260_v51  ;;  %v2248_v51 = vmul.f32 %v12969_v4, %v2185_v16 }
 0x2ad   : > { %v2738_v15 = vadd.f32 %v2710_v29, %v2506_v1  ;;  %v1116_v1 = vadd.f32 %v1088_v30, %v856_v35  ;;  %v2247_v30 = vmul.f32 %v12969_v4, %v2180_v55 }
 0x2ae   : > { %v2800_v8 = vmax.f32 %v2772_v10, 0.0  ;;  %v13364_v11 = vpop.permute.xlu1 %1957 }
 0x2af   : > { %v2773_v9 = vadd.f32 %v13054_v49, %v2738_v15  ;;  %v13367_v39 = vpop.permute.xlu0 %1503  ;;  %v1552_v15 = vmul.f32 %v12984_v54, %v13205_v24 }
 0x2b0   : > { %v10802_v50 = vpop.f32.mrf.mxu0  ;;  %v2832_v45 = vmul.f32 %v13064_v48, %v2800_v8  ;;  %v1348_v8 = vadd.f32 %v1320_v14, %v1116_v1 }
 0x2b1   : > { %v13372_v59 = vadd.f32 %v10840_v22, %v10802_v50  ;;  %v2801_v31 = vmax.f32 %v2773_v9, 0.0  ;;  %v1811_v22 = vadd.f32 %v1783_v33, %v13172_v28 }
 0x2b2   : > { %v2864_v29 = vadd.f32 %v13072_v44, %v2832_v45  ;;  %v1963_v10 = vpop.permute.xlu1 %1962  ;;  %v1580_v24 = vadd.f32 %v1552_v15, %v1348_v8 }
 0x2b3   : > { %15144 = vst [vmem:[#allocation37_spill] sm:$0xff] %v13372_v59  ;;  %v2833_v43 = vmul.f32 %v13064_v48, %v2801_v31  ;;  %v2412_v27 = vpop.permute.xlu0 %2411  ;;  %v2043_v50 = vadd.f32 %v2015_v19, %v1811_v22  ;;  %v1554_v22 = vmul.f32 %v12984_v54, %v13308_v58  ;;  %v1553_v58 = vmul.f32 %v12984_v54, %v13276_v7 }
 0x2b4   : > { %2893 = vst.msk [vmem:[#allocation2 + $0x88] sm:$0xff] %vm2875_vm0, %v2864_v29  ;;  %v2479_v14 = vmul.f32 %v12991_v56, %v2412_v27  ;;  %v1812_v28 = vadd.f32 %v1784_v40, %v1580_v24  ;;  %v1322_v27 = vmul.f32 %v12927_v25, %v13245_v57  ;;  %v2018_v7 = vmul.f32 %v13008_v6, %v1963_v10 }
 0x2b5   : > { %v2865_v35 = vadd.f32 %v13072_v44, %v2833_v43  ;;  %v2275_v33 = vadd.f32 %v2247_v30, %v2043_v50 }
 0x2b6   : > { %v13388_v9 = vpop.permute.xlu1 %1735  ;;  %v2044_v55 = vadd.f32 %v2016_v12, %v1812_v28  ;;  %v1786_v28 = vmul.f32 %v12998_v2, %v13350_v0 }
 0x2b7   : > { %2894 = vst.msk [vmem:[#allocation2 + $0x90] sm:$0xff] %vm2875_vm0, %v2865_v35  ;;  %v2417_v45 = vpop.permute.xlu0 %2416  ;;  %v2507_v1 = vadd.f32 %v2479_v14, %v2275_v33  ;;  %v1350_v14 = vadd.f32 %v1322_v27, %v13201_v36  ;;  %v1323_v36 = vmul.f32 %v12927_v25, %v13325_v13  ;;  %v1555_v13 = vmul.f32 %v12984_v54, %v13367_v39 }
 0x2b8   : > { %v2480_v29 = vmul.f32 %v12991_v56, %v2417_v45  ;;  %v2276_v16 = vadd.f32 %v2248_v51, %v2044_v55  ;;  %v1091_v45 = vmul.f32 %v12949_v63, %v13278_v42 }
 0x2b9   : > { %v1582_v55 = vadd.f32 %v1554_v22, %v1350_v14 }
 0x2ba   : > { %v2644_v31 = vpop.permute.xlu1 %2643  ;;  %v2508_v24 = vadd.f32 %v2480_v29, %v2276_v16 }
 0x2bb   : > { %v2711_v15 = vmul.f32 %v13037_v20, %v2644_v31  ;;  %v2190_v19 = vpop.permute.xlu0 %2189  ;;  %v13397_v43 = vld [vmem:[#allocation2 + $0x81] sm:$0xff]  ;;  %v859_v31 = vmul.f32 %v12920_v18, %v13268_v37  ;;  %v2017_v18 = vmul.f32 %v13008_v6, %v13364_v11  ;;  %v1814_v37 = vadd.f32 %v1786_v28, %v1582_v55 }
 0x2bc   : > { %v13399_v38 = vld [vmem:[#allocation2 + $0x88] sm:$0xff]  ;;  %10818 = vmatprep.mubr.msk.f32.mxu0 %vm2875_vm0, %v13397_v43  ;;  %v2249_v10 = vmul.f32 %v12969_v4, %v2190_v19 }
 0x2bd   : > { %15145 = vst [vmem:[#allocation43_spill] sm:$0xff] %v13399_v38  ;;  %10857 = vmatmul.mubr.msk.f32.gmra.mxu1 %vm2875_vm0, %v13399_v38  ;;  %v2739_v8 = vadd.f32 %v2711_v15, %v2507_v1  ;;  %v1785_v1 = vmul.f32 %v12998_v2, %v13337_v41  ;;  %v1581_v15 = vadd.f32 %v1553_v58, %v13226_v60  ;;  %v13714_v5 = vld [vmem:[#allocation2 + $0x82] sm:$0xff] }
 0x2be   : > { %v2649_v40 = vpop.permute.xlu1 %2648  ;;  %v13409_v30 = vld [vmem:[#allocation2 + $0x89] sm:$0xff]  ;;  %v1119_v27 = vadd.f32 %v1091_v45, %v859_v31 }
 0x2bf   : > { %v13411_v35 = vld [vmem:[#allocation2 + $0x90] sm:$0xff]  ;;  %v2774_v50 = vadd.f32 %v13054_v49, %v2739_v8  ;;  %v2712_v57 = vmul.f32 %v13037_v20, %v2649_v40  ;;  %v2195_v12 = vpop.permute.xlu0 %2194  ;;  %10819 = vmatmul.mubr.msk.f32.gmra.mxu0 %vm2875_vm0, %v13409_v30  ;;  %v1813_v25 = vadd.f32 %v1785_v1, %v1581_v15 }
 0x2c0   : > { %15146 = vst [vmem:[#allocation41_spill] sm:$0xff] %v13411_v35  ;;  %10859 = vmatprep.mubr.msk.f32.mxu1 %vm2875_vm0, %v13411_v35  ;;  %v2250_v8 = vmul.f32 %v12969_v4, %v2195_v12  ;;  %v1351_v40 = vadd.f32 %v1323_v36, %v1119_v27 }
 0x2c1   : > { %v2802_v33 = vmax.f32 %v2774_v50, 0.0  ;;  %v2740_v51 = vadd.f32 %v2712_v57, %v2508_v24  ;;  %v2046_v24 = vadd.f32 %v2018_v7, %v1814_v37  ;;  %v2045_v50 = vadd.f32 %v2017_v18, %v1813_v25 }
 0x2c2   : > { %v2422_v29 = vpop.permute.xlu1 %2421  ;;  %v1787_v57 = vmul.f32 %v12998_v2, %v13388_v9  ;;  %v1583_v19 = vadd.f32 %v1555_v13, %v1351_v40 }
 0x2c3   : > { %v2834_v63 = vmul.f32 %v13064_v48, %v2802_v33  ;;  %v2775_v42 = vadd.f32 %v13054_v49, %v2740_v51  ;;  %v1968_v0 = vpop.permute.xlu0 %1967  ;;  %v2481_v12 = vmul.f32 %v12991_v56, %v2422_v29  ;;  %v2278_v39 = vadd.f32 %v2250_v8, %v2046_v24 }
 0x2c4   : > { %v2277_v58 = vadd.f32 %v2249_v10, %v2045_v50  ;;  %v2019_v45 = vmul.f32 %v13008_v6, %v1968_v0  ;;  %v1815_v55 = vadd.f32 %v1787_v57, %v1583_v19 }
 0x2c5   : > { %v2866_v41 = vadd.f32 %v13072_v44, %v2834_v63  ;;  %v2803_v16 = vmax.f32 %v2775_v42, 0.0 }
 0x2c6   : > { %v2200_v22 = vpop.permute.xlu1 %2199  ;;  %v2509_v2 = vadd.f32 %v2481_v12, %v2277_v58  ;;  %v2047_v36 = vadd.f32 %v2019_v45, %v1815_v55 }
 0x2c7   : > { %2895 = vst.msk [vmem:[#allocation2 + $0x98] sm:$0xff] %vm2875_vm0, %v2866_v41  ;;  %v2835_v60 = vmul.f32 %v13064_v48, %v2803_v16  ;;  %v2427_v11 = vpop.permute.xlu0 %2426  ;;  %v2251_v9 = vmul.f32 %v12969_v4, %v2200_v22  ;;  %v13464_v4 = vpop.f32.mrf.mxu1 }
 0x2c8   : > { %v2482_v14 = vmul.f32 %v12991_v56, %v2427_v11  ;;  %15147 = vst [vmem:[#allocation42_spill] sm:$0xff] %v13464_v4  ;;  %v13468_v41 = vpop.f32.mrf.mxu0 }
 0x2c9   : > { %v2867_v54 = vadd.f32 %v13072_v44, %v2835_v60  ;;  %v2279_v27 = vadd.f32 %v2251_v9, %v2047_v36  ;;  %15148 = vst [vmem:[#allocation46_spill] sm:$0xff] %v13468_v41  ;;  %v13516_v36 = vld [vmem:[%s15116_s29] ss:$0 sm:$0xff]  ;;  %v11580_v41 = vld [vmem:[#allocation2 + $0x58] sm:$0xff] }
 0x2ca   : > { %v2659_v28 = vpop.permute.xlu1 %2658  ;;  %v2510_v33 = vadd.f32 %v2482_v14, %v2278_v39 }
 0x2cb   : > { %2896 = vst.msk [vmem:[#allocation2 + $0xa0] sm:$0xff] %vm2875_vm0, %v2867_v54  ;;  %v2714_v51 = vmul.f32 %v13037_v20, %v2659_v28  ;;  %v2654_v31 = vpop.permute.xlu0 %2653 }
 0x2cc   : > { %v2713_v1 = vmul.f32 %v13037_v20, %v2654_v31 }
 0x2cd   : > { %v2742_v29 = vadd.f32 %v2714_v51, %v2510_v33  ;;  %v10843_v25 = vpop.f32.mrf.mxu1 }
 0x2ce   : > { %v2741_v7 = vadd.f32 %v2713_v1, %v2509_v2  ;;  %v2664_v63 = vpop.permute.xlu1 %2663  ;;  %v13455_v42 = vld [vmem:[#allocation2 + $0x91] sm:$0xff] }
 0x2cf   : > { %v13457_v6 = vld [vmem:[#allocation2 + $0x98] sm:$0xff]  ;;  %v2777_v0 = vadd.f32 %v13054_v49, %v2742_v29  ;;  %v2432_v15 = vpop.permute.xlu0 %2431  ;;  %10821 = vmatprep.mubr.msk.f32.mxu0 %vm2875_vm0, %v13455_v42  ;;  %v2715_v13 = vmul.f32 %v13037_v20, %v2664_v63 }
 0x2d0   : > { %10860 = vmatmul.mubr.msk.f32.gmra.mxu1 %vm2875_vm0, %v13457_v6  ;;  %v2776_v18 = vadd.f32 %v13054_v49, %v2741_v7  ;;  %v2483_v37 = vmul.f32 %v12991_v56, %v2432_v15 }
 0x2d1   : > { %v2805_v16 = vmax.f32 %v2777_v0, 0.0 }
 0x2d2   : > { %v2804_v8 = vmax.f32 %v2776_v18, 0.0  ;;  %v2511_v10 = vadd.f32 %v2483_v37, %v2279_v27  ;;  %v1045_v22 = vpop.permute.xlu1 %1044  ;;  %v13471_v40 = vld [vmem:[#allocation2 + $0x99] sm:$0xff]  ;;  %v13524_v27 = vld [vmem:[%s15116_s29 + $0x2] ss:$0 sm:$0xff] }
 0x2d3   : > { %v13473_v24 = vld [vmem:[#allocation2 + $0xa0] sm:$0xff]  ;;  %v2837_v60 = vmul.f32 %v13064_v48, %v2805_v16  ;;  %v813_v11 = vpop.permute.xlu0 %812  ;;  %10822 = vmatmul.mubr.msk.f32.gmra.mxu0 %vm2875_vm0, %v13471_v40 }
 0x2d4   : > { %15149 = vst [vmem:[#allocation47_spill] sm:$0xff] %v13473_v24  ;;  %v10805_v50 = vpop.f32.mrf.mxu0  ;;  %10862 = vmatprep.mubr.msk.f32.mxu1 %vm2875_vm0, %v13473_v24  ;;  %v2836_v56 = vmul.f32 %v13064_v48, %v2804_v8  ;;  %v2743_v57 = vadd.f32 %v2715_v13, %v2511_v10  ;;  %v860_v15 = vmul.f32 %v13516_v36, %v813_v11  ;;  %v3777_v10 = vld [vmem:[#allocation2 + $0x10] sm:$0xff] }
 0x2d5   : > { %v13481_v20 = vadd.f32 %v10843_v25, %v10805_v50  ;;  %v2869_v12 = vadd.f32 %v13072_v44, %v2837_v60  ;;  %v13536_v60 = vld [vmem:[%s15116_s29 + $0x3] ss:$0 sm:$0xff] }
 0x2d6   : > { %v2868_v14 = vadd.f32 %v13072_v44, %v2836_v56  ;;  %v2778_v54 = vadd.f32 %v13054_v49, %v2743_v57  ;;  %v1050_v39 = vpop.permute.xlu1 %1049  ;;  %v3470_v56 = vld [vmem:[#allocation2 + $0x2] sm:$0xff] }
 0x2d7   : > { %15150 = vst [vmem:[#allocation48_spill] sm:$0xff] %v13481_v20  ;;  %2898 = vst.msk [vmem:[#allocation2 + $0xb0] sm:$0xff] %vm2875_vm0, %v2869_v12  ;;  %v818_v19 = vpop.permute.xlu0 %817  ;;  %v13680_v20 = vld [vmem:[#allocation2 + $0x5a] sm:$0xff] }
 0x2d8   : > { %2897 = vst.msk [vmem:[#allocation2 + $0xa8] sm:$0xff] %vm2875_vm0, %v2868_v14  ;;  %v2806_v58 = vmax.f32 %v2778_v54, 0.0  ;;  %v861_v7 = vmul.f32 %v13516_v36, %v818_v19  ;;  %v13546_v54 = vld [vmem:[%s15116_s29 + $0x4] ss:$0 sm:$0xff]  ;;  %v3778_v19 = vld [vmem:[#allocation2 + $0x18] sm:$0xff] }
 0x2da   : > { %v2838_v45 = vmul.f32 %v13064_v48, %v2806_v58  ;;  %v1282_v28 = vpop.permute.xlu1 %1281 }
 0x2db   : > { %v1277_v33 = vpop.permute.xlu0 %1276  ;;  %v1325_v18 = vmul.f32 %v13524_v27, %v1282_v28 }
 0x2dc   : > { %v2870_v51 = vadd.f32 %v13072_v44, %v2838_v45  ;;  %v13510_v44 = vld [vmem:[%s15116_s29 + $0x1] ss:$0 sm:$0xff]  ;;  %v1324_v25 = vmul.f32 %v13524_v27, %v1277_v33  ;;  %v3471_v33 = vld [vmem:[#allocation2 + $0xa] sm:$0xff] }
 0x2dd   : > { %v1093_v29 = vmul.f32 %v13510_v44, %v1050_v39  ;;  %v1092_v0 = vmul.f32 %v13510_v44, %v1045_v22 }
 0x2de   : > { %2899 = vst.msk [vmem:[#allocation2 + $0xb8] sm:$0xff] %vm2875_vm0, %v2870_v51  ;;  %v1514_v31 = vpop.permute.xlu1 %1513  ;;  %v13491_v55 = vld [vmem:[#allocation2 + $0xb0] sm:$0xff]  ;;  %v13551_v51 = vld [vmem:[#allocation2 + $0x20] sm:$0xff] }
 0x2df   : > { %v1509_v2 = vpop.permute.xlu0 %1508  ;;  %v13493_v49 = vld [vmem:[#allocation2 + $0xa1] sm:$0xff]  ;;  %v13497_v1 = vld [vmem:[#allocation2 + $0xa9] sm:$0xff]  ;;  %v1121_v22 = vadd.f32 %v1093_v29, %v861_v7  ;;  %v1557_v11 = vmul.f32 %v13536_v60, %v1514_v31  ;;  %v1120_v57 = vadd.f32 %v1092_v0, %v860_v15  ;;  %v13572_v0 = vld [vmem:[%s15049_s3 + $0x38] sm:$0xff] }
 0x2e0   : > { %v13495_v9 = vld [vmem:[#allocation2 + $0xa8] sm:$0xff]  ;;  %10824 = vmatprep.mubr.msk.f32.mxu0 %vm2875_vm0, %v13493_v49  ;;  %v1556_v12 = vmul.f32 %v13536_v60, %v1509_v2  ;;  %v13556_v31 = vld [vmem:[%s15049_s3 + $0x30] sm:$0xff] }
 0x2e1   : > { %10863 = vmatmul.mubr.msk.f32.gmra.mxu1 %vm2875_vm0, %v13495_v9  ;;  %10825 = vmatmul.mubr.msk.f32.gmra.mxu0 %vm2875_vm0, %v13497_v1  ;;  %v1353_v14 = vadd.f32 %v1325_v18, %v1121_v22  ;;  %v1352_v58 = vadd.f32 %v1324_v25, %v1120_v57 }
 0x2e2   : > { %10865 = vmatprep.mubr.msk.f32.mxu1 %vm2875_vm0, %v13491_v55  ;;  %v1746_v48 = vpop.permute.xlu1 %1745 }
 0x2e3   : > { %v1741_v63 = vpop.permute.xlu0 %1740  ;;  %v1789_v39 = vmul.f32 %v13546_v54, %v1746_v48  ;;  %v1585_v2 = vadd.f32 %v1557_v11, %v1353_v14  ;;  %v13561_v48 = vld [vmem:[%s15116_s29 + $0x5] ss:$0 sm:$0xff]  ;;  %v1584_v15 = vadd.f32 %v1556_v12, %v1352_v58  ;;  %v13591_v11 = vld [vmem:[#allocation2 + $0x1a] sm:$0xff] }
 0x2e4   : > { %v1788_v45 = vmul.f32 %v13546_v54, %v1741_v63  ;;  %v13567_v63 = vld [vmem:[#allocation2 + $0x12] sm:$0xff]  ;;  %v13606_v14 = vld [vmem:[#allocation2 + $0x22] sm:$0xff] }
 0x2e5   : > { %v13527_v37 = vld [vmem:[#allocation2 + $0xb1] sm:$0xff]  ;;  %v2953_v8 = vld [vmem:[#allocation2 + $0xb9] sm:$0xf] }
 0x2e6   : > { %v2928_v16 = vld [vmem:[#allocation2 + $0xb8] sm:$0xf]  ;;  %10827 = vmatprep.mubr.msk.f32.mxu0 %vm2875_vm0, %v13527_v37  ;;  %v1978_v13 = vpop.permute.xlu1 %1977 }
 0x2e7   : > { %10866 = vmatmul.mubr.msk.f32.gmra.mxu1 %vm2875_vm0, %v2928_v16  ;;  %10828 = vmatmul.mubr.msk.f32.gmra.mxu0 %vm2875_vm0, %v2953_v8  ;;  %v1973_v50 = vpop.permute.xlu0 %1972  ;;  %v2021_v29 = vmul.f32 %v13561_v48, %v1978_v13  ;;  %v1817_v16 = vadd.f32 %v1789_v39, %v1585_v2  ;;  %v13581_v8 = vld [vmem:[%s15116_s29 + $0x6] ss:$0 sm:$0xff]  ;;  %v13584_v13 = vld [vmem:[#allocation2 + $0x28] sm:$0xff] }
 0x2e8   : > { %10908 = vmatprep.mubr.msk.f32.mxu1 %vm2875_vm0, %v3777_v10  ;;  %10870 = vmatprep.mubr.msk.f32.mxu0 %vm2875_vm0, %v3470_v56  ;;  %v2020_v18 = vmul.f32 %v13561_v48, %v1973_v50  ;;  %v1816_v10 = vadd.f32 %v1788_v45, %v1584_v15  ;;  %v13593_v50 = vld [vmem:[#allocation2 + $0x30] sm:$0xff]  ;;  %v13611_v45 = vld [vmem:[#allocation2 + $0x38] sm:$0xff]  ;;  %v13622_v15 = vld [vmem:[%s15116_s29 + $0x8] ss:$0 sm:$0xff] }
 0x2e9   : > { %v2049_v56 = vadd.f32 %v2021_v29, %v1817_v16  ;;  %v13615_v2 = vld [vmem:[#allocation2 + $0x2a] sm:$0xff]  ;;  %v13617_v29 = vld [vmem:[#allocation2 + $0x40] sm:$0xff] }
 0x2ea   : > { %v2210_v28 = vpop.permute.xlu1 %2209  ;;  %v2048_v39 = vadd.f32 %v2020_v18, %v1816_v10  ;;  %15151 = vst [vmem:[#allocation49_spill] sm:$0xff] %v13617_v29 }
 0x2eb   : > { %10909 = vmatmul.mubr.msk.f32.vlgmr.msra.gmra.mxu1 %vm2875_vm0, %v3778_v19  ;;  %10871 = vmatmul.mubr.msk.f32.vlgmr.msra.gmra.mxu0 %vm2875_vm0, %v3471_v33  ;;  %v2205_v7 = vpop.permute.xlu0 %2204  ;;  %v2253_v25 = vmul.f32 %v13581_v8, %v2210_v28 }
 0x2ec   : > { %10911 = vmatprep.mubr.msk.f32.mxu1 %vm2875_vm0, %v13551_v51  ;;  %10945 = vmatpush3.msra.mxu0 %v13150_v34  ;;  %v2252_v34 = vmul.f32 %v13581_v8, %v2205_v7 }
 0x2ed   : > { %10873 = vmatprep.mubr.msk.f32.mxu0 %vm2875_vm0, %v13567_v63  ;;  %10983 = vmatpush3.msra.mxu1 %v13293_v61  ;;  %v13599_v61 = vld [vmem:[%s15116_s29 + $0x7] ss:$0 sm:$0xff]  ;;  %v2281_v58 = vadd.f32 %v2253_v25, %v2049_v56  ;;  %v13629_v25 = vld [vmem:[#allocation2 + $0x32] sm:$0xff] }
 0x2ee   : > { %11020 = vmatprep.subr.mxu0 %v13556_v31  ;;  %v2442_v22 = vpop.permute.xlu1 %2441  ;;  %11058 = vmatprep.subr.mxu1 %v13572_v0  ;;  %v2280_v28 = vadd.f32 %v2252_v34, %v2048_v39 }
 0x2ef   : > { %10912 = vmatmul.mubr.msk.f32.gmra.mxu1 %vm2875_vm0, %v13584_v13  ;;  %v2485_v57 = vmul.f32 %v13599_v61, %v2442_v22  ;;  %10874 = vmatmul.mubr.msk.f32.gmra.mxu0 %vm2875_vm0, %v13591_v11  ;;  %v2437_v12 = vpop.permute.xlu0 %2436  ;;  %v13634_v22 = vpop.f32.mrf.mxu1 }
 0x2f0   : > { %10914 = vmatprep.mubr.msk.f32.mxu1 %vm2875_vm0, %v13593_v50  ;;  %v2484_v19 = vmul.f32 %v13599_v61, %v2437_v12  ;;  %10876 = vmatprep.mubr.msk.f32.mxu0 %vm2875_vm0, %v13606_v14  ;;  %15152 = vst [vmem:[#allocation50_spill] sm:$0xff] %v13634_v22  ;;  %v13638_v12 = vpop.f32.mrf.mxu0 }
 0x2f1   : > { %v2513_v7 = vadd.f32 %v2485_v57, %v2281_v58  ;;  %v13636_v57 = vld [vmem:[#allocation2 + $0x48] sm:$0xff]  ;;  %15154 = vst [vmem:[#allocation52_spill] sm:$0xff] %v13638_v12 }
 0x2f2   : > { %v2674_v33 = vpop.permute.xlu1 %2673  ;;  %v2512_v10 = vadd.f32 %v2484_v19, %v2280_v28  ;;  %15153 = vst [vmem:[#allocation51_spill] sm:$0xff] %v13636_v57  ;;  %v13644_v19 = vld [vmem:[#allocation2 + $0x50] sm:$0xff]  ;;  %v13646_v28 = vld [vmem:[#allocation9] ss:$0 sm:$0xff] }
 0x2f3   : > { %10915 = vmatmul.mubr.msk.f32.gmra.mxu1 %vm2875_vm0, %v13611_v45  ;;  %v2717_v18 = vmul.f32 %v13622_v15, %v2674_v33  ;;  %10877 = vmatmul.mubr.msk.f32.gmra.mxu0 %vm2875_vm0, %v13615_v2  ;;  %v2669_v16 = vpop.permute.xlu0 %2668  ;;  %v13642_v33 = vld [vmem:[#allocation2 + $0x3a] sm:$0xff]  ;;  %15155 = vst [vmem:[#allocation53_spill] sm:$0xff] %v13644_v19 }
 0x2f4   : > { %10917 = vmatprep.mubr.msk.f32.mxu1 %vm2875_vm0, %v13617_v29  ;;  %v2716_v34 = vmul.f32 %v13622_v15, %v2669_v16  ;;  %10879 = vmatprep.mubr.msk.f32.mxu0 %vm2875_vm0, %v13629_v25 }
 0x2f5   : > { %v2745_v56 = vadd.f32 %v2717_v18, %v2513_v7  ;;  %v13653_v18 = vld [vmem:[#allocation2 + $0x42] sm:$0xff] }
 0x2f6   : > { %v2744_v39 = vadd.f32 %v2716_v34, %v2512_v10  ;;  %v1055_v58 = vpop.permute.xlu1 %1054  ;;  %v10846_v10 = vpop.f32.mrf.mxu1 }
 0x2f7   : > { %10918 = vmatmul.mubr.msk.f32.gmra.mxu1 %vm2875_vm0, %v13636_v57  ;;  %v2780_v16 = vadd.f32 %v13646_v28, %v2745_v56  ;;  %10880 = vmatmul.mubr.msk.f32.gmra.mxu0 %vm2875_vm0, %v13642_v33  ;;  %v823_v7 = vpop.permute.xlu0 %822  ;;  %v1094_v26 = vmul.f32 %v13510_v44, %v1055_v58  ;;  %v13724_v57 = vld [vmem:[#allocation2 + $0x8a] sm:$0xff] }
 0x2f8   : > { %10920 = vmatprep.mubr.msk.f32.mxu1 %vm2875_vm0, %v13644_v19  ;;  %v2779_v34 = vadd.f32 %v13646_v28, %v2744_v39  ;;  %v10808_v22 = vpop.f32.mrf.mxu0  ;;  %10882 = vmatprep.mubr.msk.f32.mxu0 %vm2875_vm0, %v13653_v18  ;;  %v11582_v39 = vld [vmem:[#allocation2 + $0x60] sm:$0xff] }
 0x2f9   : > { %v2808_v12 = vmax.f32 %v2780_v16, 0.0  ;;  %v13658_v4 = vadd.f32 %v10846_v10, %v10808_v22  ;;  %v13669_v22 = vld [vmem:[#allocation2 + $0x52] sm:$0xff] }
 0x2fa   : > { %v2807_v56 = vmax.f32 %v2779_v34, 0.0  ;;  %v1060_v17 = vpop.permute.xlu1 %1059 }
 0x2fb   : > { %15156 = vst [vmem:[#allocation54_spill] sm:$0xff] %v13658_v4  ;;  %10921 = vmatmul.mubr.msk.f32.gmra.mxu1 %vm2875_vm0, %v11580_v41  ;;  %v2840_v21 = vmul.f32 %v13663_v32, %v2808_v12  ;;  %10883 = vmatmul.mubr.msk.f32.gmra.mxu0 %vm2875_vm0, %v13661_v3  ;;  %v828_v16 = vpop.permute.xlu0 %827  ;;  %v13674_v41 = vld [vmem:[#allocation9 + $0x2] ss:$0 sm:$0xff] }
 0x2fc   : > { %10923 = vmatprep.mubr.msk.f32.mxu1 %vm2875_vm0, %v11582_v39  ;;  %v2839_v10 = vmul.f32 %v13663_v32, %v2807_v56  ;;  %10885 = vmatprep.mubr.msk.f32.mxu0 %vm2875_vm0, %v13669_v22  ;;  %v13687_v39 = vld [vmem:[#allocation2 + $0x62] sm:$0xff]  ;;  %v863_v59 = vmul.f32 %v13516_v36, %v828_v16 }
 0x2fd   : > { %v2872_v34 = vadd.f32 %v13674_v41, %v2840_v21  ;;  %v13694_v21 = vld [vmem:[#allocation2 + $0x6a] sm:$0xff] }
 0x2fe   : > { %v2871_v12 = vadd.f32 %v13674_v41, %v2839_v10  ;;  %v1292_v4 = vpop.permute.xlu1 %1291  ;;  %v13700_v10 = vld [vmem:[#allocation2 + $0x72] sm:$0xff] }
 0x2ff   : > { %10924 = vmatmul.mubr.msk.f32.gmra.mxu1 %vm2875_vm0, %v13187_v23  ;;  %2901 = vst.msk [vmem:[#allocation2 + $0xc8] sm:$0xff] %vm2875_vm0, %v2872_v34  ;;  %10886 = vmatmul.mubr.msk.f32.gmra.mxu0 %vm2875_vm0, %v13680_v20  ;;  %v1287_v56 = vpop.permute.xlu0 %1286 }
 0x300   : > { %10926 = vmatprep.mubr.msk.f32.mxu1 %vm2875_vm0, %v13218_v46  ;;  %2900 = vst.msk [vmem:[#allocation2 + $0xc0] sm:$0xff] %vm2875_vm0, %v2871_v12  ;;  %10888 = vmatprep.mubr.msk.f32.mxu0 %vm2875_vm0, %v13687_v39  ;;  %v1095_v12 = vmul.f32 %v13510_v44, %v1060_v17  ;;  %v1327_v17 = vmul.f32 %v13524_v27, %v1292_v4 }
 0x301   : > { %v1326_v16 = vmul.f32 %v13524_v27, %v1287_v56 }
 0x302   : > { %v1524_v23 = vpop.permute.xlu1 %1523 }
 0x303   : > { %10927 = vmatmul.mubr.msk.f32.gmra.mxu1 %vm2875_vm0, %v13312_v47  ;;  %10889 = vmatmul.mubr.msk.f32.gmra.mxu0 %vm2875_vm0, %v13694_v21  ;;  %v1519_v46 = vpop.permute.xlu0 %1518  ;;  %v13706_v47 = vld [vmem:[#allocation2 + $0x7a] sm:$0xff]  ;;  %v1559_v29 = vmul.f32 %v13536_v60, %v1524_v23 }
 0x304   : > { %10929 = vmatprep.mubr.msk.f32.mxu1 %vm2875_vm0, %v13341_v53  ;;  %10891 = vmatprep.mubr.msk.f32.mxu0 %vm2875_vm0, %v13700_v10  ;;  %v1558_v27 = vmul.f32 %v13536_v60, %v1519_v46 }
 0x306   : > { %v1756_v34 = vpop.permute.xlu1 %1755 }
 0x307   : > { %10930 = vmatmul.mubr.msk.f32.gmra.mxu1 %vm2875_vm0, %v13399_v38  ;;  %10892 = vmatmul.mubr.msk.f32.gmra.mxu0 %vm2875_vm0, %v13706_v47  ;;  %v1751_v53 = vpop.permute.xlu0 %1750  ;;  %v862_v38 = vmul.f32 %v13516_v36, %v823_v7  ;;  %v13731_v36 = vld [vmem:[#allocation2 + $0x92] sm:$0xff] }
 0x308   : > { %10932 = vmatprep.mubr.msk.f32.mxu1 %vm2875_vm0, %v13411_v35  ;;  %10894 = vmatprep.mubr.msk.f32.mxu0 %vm2875_vm0, %v13714_v5  ;;  %v1123_v35 = vadd.f32 %v1095_v12, %v863_v59  ;;  %v1791_v59 = vmul.f32 %v13546_v54, %v1756_v34  ;;  %v1790_v56 = vmul.f32 %v13546_v54, %v1751_v53  ;;  %v13740_v12 = vld [vmem:[#allocation2 + $0x9a] sm:$0xff] }
 0x309   : > { %v1122_v4 = vadd.f32 %v1094_v26, %v862_v38  ;;  %v13753_v34 = vld [vmem:[#allocation2 + $0xb8] sm:$0xff] }
 0x30a   : > { %v1988_v19 = vpop.permute.xlu1 %1987  ;;  %v1355_v58 = vadd.f32 %v1327_v17, %v1123_v35  ;;  %v13747_v35 = vld [vmem:[#allocation2 + $0xa2] sm:$0xff] }
 0x30b   : > { %10933 = vmatmul.mubr.msk.f32.gmra.mxu1 %vm2875_vm0, %v13457_v6  ;;  %10895 = vmatmul.mubr.msk.f32.gmra.mxu0 %vm2875_vm0, %v13724_v57  ;;  %v1983_v44 = vpop.permute.xlu0 %1982  ;;  %v1354_v7 = vadd.f32 %v1326_v16, %v1122_v4  ;;  %v2023_v26 = vmul.f32 %v13561_v48, %v1988_v19  ;;  %v13758_v16 = vld [vmem:[#allocation2 + $0xaa] sm:$0xff]  ;;  %v13760_v4 = vld [vmem:[#allocation2 + $0xc0] sm:$0xff] }
 0x30c   : > { %10935 = vmatprep.mubr.msk.f32.mxu1 %vm2875_vm0, %v13473_v24  ;;  %10897 = vmatprep.mubr.msk.f32.mxu0 %vm2875_vm0, %v13731_v36  ;;  %v1587_v24 = vadd.f32 %v1559_v29, %v1355_v58  ;;  %v2022_v54 = vmul.f32 %v13561_v48, %v1983_v44 }
 0x30d   : > { %v1586_v60 = vadd.f32 %v1558_v27, %v1354_v7  ;;  %v13767_v27 = vld [vmem:[#allocation2 + $0xb2] sm:$0xff]  ;;  %v3800_v7 = vld [vmem:[#allocation2 + $0xc8] sm:$0xf] }
 0x30e   : > { %v2220_v23 = vpop.permute.xlu1 %2219  ;;  %v1819_v46 = vadd.f32 %v1791_v59, %v1587_v24 }
 0x30f   : > { %10936 = vmatmul.mubr.msk.f32.gmra.mxu1 %vm2875_vm0, %v13495_v9  ;;  %10898 = vmatmul.mubr.msk.f32.gmra.mxu0 %vm2875_vm0, %v13740_v12  ;;  %v2215_v38 = vpop.permute.xlu0 %2214  ;;  %v2255_v29 = vmul.f32 %v13581_v8, %v2220_v23  ;;  %v1818_v19 = vadd.f32 %v1790_v56, %v1586_v60 }
 0x310   : > { %10938 = vmatprep.mubr.msk.f32.mxu1 %vm2875_vm0, %v13491_v55  ;;  %10900 = vmatprep.mubr.msk.f32.mxu0 %vm2875_vm0, %v13747_v35  ;;  %v2254_v53 = vmul.f32 %v13581_v8, %v2215_v38  ;;  %v2051_v48 = vadd.f32 %v2023_v26, %v1819_v46  ;;  %v3493_v26 = vld [vmem:[#allocation2 + $0xba] sm:$0xf] }
 0x311   : > { %v2050_v8 = vadd.f32 %v2022_v54, %v1818_v19 }
 0x312   : > { %v2452_v17 = vpop.permute.xlu1 %2451  ;;  %v2283_v59 = vadd.f32 %v2255_v29, %v2051_v48 }
 0x313   : > { %10939 = vmatmul.mubr.msk.f32.gmra.mxu1 %vm2875_vm0, %v13753_v34  ;;  %v2487_v44 = vmul.f32 %v13599_v61, %v2452_v17  ;;  %10901 = vmatmul.mubr.msk.f32.gmra.mxu0 %vm2875_vm0, %v13758_v16  ;;  %v2447_v24 = vpop.permute.xlu0 %2446  ;;  %v2282_v56 = vadd.f32 %v2254_v53, %v2050_v8  ;;  %v13779_v53 = vpop.f32.mrf.mxu1 }
 0x314   : > { %10941 = vmatprep.mubr.msk.f32.mxu1 %vm2875_vm0, %v13760_v4  ;;  %v2486_v58 = vmul.f32 %v13599_v61, %v2447_v24  ;;  %10903 = vmatprep.mubr.msk.f32.mxu0 %vm2875_vm0, %v13767_v27  ;;  %v4084_v61 = vld [vmem:[#allocation2 + $0x11] sm:$0xff]  ;;  %v13781_v17 = vpop.f32.mrf.mxu0 }
 0x315   : > { %v2515_v38 = vadd.f32 %v2487_v44, %v2283_v59  ;;  %v4085_v44 = vld [vmem:[#allocation2 + $0x19] sm:$0xff]  ;;  %v10849_v8 = vpop.f32.mrf.mxu1 }
 0x316   : > { %v2684_v23 = vpop.permute.xlu1 %2683  ;;  %v2514_v46 = vadd.f32 %v2486_v58, %v2282_v56 }
 0x317   : > { %10942 = vmatmul.mubr.msk.f32.gmra.mxu1 %vm2875_vm0, %v3800_v7  ;;  %v2719_v60 = vmul.f32 %v13622_v15, %v2684_v23  ;;  %10904 = vmatmul.mubr.msk.f32.gmra.mxu0 %vm2875_vm0, %v3493_v26  ;;  %v2679_v54 = vpop.permute.xlu0 %2678  ;;  %v13806_v23 = vld [vmem:[#allocation2 + $0x29] sm:$0xff] }
 0x318   : > { %10984 = vmatprep.mubr.msk.f32.mxu1 %vm2875_vm0, %v13567_v63  ;;  %v2718_v19 = vmul.f32 %v13622_v15, %v2679_v54  ;;  %10946 = vmatprep.mubr.msk.f32.mxu0 %vm2875_vm0, %v4084_v61  ;;  %v13788_v63 = vld [vmem:[%s15049_s3 + $0x40] sm:$0xff]  ;;  %v4092_v54 = vld [vmem:[#allocation2 + $0x51] sm:$0xff] }
 0x319   : > { %v2747_v29 = vadd.f32 %v2719_v60, %v2515_v38  ;;  %v13794_v15 = vld [vmem:[#allocation2 + $0x21] sm:$0xff]  ;;  %v13822_v60 = vld [vmem:[#allocation2 + $0x39] sm:$0xff] }
 0x31a   : > { %v2746_v48 = vadd.f32 %v2718_v19, %v2514_v46  ;;  %v4093_v61 = vld [vmem:[#allocation2 + $0x59] sm:$0xff]  ;;  %v4094_v46 = vld [vmem:[#allocation2 + $0x61] sm:$0xff]  ;;  %v4095_v19 = vld [vmem:[#allocation2 + $0x69] sm:$0xff] }
 0x31b   : > { %10985 = vmatmul.mubr.msk.f32.vlgmr.msra.gmra.mxu1 %vm2875_vm0, %v13591_v11  ;;  %v2782_v24 = vadd.f32 %v13646_v28, %v2747_v29  ;;  %10947 = vmatmul.mubr.msk.f32.vlgmr.msra.gmra.mxu0 %vm2875_vm0, %v4085_v44 }
 0x31c   : > { %10987 = vmatprep.mubr.msk.f32.mxu1 %vm2875_vm0, %v13606_v14  ;;  %v2781_v58 = vadd.f32 %v13646_v28, %v2746_v48  ;;  %11021 = vmatpush3.msra.mxu0 %v13556_v31  ;;  %v10811_v11 = vpop.f32.mrf.mxu0  ;;  %v13813_v31 = vld [vmem:[#allocation2 + $0x31] sm:$0xff] }
 0x31d   : > { %10949 = vmatprep.mubr.msk.f32.mxu0 %vm2875_vm0, %v13794_v15  ;;  %v2810_v59 = vmax.f32 %v2782_v24, 0.0  ;;  %v13800_v7 = vadd.f32 %v10849_v8, %v10811_v11  ;;  %11059 = vmatpush3.msra.mxu1 %v13572_v0  ;;  %v13887_v24 = vld [vmem:[#allocation2 + $0xba] sm:$0xff] }
 0x31e   : > { %11096 = vmatprep.subr.mxu0 %v13788_v63  ;;  %v2809_v56 = vmax.f32 %v2781_v58, 0.0  ;;  %v4105_v8 = vld [vmem:[#allocation2 + $0xb9] sm:$0xff]  ;;  %v13891_v58 = vld [vmem:[#allocation2 + $0xc2] sm:$0xff] }
 0x31f   : > { %10988 = vmatmul.mubr.msk.f32.gmra.mxu1 %vm2875_vm0, %v13615_v2  ;;  %v2842_v28 = vmul.f32 %v13663_v32, %v2810_v59  ;;  %10950 = vmatmul.mubr.msk.f32.gmra.mxu0 %vm2875_vm0, %v13806_v23  ;;  %v4106_v11 = vld [vmem:[#allocation2 + $0xc1] sm:$0xff]  ;;  %v4414_v59 = vld [vmem:[#allocation2 + $0xca] sm:$0xf] }
 0x320   : > { %10990 = vmatprep.mubr.msk.f32.mxu1 %vm2875_vm0, %v13629_v25  ;;  %v2841_v0 = vmul.f32 %v13663_v32, %v2809_v56  ;;  %10952 = vmatprep.mubr.msk.f32.mxu0 %vm2875_vm0, %v13813_v31  ;;  %v4090_v32 = vld [vmem:[#allocation2 + $0x41] sm:$0xff]  ;;  %v4107_v56 = vld [vmem:[#allocation2 + $0xc9] sm:$0xf] }
 0x321   : > { %v2874_v26 = vadd.f32 %v13674_v41, %v2842_v28  ;;  %v4708_v28 = vld [vmem:[#allocation2 + $0x70] sm:$0xff] }
 0x322   : > { %v2873_v38 = vadd.f32 %v13674_v41, %v2841_v0  ;;  %v4091_v41 = vld [vmem:[#allocation2 + $0x49] sm:$0xff]  ;;  %v4709_v0 = vld [vmem:[#allocation2 + $0x78] sm:$0xff] }
 0x323   : > { %10991 = vmatmul.mubr.msk.f32.gmra.mxu1 %vm2875_vm0, %v13642_v33  ;;  %2904 = vst.msk [vmem:[#allocation2 + $0xd8] sm:$0x3f] %vm2903_vm1, %v2874_v26  ;;  %10953 = vmatmul.mubr.msk.f32.gmra.mxu0 %vm2875_vm0, %v13822_v60  ;;  %v4710_v26 = vld [vmem:[#allocation2 + $0x80] sm:$0xff]  ;;  %vm8014_vm1 = vcmask 126978  }
 0x324   : > { %10993 = vmatprep.mubr.msk.f32.mxu1 %vm2875_vm0, %v13653_v18  ;;  %2902 = vst.msk [vmem:[#allocation2 + $0xd0] sm:$0xff] %vm2875_vm0, %v2873_v38  ;;  %10955 = vmatprep.mubr.msk.f32.mxu0 %vm2875_vm0, %v4090_v32 }
 0x327   : > { %10994 = vmatmul.mubr.msk.f32.gmra.mxu1 %vm2875_vm0, %v13661_v3  ;;  %10956 = vmatmul.mubr.msk.f32.gmra.mxu0 %vm2875_vm0, %v4091_v41 }
 0x328   : > { %10996 = vmatprep.mubr.msk.f32.mxu1 %vm2875_vm0, %v13669_v22  ;;  %10958 = vmatprep.mubr.msk.f32.mxu0 %vm2875_vm0, %v4092_v54 }
 0x32b   : > { %10997 = vmatmul.mubr.msk.f32.gmra.mxu1 %vm2875_vm0, %v13680_v20  ;;  %10959 = vmatmul.mubr.msk.f32.gmra.mxu0 %vm2875_vm0, %v4093_v61 }
 0x32c   : > { %10999 = vmatprep.mubr.msk.f32.mxu1 %vm2875_vm0, %v13687_v39  ;;  %10961 = vmatprep.mubr.msk.f32.mxu0 %vm2875_vm0, %v4094_v46 }
 0x32f   : > { %11000 = vmatmul.mubr.msk.f32.gmra.mxu1 %vm2875_vm0, %v13694_v21  ;;  %10962 = vmatmul.mubr.msk.f32.gmra.mxu0 %vm2875_vm0, %v4095_v19 }
 0x330   : > { %11002 = vmatprep.mubr.msk.f32.mxu1 %vm2875_vm0, %v13700_v10  ;;  %10964 = vmatprep.mubr.msk.f32.mxu0 %vm2875_vm0, %v13310_v52  ;;  %v13873_v52 = vpop.f32.mrf.mxu1 }
 0x333   : > { %11003 = vmatmul.mubr.msk.f32.gmra.mxu1 %vm2875_vm0, %v13706_v47  ;;  %10965 = vmatmul.mubr.msk.f32.gmra.mxu0 %vm2875_vm0, %v13339_v62  ;;  %v13875_v62 = vpop.f32.mrf.mxu0 }
 0x334   : > { %11005 = vmatprep.mubr.msk.f32.mxu1 %vm2875_vm0, %v13714_v5  ;;  %10967 = vmatprep.mubr.msk.f32.mxu0 %vm2875_vm0, %v13397_v43 }
 0x337   : > { %11006 = vmatmul.mubr.msk.f32.gmra.mxu1 %vm2875_vm0, %v13724_v57  ;;  %10968 = vmatmul.mubr.msk.f32.gmra.mxu0 %vm2875_vm0, %v13409_v30 }
 0x338   : > { %11008 = vmatprep.mubr.msk.f32.mxu1 %vm2875_vm0, %v13731_v36  ;;  %10970 = vmatprep.mubr.msk.f32.mxu0 %vm2875_vm0, %v13455_v42 }
 0x339   : > { %v10852_v29 = vpop.f32.mrf.mxu1 }
 0x33b   : > { %11009 = vmatmul.mubr.msk.f32.gmra.mxu1 %vm2875_vm0, %v13740_v12  ;;  %10971 = vmatmul.mubr.msk.f32.gmra.mxu0 %vm2875_vm0, %v13471_v40  ;;  %v13938_v38 = vpop.f32.mrf.mxu1 }
 0x33c   : > { %11011 = vmatprep.mubr.msk.f32.mxu1 %vm2875_vm0, %v13747_v35  ;;  %10973 = vmatprep.mubr.msk.f32.mxu0 %vm2875_vm0, %v13493_v49 }
 0x33f   : > { %11012 = vmatmul.mubr.msk.f32.gmra.mxu1 %vm2875_vm0, %v13758_v16  ;;  %10974 = vmatmul.mubr.msk.f32.gmra.mxu0 %vm2875_vm0, %v13497_v1 }
 0x340   : > { %11014 = vmatprep.mubr.msk.f32.mxu1 %vm2875_vm0, %v13767_v27  ;;  %v10814_v48 = vpop.f32.mrf.mxu0  ;;  %10976 = vmatprep.mubr.msk.f32.mxu0 %vm2875_vm0, %v13527_v37 }
 0x341   : > { %v13885_v44 = vadd.f32 %v10852_v29, %v10814_v48 }
 0x343   : > { %11015 = vmatmul.mubr.msk.f32.gmra.mxu1 %vm2875_vm0, %v13887_v24  ;;  %10977 = vmatmul.mubr.msk.f32.gmra.mxu0 %vm2875_vm0, %v4105_v8 }
 0x344   : > { %11017 = vmatprep.mubr.msk.f32.mxu1 %vm2875_vm0, %v13891_v58  ;;  %10979 = vmatprep.mubr.msk.f32.mxu0 %vm2875_vm0, %v4106_v11 }
 0x347   : > { %11018 = vmatmul.mubr.msk.f32.gmra.mxu1 %vm2875_vm0, %v4414_v59  ;;  %10980 = vmatmul.mubr.msk.f32.gmra.mxu0 %vm2875_vm0, %v4107_v56 }
 0x348   : > { %11060 = vmatprep.mubr.msk.f32.mxu1 %vm2875_vm0, %v13794_v15  ;;  %11022 = vmatprep.mubr.msk.f32.mxu0 %vm2875_vm0, %v13551_v51  ;;  %v15157_v51 = vld [vmem:[#allocation49_spill] sm:$0xff]  ;;  %v4707_v15 = vld [vmem:[#allocation2 + $0x68] sm:$0xff] }
 0x34b   : > { %11061 = vmatmul.mubr.msk.f32.vlgmr.msra.gmra.mxu1 %vm2875_vm0, %v13806_v23  ;;  %11023 = vmatmul.mubr.msk.f32.vlgmr.msra.gmra.mxu0 %vm2875_vm0, %v13584_v13  ;;  %v15158_v13 = vld [vmem:[#allocation51_spill] sm:$0xff] }
 0x34c   : > { %11063 = vmatprep.mubr.msk.f32.mxu1 %vm2875_vm0, %v13813_v31  ;;  %11097 = vmatpush3.msra.mxu0 %v13788_v63  ;;  %v15159_v63 = vld [vmem:[#allocation53_spill] sm:$0xff]  ;;  %v5015_v23 = vld [vmem:[#allocation2 + $0x71] sm:$0xff] }
 0x34d   : > { %11025 = vmatprep.mubr.msk.f32.mxu0 %vm2875_vm0, %v13593_v50  ;;  %v4705_v50 = vld [vmem:[#allocation2 + $0x58] sm:$0xff] }
 0x34e   : > { %v5016_v31 = vld [vmem:[#allocation2 + $0x79] sm:$0xff] }
 0x34f   : > { %11064 = vmatmul.mubr.msk.f32.gmra.mxu1 %vm2875_vm0, %v13822_v60  ;;  %11026 = vmatmul.mubr.msk.f32.gmra.mxu0 %vm2875_vm0, %v13611_v45  ;;  %v4706_v45 = vld [vmem:[#allocation2 + $0x60] sm:$0xff]  ;;  %v13940_v60 = vpop.f32.mrf.mxu0 }
 0x350   : > { %11066 = vmatprep.mubr.msk.f32.mxu1 %vm2875_vm0, %v4090_v32  ;;  %11028 = vmatprep.mubr.msk.f32.mxu0 %vm2875_vm0, %v15157_v51  ;;  %v15160_v32 = vld [vmem:[#allocation43_spill] sm:$0xff] }
 0x353   : > { %11067 = vmatmul.mubr.msk.f32.gmra.mxu1 %vm2875_vm0, %v4091_v41  ;;  %11029 = vmatmul.mubr.msk.f32.gmra.mxu0 %vm2875_vm0, %v15158_v13  ;;  %v15164_v13 = vld [vmem:[#allocation45_spill] sm:$0xff] }
 0x354   : > { %11069 = vmatprep.mubr.msk.f32.mxu1 %vm2875_vm0, %v4092_v54  ;;  %11031 = vmatprep.mubr.msk.f32.mxu0 %vm2875_vm0, %v15159_v63 }
 0x357   : > { %11070 = vmatmul.mubr.msk.f32.gmra.mxu1 %vm2875_vm0, %v4093_v61  ;;  %11032 = vmatmul.mubr.msk.f32.gmra.mxu0 %vm2875_vm0, %v4705_v50  ;;  %v15161_v61 = vld [vmem:[#allocation41_spill] sm:$0xff] }
 0x358   : > { %11072 = vmatprep.mubr.msk.f32.mxu1 %vm2875_vm0, %v4094_v46  ;;  %11034 = vmatprep.mubr.msk.f32.mxu0 %vm2875_vm0, %v4706_v45 }
 0x35b   : > { %11073 = vmatmul.mubr.msk.f32.gmra.mxu1 %vm2875_vm0, %v4095_v19  ;;  %11035 = vmatmul.mubr.msk.f32.gmra.mxu0 %vm2875_vm0, %v4707_v15 }
 0x35c   : > { %11075 = vmatprep.mubr.msk.f32.mxu1 %vm2875_vm0, %v5015_v23  ;;  %11037 = vmatprep.mubr.msk.f32.mxu0 %vm2875_vm0, %v4708_v28 }
 0x35d   : > { %v10855_v41 = vpop.f32.mrf.mxu1 }
 0x35f   : > { %11076 = vmatmul.mubr.msk.f32.gmra.mxu1 %vm2875_vm0, %v5016_v31  ;;  %11038 = vmatmul.mubr.msk.f32.gmra.mxu0 %vm2875_vm0, %v4709_v0  ;;  %v15165_v31 = vld [vmem:[#allocation37_spill] sm:$0xff] }
 0x360   : > { %11078 = vmatprep.mubr.msk.f32.mxu1 %vm2875_vm0, %v13397_v43  ;;  %11040 = vmatprep.mubr.msk.f32.mxu0 %vm2875_vm0, %v4710_v26 }
 0x363   : > { %11079 = vmatmul.mubr.msk.f32.gmra.mxu1 %vm2875_vm0, %v13409_v30  ;;  %11041 = vmatmul.mubr.msk.f32.gmra.mxu0 %vm2875_vm0, %v15160_v32  ;;  %v15162_v30 = vld [vmem:[#allocation47_spill] sm:$0xff] }
 0x364   : > { %11081 = vmatprep.mubr.msk.f32.mxu1 %vm2875_vm0, %v13455_v42  ;;  %v10817_v54 = vpop.f32.mrf.mxu0  ;;  %11043 = vmatprep.mubr.msk.f32.mxu0 %vm2875_vm0, %v15161_v61  ;;  %v5026_v42 = vld [vmem:[#allocation2 + $0xc9] sm:$0xff] }
 0x365   : > { %v13950_v43 = vadd.f32 %v10855_v41, %v10817_v54 }
 0x367   : > { %11082 = vmatmul.mubr.msk.f32.gmra.mxu1 %vm2875_vm0, %v13471_v40  ;;  %11044 = vmatmul.mubr.msk.f32.gmra.mxu0 %vm2875_vm0, %v13457_v6  ;;  %v4719_v6 = vld [vmem:[#allocation2 + $0xc8] sm:$0xff]  ;;  %v5027_v40 = vld [vmem:[#allocation2 + $0xd1] sm:$0xff] }
 0x368   : > { %11084 = vmatprep.mubr.msk.f32.mxu1 %vm2875_vm0, %v13493_v49  ;;  %11046 = vmatprep.mubr.msk.f32.mxu0 %vm2875_vm0, %v15162_v30  ;;  %v5028_v49 = vld [vmem:[#allocation2 + $0xd9] sm:$0xf] }
 0x369   : > { %v15166_v30 = vld [vmem:[#allocation48_spill] sm:$0xff] }
 0x36b   : > { %11085 = vmatmul.mubr.msk.f32.gmra.mxu1 %vm2875_vm0, %v13497_v1  ;;  %11047 = vmatmul.mubr.msk.f32.gmra.mxu0 %vm2875_vm0, %v13495_v9  ;;  %v4721_v9 = vld [vmem:[#allocation2 + $0xd8] sm:$0xf]  ;;  %v13986_v1 = vpop.f32.mrf.mxu1 }
 0x36c   : > { %11087 = vmatprep.mubr.msk.f32.mxu1 %vm2875_vm0, %v13527_v37  ;;  %11049 = vmatprep.mubr.msk.f32.mxu0 %vm2875_vm0, %v13491_v55  ;;  %v4720_v55 = vld [vmem:[#allocation2 + $0xd0] sm:$0xff]  ;;  %v13988_v37 = vpop.f32.mrf.mxu0 }
 0x36f   : > { %11088 = vmatmul.mubr.msk.f32.gmra.mxu1 %vm2875_vm0, %v4105_v8  ;;  %11050 = vmatmul.mubr.msk.f32.gmra.mxu0 %vm2875_vm0, %v13753_v34 }
 0x370   : > { %11090 = vmatprep.mubr.msk.f32.mxu1 %vm2875_vm0, %v4106_v11  ;;  %11052 = vmatprep.mubr.msk.f32.mxu0 %vm2875_vm0, %v13760_v4 }
 0x373   : > { %11091 = vmatmul.mubr.msk.f32.gmra.mxu1 %vm2875_vm0, %v5026_v42  ;;  %11053 = vmatmul.mubr.msk.f32.gmra.mxu0 %vm2875_vm0, %v4719_v6 }
 0x374   : > { %11093 = vmatprep.mubr.msk.f32.mxu1 %vm2875_vm0, %v5027_v40  ;;  %11055 = vmatprep.mubr.msk.f32.mxu0 %vm2875_vm0, %v4720_v55  ;;  %v14080_v40 = vld [vmem:[%s15051_s5 + $0x8] sm:$0xf] }
 0x375   : > { %15167 = vst [vmem:[#allocation49_spill] sm:$0xff] %v14080_v40 }
 0x377   : > { %11094 = vmatmul.mubr.msk.f32.gmra.mxu1 %vm2875_vm0, %v5028_v49  ;;  %11056 = vmatmul.mubr.msk.f32.gmra.mxu0 %vm2875_vm0, %v4721_v9  ;;  %v15079_v49 = vmov 0.0  }
 0x378   : > { %11098 = vmatprep.mubr.msk.f32.mxu0 %vm2875_vm0, %v13606_v14  ;;  %11134 = vmatprep.subr.mxu1 %v15079_v49  ;;  %6285 = vst.msk [vmem:[#allocation6] sm:$0xff] %vm5730_vm3, %v15079_v49  ;;  %6286 = vst.msk [vmem:[#allocation6 + $0x8] sm:$0xff] %vm5730_vm3, %v15079_v49 }
 0x379   : > { %11135 = vmatpush3.msk.msra.mxu1 %vm5778_vm2, %v14080_v40  ;;  %6287 = vst.msk [vmem:[#allocation6 + $0x10] sm:$0xff] %vm5730_vm3, %v15079_v49  ;;  %11138 = vmatprep.mubr.msk.f32.mxu1 %vm11914_vm4, %v15079_v49 }
 0x37a   : > { %11136 = vmatprep.subr.mxu1 %v15079_v49 }
 0x37b   : > { %11099 = vmatmul.mubr.msk.f32.vlgmr.msra.gmra.mxu0 %vm2875_vm0, %v13615_v2 }
 0x37c   : > { %11101 = vmatprep.mubr.msk.f32.mxu0 %vm2875_vm0, %v13629_v25 }
 0x37d   : > { %v10858_v34 = vpop.f32.mrf.mxu1 }
 0x37f   : > { %11102 = vmatmul.mubr.msk.f32.gmra.mxu0 %vm2875_vm0, %v13642_v33  ;;  %v10820_v4 = vpop.f32.mrf.mxu0 }
 0x380   : > { %v13992_v46 = vadd.f32 %v10858_v34, %v10820_v4  ;;  %11104 = vmatprep.mubr.msk.f32.mxu0 %vm2875_vm0, %v13653_v18 }
 0x381   : > { %v14014_v14 = vpop.f32.mrf.mxu0 }
 0x383   : > { %11105 = vmatmul.mubr.msk.f32.gmra.mxu0 %vm2875_vm0, %v13661_v3  ;;  %v14012_v3 = vpop.f32.mrf.mxu1 }
 0x384   : > { %11107 = vmatprep.mubr.msk.f32.mxu0 %vm2875_vm0, %v13669_v22 }
 0x387   : > { %11108 = vmatmul.mubr.msk.f32.gmra.mxu0 %vm2875_vm0, %v13680_v20 }
 0x388   : > { %11110 = vmatprep.mubr.msk.f32.mxu0 %vm2875_vm0, %v13687_v39  ;;  %v5333_v39 = vld [vmem:[#allocation2 + $0xca] sm:$0xff] }
 0x38b   : > { %11111 = vmatmul.mubr.msk.f32.gmra.mxu0 %vm2875_vm0, %v13694_v21  ;;  %v5334_v21 = vld [vmem:[#allocation2 + $0xd2] sm:$0xff] }
 0x38c   : > { %11113 = vmatprep.mubr.msk.f32.mxu0 %vm2875_vm0, %v13700_v10 }
 0x38f   : > { %11114 = vmatmul.mubr.msk.f32.gmra.mxu0 %vm2875_vm0, %v13706_v47 }
 0x390   : > { %11116 = vmatprep.mubr.msk.f32.mxu0 %vm2875_vm0, %v13714_v5  ;;  %v10861_v20 = vpop.f32.mrf.mxu1 }
 0x392   : > { %v14030_v5 = vpop.f32.mrf.mxu1 }
 0x393   : > { %11117 = vmatmul.mubr.msk.f32.gmra.mxu0 %vm2875_vm0, %v13724_v57  ;;  %v10823_v2 = vpop.f32.mrf.mxu0 }
 0x394   : > { %v14018_v25 = vadd.f32 %v10861_v20, %v10823_v2  ;;  %11119 = vmatprep.mubr.msk.f32.mxu0 %vm2875_vm0, %v13731_v36  ;;  %v15168_v20 = vld [vmem:[#allocation54_spill] sm:$0xff] }
 0x395   : > { %v14032_v57 = vpop.f32.mrf.mxu0 }
 0x397   : > { %11120 = vmatmul.mubr.msk.f32.gmra.mxu0 %vm2875_vm0, %v13740_v12  ;;  %v5335_v12 = vld [vmem:[#allocation2 + $0xda] sm:$0xf] }
 0x398   : > { %11122 = vmatprep.mubr.msk.f32.mxu0 %vm2875_vm0, %v13747_v35 }
 0x39b   : > { %11123 = vmatmul.mubr.msk.f32.gmra.mxu0 %vm2875_vm0, %v13758_v16 }
 0x39c   : > { %11125 = vmatprep.mubr.msk.f32.mxu0 %vm2875_vm0, %v13767_v27 }
 0x39f   : > { %11126 = vmatmul.mubr.msk.f32.gmra.mxu0 %vm2875_vm0, %v13887_v24  ;;  %v15163_v24 = vld [vmem:[#allocation39_spill] sm:$0xff] }
 0x3a0   : > { %11128 = vmatprep.mubr.msk.f32.mxu0 %vm2875_vm0, %v13891_v58 }
 0x3a1   : > { %v10864_v33 = vpop.f32.mrf.mxu1  ;;  %v10826_v18 = vpop.f32.mrf.mxu0 }
 0x3a2   : > { %v14038_v22 = vadd.f32 %v10864_v33, %v10826_v18 }
 0x3a3   : > { %11129 = vmatmul.mubr.msk.f32.gmra.mxu0 %vm2875_vm0, %v5333_v39  ;;  %v14041_v10 = vpop.f32.mrf.mxu1  ;;  %v14044_v47 = vpop.f32.mrf.mxu0 }
 0x3a4   : > { %11131 = vmatprep.mubr.msk.f32.mxu0 %vm2875_vm0, %v5334_v21 }
 0x3a7   : > { %v10867_v36 = vpop.f32.mrf.mxu1  ;;  %v10829_v35 = vpop.f32.mrf.mxu0  ;;  %11132 = vmatmul.mubr.msk.f32.gmra.mxu0 %vm2875_vm0, %v5335_v12  ;;  %vm6294_vm0 = vcmask 122880  }
 0x3a8   : > { %v14047_v16 = vadd.f32 %v10867_v36, %v10829_v35 }
 0x3a9   : > { %v14049_v27 = vpop.f32.mrf.mxu1  ;;  %v14051_v19 = vpop.f32.mrf.mxu0 }
 0x3ab   : > { %v10910_v29 = vpop.f32.mrf.mxu1  ;;  %v10872_v48 = vpop.f32.mrf.mxu0 }
 0x3ac   : > { %v3754_v8 = vadd.f32 %v10872_v48, %v15163_v24 }
 0x3ad   : > { %v14054_v58 = vpop.f32.mrf.mxu1  ;;  %v14056_v11 = vpop.f32.mrf.mxu0 }
 0x3ae   : > { %v14058_v56 = vadd.f32 %v10910_v29, %v3754_v8 }
 0x3af   : > { %v10913_v59 = vpop.f32.mrf.mxu1  ;;  %v10875_v51 = vpop.f32.mrf.mxu0 }
 0x3b0   : > { %v3756_v63 = vadd.f32 %v10875_v51, %v15164_v13 }
 0x3b1   : > { %v14061_v50 = vpop.f32.mrf.mxu1  ;;  %v14063_v45 = vpop.f32.mrf.mxu0 }
 0x3b2   : > { %v14065_v23 = vadd.f32 %v10913_v59, %v3756_v63 }
 0x3b3   : > { %v10916_v15 = vpop.f32.mrf.mxu1  ;;  %v10878_v28 = vpop.f32.mrf.mxu0 }
 0x3b4   : > { %v3758_v0 = vadd.f32 %v10878_v28, %v15165_v31 }
 0x3b5   : > { %v14068_v26 = vpop.f32.mrf.mxu1  ;;  %v14070_v32 = vpop.f32.mrf.mxu0 }
 0x3b6   : > { %v14072_v54 = vadd.f32 %v10916_v15, %v3758_v0 }
 0x3b7   : > { %v10919_v41 = vpop.f32.mrf.mxu1  ;;  %v10881_v61 = vpop.f32.mrf.mxu0 }
 0x3b8   : > { %v3760_v42 = vadd.f32 %v10881_v61, %v15166_v30  ;;  %v3432_v30 = vadd.f32 %v14012_v3, %v14014_v14 }
 0x3b9   : > { %v14075_v6 = vpop.f32.mrf.mxu1  ;;  %v14082_v55 = vpop.f32.mrf.mxu0 }
 0x3ba   : > { %v14085_v34 = vadd.f32 %v10919_v41, %v3760_v42 }
 0x3bb   : > { %v10922_v9 = vpop.f32.mrf.mxu1  ;;  %v10884_v4 = vpop.f32.mrf.mxu0 }
 0x3bc   : > { %v3762_v2 = vadd.f32 %v10884_v4, %v15168_v20 }
 0x3bd   : > { %v14091_v33 = vpop.f32.mrf.mxu1  ;;  %v14093_v18 = vpop.f32.mrf.mxu0 }
 0x3be   : > { %v14095_v21 = vadd.f32 %v10922_v9, %v3762_v2 }
 0x3bf   : > { %v10925_v39 = vpop.f32.mrf.mxu1  ;;  %v10887_v36 = vpop.f32.mrf.mxu0 }
 0x3c0   : > { %v3764_v12 = vadd.f32 %v10887_v36, %v13800_v7  ;;  %v3442_v36 = vadd.f32 %v14030_v5, %v14032_v57 }
 0x3c1   : > { %v14098_v35 = vpop.f32.mrf.mxu1  ;;  %v14100_v29 = vpop.f32.mrf.mxu0 }
 0x3c2   : > { %v14102_v24 = vadd.f32 %v10925_v39, %v3764_v12 }
 0x3c3   : > { %v10928_v48 = vpop.f32.mrf.mxu1  ;;  %v10890_v8 = vpop.f32.mrf.mxu0 }
 0x3c4   : > { %v3766_v59 = vadd.f32 %v10890_v8, %v13885_v44 }
 0x3c5   : > { %v14105_v51 = vpop.f32.mrf.mxu1  ;;  %v14107_v13 = vpop.f32.mrf.mxu0 }
 0x3c6   : > { %v14115_v63 = vadd.f32 %v10928_v48, %v3766_v59 }
 0x3c7   : > { %v10931_v7 = vpop.f32.mrf.mxu1  ;;  %v10893_v15 = vpop.f32.mrf.mxu0 }
 0x3c8   : > { %v3768_v44 = vadd.f32 %v10893_v15, %v13950_v43  ;;  %v3452_v15 = vadd.f32 %v14041_v10, %v14044_v47 }
 0x3c9   : > { %v14118_v28 = vpop.f32.mrf.mxu1  ;;  %v14120_v31 = vpop.f32.mrf.mxu0 }
 0x3ca   : > { %v14122_v41 = vadd.f32 %v10931_v7, %v3768_v44 }
 0x3cb   : > { %v10934_v0 = vpop.f32.mrf.mxu1  ;;  %v10896_v61 = vpop.f32.mrf.mxu0 }
 0x3cc   : > { %v3770_v42 = vadd.f32 %v10896_v61, %v13992_v46 }
 0x3cd   : > { %v4021_v9 = vpop.f32.mrf.mxu1  ;;  %v3714_v4 = vpop.f32.mrf.mxu0 }
 0x3ce   : > { %v3769_v20 = vadd.f32 %v3714_v4, %v3432_v30  ;;  %v14127_v39 = vadd.f32 %v10934_v0, %v3770_v42  ;;  %v3462_v4 = vadd.f32 %v14049_v27, %v14051_v19 }
 0x3cf   : > { %v10937_v2 = vpop.f32.mrf.mxu1  ;;  %v10899_v43 = vpop.f32.mrf.mxu0 }
 0x3d0   : > { %v3772_v12 = vadd.f32 %v10899_v43, %v14018_v25  ;;  %v14132_v8 = vadd.f32 %v4021_v9, %v3769_v20  ;;  %v14146_v9 = vld [vmem:[%s15051_s5] sm:$0xff] }
 0x3d1   : > { %v4031_v48 = vpop.f32.mrf.mxu1  ;;  %v3724_v59 = vpop.f32.mrf.mxu0  ;;  %15169 = vst [vmem:[#allocation51_spill] sm:$0xff] %v14146_v9  ;;  %11137 = vmatpush3.msra.mxu1 %v14146_v9  ;;  %v3422_v9 = vadd.f32 %v13986_v1, %v13988_v37 }
 0x3d2   : > { %v3771_v7 = vadd.f32 %v3724_v59, %v3442_v36  ;;  %v14134_v14 = vadd.f32 %v10937_v2, %v3772_v12  ;;  %11141 = vmatprep.subr.mxu1 %v15079_v49 }
 0x3d3   : > { %v10940_v3 = vpop.f32.mrf.mxu1  ;;  %v10902_v46 = vpop.f32.mrf.mxu0 }
 0x3d4   : > { %v3774_v44 = vadd.f32 %v10902_v46, %v14038_v22  ;;  %v14139_v61 = vadd.f32 %v4031_v48, %v3771_v7 }
 0x3d5   : > { %v4041_v0 = vpop.f32.mrf.mxu1  ;;  %v3734_v5 = vpop.f32.mrf.mxu0 }
 0x3d6   : > { %v3773_v57 = vadd.f32 %v3734_v5, %v3452_v15  ;;  %v14141_v30 = vadd.f32 %v10940_v3, %v3774_v44 }
 0x3d7   : > { %v10943_v25 = vpop.f32.mrf.mxu1  ;;  %v10905_v42 = vpop.f32.mrf.mxu0 }
 0x3d8   : > { %v3776_v10 = vadd.f32 %v10905_v42, %v14047_v16  ;;  %v14151_v47 = vadd.f32 %v4041_v0, %v3773_v57 }
 0x3d9   : > { %v4051_v22 = vpop.f32.mrf.mxu1  ;;  %v3744_v20 = vpop.f32.mrf.mxu0 }
 0x3da   : > { %v3775_v2 = vadd.f32 %v3744_v20, %v3462_v4  ;;  %v14159_v36 = vadd.f32 %v10943_v25, %v3776_v10 }
 0x3db   : > { %v14157_v43 = vpop.f32.mrf.mxu1  ;;  %v10948_v27 = vpop.f32.mrf.mxu0 }
 0x3dc   : > { %v14162_v16 = vadd.f32 %v10948_v27, %v14058_v56  ;;  %v14166_v12 = vadd.f32 %v4051_v22, %v3775_v2 }
 0x3dd   : > { %v14164_v19 = vpop.f32.mrf.mxu1  ;;  %v14168_v48 = vpop.f32.mrf.mxu0 }
 0x3df   : > { %v14170_v59 = vpop.f32.mrf.mxu1  ;;  %v10951_v7 = vpop.f32.mrf.mxu0 }
 0x3e0   : > { %v14173_v3 = vadd.f32 %v10951_v7, %v14065_v23 }
 0x3e1   : > { %v14175_v46 = vpop.f32.mrf.mxu1  ;;  %v14177_v15 = vpop.f32.mrf.mxu0 }
 0x3e3   : > { %v14179_v44 = vpop.f32.mrf.mxu1  ;;  %v10954_v56 = vpop.f32.mrf.mxu0 }
 0x3e4   : > { %v14182_v0 = vadd.f32 %v10954_v56, %v14072_v54 }
 0x3e5   : > { %v14184_v5 = vpop.f32.mrf.mxu1  ;;  %v14186_v57 = vpop.f32.mrf.mxu0 }
 0x3e7   : > { %v14188_v25 = vpop.f32.mrf.mxu1  ;;  %v10957_v42 = vpop.f32.mrf.mxu0 }
 0x3e8   : > { %v14191_v23 = vadd.f32 %v10957_v42, %v14085_v34 }
 0x3e9   : > { %v14193_v4 = vpop.f32.mrf.mxu1  ;;  %v14195_v10 = vpop.f32.mrf.mxu0 }
 0x3eb   : > { %v14197_v22 = vpop.f32.mrf.mxu1  ;;  %v10960_v20 = vpop.f32.mrf.mxu0 }
 0x3ec   : > { %15170 = vst [vmem:[#allocation53_spill] sm:$0xff] %v14197_v22  ;;  %v14200_v54 = vadd.f32 %v10960_v20, %v14095_v21  ;;  %v3767_v20 = vadd.f32 %v14120_v31, %v3422_v9 }
 0x3ed   : > { %v14202_v2 = vpop.f32.mrf.mxu1  ;;  %v14204_v27 = vpop.f32.mrf.mxu0 }
 0x3ee   : > { %15171 = vst [vmem:[#allocation43_spill] sm:$0xff] %v14202_v2  ;;  %v4074_v1 = vadd.f32 %v14118_v28, %v3767_v20 }
 0x3ef   : > { %v14206_v7 = vpop.f32.mrf.mxu1  ;;  %v10963_v56 = vpop.f32.mrf.mxu0 }
 0x3f0   : > { %15172 = vst [vmem:[#allocation41_spill] sm:$0xff] %v14206_v7  ;;  %v14209_v34 = vadd.f32 %v10963_v56, %v14102_v24 }
 0x3f1   : > { %v14211_v42 = vpop.f32.mrf.mxu1  ;;  %v14213_v49 = vpop.f32.mrf.mxu0 }
 0x3f2   : > { %15173 = vst [vmem:[#allocation47_spill] sm:$0xff] %v14209_v34  ;;  %15174 = vst [vmem:[#allocation39_spill] sm:$0xff] %v14211_v42 }
 0x3f3   : > { %v14217_v40 = vpop.f32.mrf.mxu1  ;;  %v10966_v21 = vpop.f32.mrf.mxu0 }
 0x3f4   : > { %15175 = vst [vmem:[#allocation45_spill] sm:$0xff] %v14217_v40  ;;  %v14221_v2 = vadd.f32 %v10966_v21, %v14115_v63 }
 0x3f5   : > { %v14223_v7 = vpop.f32.mrf.mxu1  ;;  %v14225_v22 = vpop.f32.mrf.mxu0 }
 0x3f6   : > { %15176 = vst [vmem:[#allocation37_spill] sm:$0xff] %v14221_v2  ;;  %15177 = vst [vmem:[#allocation48_spill] sm:$0xff] %v14223_v7  ;;  %v15219_v2 = vld [vmem:[#allocation38_spill] sm:$0xff] }
 0x3f7   : > { %v14227_v24 = vpop.f32.mrf.mxu1  ;;  %v10969_v56 = vpop.f32.mrf.mxu0 }
 0x3f8   : > { %15178 = vst [vmem:[#allocation54_spill] sm:$0xff] %v14227_v24  ;;  %v14230_v42 = vadd.f32 %v10969_v56, %v14122_v41 }
 0x3f9   : > { %v14232_v34 = vpop.f32.mrf.mxu1  ;;  %v4318_v37 = vpop.f32.mrf.mxu0 }
 0x3fa   : > { %15179 = vst [vmem:[#allocation55_spill] sm:$0xff] %v14230_v42  ;;  %15180 = vst [vmem:[#allocation56_spill] sm:$0xff] %v14232_v34  ;;  %v14235_v40 = vadd.f32 %v4318_v37, %v4074_v1 }
 0x3fb   : > { %v14237_v31 = vpop.f32.mrf.mxu1  ;;  %v10972_v63 = vpop.f32.mrf.mxu0 }
 0x3fc   : > { %15181 = vst [vmem:[#allocation57_spill] sm:$0xff] %v14235_v40  ;;  %15182 = vst [vmem:[#allocation58_spill] sm:$0xff] %v14237_v31  ;;  %v14240_v9 = vadd.f32 %v10972_v63, %v14127_v39 }
 0x3fd   : > { %v14242_v21 = vpop.f32.mrf.mxu1  ;;  %v4328_v24 = vpop.f32.mrf.mxu0 }
 0x3fe   : > { %15183 = vst [vmem:[#allocation59_spill] sm:$0xff] %v14240_v9  ;;  %15184 = vst [vmem:[#allocation60_spill] sm:$0xff] %v14242_v21  ;;  %v14245_v7 = vadd.f32 %v4328_v24, %v14132_v8 }
 0x3ff   : > { %v14247_v41 = vpop.f32.mrf.mxu1  ;;  %v10975_v56 = vpop.f32.mrf.mxu0 }
 0x400   : > { %15185 = vst [vmem:[#allocation61_spill] sm:$0xff] %v14245_v7  ;;  %15186 = vst [vmem:[#allocation62_spill] sm:$0xff] %v14247_v41  ;;  %v14250_v28 = vadd.f32 %v10975_v56, %v14134_v14 }
 0x401   : > { %v14252_v20 = vpop.f32.mrf.mxu1  ;;  %v4338_v1 = vpop.f32.mrf.mxu0 }
 0x402   : > { %15187 = vst [vmem:[#allocation63_spill] sm:$0xff] %v14250_v28  ;;  %15188 = vst [vmem:[#allocation64_spill] sm:$0xff] %v14252_v20  ;;  %v14255_v37 = vadd.f32 %v4338_v1, %v14139_v61 }
 0x403   : > { %v14257_v39 = vpop.f32.mrf.mxu1  ;;  %v10978_v63 = vpop.f32.mrf.mxu0 }
 0x404   : > { %15189 = vst [vmem:[#allocation65_spill] sm:$0xff] %v14255_v37  ;;  %15190 = vst [vmem:[#allocation66_spill] sm:$0xff] %v14257_v39  ;;  %v14260_v21 = vadd.f32 %v10978_v63, %v14141_v30 }
 0x405   : > { %v14262_v8 = vpop.f32.mrf.mxu1  ;;  %v4348_v24 = vpop.f32.mrf.mxu0 }
 0x406   : > { %15191 = vst [vmem:[#allocation67_spill] sm:$0xff] %v14260_v21  ;;  %15192 = vst [vmem:[#allocation68_spill] sm:$0xff] %v14262_v8  ;;  %v14265_v41 = vadd.f32 %v4348_v24, %v14151_v47 }
 0x407   : > { %v14267_v14 = vpop.f32.mrf.mxu1  ;;  %v10981_v56 = vpop.f32.mrf.mxu0 }
 0x408   : > { %15193 = vst [vmem:[#allocation69_spill] sm:$0xff] %v14265_v41  ;;  %15194 = vst [vmem:[#allocation70_spill] sm:$0xff] %v14267_v14  ;;  %v14270_v20 = vadd.f32 %v10981_v56, %v14159_v36 }
 0x409   : > { %v14272_v61 = vpop.f32.mrf.mxu1  ;;  %v4358_v1 = vpop.f32.mrf.mxu0 }
 0x40a   : > { %15195 = vst [vmem:[#allocation71_spill] sm:$0xff] %v14270_v20  ;;  %15196 = vst [vmem:[#allocation72_spill] sm:$0xff] %v14272_v61  ;;  %v14275_v39 = vadd.f32 %v4358_v1, %v14166_v12 }
 0x40b   : > { %v14277_v30 = vpop.f32.mrf.mxu1  ;;  %v11024_v63 = vpop.f32.mrf.mxu0 }
 0x40c   : > { %15197 = vst [vmem:[#allocation73_spill] sm:$0xff] %v14275_v39 }
 0x40d   : > { %v4862_v8 = vpop.f32.mrf.mxu0  ;;  %v14279_v21 = vpop.f32.mrf.mxu1 }
 0x40f   : > { %v11027_v47 = vpop.f32.mrf.mxu0  ;;  %v14283_v14 = vpop.f32.mrf.mxu1 }
 0x411   : > { %v14281_v24 = vpop.f32.mrf.mxu0  ;;  %v14289_v56 = vpop.f32.mrf.mxu1 }
 0x412   : > { %15199 = vst [vmem:[#allocation75_spill] sm:$0xff] %v14289_v56 }
 0x413   : > { %v14285_v41 = vpop.f32.mrf.mxu0  ;;  %v14295_v1 = vpop.f32.mrf.mxu1 }
 0x414   : > { %15202 = vst [vmem:[#allocation78_spill] sm:$0xff] %v14295_v1 }
 0x415   : > { %v14287_v36 = vpop.f32.mrf.mxu0  ;;  %v14301_v37 = vpop.f32.mrf.mxu1 }
 0x416   : > { %15198 = vst [vmem:[#allocation74_spill] sm:$0xff] %v14287_v36  ;;  %15205 = vst [vmem:[#allocation81_spill] sm:$0xff] %v14301_v37 }
 0x417   : > { %v14291_v61 = vpop.f32.mrf.mxu0  ;;  %v14307_v31 = vpop.f32.mrf.mxu1 }
 0x418   : > { %15200 = vst [vmem:[#allocation76_spill] sm:$0xff] %v14291_v61  ;;  %15208 = vst [vmem:[#allocation84_spill] sm:$0xff] %v14307_v31 }
 0x419   : > { %v14293_v12 = vpop.f32.mrf.mxu0  ;;  %v14313_v40 = vpop.f32.mrf.mxu1 }
 0x41a   : > { %15201 = vst [vmem:[#allocation77_spill] sm:$0xff] %v14293_v12  ;;  %15211 = vst [vmem:[#allocation87_spill] sm:$0xff] %v14313_v40 }
 0x41b   : > { %v14297_v39 = vpop.f32.mrf.mxu0  ;;  %v14321_v37 = vpop.f32.mrf.mxu1 }
 0x41c   : > { %15203 = vst [vmem:[#allocation79_spill] sm:$0xff] %v14297_v39  ;;  %v15214_v39 = vld [vmem:[#allocation44_spill] sm:$0xff] }
 0x41d   : > { %v14299_v20 = vpop.f32.mrf.mxu0  ;;  %15216 = vst [vmem:[#allocation44_spill] sm:$0xff] %v14321_v37  ;;  %v14330_v61 = vpop.f32.mrf.mxu1  ;;  %v15223_v37 = vld [vmem:[#allocation52_spill] sm:$0xff] }
 0x41e   : > { %15204 = vst [vmem:[#allocation80_spill] sm:$0xff] %v14299_v20  ;;  %v15215_v20 = vld [vmem:[#allocation36_spill] sm:$0xff] }
 0x41f   : > { %v14303_v28 = vpop.f32.mrf.mxu0  ;;  %v3352_v12 = vadd.f32 %v15215_v20, %v15214_v39 }
 0x420   : > { %15206 = vst [vmem:[#allocation82_spill] sm:$0xff] %v14303_v28 }
 0x421   : > { %v14305_v7 = vpop.f32.mrf.mxu0 }
 0x422   : > { %15207 = vst [vmem:[#allocation83_spill] sm:$0xff] %v14305_v7  ;;  %v3753_v7 = vadd.f32 %v14056_v11, %v3352_v12 }
 0x423   : > { %v14309_v9 = vpop.f32.mrf.mxu0 }
 0x424   : > { %15209 = vst [vmem:[#allocation85_spill] sm:$0xff] %v14309_v9  ;;  %v15218_v9 = vld [vmem:[#allocation40_spill] sm:$0xff]  ;;  %v4060_v39 = vadd.f32 %v14054_v58, %v3753_v7  ;;  %v3402_v7 = vadd.f32 %v13873_v52, %v13875_v62 }
 0x425   : > { %v14311_v34 = vpop.f32.mrf.mxu0 }
 0x426   : > { %15210 = vst [vmem:[#allocation86_spill] sm:$0xff] %v14311_v34  ;;  %v3362_v34 = vadd.f32 %v15219_v2, %v15218_v9  ;;  %v4367_v2 = vadd.f32 %v14168_v48, %v4060_v39  ;;  %v14344_v9 = vpop.f32.mrf.mxu1  ;;  %v15227_v39 = vld [vmem:[#allocation43_spill] sm:$0xff] }
 0x427   : > { %v14315_v42 = vpop.f32.mrf.mxu0 }
 0x428   : > { %15212 = vst [vmem:[#allocation88_spill] sm:$0xff] %v14315_v42  ;;  %v15221_v42 = vld [vmem:[#allocation46_spill] sm:$0xff]  ;;  %v3755_v20 = vadd.f32 %v14063_v45, %v3362_v34  ;;  %v4675_v45 = vadd.f32 %v14157_v43, %v14162_v16  ;;  %v3763_v43 = vadd.f32 %v14100_v29, %v3402_v7  ;;  %v15230_v7 = vld [vmem:[#allocation75_spill] sm:$0xff] }
 0x429   : > { %v14317_v1 = vpop.f32.mrf.mxu0 }
 0x42a   : > { %15213 = vst [vmem:[#allocation89_spill] sm:$0xff] %v14317_v1  ;;  %v15222_v1 = vld [vmem:[#allocation42_spill] sm:$0xff]  ;;  %v4062_v58 = vadd.f32 %v14061_v50, %v3755_v20  ;;  %v4674_v50 = vadd.f32 %v14164_v19, %v4367_v2 }
 0x42b   : > { %v14323_v28 = vpop.f32.mrf.mxu0  ;;  %v3372_v56 = vadd.f32 %v15222_v1, %v15221_v42  ;;  %v15226_v20 = vld [vmem:[#allocation74_spill] sm:$0xff] }
 0x42c   : > { %15217 = vst [vmem:[#allocation36_spill] sm:$0xff] %v14323_v28  ;;  %v15224_v28 = vld [vmem:[#allocation50_spill] sm:$0xff] }
 0x42d   : > { %v14326_v31 = vpop.f32.mrf.mxu0  ;;  %v3382_v36 = vadd.f32 %v15224_v28, %v15223_v37  ;;  %v3757_v12 = vadd.f32 %v14070_v32, %v3372_v56  ;;  %v3412_v32 = vadd.f32 %v13938_v38, %v13940_v60  ;;  %v14364_v28 = vpop.f32.mrf.mxu1  ;;  %v14408_v2 = vld [vmem:[#allocation12 + $0x1] ss:$0 sm:$0xff] }
 0x42f   : > { %v14332_v40 = vpop.f32.mrf.mxu0  ;;  %v3759_v42 = vadd.f32 %v14082_v55, %v3382_v36  ;;  %v4982_v55 = vadd.f32 %v11024_v63, %v4675_v45  ;;  %v3765_v52 = vadd.f32 %v14107_v13, %v3412_v32  ;;  %v14379_v13 = vpop.f32.mrf.mxu1 }
 0x430   : > { %15220 = vst [vmem:[#allocation40_spill] sm:$0xff] %v14332_v40  ;;  %v3392_v40 = vadd.f32 %v13779_v53, %v13781_v17  ;;  %v4369_v53 = vadd.f32 %v14177_v15, %v4062_v58  ;;  %v4064_v17 = vadd.f32 %v14068_v26, %v3757_v12 }
 0x431   : > { %v14340_v11 = vpop.f32.mrf.mxu0  ;;  %v4066_v62 = vadd.f32 %v14075_v6, %v3759_v42  ;;  %v5289_v6 = vadd.f32 %v14277_v30, %v4982_v55  ;;  %v14399_v56 = vpop.f32.mrf.mxu1  ;;  %v15234_v55 = vld [vmem:[#allocation45_spill] sm:$0xff] }
 0x432   : > { %v3761_v48 = vadd.f32 %v14093_v18, %v3392_v40  ;;  %v4371_v60 = vadd.f32 %v14186_v57, %v4064_v17  ;;  %v4981_v40 = vadd.f32 %v4862_v8, %v4674_v50  ;;  %v4677_v18 = vadd.f32 %v14170_v59, %v14173_v3  ;;  %v15233_v17 = vld [vmem:[#allocation37_spill] sm:$0xff] }
 0x433   : > { %v14349_v1 = vpop.f32.mrf.mxu0  ;;  %v4373_v26 = vadd.f32 %v14195_v10, %v4066_v62  ;;  %v4676_v29 = vadd.f32 %v14175_v46, %v4369_v53  ;;  %v4070_v57 = vadd.f32 %v14098_v35, %v3763_v43  ;;  %v4072_v8 = vadd.f32 %v14105_v51, %v3765_v52  ;;  %v15232_v53 = vld [vmem:[#allocation39_spill] sm:$0xff]  ;;  %v15235_v43 = vld [vmem:[#allocation48_spill] sm:$0xff] }
 0x434   : > { %v4068_v16 = vadd.f32 %v14091_v33, %v3761_v48  ;;  %v4984_v15 = vadd.f32 %v11027_v47, %v4677_v18  ;;  %v4679_v59 = vadd.f32 %v14179_v44, %v14182_v0  ;;  %v14387_v33 = vld [vmem:[#allocation12] ss:$0 sm:$0xff]  ;;  %v4678_v46 = vadd.f32 %v14184_v5, %v4371_v60  ;;  %v15225_v0 = vld [vmem:[#allocation53_spill] sm:$0xff]  ;;  %v15231_v48 = vld [vmem:[#allocation76_spill] sm:$0xff] }
 0x435   : > { %v14359_v34 = vpop.f32.mrf.mxu0  ;;  %v4983_v10 = vadd.f32 %v14281_v24, %v4676_v29  ;;  %v5288_v47 = vadd.f32 %v14279_v21, %v4981_v40  ;;  %v4377_v30 = vadd.f32 %v14213_v49, %v4070_v57  ;;  %v4681_v35 = vadd.f32 %v14188_v25, %v14191_v23  ;;  %v15228_v25 = vld [vmem:[#allocation47_spill] sm:$0xff]  ;;  %v15229_v23 = vld [vmem:[#allocation41_spill] sm:$0xff]  ;;  %v14421_v40 = vpop.f32.mrf.mxu1  ;;  %v15238_v57 = vld [vmem:[#allocation54_spill] sm:$0xff] }
 0x436   : > { %v4375_v37 = vadd.f32 %v14204_v27, %v4068_v16  ;;  %v4379_v27 = vadd.f32 %v14225_v22, %v4072_v8  ;;  %v4680_v51 = vadd.f32 %v14193_v4, %v4373_v26  ;;  %v4683_v36 = vadd.f32 %v15225_v0, %v14200_v54  ;;  %v14419_v62 = vld [vmem:[#allocation12 + $0x2] ss:$0 sm:$0xff]  ;;  %v15236_v29 = vld [vmem:[#allocation77_spill] sm:$0xff] }
 0x437   : > { %v14369_v38 = vpop.f32.mrf.mxu0  ;;  %v5291_v21 = vadd.f32 %v14283_v14, %v4984_v15  ;;  %v4986_v49 = vadd.f32 %v14285_v41, %v4679_v59  ;;  %v4985_v22 = vadd.f32 %v15226_v20, %v4678_v46  ;;  %v4685_v4 = vadd.f32 %v15229_v23, %v15228_v25  ;;  %v15239_v59 = vld [vmem:[#allocation78_spill] sm:$0xff]  ;;  %v15240_v46 = vld [vmem:[#allocation81_spill] sm:$0xff] }
 0x438   : > { %v4682_v12 = vadd.f32 %v15227_v39, %v4375_v37  ;;  %v5290_v32 = vadd.f32 %v15230_v7, %v4983_v10  ;;  %v4988_v14 = vadd.f32 %v15231_v48, %v4681_v35  ;;  %v4684_v41 = vadd.f32 %v15232_v53, %v4377_v30  ;;  %v15237_v37 = vld [vmem:[#allocation55_spill] sm:$0xff]  ;;  %v15244_v39 = vld [vmem:[#allocation84_spill] sm:$0xff]  ;;  %v15247_v7 = vld [vmem:[#allocation61_spill] sm:$0xff] }
 0x439   : > { %v14376_v19 = vpop.f32.mrf.mxu0  ;;  %v4687_v50 = vadd.f32 %v15234_v55, %v15233_v17  ;;  %v14417_v52 = vadd.f32 %v15235_v43, %v4379_v27  ;;  %v4689_v8 = vadd.f32 %v15238_v57, %v15237_v37  ;;  %v15249_v17 = vld [vmem:[#allocation87_spill] sm:$0xff] }
 0x43a   : > { %v5295_v25 = vadd.f32 %v15244_v39, %v4988_v14 }
 0x43b   : > { %v11100_v3 = vpop.f32.mrf.mxu0 }
 0x43c   : > { %v5596_v63 = vadd.f32 %v11100_v3, %v5289_v6  ;;  %v4987_v6 = vadd.f32 %v15236_v29, %v4680_v51  ;;  %v5293_v3 = vadd.f32 %v15239_v59, %v4986_v49  ;;  %v14437_v49 = vpop.f32.mrf.mxu1  ;;  %v15251_v29 = vld [vmem:[#allocation82_spill] sm:$0xff] }
 0x43d   : > { %v5476_v44 = vpop.f32.mrf.mxu0  ;;  %v4992_v37 = vadd.f32 %v15251_v29, %v4685_v4  ;;  %v15256_v4 = vld [vmem:[#allocation65_spill] sm:$0xff] }
 0x43e   : > { %v5627_v5 = vadd.f32 %v14387_v33, %v5596_v63  ;;  %v5595_v24 = vadd.f32 %v5476_v44, %v5288_v47  ;;  %v5292_v63 = vadd.f32 %v15240_v46, %v4985_v22  ;;  %v15241_v44 = vld [vmem:[#allocation79_spill] sm:$0xff]  ;;  %v5294_v55 = vadd.f32 %v15249_v17, %v4987_v6  ;;  %v14459_v46 = vpop.f32.mrf.mxu1 }
 0x43f   : > { %v11103_v42 = vpop.f32.mrf.mxu0  ;;  %v4990_v0 = vadd.f32 %v15241_v44, %v4683_v36  ;;  %v15254_v44 = vld [vmem:[#allocation63_spill] sm:$0xff] }
 0x440   : > { %v5651_v54 = vmax.f32 %v5627_v5, 0.0  ;;  %v5626_v58 = vadd.f32 %v14387_v33, %v5595_v24  ;;  %v5598_v45 = vadd.f32 %v11103_v42, %v5291_v21  ;;  %v15242_v5 = vld [vmem:[#allocation57_spill] sm:$0xff]  ;;  %v15243_v24 = vld [vmem:[#allocation56_spill] sm:$0xff] }
 0x441   : > { %v5486_v60 = vpop.f32.mrf.mxu0  ;;  %v4688_v51 = vadd.f32 %v15243_v24, %v15242_v5  ;;  %v15257_v24 = vld [vmem:[#allocation64_spill] sm:$0xff] }
 0x442   : > { %v5679_v18 = vmul.f32 %v14408_v2, %v5651_v54  ;;  %v5650_v26 = vmax.f32 %v5626_v58, 0.0  ;;  %v5629_v16 = vadd.f32 %v14387_v33, %v5598_v45  ;;  %v5597_v15 = vadd.f32 %v5486_v60, %v5290_v32  ;;  %v15245_v58 = vld [vmem:[#allocation59_spill] sm:$0xff]  ;;  %v15246_v45 = vld [vmem:[#allocation58_spill] sm:$0xff]  ;;  %v15248_v32 = vld [vmem:[#allocation60_spill] sm:$0xff] }
 0x443   : > { %v11106_v10 = vpop.f32.mrf.mxu0  ;;  %v14444_v36 = vadd.f32 %v15246_v45, %v15245_v58  ;;  %v14448_v48 = vadd.f32 %v15248_v32, %v15247_v7  ;;  %v5299_v7 = vadd.f32 %v14344_v9, %v4992_v37  ;;  %v14481_v32 = vpop.f32.mrf.mxu1 }
 0x444   : > { %v5707_v47 = vadd.f32 %v14419_v62, %v5679_v18  ;;  %v5678_v30 = vmul.f32 %v14408_v2, %v5650_v26  ;;  %v5653_v27 = vmax.f32 %v5629_v16, 0.0  ;;  %v5628_v35 = vadd.f32 %v14387_v33, %v5597_v15  ;;  %v15250_v16 = vld [vmem:[#allocation80_spill] sm:$0xff] }
 0x445   : > { %v5600_v21 = vadd.f32 %v11106_v10, %v5293_v3  ;;  %v5496_v20 = vpop.f32.mrf.mxu0  ;;  %v4989_v15 = vadd.f32 %v15250_v16, %v4682_v12  ;;  %v15252_v3 = vld [vmem:[#allocation44_spill] sm:$0xff]  ;;  %v15255_v12 = vld [vmem:[#allocation62_spill] sm:$0xff] }
 0x446   : > { %5732 = vst.msk [vmem:[#allocation3 + $0x8] sm:$0xff] %vm5730_vm3, %v5707_v47  ;;  %v5706_v22 = vadd.f32 %v14419_v62, %v5678_v30  ;;  %v5681_v23 = vmul.f32 %v14408_v2, %v5653_v27  ;;  %v5652_v42 = vmax.f32 %v5628_v35, 0.0  ;;  %v5599_v54 = vadd.f32 %v5496_v20, %v5292_v63  ;;  %v15253_v27 = vld [vmem:[#allocation83_spill] sm:$0xff] }
 0x447   : > { %v5631_v14 = vadd.f32 %v14387_v33, %v5600_v21  ;;  %v11109_v53 = vpop.f32.mrf.mxu0  ;;  %v5297_v10 = vadd.f32 %v15252_v3, %v4990_v0  ;;  %v4991_v35 = vadd.f32 %v15253_v27, %v4684_v41  ;;  %v14467_v5 = vadd.f32 %v15255_v12, %v15254_v44  ;;  %v15258_v41 = vld [vmem:[#allocation85_spill] sm:$0xff]  ;;  %v15262_v3 = vld [vmem:[#allocation67_spill] sm:$0xff]  ;;  %v15264_v12 = vld [vmem:[#allocation36_spill] sm:$0xff] }
 0x448   : > { %5731 = vst.msk [vmem:[#allocation3] sm:$0xff] %vm5730_vm3, %v5706_v22  ;;  %v5709_v43 = vadd.f32 %v14419_v62, %v5681_v23  ;;  %v5680_v60 = vmul.f32 %v14408_v2, %v5652_v42  ;;  %v5630_v18 = vadd.f32 %v14387_v33, %v5599_v54  ;;  %v5602_v26 = vadd.f32 %v11109_v53, %v5295_v25 }
 0x449   : > { %v5655_v57 = vmax.f32 %v5631_v14, 0.0  ;;  %v5506_v59 = vpop.f32.mrf.mxu0  ;;  %v14471_v21 = vadd.f32 %v15257_v24, %v15256_v4  ;;  %v4994_v42 = vadd.f32 %v15258_v41, %v4687_v50  ;;  %v5296_v58 = vadd.f32 %v14330_v61, %v4989_v15  ;;  %v15260_v50 = vld [vmem:[#allocation88_spill] sm:$0xff] }
 0x44a   : > { %5734 = vst.msk [vmem:[#allocation3 + $0x18] sm:$0xff] %vm5730_vm3, %v5709_v43  ;;  %v5708_v6 = vadd.f32 %v14419_v62, %v5680_v60  ;;  %v5654_v63 = vmax.f32 %v5630_v18, 0.0  ;;  %v5633_v47 = vadd.f32 %v14387_v33, %v5602_v26  ;;  %v5601_v30 = vadd.f32 %v5506_v59, %v5294_v55  ;;  %v15259_v43 = vld [vmem:[#allocation86_spill] sm:$0xff] }
 0x44b   : > { %v5683_v0 = vmul.f32 %v14408_v2, %v5655_v57  ;;  %v11112_v20 = vpop.f32.mrf.mxu0  ;;  %v4993_v60 = vadd.f32 %v15259_v43, %v14417_v52  ;;  %v4996_v18 = vadd.f32 %v15260_v50, %v4689_v8  ;;  %v5298_v9 = vadd.f32 %v14364_v28, %v4991_v35  ;;  %v15261_v57 = vld [vmem:[#allocation89_spill] sm:$0xff]  ;;  %v15263_v52 = vld [vmem:[#allocation66_spill] sm:$0xff]  ;;  %v11089_v28 = vpop.f32.mrf.mxu1  ;;  %v15265_v43 = vld [vmem:[#allocation40_spill] sm:$0xff] }
 0x44c   : > { %5733 = vst.msk [vmem:[#allocation3 + $0x10] sm:$0xff] %vm5730_vm3, %v5708_v6  ;;  %v5682_v39 = vmul.f32 %v14408_v2, %v5654_v63  ;;  %v5657_v25 = vmax.f32 %v5633_v47, 0.0  ;;  %v5632_v22 = vadd.f32 %v14387_v33, %v5601_v30  ;;  %v5604_v23 = vadd.f32 %v11112_v20, %v5297_v10 }
 0x44d   : > { %v5711_v54 = vadd.f32 %v14419_v62, %v5683_v0  ;;  %v5516_v45 = vpop.f32.mrf.mxu0  ;;  %v4995_v59 = vadd.f32 %v15261_v57, %v4688_v51  ;;  %v14497_v10 = vadd.f32 %v15263_v52, %v15262_v3  ;;  %v5301_v63 = vadd.f32 %v14379_v13, %v4994_v42  ;;  %v15268_v57 = vld [vmem:[#allocation71_spill] sm:$0xff] }
 0x44e   : > { %v5710_v14 = vadd.f32 %v14419_v62, %v5682_v39  ;;  %v5685_v53 = vmul.f32 %v14408_v2, %v5657_v25  ;;  %v5656_v17 = vmax.f32 %v5632_v22, 0.0  ;;  %v5635_v55 = vadd.f32 %v14387_v33, %v5604_v23 }
 0x44f   : > { %5736 = vst.msk [vmem:[#allocation3 + $0x28] sm:$0xff] %vm5730_vm3, %v5711_v54  ;;  %v5603_v61 = vadd.f32 %v5516_v45, %v5296_v58  ;;  %v11115_v26 = vpop.f32.mrf.mxu0  ;;  %v5759_v51 = vld [vmem:[#allocation3] ss:$2 sm:$0x3f]  ;;  %v4998_v4 = vadd.f32 %v15264_v12, %v14444_v36  ;;  %v5300_v20 = vadd.f32 %v14399_v56, %v4993_v60  ;;  %v5303_v13 = vadd.f32 %v14421_v40, %v4996_v18  ;;  %v14514_v56 = vpop.f32.mrf.mxu1 }
 0x450   : > { %5735 = vst.msk [vmem:[#allocation3 + $0x20] sm:$0xff] %vm5730_vm3, %v5710_v14  ;;  %v5713_v16 = vadd.f32 %v14419_v62, %v5685_v53  ;;  %v5684_v15 = vmul.f32 %v14408_v2, %v5656_v17  ;;  %v5659_v29 = vmax.f32 %v5635_v55, 0.0  ;;  %v5606_v37 = vadd.f32 %v11115_v26, %v5299_v7  ;;  %v5761_v44 = vld [vmem:[#allocation3 + $0x1] ss:$2 sm:$0x3f] }
 0x451   : > { %v5634_v8 = vadd.f32 %v14387_v33, %v5603_v61  ;;  %v5526_v6 = vpop.f32.mrf.mxu0  ;;  %v5766_v36 = vmax.f32 %v5759_v51, %v5761_v44  ;;  %v5302_v7 = vadd.f32 %v14437_v49, %v4995_v59  ;;  %v4997_v55 = vadd.f32 %v14326_v31, %v14448_v48  ;;  %v15269_v59 = vld [vmem:[#allocation70_spill] sm:$0xff] }
 0x452   : > { %5738 = vst.msk [vmem:[#allocation3 + $0x38] sm:$0xff] %vm5730_vm3, %v5713_v16  ;;  %v5712_v47 = vadd.f32 %v14419_v62, %v5684_v15  ;;  %v5687_v30 = vmul.f32 %v14408_v2, %v5659_v29  ;;  %v5637_v27 = vadd.f32 %v14387_v33, %v5606_v37  ;;  %v5605_v35 = vadd.f32 %v5526_v6, %v5298_v9  ;;  %v15266_v15 = vld [vmem:[#allocation69_spill] sm:$0xff]  ;;  %v15267_v29 = vld [vmem:[#allocation68_spill] sm:$0xff] }
 0x453   : > { %v5658_v24 = vmax.f32 %v5634_v8, 0.0  ;;  %v11118_v0 = vpop.f32.mrf.mxu0  ;;  %v5763_v39 = vld [vmem:[#allocation3 + $0x10] ss:$2 sm:$0x3f]  ;;  %v5000_v60 = vadd.f32 %v15265_v43, %v14467_v5  ;;  %v4694_v37 = vadd.f32 %v15267_v29, %v15266_v15  ;;  %v4697_v31 = vadd.f32 %v15269_v59, %v15268_v57  ;;  %v11092_v8 = vpop.f32.mrf.mxu1 }
 0x454   : > { %5737 = vst.msk [vmem:[#allocation3 + $0x30] sm:$0xff] %vm5730_vm3, %v5712_v47  ;;  %v5715_v25 = vadd.f32 %v14419_v62, %v5687_v30  ;;  %v5661_v22 = vmax.f32 %v5637_v27, 0.0  ;;  %v5636_v23 = vadd.f32 %v14387_v33, %v5605_v35  ;;  %v5608_v41 = vadd.f32 %v11118_v0, %v5301_v63  ;;  %v5765_v42 = vld [vmem:[#allocation3 + $0x11] ss:$2 sm:$0x3f]  ;;  %v15270_v27 = vld [vmem:[#allocation49_spill] sm:$0xff] }
 0x455   : > { %v5686_v54 = vmul.f32 %v14408_v2, %v5658_v24  ;;  %v5536_v58 = vpop.f32.mrf.mxu0  ;;  %v5767_v45 = vmax.f32 %v5763_v39, %v5765_v42  ;;  %v5305_v3 = vadd.f32 %v14459_v46, %v4998_v4  ;;  %v15271_v35 = vmov 0.0   ;;  %v5269_v42 = vpop.f32.mrf.mxu1 }
 0x456   : > { %5740 = vst.msk [vmem:[#allocation3 + $0x48] sm:$0xff] %vm5730_vm3, %v5715_v25  ;;  %v5689_v40 = vmul.f32 %v14408_v2, %v5661_v22  ;;  %v5660_v14 = vmax.f32 %v5636_v23, 0.0  ;;  %v5639_v53 = vadd.f32 %v14387_v33, %v5608_v41  ;;  %v5607_v17 = vadd.f32 %v5536_v58, %v5300_v20 }
 0x457   : > { %v5714_v50 = vadd.f32 %v14419_v62, %v5686_v54  ;;  %v11121_v18 = vpop.f32.mrf.mxu0  ;;  %v5768_v49 = vmax.f32 %v5766_v36, %v5767_v45  ;;  %v5855_v52 = vld [vmem:[#allocation3 + $0x20] ss:$2 sm:$0x3f]  ;;  %v5857_v51 = vld [vmem:[#allocation3 + $0x21] ss:$2 sm:$0x3f]  ;;  %v4999_v46 = vadd.f32 %v14340_v11, %v14471_v21  ;;  %v5304_v4 = vadd.f32 %v14481_v32, %v4997_v55 }
 0x458   : > { %v5717_v61 = vadd.f32 %v14419_v62, %v5689_v40  ;;  %v5688_v26 = vmul.f32 %v14408_v2, %v5660_v14  ;;  %v5663_v9 = vmax.f32 %v5639_v53, 0.0  ;;  %v5638_v16 = vadd.f32 %v14387_v33, %v5607_v17  ;;  %v15272_v11 = vld [vmem:[#allocation51_spill] sm:$0xff]  ;;  %v15273_v40 = vld [vmem:[#allocation73_spill] sm:$0xff]  ;;  %v15274_v14 = vld [vmem:[#allocation72_spill] sm:$0xff]  ;;  %6280 = vst.msk [vmem:[#allocation5] sm:$0xff] %vm6279_vm6, %v15271_v35 }
 0x459   : > { %5739 = vst.msk [vmem:[#allocation3 + $0x40] sm:$0xff] %vm5730_vm3, %v5714_v50  ;;  %v5610_v48 = vadd.f32 %v11121_v18, %v5303_v13  ;;  %11139 = vmatmul.mubr.msk.f32.vlgmr.msra.gmra.mxu1 %vm5730_vm3, %v5768_v49  ;;  %v5546_v5 = vpop.f32.mrf.mxu0  ;;  %v5307_v24 = vadd.f32 %v11089_v28, %v5000_v60  ;;  %v5002_v21 = vadd.f32 %v14349_v1, %v14497_v10 }
 0x45a   : > { %5742 = vst.msk [vmem:[#allocation3 + $0x58] sm:$0xff] %vm5730_vm3, %v5717_v61  ;;  %v5716_v6 = vadd.f32 %v14419_v62, %v5688_v26  ;;  %v5691_v63 = vmul.f32 %v14408_v2, %v5663_v9  ;;  %v5662_v47 = vmax.f32 %v5638_v16, 0.0  ;;  %v5609_v30 = vadd.f32 %v5546_v5, %v5302_v7  ;;  %11142 = vmatpush3.msk.msra.mxu1 %vm5778_vm2, %v15270_v27  ;;  %v11095_v16 = vpop.f32.mrf.mxu1 }
 0x45b   : > { %11145 = vmatprep.mubr.msk.f32.mxu1 %vm11914_vm4, %v15271_v35  ;;  %v5641_v44 = vadd.f32 %v14387_v33, %v5610_v48  ;;  %v11124_v12 = vpop.f32.mrf.mxu0  ;;  %11143 = vmatprep.subr.mxu1 %v15271_v35  ;;  %v5859_v0 = vld [vmem:[#allocation3 + $0x30] ss:$2 sm:$0x3f]  ;;  %v5861_v20 = vld [vmem:[#allocation3 + $0x31] ss:$2 sm:$0x3f]  ;;  %v5862_v41 = vmax.f32 %v5855_v52, %v5857_v51  ;;  %v5001_v7 = vadd.f32 %v14359_v34, %v4694_v37 }
 0x45c   : > { %5741 = vst.msk [vmem:[#allocation3 + $0x50] sm:$0xff] %vm5730_vm3, %v5716_v6  ;;  %v5719_v13 = vadd.f32 %v14419_v62, %v5691_v63  ;;  %v5690_v39 = vmul.f32 %v14408_v2, %v5662_v47  ;;  %v5640_v25 = vadd.f32 %v14387_v33, %v5609_v30  ;;  %v5612_v22 = vadd.f32 %v11124_v12, %v5305_v3 }
 0x45d   : > { %11144 = vmatpush3.msra.mxu1 %v15272_v11  ;;  %v5665_v32 = vmax.f32 %v5641_v44, 0.0  ;;  %v5556_v23 = vpop.f32.mrf.mxu0  ;;  %v5863_v28 = vmax.f32 %v5859_v0, %v5861_v20  ;;  %v4696_v1 = vadd.f32 %v15274_v14, %v15273_v40  ;;  %v5004_v18 = vadd.f32 %v14369_v38, %v4697_v31  ;;  %v5279_v44 = vpop.f32.mrf.mxu1  ;;  %6281 = vst.msk [vmem:[#allocation5 + $0x8] sm:$0xff] %vm6279_vm6, %v15271_v35 }
 0x45e   : > { %11148 = vmatprep.subr.mxu1 %v15271_v35  ;;  %5744 = vst.msk [vmem:[#allocation3 + $0x68] sm:$0xff] %vm5730_vm3, %v5719_v13  ;;  %v5718_v54 = vadd.f32 %v14419_v62, %v5690_v39  ;;  %v5664_v58 = vmax.f32 %v5640_v25, 0.0  ;;  %v5643_v36 = vadd.f32 %v14387_v33, %v5612_v22  ;;  %v5611_v45 = vadd.f32 %v5556_v23, %v5304_v4 }
 0x45f   : > { %v5693_v10 = vmul.f32 %v14408_v2, %v5665_v32  ;;  %v11127_v53 = vpop.f32.mrf.mxu0  ;;  %v5864_v17 = vmax.f32 %v5862_v41, %v5863_v28  ;;  %v5306_v34 = vadd.f32 %v14514_v56, %v4999_v46  ;;  %v5309_v26 = vadd.f32 %v11092_v8, %v5002_v21  ;;  %6282 = vst.msk [vmem:[#allocation5 + $0x10] sm:$0xff] %vm6279_vm6, %v15271_v35 }
 0x460   : > { %5743 = vst.msk [vmem:[#allocation3 + $0x60] sm:$0xff] %vm5730_vm3, %v5718_v54  ;;  %v5692_v55 = vmul.f32 %v14408_v2, %v5664_v58  ;;  %v5667_v43 = vmax.f32 %v5643_v36, 0.0  ;;  %v5642_v60 = vadd.f32 %v14387_v33, %v5611_v45  ;;  %v5614_v50 = vadd.f32 %v11127_v53, %v5307_v24  ;;  %v5940_v9 = vld [vmem:[#allocation3 + $0x40] ss:$2 sm:$0x3f] }
 0x461   : > { %v5721_v49 = vadd.f32 %v14419_v62, %v5693_v10  ;;  %11146 = vmatmul.mubr.msk.f32.vlgmr.msra.gmra.mxu1 %vm5730_vm3, %v5864_v17  ;;  %v5566_v61 = vpop.f32.mrf.mxu0  ;;  %v5942_v38 = vld [vmem:[#allocation3 + $0x41] ss:$2 sm:$0x3f]  ;;  %v5003_v56 = vadd.f32 %v14376_v19, %v4696_v1  ;;  %v5308_v48 = vadd.f32 %v5269_v42, %v5001_v7  ;;  %v5311_v30 = vadd.f32 %v11095_v16, %v5004_v18 }
 0x462   : > { %v5720_v15 = vadd.f32 %v14419_v62, %v5692_v55  ;;  %v5695_v29 = vmul.f32 %v14408_v2, %v5667_v43  ;;  %v5666_v37 = vmax.f32 %v5642_v60, 0.0  ;;  %v5645_v57 = vadd.f32 %v14387_v33, %v5614_v50  ;;  %11149 = vmatpush3.msk.msra.mxu1 %vm5778_vm2, %v15270_v27  ;;  %11152 = vmatprep.mubr.msk.f32.mxu1 %vm11914_vm4, %v15271_v35 }
 0x463   : > { %5746 = vst.msk [vmem:[#allocation3 + $0x78] sm:$0xff] %vm5730_vm3, %v5721_v49  ;;  %v5613_v59 = vadd.f32 %v5566_v61, %v5306_v34  ;;  %v11130_v31 = vpop.f32.mrf.mxu0  ;;  %11150 = vmatprep.subr.mxu1 %v15271_v35  ;;  %v5944_v5 = vld [vmem:[#allocation3 + $0x50] ss:$2 sm:$0x3f]  ;;  %v5947_v51 = vmax.f32 %v5940_v9, %v5942_v38  ;;  %v5310_v25 = vadd.f32 %v5279_v44, %v5003_v56  ;;  %v11584_v38 = vld [vmem:[%s15051_s5 + $0x8] sm:$0xf] }
 0x464   : > { %v5946_v3 = vld [vmem:[#allocation3 + $0x51] ss:$2 sm:$0x3f]  ;;  %5745 = vst.msk [vmem:[#allocation3 + $0x70] sm:$0xff] %vm5730_vm3, %v5720_v15  ;;  %v5723_v52 = vadd.f32 %v14419_v62, %v5695_v29  ;;  %v5694_v8 = vmul.f32 %v14408_v2, %v5666_v37  ;;  %v5669_v6 = vmax.f32 %v5645_v57, 0.0  ;;  %v5616_v63 = vadd.f32 %v11130_v31, %v5309_v26  ;;  %11151 = vmatpush3.msra.mxu1 %v15272_v11 }
 0x465   : > { %v5644_v19 = vadd.f32 %v14387_v33, %v5613_v59  ;;  %v5576_v47 = vpop.f32.mrf.mxu0  ;;  %v5948_v46 = vmax.f32 %v5944_v5, %v5946_v3  ;;  %11155 = vmatprep.subr.mxu1 %v15271_v35  ;;  %v10235_v3 = vld [vmem:[%s15053_s7 + $0x8] sm:$0x3f]  ;;  %6284 = vst.msk [vmem:[#allocation5 + $0x18] sm:$0x1] %vm6283_vm8, %v15271_v35  ;;  %vm6300_vm8 = vcmask 106496  }
 0x466   : > { %5748 = vst.msk [vmem:[#allocation3 + $0x88] sm:$0xff] %vm5730_vm3, %v5723_v52  ;;  %v5722_v12 = vadd.f32 %v14419_v62, %v5694_v8  ;;  %v5697_v4 = vmul.f32 %v14408_v2, %v5669_v6  ;;  %v5647_v24 = vadd.f32 %v14387_v33, %v5616_v63  ;;  %v5615_v0 = vadd.f32 %v5576_v47, %v5308_v48  ;;  %v6340_v52 = vld [vmem:[%s15053_s7] sm:$0x3f]  ;;  %v10222_v6 = vld [vmem:[#allocation14] ss:$0 sm:$0xff] }
 0x467   : > { %v5668_v20 = vmax.f32 %v5644_v19, 0.0  ;;  %v11133_v13 = vpop.f32.mrf.mxu0  ;;  %v5949_v39 = vmax.f32 %v5947_v51, %v5948_v46  ;;  %v6025_v42 = vld [vmem:[#allocation3 + $0x60] ss:$2 sm:$0x3f]  ;;  %6289 = vst.msk [vmem:[#allocation6 + $0x18] sm:$0x1] %vm6288_vm11, %v15271_v35 }
 0x468   : > { %5747 = vst.msk [vmem:[#allocation3 + $0x80] sm:$0xff] %vm5730_vm3, %v5722_v12  ;;  %v5725_v22 = vadd.f32 %v14419_v62, %v5697_v4  ;;  %v5671_v21 = vmax.f32 %v5647_v24, 0.0  ;;  %v5646_v32 = vadd.f32 %v14387_v33, %v5615_v0  ;;  %v5618_v23 = vadd.f32 %v11133_v13, %v5311_v30  ;;  %v6027_v7 = vld [vmem:[#allocation3 + $0x61] ss:$2 sm:$0x3f] }
 0x469   : > { %v5696_v41 = vmul.f32 %v14408_v2, %v5668_v20  ;;  %11153 = vmatmul.mubr.msk.f32.vlgmr.msra.gmra.mxu1 %vm5730_vm3, %v5949_v39  ;;  %v5586_v28 = vpop.f32.mrf.mxu0  ;;  %v6032_v43 = vmax.f32 %v6025_v42, %v6027_v7  ;;  %v14658_v8 = vld [vmem:[%s15053_s7 + $0x40] sm:$0x3f]  ;;  %6293 = vst.msk [vmem:[#allocation7 + $0x10] sm:$0xff] %vm6290_vm15, %v15271_v35  ;;  %6291 = vst.msk [vmem:[#allocation7] sm:$0xff] %vm6290_vm15, %v15271_v35  ;;  %vm8828_vm11 = vcmask 113669  }
 0x46a   : > { %5750 = vst.msk [vmem:[#allocation3 + $0x98] sm:$0xff] %vm5730_vm3, %v5725_v22  ;;  %v5699_v54 = vmul.f32 %v14408_v2, %v5671_v21  ;;  %v5670_v58 = vmax.f32 %v5646_v32, 0.0  ;;  %v5649_v36 = vadd.f32 %v14387_v33, %v5618_v23  ;;  %v5617_v45 = vadd.f32 %v5586_v28, %v5310_v25  ;;  %11156 = vmatpush3.msk.msra.mxu1 %vm5778_vm2, %v15270_v27 }
 0x46b   : > { %11159 = vmatprep.mubr.msk.f32.mxu1 %vm11914_vm4, %v15271_v35  ;;  %v5724_v40 = vadd.f32 %v14419_v62, %v5696_v41  ;;  %11157 = vmatprep.subr.mxu1 %v15271_v35  ;;  %v6029_v14 = vld [vmem:[#allocation3 + $0x70] ss:$2 sm:$0x3f]  ;;  %v6031_v1 = vld [vmem:[#allocation3 + $0x71] ss:$2 sm:$0x3f] }
 0x46c   : > { %v5727_v10 = vadd.f32 %v14419_v62, %v5699_v54  ;;  %v5698_v53 = vmul.f32 %v14408_v2, %v5670_v58  ;;  %v5673_v17 = vmax.f32 %v5649_v36, 0.0  ;;  %v5648_v55 = vadd.f32 %v14387_v33, %v5617_v45  ;;  %11158 = vmatpush3.msra.mxu1 %v15272_v11  ;;  %6292 = vst.msk [vmem:[#allocation7 + $0x8] sm:$0xff] %vm6290_vm15, %v15271_v35 }
 0x46d   : > { %5749 = vst.msk [vmem:[#allocation3 + $0x90] sm:$0xff] %vm5730_vm3, %v5724_v40  ;;  %v6033_v60 = vmax.f32 %v6029_v14, %v6031_v1  ;;  %11162 = vmatprep.subr.mxu1 %v15271_v35 }
 0x46e   : > { %5752 = vst.msk [vmem:[#allocation3 + $0xa8] sm:$0xff] %vm5730_vm3, %v5727_v10  ;;  %v5726_v50 = vadd.f32 %v14419_v62, %v5698_v53  ;;  %v5701_v18 = vmul.f32 %v14408_v2, %v5673_v17  ;;  %v5672_v49 = vmax.f32 %v5648_v55, 0.0 }
 0x46f   : > { %v6034_v34 = vmax.f32 %v6032_v43, %v6033_v60  ;;  %v6110_v9 = vld [vmem:[#allocation3 + $0x80] ss:$2 sm:$0x3f]  ;;  %v6112_v16 = vld [vmem:[#allocation3 + $0x81] ss:$2 sm:$0x3f] }
 0x470   : > { %5751 = vst.msk [vmem:[#allocation3 + $0xa0] sm:$0xff] %vm5730_vm3, %v5726_v50  ;;  %v5729_v33 = vadd.f32 %v14419_v62, %v5701_v18  ;;  %v5700_v61 = vmul.f32 %v14408_v2, %v5672_v49  ;;  %v6117_v29 = vmax.f32 %v6110_v9, %v6112_v16  ;;  %v10242_v60 = vld [vmem:[%s15053_s7 + $0x10] sm:$0x3f]  ;;  %v10246_v9 = vld [vmem:[%s15053_s7 + $0x18] sm:$0x3f] }
 0x471   : > { %11160 = vmatmul.mubr.msk.f32.vlgmr.msra.gmra.mxu1 %vm5730_vm3, %v6034_v34  ;;  %6295 = vst.msk [vmem:[#allocation7 + $0x18] sm:$0x1] %vm6294_vm0, %v15271_v35 }
 0x472   : > { %5755 = vst.msk [vmem:[#allocation3 + $0xb8] sm:$0xf] %vm5754_vm5, %v5729_v33  ;;  %v5728_v26 = vadd.f32 %v14419_v62, %v5700_v61  ;;  %11163 = vmatpush3.msk.msra.mxu1 %vm5778_vm2, %v15270_v27  ;;  %11166 = vmatprep.mubr.msk.f32.mxu1 %vm11914_vm4, %v15271_v35  ;;  %vm8012_vm5 = vcmask 130053  }
 0x473   : > { %11164 = vmatprep.subr.mxu1 %v15271_v35  ;;  %6301 = vst.msk [vmem:[#allocation8 + $0x18] sm:$0x1] %vm6300_vm8, %v15271_v35 }
 0x474   : > { %5753 = vst.msk [vmem:[#allocation3 + $0xb0] sm:$0xff] %vm5730_vm3, %v5728_v26  ;;  %11165 = vmatpush3.msra.mxu1 %v15272_v11  ;;  %v6114_v2 = vld [vmem:[#allocation3 + $0x90] ss:$2 sm:$0x3f] }
 0x475   : > { %v6116_v15 = vld [vmem:[#allocation3 + $0x91] ss:$2 sm:$0x3f]  ;;  %11169 = vmatprep.subr.mxu1 %v15271_v35 }
 0x476   : > { %v6118_v37 = vmax.f32 %v6114_v2, %v6116_v15 }
 0x477   : > { %v6195_v27 = vld [vmem:[#allocation3 + $0xa0] ss:$2 sm:$0x3f]  ;;  %v6197_v57 = vld [vmem:[#allocation3 + $0xa1] ss:$2 sm:$0x3f] }
 0x478   : > { %v6119_v62 = vmax.f32 %v6117_v29, %v6118_v37  ;;  %v6202_v31 = vmax.f32 %v6195_v27, %v6197_v57  ;;  %v10250_v29 = vld [vmem:[%s15053_s7 + $0x20] sm:$0x3f] }
 0x47a   : > { %11167 = vmatmul.mubr.msk.f32.vlgmr.msra.gmra.mxu1 %vm5730_vm3, %v6119_v62  ;;  %v10254_v62 = vld [vmem:[%s15053_s7 + $0x28] sm:$0x3f] }
 0x47b   : > { %11170 = vmatpush3.msk.msra.mxu1 %vm5778_vm2, %v11584_v38  ;;  %11173 = vmatprep.mubr.msk.f32.mxu1 %vm11914_vm4, %v15271_v35  ;;  %v6199_v56 = vld [vmem:[#allocation3 + $0xb0] ss:$2 sm:$0x3f]  ;;  %v6201_v59 = vld [vmem:[#allocation3 + $0xb1] ss:$2 sm:$0x3f] }
 0x47c   : > { %11171 = vmatprep.subr.mxu1 %v15271_v35  ;;  %v6203_v48 = vmax.f32 %v6199_v56, %v6201_v59  ;;  %vm8010_vm4 = vcmask 124928  }
 0x47d   : > { %11172 = vmatpush3.msra.mxu1 %v15272_v11  ;;  %v10258_v11 = vld [vmem:[%s15053_s7 + $0x30] sm:$0x3f] }
 0x47e   : > { %v6204_v5 = vmax.f32 %v6202_v31, %v6203_v48  ;;  %11206 = vmatprep.subr.msk.mxu0 %vm6351_vm7, %v10258_v11  ;;  %11176 = vmatprep.subr.msk.mxu1 %vm6351_vm7, %v10235_v3  ;;  %v10262_v48 = vld [vmem:[%s15053_s7 + $0x38] sm:$0x3f] }
 0x47f   : > { %11207 = vmatpush3.msk.msra.mxu0 %vm6351_vm7, %v10258_v11 }
 0x480   : > { %11174 = vmatmul.mubr.msk.f32.vlgmr.msra.gmra.mxu1 %vm5730_vm3, %v6204_v5  ;;  %11216 = vmatprep.subr.msk.mxu0 %vm6351_vm7, %v14658_v8  ;;  %v7055_v5 = vld [vmem:[#allocation5 + $0x14] sm:$0x1f] }
 0x481   : > { %11177 = vmatpush3.msk.msra.mxu1 %vm6351_vm7, %v10235_v3 }
 0x482   : > { %11181 = vmatprep.subr.msk.mxu1 %vm6351_vm7, %v6340_v52 }
 0x519   : > { %v5848_v63 = vpop.f32.mrf.mxu1 }
 0x51a   : > { %v5849_v19 = vadd.f32 %v10222_v6, %v5848_v63  ;;  %v7176_v63 = vld [vmem:[%s15055_s9 + $0x8] sm:$0xf] }
 0x51b   : > { %v11140_v47 = vpop.f32.mrf.mxu1 }
 0x51c   : > { %5853 = vst.msk [vmem:[#allocation4] sm:$0x3f] %vm5852_vm9, %v5849_v19  ;;  %v10273_v19 = vld [vmem:[%s15055_s9 + $0x10] sm:$0xff]  ;;  %v7175_v47 = vld [vmem:[%s15055_s9] sm:$0xff] }
 0x521   : > { %v5934_v30 = vpop.f32.mrf.mxu1 }
 0x522   : > { %v5935_v51 = vadd.f32 %v10222_v6, %v5934_v30  ;;  %v14736_v30 = vld [vmem:[%s15055_s9 + $0x28] sm:$0xf] }
 0x523   : > { %v11147_v46 = vpop.f32.mrf.mxu1  ;;  %v6302_v44 = vld [vmem:[#allocation4] ss:$2 sm:$0x7]  ;;  %v6304_v12 = vld [vmem:[#allocation4 + $0x1] ss:$2 sm:$0x7] }
 0x524   : > { %5938 = vst.msk [vmem:[#allocation4 + $0x6] sm:$0x3f] %vm5852_vm9, %v5935_v51  ;;  %v6309_v39 = vmax.f32 %v6302_v44, %v6304_v12  ;;  %v14743_v51 = vld [vmem:[%s15055_s9 + $0x38] sm:$0xf] }
 0x529   : > { %v6019_v4 = vpop.f32.mrf.mxu1 }
 0x52a   : > { %v6020_v24 = vadd.f32 %v10222_v6, %v6019_v4 }
 0x52b   : > { %v6306_v0 = vld [vmem:[#allocation4 + $0x6] ss:$2 sm:$0x7]  ;;  %v6308_v20 = vld [vmem:[#allocation4 + $0x7] ss:$2 sm:$0x7]  ;;  %v11154_v13 = vpop.f32.mrf.mxu1 }
 0x52c   : > { %v6310_v25 = vmax.f32 %v6306_v0, %v6308_v20  ;;  %6023 = vst.msk [vmem:[#allocation4 + $0xc] sm:$0x3f] %vm5852_vm9, %v6020_v24 }
 0x52e   : > { %v6311_v22 = vmax.f32 %v6309_v39, %v6310_v25 }
 0x530   : > { %6313 = vst.msk [vmem:[#allocation5 + $0x6] sm:$0x7] %vm6312_vm10, %v6311_v22 }
 0x531   : > { %v6104_v21 = vpop.f32.mrf.mxu1 }
 0x532   : > { %v6105_v32 = vadd.f32 %v10222_v6, %v6104_v21 }
 0x533   : > { %v11161_v23 = vpop.f32.mrf.mxu1  ;;  %v6315_v28 = vld [vmem:[#allocation4 + $0xc] ss:$2 sm:$0x7]  ;;  %v6317_v42 = vld [vmem:[#allocation4 + $0xd] ss:$2 sm:$0x7] }
 0x534   : > { %6108 = vst.msk [vmem:[#allocation4 + $0x12] sm:$0x3f] %vm5852_vm9, %v6105_v32  ;;  %v6322_v40 = vmax.f32 %v6315_v28, %v6317_v42 }
 0x537   : > { %v6341_v41 = vld [vmem:[#allocation5 + $0x1] sm:$0xff] }
 0x538   : > { %11178 = vmatprep.mubr.msk.f32.mxu1 %vm6279_vm6, %v6341_v41  ;;  %v6338_v43 = vld [vmem:[#allocation5] sm:$0xff] }
 0x539   : > { %v6514_v16 = vld [vmem:[#allocation5 + $0x2] sm:$0xff] }
 0x53a   : > { %v6189_v54 = vpop.f32.mrf.mxu1 }
 0x53b   : > { %v6190_v58 = vadd.f32 %v10222_v6, %v6189_v54  ;;  %v6319_v36 = vld [vmem:[#allocation4 + $0x12] ss:$2 sm:$0x7]  ;;  %v6321_v45 = vld [vmem:[#allocation4 + $0x13] ss:$2 sm:$0x7] }
 0x53c   : > { %v11168_v7 = vpop.f32.mrf.mxu1  ;;  %v6323_v14 = vmax.f32 %v6319_v36, %v6321_v45 }
 0x53d   : > { %6193 = vst.msk [vmem:[#allocation4 + $0x18] sm:$0x3f] %vm5852_vm9, %v6190_v58 }
 0x53e   : > { %v6324_v1 = vmax.f32 %v6322_v40, %v6323_v14 }
 0x540   : > { %6325 = vst.msk [vmem:[#allocation5 + $0xb] sm:$0x7] %vm6312_vm10, %v6324_v1  ;;  %v6274_v10 = vpop.f32.mrf.mxu1 }
 0x541   : > { %v6275_v53 = vadd.f32 %v10222_v6, %v6274_v10  ;;  %v10274_v6 = vld [vmem:[%s15055_s9 + $0x18] sm:$0xf] }
 0x542   : > { %v11175_v17 = vpop.f32.mrf.mxu1 }
 0x543   : > { %6278 = vst.msk [vmem:[#allocation4 + $0x1e] sm:$0x3f] %vm5852_vm9, %v6275_v53  ;;  %vm8830_vm9 = vcmask 110594  }
 0x544   : > { %v6327_v50 = vld [vmem:[#allocation4 + $0x18] ss:$2 sm:$0x7]  ;;  %v6329_v18 = vld [vmem:[#allocation4 + $0x19] ss:$2 sm:$0x7] }
 0x545   : > { %v6334_v33 = vmax.f32 %v6327_v50, %v6329_v18 }
 0x547   : > { %v6342_v55 = vld [vmem:[#allocation5 + $0x9] sm:$0x1f] }
 0x548   : > { %11179 = vmatmul.mubr.msk.f32.vlgmr.msra.gmra.mxu1 %vm6279_vm6, %v6342_v55  ;;  %v6339_v26 = vld [vmem:[#allocation5 + $0x8] sm:$0x1f] }
 0x549   : > { %11183 = vmatprep.mubr.msk.f32.mxu1 %vm6279_vm6, %v6338_v43  ;;  %11182 = vmatpush3.msk.msra.mxu1 %vm6351_vm7, %v6340_v52  ;;  %v6515_v15 = vld [vmem:[#allocation5 + $0xa] sm:$0x1f] }
 0x54a   : > { %v6331_v49 = vld [vmem:[#allocation4 + $0x1e] ss:$2 sm:$0x7]  ;;  %v6333_v34 = vld [vmem:[#allocation4 + $0x1f] ss:$2 sm:$0x7]  ;;  %11186 = vmatprep.subr.msk.mxu1 %vm6351_vm7, %v10242_v60 }
 0x54b   : > { %v6335_v61 = vmax.f32 %v6331_v49, %v6333_v34  ;;  %v6604_v37 = vld [vmem:[#allocation5 + $0x5] sm:$0xff] }
 0x54c   : > { %11184 = vmatmul.mubr.msk.f32.vlgmr.msra.gmra.mxu1 %vm6279_vm6, %v6339_v26  ;;  %v6694_v56 = vld [vmem:[#allocation5 + $0x6] sm:$0xff] }
 0x54d   : > { %v6336_v2 = vmax.f32 %v6334_v33, %v6335_v61  ;;  %11188 = vmatprep.mubr.msk.f32.mxu1 %vm6279_vm6, %v6514_v16  ;;  %11187 = vmatpush3.msk.msra.mxu1 %vm6351_vm7, %v10242_v60  ;;  %v6784_v11 = vld [vmem:[#allocation5 + $0x7] sm:$0xff] }
 0x54e   : > { %11191 = vmatprep.subr.msk.mxu1 %vm6351_vm7, %v10246_v9  ;;  %v10270_v43 = vld [vmem:[#allocation15] ss:$0 sm:$0xff]  ;;  %v10271_v61 = vld [vmem:[#allocation15 + $0x1] ss:$0 sm:$0xff]  ;;  %v10272_v16 = vld [vmem:[#allocation15 + $0x2] ss:$0 sm:$0xff] }
 0x54f   : > { %6337 = vst.msk [vmem:[#allocation5 + $0x10] sm:$0x7] %vm6312_vm10, %v6336_v2  ;;  %vm8826_vm10 = vcmask 108544  }
 0x550   : > { %11189 = vmatmul.mubr.msk.f32.vlgmr.msra.gmra.mxu1 %vm6279_vm6, %v6515_v15 }
 0x551   : > { %11193 = vmatprep.mubr.msk.f32.mxu1 %vm6279_vm6, %v6604_v37  ;;  %11192 = vmatpush3.msk.msra.mxu1 %vm6351_vm7, %v10246_v9 }
 0x552   : > { %11196 = vmatprep.subr.msk.mxu1 %vm6351_vm7, %v10250_v29 }
 0x556   : > { %v6605_v27 = vld [vmem:[#allocation5 + $0xd] sm:$0x1f]  ;;  %v6875_v38 = vld [vmem:[#allocation5 + $0x12] sm:$0x1f] }
 0x557   : > { %v6874_v57 = vld [vmem:[#allocation5 + $0xa] sm:$0xff]  ;;  %11194 = vmatmul.mubr.msk.f32.vlgmr.msra.gmra.mxu1 %vm6279_vm6, %v6605_v27 }
 0x558   : > { %11208 = vmatprep.mubr.msk.f32.mxu0 %vm6279_vm6, %v6874_v57  ;;  %11197 = vmatpush3.msk.msra.mxu1 %vm6351_vm7, %v10250_v29  ;;  %v7054_v59 = vld [vmem:[#allocation5 + $0xc] sm:$0xff] }
 0x559   : > { %11198 = vmatprep.mubr.msk.f32.mxu1 %vm6279_vm6, %v6694_v56  ;;  %11209 = vmatmul.mubr.msk.f32.vlgmr.msra.gmra.mxu0 %vm6279_vm6, %v6875_v38  ;;  %v6695_v31 = vld [vmem:[#allocation5 + $0xe] sm:$0x1f] }
 0x55a   : > { %11201 = vmatprep.subr.msk.mxu1 %vm6351_vm7, %v10254_v62  ;;  %11218 = vmatprep.mubr.msk.f32.mxu0 %vm6279_vm6, %v7054_v59  ;;  %v6785_v3 = vld [vmem:[#allocation5 + $0xf] sm:$0x1f]  ;;  %v10281_v59 = vld [vmem:[%s15055_s9 + $0x20] sm:$0xff] }
 0x55b   : > { %11217 = vmatpush3.msk.msra.mxu0 %vm6351_vm7, %v14658_v8  ;;  %11199 = vmatmul.mubr.msk.f32.vlgmr.msra.gmra.mxu1 %vm6279_vm6, %v6695_v31  ;;  %v6964_v52 = vld [vmem:[#allocation5 + $0xb] sm:$0xff]  ;;  %v6965_v8 = vld [vmem:[#allocation5 + $0x13] sm:$0x1f] }
 0x55c   : > { %11202 = vmatpush3.msk.msra.mxu1 %vm6351_vm7, %v10254_v62  ;;  %11203 = vmatprep.mubr.msk.f32.mxu1 %vm6279_vm6, %v6784_v11 }
 0x55d   : > { %11211 = vmatprep.subr.msk.mxu1 %vm6351_vm7, %v10262_v48  ;;  %11219 = vmatmul.mubr.msk.f32.vlgmr.msra.gmra.mxu0 %vm6279_vm6, %v7055_v5  ;;  %v10292_v5 = vld [vmem:[%s15055_s9 + $0x48] sm:$0xf] }
 0x55e   : > { %11228 = vmatprep.subr.msk.mxu0 %vm5778_vm2, %v7176_v63 }
 0x55f   : > { %11204 = vmatmul.mubr.msk.f32.vlgmr.msra.gmra.mxu1 %vm6279_vm6, %v6785_v3  ;;  %11229 = vmatpush3.msk.msra.mxu0 %vm5778_vm2, %v7176_v63 }
 0x560   : > { %11212 = vmatpush3.msk.msra.mxu1 %vm6351_vm7, %v10262_v48  ;;  %11213 = vmatprep.mubr.msk.f32.mxu1 %vm6279_vm6, %v6964_v52  ;;  %v10286_v48 = vld [vmem:[%s15055_s9 + $0x30] sm:$0xff]  ;;  %v10297_v52 = vld [vmem:[%s15055_s9 + $0x58] sm:$0xf] }
 0x561   : > { %11221 = vmatprep.subr.msk.mxu1 %vm5778_vm2, %v10274_v6  ;;  %11230 = vmatprep.subr.mxu0 %v7175_v47 }
 0x562   : > { %11231 = vmatpush3.msra.mxu0 %v7175_v47  ;;  %v10302_v47 = vld [vmem:[%s15055_s9 + $0x68] sm:$0xf] }
 0x563   : > { %11214 = vmatmul.mubr.msk.f32.vlgmr.msra.gmra.mxu1 %vm6279_vm6, %v6965_v8  ;;  %11242 = vmatprep.subr.msk.mxu0 %vm5778_vm2, %v14743_v51  ;;  %v10291_v8 = vld [vmem:[%s15055_s9 + $0x40] sm:$0xff]  ;;  %vm6296_vm6 = vcmask 113664  }
 0x564   : > { %11222 = vmatpush3.msk.msra.mxu1 %vm5778_vm2, %v10274_v6  ;;  %6299 = vst.msk [vmem:[#allocation8 + $0x10] sm:$0xff] %vm6296_vm6, %v15271_v35  ;;  %6297 = vst.msk [vmem:[#allocation8] sm:$0xff] %vm6296_vm6, %v15271_v35 }
 0x565   : > { %11223 = vmatprep.subr.mxu1 %v10273_v19  ;;  %6298 = vst.msk [vmem:[#allocation8 + $0x8] sm:$0xff] %vm6296_vm6, %v15271_v35 }
 0x566   : > { %11224 = vmatpush3.msra.mxu1 %v10273_v19  ;;  %v10296_v19 = vld [vmem:[%s15055_s9 + $0x50] sm:$0xff] }
 0x567   : > { %11235 = vmatprep.subr.msk.mxu1 %vm5778_vm2, %v14736_v30 }
 0x608   : > { %v11180_v46 = vpop.f32.mrf.mxu1 }
 0x60a   : > { %v6421_v44 = vpop.f32.mrf.mxu1 }
 0x60c   : > { %v11185_v12 = vpop.f32.mrf.mxu1 }
 0x60d   : > { %v6511_v13 = vadd.f32 %v11185_v12, %v11180_v46  ;;  %v10307_v46 = vld [vmem:[%s15055_s9 + $0x78] sm:$0xf] }
 0x60e   : > { %v6505_v4 = vpop.f32.mrf.mxu1 }
 0x60f   : > { %v6506_v25 = vadd.f32 %v6505_v4, %v6421_v44  ;;  %v10301_v44 = vld [vmem:[%s15055_s9 + $0x60] sm:$0xff] }
 0x610   : > { %v11190_v24 = vpop.f32.mrf.mxu1 }
 0x611   : > { %v6603_v22 = vadd.f32 %v11190_v24, %v6511_v13  ;;  %v10306_v24 = vld [vmem:[%s15055_s9 + $0x70] sm:$0xff]  ;;  %v7806_v13 = vld [vmem:[#allocation6 + $0x13] sm:$0x1f] }
 0x612   : > { %v6593_v0 = vpop.f32.mrf.mxu1 }
 0x613   : > { %v6602_v32 = vadd.f32 %v6593_v0, %v6506_v25  ;;  %v10312_v0 = vld [vmem:[%s15055_s9 + $0x88] sm:$0xf]  ;;  %v10311_v25 = vld [vmem:[%s15055_s9 + $0x80] sm:$0xff] }
 0x617   : > { %v11195_v20 = vpop.f32.mrf.mxu1 }
 0x618   : > { %v6693_v23 = vadd.f32 %v11195_v20, %v6603_v22 }
 0x619   : > { %v6683_v39 = vpop.f32.mrf.mxu1  ;;  %v11210_v41 = vpop.f32.mrf.mxu0 }
 0x61a   : > { %v6692_v42 = vadd.f32 %v6683_v39, %v6602_v32  ;;  %v10320_v32 = vld [vmem:[%s15057_s11 + $0x18] sm:$0xff] }
 0x61b   : > { %v11200_v21 = vpop.f32.mrf.mxu1  ;;  %v6953_v7 = vpop.f32.mrf.mxu0 }
 0x61c   : > { %v6783_v54 = vadd.f32 %v11200_v21, %v6693_v23  ;;  %v7897_v21 = vld [vmem:[#allocation6 + $0x14] sm:$0x1f]  ;;  %v8019_v23 = vld [vmem:[%s15057_s11 + $0x8] sm:$0xff] }
 0x61d   : > { %v6773_v28 = vpop.f32.mrf.mxu1  ;;  %v11220_v53 = vpop.f32.mrf.mxu0 }
 0x61e   : > { %v6782_v36 = vadd.f32 %v6773_v28, %v6692_v42  ;;  %v8018_v28 = vld [vmem:[%s15057_s11] sm:$0xff]  ;;  %v14837_v42 = vld [vmem:[%s15057_s11 + $0x28] sm:$0xff] }
 0x61f   : > { %v11205_v58 = vpop.f32.mrf.mxu1  ;;  %v7133_v49 = vpop.f32.mrf.mxu0 }
 0x620   : > { %v6873_v45 = vadd.f32 %v11205_v58, %v6783_v54  ;;  %v14843_v54 = vld [vmem:[%s15057_s11 + $0x38] sm:$0xff] }
 0x621   : > { %v6863_v40 = vpop.f32.mrf.mxu1 }
 0x622   : > { %v6872_v14 = vadd.f32 %v6863_v40, %v6782_v36  ;;  %v6963_v1 = vadd.f32 %v11210_v41, %v6873_v45  ;;  %v10319_v41 = vld [vmem:[%s15057_s11 + $0x10] sm:$0xff] }
 0x623   : > { %v11215_v10 = vpop.f32.mrf.mxu1 }
 0x624   : > { %v7053_v17 = vadd.f32 %v11215_v10, %v6963_v1  ;;  %v6962_v55 = vadd.f32 %v6953_v7, %v6872_v14 }
 0x625   : > { %v7043_v60 = vpop.f32.mrf.mxu1 }
 0x626   : > { %v7143_v50 = vadd.f32 %v11220_v53, %v7053_v17  ;;  %v7052_v18 = vadd.f32 %v7043_v60, %v6962_v55 }
 0x628   : > { %v7152_v34 = vadd.f32 %v10270_v43, %v7143_v50  ;;  %v7142_v33 = vadd.f32 %v7133_v49, %v7052_v18 }
 0x62a   : > { %v7154_v26 = vmax.f32 %v7152_v34, 0.0  ;;  %v7151_v9 = vadd.f32 %v10270_v43, %v7142_v33 }
 0x62c   : > { %v7160_v2 = vmul.f32 %v10271_v61, %v7154_v26  ;;  %v7153_v15 = vmax.f32 %v7151_v9, 0.0 }
 0x62e   : > { %v7166_v29 = vadd.f32 %v10272_v16, %v7160_v2  ;;  %v7159_v37 = vmul.f32 %v10271_v61, %v7153_v15 }
 0x630   : > { %7172 = vst.msk [vmem:[#allocation6 + $0xe] sm:$0x1c] %vm7171_vm12, %v7166_v29  ;;  %v7165_v62 = vadd.f32 %v10272_v16, %v7159_v37 }
 0x632   : > { %7168 = vst.msk [vmem:[#allocation6 + $0x6] sm:$0x7] %vm7167_vm13, %v7165_v62 }
 0x633   : > { %7170 = vst.msk [vmem:[#allocation6 + $0x6] sm:$0xe0] %vm7169_vm14, %v7165_v62 }
 0x637   : > { %v7624_v12 = vld [vmem:[#allocation6 + $0xf] sm:$0x1f] }
 0x638   : > { %v7715_v39 = vld [vmem:[#allocation6 + $0x12] sm:$0x1f] }
 0x639   : > { %v7177_v27 = vld [vmem:[#allocation6 + $0x1] sm:$0xff] }
 0x63a   : > { %v7173_v57 = vld [vmem:[#allocation6] sm:$0xff]  ;;  %v7178_v38 = vld [vmem:[#allocation6 + $0x9] sm:$0x1f]  ;;  %11225 = vmatprep.mubr.msk.f32.mxu1 %vm5730_vm3, %v7177_v27 }
 0x63b   : > { %11232 = vmatprep.mubr.msk.f32.mxu0 %vm5730_vm3, %v7173_v57  ;;  %v7174_v56 = vld [vmem:[#allocation6 + $0x8] sm:$0x1f]  ;;  %11226 = vmatmul.mubr.msk.f32.vlgmr.msra.gmra.mxu1 %vm5730_vm3, %v7178_v38  ;;  %v7442_v6 = vld [vmem:[#allocation6 + $0xd] sm:$0x1f] }
 0x63c   : > { %11233 = vmatmul.mubr.msk.f32.vlgmr.msra.gmra.mxu0 %vm5730_vm3, %v7174_v56  ;;  %v7350_v31 = vld [vmem:[#allocation6 + $0x2] sm:$0xff]  ;;  %11236 = vmatpush3.msk.msra.mxu1 %vm5778_vm2, %v14736_v30  ;;  %v7351_v3 = vld [vmem:[#allocation6 + $0xa] sm:$0x1f] }
 0x63d   : > { %11239 = vmatprep.mubr.msk.f32.mxu1 %vm5730_vm3, %v7350_v31  ;;  %11237 = vmatprep.subr.mxu1 %v10281_v59  ;;  %v7441_v11 = vld [vmem:[#allocation6 + $0x5] sm:$0xff]  ;;  %v10316_v56 = vld [vmem:[#allocation17] ss:$0 sm:$0xff] }
 0x63e   : > { %11243 = vmatpush3.msk.msra.mxu0 %vm5778_vm2, %v14743_v51  ;;  %11246 = vmatprep.mubr.msk.f32.mxu0 %vm5730_vm3, %v7441_v11  ;;  %v7532_v63 = vld [vmem:[#allocation6 + $0x6] sm:$0xff]  ;;  %v7533_v51 = vld [vmem:[#allocation6 + $0xe] sm:$0x1f] }
 0x63f   : > { %11238 = vmatpush3.msra.mxu1 %v10281_v59  ;;  %11244 = vmatprep.subr.mxu0 %v10286_v48  ;;  %v7623_v30 = vld [vmem:[#allocation6 + $0x7] sm:$0xff] }
 0x640   : > { %11249 = vmatprep.subr.msk.mxu1 %vm5778_vm2, %v10292_v5  ;;  %11245 = vmatpush3.msra.mxu0 %v10286_v48  ;;  %v7714_v4 = vld [vmem:[#allocation6 + $0xa] sm:$0xff] }
 0x641   : > { %11240 = vmatmul.mubr.msk.f32.vlgmr.msra.gmra.mxu1 %vm5730_vm3, %v7351_v3  ;;  %11247 = vmatmul.mubr.msk.f32.vlgmr.msra.gmra.mxu0 %vm5730_vm3, %v7442_v6  ;;  %v7805_v20 = vld [vmem:[#allocation6 + $0xb] sm:$0xff] }
 0x642   : > { %11250 = vmatpush3.msk.msra.mxu1 %vm5778_vm2, %v10292_v5  ;;  %11256 = vmatprep.subr.msk.mxu0 %vm5778_vm2, %v10297_v52  ;;  %v7896_v22 = vld [vmem:[#allocation6 + $0xc] sm:$0xff] }
 0x643   : > { %11251 = vmatprep.subr.mxu1 %v10291_v8  ;;  %11253 = vmatprep.mubr.msk.f32.mxu1 %vm5730_vm3, %v7532_v63  ;;  %v10317_v3 = vld [vmem:[#allocation17 + $0x1] ss:$0 sm:$0xff]  ;;  %v10318_v6 = vld [vmem:[#allocation17 + $0x2] ss:$0 sm:$0xff] }
 0x644   : > { %11257 = vmatpush3.msk.msra.mxu0 %vm5778_vm2, %v10297_v52  ;;  %11260 = vmatprep.mubr.msk.f32.mxu0 %vm5730_vm3, %v7623_v30 }
 0x645   : > { %11252 = vmatpush3.msra.mxu1 %v10291_v8  ;;  %11258 = vmatprep.subr.mxu0 %v10296_v19 }
 0x646   : > { %11263 = vmatprep.subr.msk.mxu1 %vm5778_vm2, %v10302_v47  ;;  %11259 = vmatpush3.msra.mxu0 %v10296_v19 }
 0x647   : > { %11254 = vmatmul.mubr.msk.f32.vlgmr.msra.gmra.mxu1 %vm5730_vm3, %v7533_v51  ;;  %11261 = vmatmul.mubr.msk.f32.vlgmr.msra.gmra.mxu0 %vm5730_vm3, %v7624_v12 }
 0x648   : > { %11264 = vmatpush3.msk.msra.mxu1 %vm5778_vm2, %v10302_v47  ;;  %11270 = vmatprep.subr.msk.mxu0 %vm5778_vm2, %v10307_v46 }
 0x649   : > { %11265 = vmatprep.subr.mxu1 %v10301_v44  ;;  %11267 = vmatprep.mubr.msk.f32.mxu1 %vm5730_vm3, %v7714_v4 }
 0x64a   : > { %11271 = vmatpush3.msk.msra.mxu0 %vm5778_vm2, %v10307_v46  ;;  %11274 = vmatprep.mubr.msk.f32.mxu0 %vm5730_vm3, %v7805_v20  ;;  %v10329_v20 = vld [vmem:[%s15057_s11 + $0x30] sm:$0xff] }
 0x64b   : > { %11266 = vmatpush3.msra.mxu1 %v10301_v44  ;;  %11272 = vmatprep.subr.mxu0 %v10306_v24 }
 0x64c   : > { %11277 = vmatprep.subr.msk.mxu1 %vm5778_vm2, %v10312_v0  ;;  %11273 = vmatpush3.msra.mxu0 %v10306_v24  ;;  %v10325_v24 = vld [vmem:[%s15057_s11 + $0x20] sm:$0xff] }
 0x64d   : > { %11268 = vmatmul.mubr.msk.f32.vlgmr.msra.gmra.mxu1 %vm5730_vm3, %v7715_v39  ;;  %11275 = vmatmul.mubr.msk.f32.vlgmr.msra.gmra.mxu0 %vm5730_vm3, %v7806_v13  ;;  %v10334_v13 = vld [vmem:[%s15057_s11 + $0x48] sm:$0xff] }
 0x64e   : > { %11278 = vmatpush3.msk.msra.mxu1 %vm5778_vm2, %v10312_v0  ;;  %11281 = vmatprep.mubr.msk.f32.mxu1 %vm5730_vm3, %v7896_v22  ;;  %v10338_v22 = vld [vmem:[%s15057_s11 + $0x58] sm:$0xff] }
 0x64f   : > { %11279 = vmatprep.subr.mxu1 %v10311_v25  ;;  %11284 = vmatprep.subr.mxu0 %v10320_v32 }
 0x650   : > { %11280 = vmatpush3.msra.mxu1 %v10311_v25  ;;  %11285 = vmatpush3.msra.mxu0 %v10320_v32 }
 0x651   : > { %11282 = vmatmul.mubr.msk.f32.vlgmr.msra.gmra.mxu1 %vm5730_vm3, %v7897_v21  ;;  %11291 = vmatprep.subr.mxu1 %v8019_v23  ;;  %v10333_v21 = vld [vmem:[%s15057_s11 + $0x40] sm:$0xff] }
 0x652   : > { %11292 = vmatpush3.msra.mxu1 %v8019_v23  ;;  %11286 = vmatprep.subr.mxu0 %v10319_v41 }
 0x653   : > { %11293 = vmatprep.subr.mxu1 %v8018_v28  ;;  %11287 = vmatpush3.msra.mxu0 %v10319_v41  ;;  %v10337_v41 = vld [vmem:[%s15057_s11 + $0x50] sm:$0xff] }
 0x654   : > { %11294 = vmatpush3.msra.mxu1 %v8018_v28  ;;  %11298 = vmatprep.subr.mxu0 %v14837_v42  ;;  %v10342_v28 = vld [vmem:[%s15057_s11 + $0x68] sm:$0xff] }
 0x655   : > { %11305 = vmatprep.subr.mxu1 %v14843_v54 }
 0x6fb   : > { %v11227_v58 = vpop.f32.mrf.mxu1 }
 0x6fc   : > { %v11234_v36 = vpop.f32.mrf.mxu0 }
 0x6fd   : > { %v7257_v45 = vpop.f32.mrf.mxu1  ;;  %v7347_v40 = vadd.f32 %v11234_v36, %v11227_v58  ;;  %v10346_v58 = vld [vmem:[%s15057_s11 + $0x78] sm:$0xff]  ;;  %v10341_v36 = vld [vmem:[%s15057_s11 + $0x60] sm:$0xff] }
 0x6fe   : > { %v7341_v7 = vpop.f32.mrf.mxu0 }
 0x6ff   : > { %v7342_v1 = vadd.f32 %v7341_v7, %v7257_v45 }
 0x701   : > { %v11241_v14 = vpop.f32.mrf.mxu1  ;;  %v11248_v53 = vpop.f32.mrf.mxu0 }
 0x702   : > { %v7440_v10 = vadd.f32 %v11241_v14, %v7347_v40  ;;  %v10345_v40 = vld [vmem:[%s15057_s11 + $0x70] sm:$0xff]  ;;  %v10350_v14 = vld [vmem:[%s15057_s11 + $0x88] sm:$0xff] }
 0x703   : > { %v7430_v17 = vpop.f32.mrf.mxu1  ;;  %v7521_v60 = vpop.f32.mrf.mxu0 }
 0x704   : > { %v7531_v55 = vadd.f32 %v11248_v53, %v7440_v10  ;;  %v7439_v43 = vadd.f32 %v7430_v17, %v7342_v1  ;;  %v8628_v10 = vld [vmem:[#allocation7 + $0x13] sm:$0x1f]  ;;  %v10349_v17 = vld [vmem:[%s15057_s11 + $0x80] sm:$0xff] }
 0x706   : > { %v7530_v50 = vadd.f32 %v7521_v60, %v7439_v43  ;;  %v8716_v43 = vld [vmem:[#allocation7 + $0x14] sm:$0x1f] }
 0x707   : > { %v11255_v18 = vpop.f32.mrf.mxu1  ;;  %v11262_v34 = vpop.f32.mrf.mxu0  ;;  %v10357_v60 = vld [vmem:[%s15059_s13 + $0x18] sm:$0x3f] }
 0x708   : > { %v7622_v49 = vadd.f32 %v11255_v18, %v7531_v55  ;;  %v10356_v18 = vld [vmem:[%s15059_s13 + $0x10] sm:$0xff] }
 0x709   : > { %v7612_v33 = vpop.f32.mrf.mxu1  ;;  %v7703_v9 = vpop.f32.mrf.mxu0 }
 0x70a   : > { %v7713_v61 = vadd.f32 %v11262_v34, %v7622_v49  ;;  %v7621_v26 = vadd.f32 %v7612_v33, %v7530_v50  ;;  %v8835_v50 = vld [vmem:[%s15059_s13 + $0x8] sm:$0x3f]  ;;  %v8834_v49 = vld [vmem:[%s15059_s13] sm:$0xff]  ;;  %v14935_v33 = vld [vmem:[%s15059_s13 + $0x38] sm:$0x3f] }
 0x70b   : > { %v14928_v34 = vld [vmem:[%s15059_s13 + $0x28] sm:$0x3f] }
 0x70c   : > { %v7712_v16 = vadd.f32 %v7703_v9, %v7621_v26 }
 0x70d   : > { %v11269_v2 = vpop.f32.mrf.mxu1  ;;  %v11276_v29 = vpop.f32.mrf.mxu0 }
 0x70e   : > { %v7804_v15 = vadd.f32 %v11269_v2, %v7713_v61 }
 0x70f   : > { %v7794_v37 = vpop.f32.mrf.mxu1  ;;  %v7885_v57 = vpop.f32.mrf.mxu0 }
 0x710   : > { %v7895_v62 = vadd.f32 %v11276_v29, %v7804_v15  ;;  %v7803_v27 = vadd.f32 %v7794_v37, %v7712_v16 }
 0x711   : > { %v11283_v38 = vpop.f32.mrf.mxu1 }
 0x712   : > { %v7894_v59 = vadd.f32 %v7885_v57, %v7803_v27  ;;  %v7986_v31 = vadd.f32 %v11283_v38, %v7895_v62 }
 0x713   : > { %v7976_v48 = vpop.f32.mrf.mxu1 }
 0x714   : > { %v7995_v5 = vadd.f32 %v10316_v56, %v7986_v31  ;;  %v7985_v11 = vadd.f32 %v7976_v48, %v7894_v59 }
 0x716   : > { %v7997_v52 = vmax.f32 %v7995_v5, 0.0  ;;  %v7994_v8 = vadd.f32 %v10316_v56, %v7985_v11 }
 0x718   : > { %v8003_v63 = vmul.f32 %v10317_v3, %v7997_v52  ;;  %v7996_v19 = vmax.f32 %v7994_v8, 0.0 }
 0x71a   : > { %v8009_v47 = vadd.f32 %v10318_v6, %v8003_v63  ;;  %v8002_v30 = vmul.f32 %v10317_v3, %v7996_v19 }
 0x71c   : > { %8015 = vst.msk [vmem:[#allocation7 + $0xe] sm:$0x1c] %vm8014_vm1, %v8009_v47  ;;  %v8008_v51 = vadd.f32 %v10318_v6, %v8002_v30 }
 0x71e   : > { %8011 = vst.msk [vmem:[#allocation7 + $0x6] sm:$0x7] %vm8010_vm4, %v8008_v51 }
 0x71f   : > { %8013 = vst.msk [vmem:[#allocation7 + $0x6] sm:$0xe0] %vm8012_vm5, %v8008_v51 }
 0x723   : > { %v8452_v45 = vld [vmem:[#allocation7 + $0xf] sm:$0x1f] }
 0x724   : > { %v8540_v53 = vld [vmem:[#allocation7 + $0x12] sm:$0x1f] }
 0x725   : > { %v8020_v46 = vld [vmem:[#allocation7 + $0x1] sm:$0xff] }
 0x726   : > { %v8016_v44 = vld [vmem:[#allocation7] sm:$0xff]  ;;  %v8021_v12 = vld [vmem:[#allocation7 + $0x9] sm:$0x1f]  ;;  %11288 = vmatprep.mubr.msk.f32.mxu0 %vm6290_vm15, %v8020_v46 }
 0x727   : > { %11295 = vmatprep.mubr.msk.f32.mxu1 %vm6290_vm15, %v8016_v44  ;;  %v8017_v4 = vld [vmem:[#allocation7 + $0x8] sm:$0x1f]  ;;  %11289 = vmatmul.mubr.msk.f32.vlgmr.msra.gmra.mxu0 %vm6290_vm15, %v8021_v12  ;;  %v8276_v32 = vld [vmem:[#allocation7 + $0xd] sm:$0x1f]  ;;  %v10353_v12 = vld [vmem:[#allocation18] ss:$0 sm:$0xff] }
 0x728   : > { %11296 = vmatmul.mubr.msk.f32.vlgmr.msra.gmra.mxu1 %vm6290_vm15, %v8017_v4  ;;  %v8187_v0 = vld [vmem:[#allocation7 + $0x2] sm:$0xff]  ;;  %11299 = vmatpush3.msra.mxu0 %v14837_v42  ;;  %v8188_v25 = vld [vmem:[#allocation7 + $0xa] sm:$0x1f] }
 0x729   : > { %11302 = vmatprep.mubr.msk.f32.mxu0 %vm6290_vm15, %v8187_v0  ;;  %11300 = vmatprep.subr.mxu0 %v10325_v24  ;;  %v8275_v39 = vld [vmem:[#allocation7 + $0x5] sm:$0xff] }
 0x72a   : > { %11306 = vmatpush3.msra.mxu1 %v14843_v54  ;;  %11309 = vmatprep.mubr.msk.f32.mxu1 %vm6290_vm15, %v8275_v39  ;;  %v8363_v23 = vld [vmem:[#allocation7 + $0x6] sm:$0xff]  ;;  %v8364_v54 = vld [vmem:[#allocation7 + $0xe] sm:$0x1f]  ;;  %v10354_v39 = vld [vmem:[#allocation18 + $0x1] ss:$0 sm:$0xff] }
 0x72b   : > { %11301 = vmatpush3.msra.mxu0 %v10325_v24  ;;  %11307 = vmatprep.subr.mxu1 %v10329_v20  ;;  %v8451_v42 = vld [vmem:[#allocation7 + $0x7] sm:$0xff] }
 0x72c   : > { %11312 = vmatprep.subr.mxu0 %v10334_v13  ;;  %11308 = vmatpush3.msra.mxu1 %v10329_v20  ;;  %v8539_v7 = vld [vmem:[#allocation7 + $0xa] sm:$0xff] }
 0x72d   : > { %11303 = vmatmul.mubr.msk.f32.vlgmr.msra.gmra.mxu0 %vm6290_vm15, %v8188_v25  ;;  %11310 = vmatmul.mubr.msk.f32.vlgmr.msra.gmra.mxu1 %vm6290_vm15, %v8276_v32  ;;  %v8627_v1 = vld [vmem:[#allocation7 + $0xb] sm:$0xff] }
 0x72e   : > { %11313 = vmatpush3.msra.mxu0 %v10334_v13  ;;  %11319 = vmatprep.subr.mxu1 %v10338_v22  ;;  %v8715_v55 = vld [vmem:[#allocation7 + $0xc] sm:$0xff] }
 0x72f   : > { %11314 = vmatprep.subr.mxu0 %v10333_v21  ;;  %11316 = vmatprep.mubr.msk.f32.mxu0 %vm6290_vm15, %v8363_v23 }
 0x730   : > { %11320 = vmatpush3.msra.mxu1 %v10338_v22  ;;  %11323 = vmatprep.mubr.msk.f32.mxu1 %vm6290_vm15, %v8451_v42 }
 0x731   : > { %11315 = vmatpush3.msra.mxu0 %v10333_v21  ;;  %11321 = vmatprep.subr.mxu1 %v10337_v41  ;;  %v10355_v21 = vld [vmem:[#allocation18 + $0x2] ss:$0 sm:$0xff] }
 0x732   : > { %11326 = vmatprep.subr.mxu0 %v10342_v28  ;;  %11322 = vmatpush3.msra.mxu1 %v10337_v41 }
 0x733   : > { %11317 = vmatmul.mubr.msk.f32.vlgmr.msra.gmra.mxu0 %vm6290_vm15, %v8364_v54  ;;  %11324 = vmatmul.mubr.msk.f32.vlgmr.msra.gmra.mxu1 %vm6290_vm15, %v8452_v45 }
 0x734   : > { %11327 = vmatpush3.msra.mxu0 %v10342_v28  ;;  %11333 = vmatprep.subr.mxu1 %v10346_v58 }
 0x735   : > { %11328 = vmatprep.subr.mxu0 %v10341_v36  ;;  %11330 = vmatprep.mubr.msk.f32.mxu0 %vm6290_vm15, %v8539_v7  ;;  %v10364_v7 = vld [vmem:[%s15059_s13 + $0x20] sm:$0xff] }
 0x736   : > { %11334 = vmatpush3.msra.mxu1 %v10346_v58  ;;  %11337 = vmatprep.mubr.msk.f32.mxu1 %vm6290_vm15, %v8627_v1  ;;  %v10375_v1 = vld [vmem:[%s15059_s13 + $0x48] sm:$0x3f] }
 0x737   : > { %11329 = vmatpush3.msra.mxu0 %v10341_v36  ;;  %11335 = vmatprep.subr.mxu1 %v10345_v40 }
 0x738   : > { %11340 = vmatprep.subr.mxu0 %v10350_v14  ;;  %11336 = vmatpush3.msra.mxu1 %v10345_v40 }
 0x739   : > { %11331 = vmatmul.mubr.msk.f32.vlgmr.msra.gmra.mxu0 %vm6290_vm15, %v8540_v53  ;;  %11338 = vmatmul.mubr.msk.f32.vlgmr.msra.gmra.mxu1 %vm6290_vm15, %v8628_v10 }
 0x73a   : > { %11341 = vmatpush3.msra.mxu0 %v10350_v14  ;;  %11344 = vmatprep.mubr.msk.f32.mxu0 %vm6290_vm15, %v8715_v55  ;;  %v10369_v14 = vld [vmem:[%s15059_s13 + $0x30] sm:$0xff]  ;;  %v10374_v55 = vld [vmem:[%s15059_s13 + $0x40] sm:$0xff] }
 0x73b   : > { %11342 = vmatprep.subr.mxu0 %v10349_v17  ;;  %11347 = vmatprep.subr.msk.mxu1 %vm6351_vm7, %v10357_v60 }
 0x73c   : > { %11343 = vmatpush3.msra.mxu0 %v10349_v17  ;;  %11348 = vmatpush3.msk.msra.mxu1 %vm6351_vm7, %v10357_v60  ;;  %v10380_v17 = vld [vmem:[%s15059_s13 + $0x58] sm:$0x3f] }
 0x73d   : > { %11345 = vmatmul.mubr.msk.f32.vlgmr.msra.gmra.mxu0 %vm6290_vm15, %v8716_v43  ;;  %11354 = vmatprep.subr.msk.mxu0 %vm6351_vm7, %v8835_v50 }
 0x73e   : > { %11355 = vmatpush3.msk.msra.mxu0 %vm6351_vm7, %v8835_v50  ;;  %11349 = vmatprep.subr.mxu1 %v10356_v18  ;;  %v10379_v50 = vld [vmem:[%s15059_s13 + $0x50] sm:$0xff] }
 0x73f   : > { %11356 = vmatprep.subr.mxu0 %v8834_v49  ;;  %11350 = vmatpush3.msra.mxu1 %v10356_v18  ;;  %v10385_v18 = vld [vmem:[%s15059_s13 + $0x68] sm:$0x3f] }
 0x740   : > { %11357 = vmatpush3.msra.mxu0 %v8834_v49  ;;  %11361 = vmatprep.subr.msk.mxu1 %vm6351_vm7, %v14928_v34 }
 0x741   : > { %11368 = vmatprep.subr.msk.mxu0 %vm6351_vm7, %v14935_v33 }
 0x7e7   : > { %v11290_v61 = vpop.f32.mrf.mxu0 }
 0x7e8   : > { %v11297_v26 = vpop.f32.mrf.mxu1 }
 0x7e9   : > { %v8097_v9 = vpop.f32.mrf.mxu0  ;;  %v8184_v2 = vadd.f32 %v11297_v26, %v11290_v61  ;;  %v10384_v61 = vld [vmem:[%s15059_s13 + $0x60] sm:$0xff] }
 0x7ea   : > { %v8178_v16 = vpop.f32.mrf.mxu1 }
 0x7eb   : > { %v8179_v29 = vadd.f32 %v8178_v16, %v8097_v9  ;;  %v10389_v16 = vld [vmem:[%s15059_s13 + $0x70] sm:$0xff] }
 0x7ed   : > { %v11304_v15 = vpop.f32.mrf.mxu0  ;;  %v11311_v62 = vpop.f32.mrf.mxu1 }
 0x7ee   : > { %v8274_v37 = vadd.f32 %v11304_v15, %v8184_v2  ;;  %v10395_v2 = vld [vmem:[%s15059_s13 + $0x88] sm:$0x3f] }
 0x7ef   : > { %v8264_v27 = vpop.f32.mrf.mxu0  ;;  %v8352_v56 = vpop.f32.mrf.mxu1 }
 0x7f0   : > { %v8362_v57 = vadd.f32 %v11311_v62, %v8274_v37  ;;  %v8273_v38 = vadd.f32 %v8264_v27, %v8179_v29  ;;  %v9465_v29 = vld [vmem:[#allocation8 + $0x13] sm:$0x1f]  ;;  %v10394_v62 = vld [vmem:[%s15059_s13 + $0x80] sm:$0xff] }
 0x7f2   : > { %v8361_v59 = vadd.f32 %v8352_v56, %v8273_v38  ;;  %v9670_v38 = vld [vmem:[#allocation21 + $0x8] sm:$0xf]  ;;  %v9669_v56 = vld [vmem:[#allocation21] sm:$0xff] }
 0x7f3   : > { %v11318_v31 = vpop.f32.mrf.mxu0  ;;  %v11325_v5 = vpop.f32.mrf.mxu1 }
 0x7f4   : > { %v8450_v48 = vadd.f32 %v11318_v31, %v8362_v57  ;;  %v9556_v57 = vld [vmem:[#allocation8 + $0x14] sm:$0x1f] }
 0x7f5   : > { %v8440_v11 = vpop.f32.mrf.mxu0  ;;  %v8528_v52 = vpop.f32.mrf.mxu1 }
 0x7f6   : > { %v8538_v3 = vadd.f32 %v11325_v5, %v8450_v48  ;;  %v8449_v35 = vadd.f32 %v8440_v11, %v8361_v59 }
 0x7f8   : > { %v8537_v8 = vadd.f32 %v8528_v52, %v8449_v35 }
 0x7f9   : > { %v11332_v6 = vpop.f32.mrf.mxu0  ;;  %v11339_v19 = vpop.f32.mrf.mxu1 }
 0x7fa   : > { %v8626_v63 = vadd.f32 %v11332_v6, %v8538_v3 }
 0x7fb   : > { %v8616_v47 = vpop.f32.mrf.mxu0  ;;  %v8704_v46 = vpop.f32.mrf.mxu1 }
 0x7fc   : > { %v8714_v30 = vadd.f32 %v11339_v19, %v8626_v63  ;;  %v8625_v51 = vadd.f32 %v8616_v47, %v8537_v8 }
 0x7fd   : > { %v11346_v44 = vpop.f32.mrf.mxu0 }
 0x7fe   : > { %v8713_v4 = vadd.f32 %v8704_v46, %v8625_v51  ;;  %v8802_v24 = vadd.f32 %v11346_v44, %v8714_v30 }
 0x7ff   : > { %v8792_v0 = vpop.f32.mrf.mxu0 }
 0x800   : > { %v8811_v20 = vadd.f32 %v10353_v12, %v8802_v24  ;;  %v8801_v13 = vadd.f32 %v8792_v0, %v8713_v4 }
 0x802   : > { %v8813_v25 = vmax.f32 %v8811_v20, 0.0  ;;  %v8810_v22 = vadd.f32 %v10353_v12, %v8801_v13 }
 0x804   : > { %v8819_v32 = vmul.f32 %v10354_v39, %v8813_v25  ;;  %v8812_v23 = vmax.f32 %v8810_v22, 0.0 }
 0x806   : > { %v8825_v41 = vadd.f32 %v10355_v21, %v8819_v32  ;;  %v8818_v28 = vmul.f32 %v10354_v39, %v8812_v23 }
 0x808   : > { %8831 = vst.msk [vmem:[#allocation8 + $0xe] sm:$0x1c] %vm8830_vm9, %v8825_v41  ;;  %v8824_v42 = vadd.f32 %v10355_v21, %v8818_v28  ;;  %v10399_v28 = vld [vmem:[#allocation20] ss:$0 sm:$0xff] }
 0x80a   : > { %8827 = vst.msk [vmem:[#allocation8 + $0x6] sm:$0x7] %vm8826_vm10, %v8824_v42 }
 0x80b   : > { %8829 = vst.msk [vmem:[#allocation8 + $0x6] sm:$0xe0] %vm8828_vm11, %v8824_v42 }
 0x80f   : > { %v9283_v26 = vld [vmem:[#allocation8 + $0xf] sm:$0x1f] }
 0x810   : > { %v9374_v37 = vld [vmem:[#allocation8 + $0x12] sm:$0x1f] }
 0x811   : > { %v8836_v54 = vld [vmem:[#allocation8 + $0x1] sm:$0xff] }
 0x812   : > { %v8832_v58 = vld [vmem:[#allocation8] sm:$0xff]  ;;  %v8837_v36 = vld [vmem:[#allocation8 + $0x9] sm:$0x1f]  ;;  %11351 = vmatprep.mubr.msk.f32.mxu1 %vm6296_vm6, %v8836_v54 }
 0x813   : > { %11358 = vmatprep.mubr.msk.f32.mxu0 %vm6296_vm6, %v8832_v58  ;;  %v8833_v45 = vld [vmem:[#allocation8 + $0x8] sm:$0x1f]  ;;  %11352 = vmatmul.mubr.msk.f32.vlgmr.msra.gmra.mxu1 %vm6296_vm6, %v8837_v36  ;;  %v9101_v43 = vld [vmem:[#allocation8 + $0xd] sm:$0x1f] }
 0x814   : > { %11359 = vmatmul.mubr.msk.f32.vlgmr.msra.gmra.mxu0 %vm6296_vm6, %v8833_v45  ;;  %v9009_v40 = vld [vmem:[#allocation8 + $0x2] sm:$0xff]  ;;  %11362 = vmatpush3.msk.msra.mxu1 %vm6351_vm7, %v14928_v34  ;;  %v9010_v53 = vld [vmem:[#allocation8 + $0xa] sm:$0x1f] }
 0x815   : > { %11365 = vmatprep.mubr.msk.f32.mxu1 %vm6296_vm6, %v9009_v40  ;;  %11363 = vmatprep.subr.mxu1 %v10364_v7  ;;  %v9100_v10 = vld [vmem:[#allocation8 + $0x5] sm:$0xff]  ;;  %v9192_v34 = vld [vmem:[#allocation8 + $0xe] sm:$0x1f] }
 0x816   : > { %11369 = vmatpush3.msk.msra.mxu0 %vm6351_vm7, %v14935_v33  ;;  %11372 = vmatprep.mubr.msk.f32.mxu0 %vm6296_vm6, %v9100_v10  ;;  %v9191_v60 = vld [vmem:[#allocation8 + $0x6] sm:$0xff]  ;;  %v10390_v33 = vld [vmem:[%s15059_s13 + $0x78] sm:$0x3f] }
 0x817   : > { %11364 = vmatpush3.msra.mxu1 %v10364_v7  ;;  %11370 = vmatprep.subr.mxu0 %v10369_v14  ;;  %v9282_v49 = vld [vmem:[#allocation8 + $0x7] sm:$0xff]  ;;  %v10400_v7 = vld [vmem:[#allocation20 + $0x1] ss:$0 sm:$0xff] }
 0x818   : > { %11375 = vmatprep.subr.msk.mxu1 %vm6351_vm7, %v10375_v1  ;;  %11371 = vmatpush3.msra.mxu0 %v10369_v14  ;;  %v9373_v9 = vld [vmem:[#allocation8 + $0xa] sm:$0xff] }
 0x819   : > { %11366 = vmatmul.mubr.msk.f32.vlgmr.msra.gmra.mxu1 %vm6296_vm6, %v9010_v53  ;;  %11373 = vmatmul.mubr.msk.f32.vlgmr.msra.gmra.mxu0 %vm6296_vm6, %v9101_v43  ;;  %v9464_v15 = vld [vmem:[#allocation8 + $0xb] sm:$0xff]  ;;  %v10401_v53 = vld [vmem:[#allocation20 + $0x2] ss:$0 sm:$0xff] }
 0x81a   : > { %11376 = vmatpush3.msk.msra.mxu1 %vm6351_vm7, %v10375_v1  ;;  %11382 = vmatprep.subr.msk.mxu0 %vm6351_vm7, %v10380_v17  ;;  %v9555_v27 = vld [vmem:[#allocation8 + $0xc] sm:$0xff] }
 0x81b   : > { %11377 = vmatprep.subr.mxu1 %v10374_v55  ;;  %11379 = vmatprep.mubr.msk.f32.mxu1 %vm6296_vm6, %v9191_v60 }
 0x81c   : > { %11383 = vmatpush3.msk.msra.mxu0 %vm6351_vm7, %v10380_v17  ;;  %11386 = vmatprep.mubr.msk.f32.mxu0 %vm6296_vm6, %v9282_v49 }
 0x81d   : > { %11378 = vmatpush3.msra.mxu1 %v10374_v55  ;;  %11384 = vmatprep.subr.mxu0 %v10379_v50 }
 0x81e   : > { %11389 = vmatprep.subr.msk.mxu1 %vm6351_vm7, %v10385_v18  ;;  %11385 = vmatpush3.msra.mxu0 %v10379_v50  ;;  %v10402_v50 = vld [vmem:[#allocation23] ss:$0 sm:$0xff] }
 0x81f   : > { %11380 = vmatmul.mubr.msk.f32.vlgmr.msra.gmra.mxu1 %vm6296_vm6, %v9192_v34  ;;  %11387 = vmatmul.mubr.msk.f32.vlgmr.msra.gmra.mxu0 %vm6296_vm6, %v9283_v26 }
 0x820   : > { %11390 = vmatpush3.msk.msra.mxu1 %vm6351_vm7, %v10385_v18  ;;  %11396 = vmatprep.subr.msk.mxu0 %vm6351_vm7, %v10390_v33 }
 0x821   : > { %11391 = vmatprep.subr.mxu1 %v10384_v61  ;;  %11393 = vmatprep.mubr.msk.f32.mxu1 %vm6296_vm6, %v9373_v9 }
 0x822   : > { %11397 = vmatpush3.msk.msra.mxu0 %vm6351_vm7, %v10390_v33  ;;  %11400 = vmatprep.mubr.msk.f32.mxu0 %vm6296_vm6, %v9464_v15 }
 0x823   : > { %11392 = vmatpush3.msra.mxu1 %v10384_v61  ;;  %11398 = vmatprep.subr.mxu0 %v10389_v16 }
 0x824   : > { %11403 = vmatprep.subr.msk.mxu1 %vm6351_vm7, %v10395_v2  ;;  %11399 = vmatpush3.msra.mxu0 %v10389_v16 }
 0x825   : > { %11394 = vmatmul.mubr.msk.f32.vlgmr.msra.gmra.mxu1 %vm6296_vm6, %v9374_v37  ;;  %11401 = vmatmul.mubr.msk.f32.vlgmr.msra.gmra.mxu0 %vm6296_vm6, %v9465_v29 }
 0x826   : > { %11404 = vmatpush3.msk.msra.mxu1 %vm6351_vm7, %v10395_v2  ;;  %11407 = vmatprep.mubr.msk.f32.mxu1 %vm6296_vm6, %v9555_v27  ;;  %vm9779_vm7 = vcmask 80896  }
 0x827   : > { %11405 = vmatprep.subr.mxu1 %v10394_v62  ;;  %11410 = vmatprep.subr.msk.mxu0 %vm5778_vm2, %v9670_v38 }
 0x828   : > { %11406 = vmatpush3.msra.mxu1 %v10394_v62  ;;  %11411 = vmatpush3.msk.msra.mxu0 %vm5778_vm2, %v9670_v38  ;;  %vm9770_vm2 = vcmask 75776  }
 0x829   : > { %11408 = vmatmul.mubr.msk.f32.vlgmr.msra.gmra.mxu1 %vm6296_vm6, %v9556_v57  ;;  %11412 = vmatprep.subr.mxu0 %v9669_v56 }
 0x82a   : > { %11413 = vmatpush3.msra.mxu0 %v9669_v56 }
 0x8d3   : > { %v11353_v59 = vpop.f32.mrf.mxu1 }
 0x8d4   : > { %v11360_v31 = vpop.f32.mrf.mxu0 }
 0x8d5   : > { %v8916_v48 = vpop.f32.mrf.mxu1  ;;  %v9006_v11 = vadd.f32 %v11360_v31, %v11353_v59 }
 0x8d6   : > { %v9000_v5 = vpop.f32.mrf.mxu0 }
 0x8d7   : > { %v9001_v35 = vadd.f32 %v9000_v5, %v8916_v48 }
 0x8d9   : > { %v11367_v3 = vpop.f32.mrf.mxu1  ;;  %v11374_v8 = vpop.f32.mrf.mxu0 }
 0x8da   : > { %v9099_v52 = vadd.f32 %v11367_v3, %v9006_v11 }
 0x8db   : > { %v9089_v6 = vpop.f32.mrf.mxu1  ;;  %v9180_v47 = vpop.f32.mrf.mxu0 }
 0x8dc   : > { %v9190_v63 = vadd.f32 %v11374_v8, %v9099_v52  ;;  %v9098_v19 = vadd.f32 %v9089_v6, %v9001_v35 }
 0x8de   : > { %v9189_v30 = vadd.f32 %v9180_v47, %v9098_v19 }
 0x8df   : > { %v11381_v51 = vpop.f32.mrf.mxu1  ;;  %v11388_v44 = vpop.f32.mrf.mxu0 }
 0x8e0   : > { %v9281_v46 = vadd.f32 %v11381_v51, %v9190_v63 }
 0x8e1   : > { %v9271_v12 = vpop.f32.mrf.mxu1  ;;  %v9362_v0 = vpop.f32.mrf.mxu0 }
 0x8e2   : > { %v9372_v4 = vadd.f32 %v11388_v44, %v9281_v46  ;;  %v9280_v24 = vadd.f32 %v9271_v12, %v9189_v30 }
 0x8e4   : > { %v9371_v20 = vadd.f32 %v9362_v0, %v9280_v24 }
 0x8e5   : > { %v11395_v13 = vpop.f32.mrf.mxu1  ;;  %v11402_v25 = vpop.f32.mrf.mxu0 }
 0x8e6   : > { %v9463_v39 = vadd.f32 %v11395_v13, %v9372_v4 }
 0x8e7   : > { %v9453_v22 = vpop.f32.mrf.mxu1  ;;  %v9544_v23 = vpop.f32.mrf.mxu0 }
 0x8e8   : > { %v9554_v21 = vadd.f32 %v11402_v25, %v9463_v39  ;;  %v9462_v32 = vadd.f32 %v9453_v22, %v9371_v20 }
 0x8e9   : > { %v11409_v41 = vpop.f32.mrf.mxu1 }
 0x8ea   : > { %v9553_v42 = vadd.f32 %v9544_v23, %v9462_v32  ;;  %v9645_v54 = vadd.f32 %v11409_v41, %v9554_v21 }
 0x8eb   : > { %v9635_v58 = vpop.f32.mrf.mxu1 }
 0x8ec   : > { %v9654_v36 = vadd.f32 %v10399_v28, %v9645_v54  ;;  %v9644_v45 = vadd.f32 %v9635_v58, %v9553_v42 }
 0x8ee   : > { %v9656_v40 = vmax.f32 %v9654_v36, 0.0  ;;  %v9653_v14 = vadd.f32 %v10399_v28, %v9644_v45 }
 0x8f0   : > { %v9655_v1 = vmax.f32 %v9653_v14, 0.0  ;;  %v9662_v10 = vmul.f32 %v10400_v7, %v9656_v40 }
 0x8f2   : > { %v9661_v17 = vmul.f32 %v10400_v7, %v9655_v1  ;;  %v9668_v43 = vadd.f32 %v10401_v53, %v9662_v10 }
 0x8f4   : > { %v9667_v55 = vadd.f32 %v10401_v53, %v9661_v17 }
 0x8f6   : > { %11414 = vmatprep.mubr.msk.f32.mxu0 %vm5730_vm3, %v9667_v55 }
 0x8f7   : > { %11415 = vmatmul.mubr.msk.f32.vlgmr.msra.gmra.mxu0 %vm5730_vm3, %v9668_v43  ;;  %vm9793_vm3 = vcmask 73728  }
 0x9b7   : > { %v11416_v60 = vpop.f32.mrf.mxu0 }
 0x9b8   : > { %v9759_v49 = vadd.f32 %v11416_v60, %v10402_v50 }
 0x9b9   : > { %v9753_v18 = vpop.f32.mrf.mxu0 }
 0x9ba   : > { %v9754_v34 = vadd.f32 %v10402_v50, %v9753_v18  ;;  %v9767_v61 = vrot.slane %v9759_v49, 2 }
 0x9bc   : > { %v9763_v33 = vrot.slane %v9754_v34, 5 }
 0x9be   : > { %v9765_v26 = vadd.f32 %v9763_v33, %v9754_v34 }
 0x9c0   : > { %v9769_v9 = vadd.f32 %v9767_v61, %v9765_v26 }
 0x9c2   : > { %v9771_v16 = vsel %vm9770_vm2, %v9769_v9, 0.0 }
 0x9c3   : > { %v9772_v2 = vrot.slane %v9771_v16, 4 }
 0x9c5   : > { %v9773_v15 = vadd.f32 %v9772_v2, %v9771_v16 }
 0x9c7   : > { %v9774_v29 = vrot.slane %v9773_v15, 2 }
 0x9c9   : > { %v9775_v37 = vadd.f32 %v9774_v29, %v9773_v15 }
 0x9cb   : > { %v9776_v62 = vrot.slane %v9775_v37, 1 }
 0x9cd   : > { %v9777_v27 = vadd.f32 %v9776_v62, %v9775_v37 }
 0x9cf   : > { %v9778_v57 = vmul.f32 0.11111111, %v9777_v27 }
 0x9d1   : > { %v9780_v38 = vsel %vm9779_vm7, %v9778_v57, -inf }
 0x9d2   : > { %9781 = vmax.xlane.f32.xlu0 %v9780_v38 }
 0xa5b   : > { %v9782_v56 = vpop.xlane.xlu0 %9781 }
 0xa5c   : > { %v9783_v59 = vsub.f32 %v9778_v57, %v9782_v56 }
 0xa5e   : > { %v9784_v31 = vmul.f32 1.442695, %v9783_v59 }
 0xa60   : > { %11554 = vpow2.f32 %v9784_v31 }
 0xa6d   : > { %v11555_v48 = vpop.eup %11554 }
 0xa6e   : > { %v9786_v5 = vsel %vm9779_vm7, %v11555_v48, 0.0 }
 0xa6f   : > { %9787 = vadd.xlane.f32.xlu1 %v9786_v5 }
 0xaf8   : > { %v9788_v11 = vpop.xlane.xlu1 %9787 }
 0xaf9   : > { %11556 = vlog2.f32 %v9788_v11 }
 0xb06   : > { %v11557_v3 = vpop.eup %11556 }
 0xb07   : > { %v9790_v35 = vmul.f32 0.6931472, %v11557_v3 }
 0xb09   : > { %v9791_v52 = vadd.f32 %v9790_v35, %v9782_v56 }
 0xb0b   : > { %v9792_v8 = vsub.f32 %v9778_v57, %v9791_v52 }
 0xb0d   : > { %9794 = vst.msk [vmem:[%s655_s12] sm:$0x1] %vm9793_vm3, %v9792_v8 }
 0xb0e   : > { %11832 = shalt.err (!%p11829_p6)
}
 0xb0f   : > { %s11833_s30 = scalar_lea.hbm %s9806_s20, 16  ;;  %s11837_s22 = scalar_lea.hbm %s15063_s17, 32 }
 0xb10   : > { %p11834_p12 = scmp.ne.s32.totalorder %s9806_s20, %s11833_s30  ;;  %p11838_p8 = scmp.lt.s32.totalorder %s9806_s20, %s15063_s17 }
 0xb11   : > { %p11839_p11 = scmp.lt.s32.totalorder %s11837_s22, %s11833_s30 }
 0xb12   : > { %p11835_p10 = pnand %p11834_p12, %p15275_p2 }
 0xb13   : > { %p11840_p0 = por %p11839_p11, %p11838_p8 }
 0xb14   : > { %p11836_p7 = pneg %p11835_p10 }
 0xb16   : > { %p11841_p1 = pnand %p11840_p0, %p11836_p7 }
 0xb18   : > { %11844 = shalt.err (!%p11841_p1)
}
 0xb19   : > { %11453 = dma.vmem_to_hbm [thread:$0]  (%p15275_p2), %s9809_s23, 16, %s9806_s20, %s9796_s19  }
 0xb1a PF: > { %s15276_s26 = sld [smem:[#allocation31_spill]]  ;;  %p11505_p3 = scmp.ge.s32.totalorder %s11899_s27, 2 }
 0xb1b   : > { %s15277_s0 = sld [smem:[#allocation35_spill]] }
 0xb20   : > { %s9820_s21 = sand.u32 1, %s15276_s26  }
 0xb21   : > { %p15278_p9 = scmp.ne.s32.totalorder %s15277_s0, 0  ;;  %s9821_s18 = scalar_lea.sflag [#allocation11], %s9820_s21 }
 0xb23   : > { %p11484_p13 = pnand %p11505_p3, %p15278_p9 }
 0xb25   : > { %p11485_p4 = pneg %p11484_p13 }
 0xb27   : > { %11882 = dma.done.wait (%p11485_p4), %s9821_s18, 16  }
 0xb28   : > { %11884 = vsyncadd (%p11485_p4), %s9821_s18, 4294967280  ;;  %s15279_s27 = sld [smem:[#allocation33_spill]]  ;;  %s15282_s24 = smov %s11891_s25 }
 0xb29   : > { %s15280_s28 = sld [smem:[#allocation32_spill]] }
 0xb2a   : > { %s15281_s26 = sld [smem:[#allocation34_spill]] }
 0xb2e   : > { %p32_p5 = scmp.ge.s32.totalorder %s15279_s27, 4  }
 0xb2f   : > { %s15283_s25 = smov %s15280_s28 }
 0xb30   :  { %34 = sbr.rel (!%p32_p5) target bundleno = 14 (0xe), region = 242 }
 0xb35   :  { %9825 = vsyncpa [#allocation10], 1 }
 0xb36   :  { %9827 = vsyncpa [#allocation10 + $0x1], 1 }
 0xb37   :  { %9828 = vsyncpa [#allocation13], 1 }
 0xb38   :  { %9829 = vsyncpa [#allocation16], 1 }
 0xb39   :  { %9830 = vsyncpa [#allocation19], 1 }
 0xb3a   :  { %9831 = vsyncpa [#allocation22], 1 }
 0xb3b   :  { %9832 = vsyncpa [#allocation11], 1 }
 0xb3c   :  { %9834 = vsyncpa [#allocation11 + $0x1], 1 }

</bundles_post_ra>
